<compile_context>
chip_gen: v7x
topology: tpu7x:2x2x1
jax: 0.10.0
libtpu: 0.0.40
codegen_flags: <defaults>
</compile_context>

<pallas_src>
import math
from functools import partial

import jax
import jax.numpy as jnp
from jax import lax
from jax.experimental import pallas as pl
from jax.experimental.pallas import tpu as pltpu

BN_EPS = 1e-5
BN_SCALE = 1.0 / math.sqrt(1.0 + BN_EPS)  # eval-mode BN == per-channel scale


def _round_up(v, m):
    return (v + m - 1) // m * m


def _pick_tm_base():
    """256-row M tiles on 256-wide MXU chips (v6e/v7x), 128 on older chips."""
    try:
        kind = jax.devices()[0].device_kind.lower()
    except Exception:
        return 128
    if any(v in kind for v in ("v2", "v3", "v4", "v5")):
        return 128
    return 256


# ----------------------------------------------------------------------------
# Pallas kernel 1: matmul with full-K / full-N blocks and fused epilogue
#   y = [relu]( x @ w + b [+ addend] )      (BN scale pre-folded into w and b)
# ----------------------------------------------------------------------------
def _make_mm_kernel(relu, has_add):
    def kernel(x_ref, w_ref, b_ref, *rest):
        if has_add:
            a_ref, o_ref = rest
        else:
            (o_ref,) = rest
        y = jnp.dot(x_ref[...], w_ref[...], preferred_element_type=jnp.float32)
        y = y + b_ref[...]
        if has_add:
            y = y + a_ref[...]
        if relu:
            y = jnp.maximum(y, 0.0)
        o_ref[...] = y
    return kernel


def matmul_fused(cols, wp, bp, addend=None, relu=False, tm_base=128):
    """cols: (M, K) f32; wp: (Kp, Np) bf16 (padded, scale-folded);
    bp: (1, Np) f32.  Returns the PADDED (Mp, Np) f32 result (caller slices)."""
    M, K = cols.shape
    Kp, Np = wp.shape
    nt = -(-M // tm_base)                      # number of M tiles
    tm = _round_up(-(-M // nt), 16)            # tile rows (mult of 16 for bf16)
    Mp = nt * tm
    x = jnp.pad(cols.astype(jnp.bfloat16), ((0, Mp - M), (0, Kp - K)))

    args = [x, wp, bp]
    in_specs = [
        pl.BlockSpec((tm, Kp), lambda i: (i, 0)),
        pl.BlockSpec((Kp, Np), lambda i: (0, 0)),   # weight resident across tiles
        pl.BlockSpec((1, Np), lambda i: (0, 0)),
    ]
    if addend is not None:                          # already padded (Mp, Np)
        args.append(addend)
        in_specs.append(pl.BlockSpec((tm, Np), lambda i: (i, 0)))

    return pl.pallas_call(
        _make_mm_kernel(relu, addend is not None),
        out_shape=jax.ShapeDtypeStruct((Mp, Np), jnp.float32),
        grid=(nt,),
        in_specs=in_specs,
        out_specs=pl.BlockSpec((tm, Np), lambda i: (i, 0)),
        compiler_params=pltpu.CompilerParams(dimension_semantics=("parallel",)),
    )(*args)


# ----------------------------------------------------------------------------
# Pallas kernel 2: fused container 1x1 conv + mean over H + log_softmax.
# ----------------------------------------------------------------------------
def _head_kernel(x_ref, w_ref, b_ref, o_ref, *, inv_h):
    xs = x_ref[0]
    for h in range(1, x_ref.shape[0]):
        xs = xs + x_ref[h]
    y = jnp.dot(xs * inv_h, w_ref[...], preferred_element_type=jnp.float32)
    y = y + b_ref[...]                      # padded classes carry -1e30 bias
    mx = jnp.max(y, axis=-1, keepdims=True)
    z = y - mx
    lse = jnp.log(jnp.sum(jnp.exp(z), axis=-1, keepdims=True))
    o_ref[...] = z - lse


def head_fused(xh, p, num_classes):
    # xh: (H, R, K) f32 with rows ordered (n, w). Returns (R, num_classes).
    Hd, R, K = xh.shape
    wp, bp = p["w"], p["b"]
    Kp, Np = wp.shape
    Rp = _round_up(R, 8)
    xhp = jnp.pad(xh, ((0, 0), (0, Rp - R), (0, Kp - K)))
    out = pl.pallas_call(
        partial(_head_kernel, inv_h=1.0 / Hd),
        out_shape=jax.ShapeDtypeStruct((Rp, Np), jnp.float32),
    )(xhp, wp, bp)
    return out[:R, :num_classes]


# ----------------------------------------------------------------------------
# Conv2d via im2col (one XLA patch-extraction op) + Pallas matmul.  NHWC glue.
# TODO(synk): whole small-basic-blocks are not yet fused into one VMEM-resident
# pallas_call; each conv is still its own call.
# ----------------------------------------------------------------------------
def conv2d_pallas(x, p, ksize=(1, 1), padding=(0, 0), cout=None, relu=False,
                  addend2d=None, return_2d=False, tm_base=128):
    N, H, W, C = x.shape
    kh, kw = ksize
    ph, pw = padding
    Ho = H + 2 * ph - kh + 1
    Wo = W + 2 * pw - kw + 1
    if (kh, kw, ph, pw) == (1, 1, 0, 0):
        cols = x.reshape(N * H * W, C)
    else:
        cols = lax.conv_general_dilated_patches(
            x, (kh, kw), (1, 1), [(ph, ph), (pw, pw)],
            dimension_numbers=("NHWC", "HWIO", "NHWC"))
        cols = cols.reshape(N * Ho * Wo, C * kh * kw)   # (c, kh, kw) ordering
    out2d = matmul_fused(cols, p["w"], p["b"], addend=addend2d, relu=relu,
                         tm_base=tm_base)
    if return_2d:
        return out2d, (N, Ho, Wo)
    return out2d[:N * Ho * Wo, :cout].reshape(N, Ho, Wo, cout)


# TODO(synk): pooling runs as single XLA reduce_window ops, not Pallas kernels.
def maxpool3d_133(x, sc, sh, sw):
    # nn.MaxPool3d((1,3,3), (sc,sh,sw)) on a 4-D NCHW tensor == channel
    # subsample (stride sc) + 3x3 spatial max; x is NHWC here.
    x = x[..., ::sc]
    return lax.reduce_window(x, jnp.array(-jnp.inf, dtype=x.dtype), lax.max,
                             (1, 3, 3, 1), (1, sh, sw, 1), "VALID")


def avgpool2d(x, kh, kw, sh, sw):
    s = lax.reduce_window(x, jnp.array(0.0, dtype=x.dtype), lax.add,
                          (1, kh, kw, 1), (1, sh, sw, 1), "VALID")
    return s * (1.0 / (kh * kw))


# ----------------------------------------------------------------------------
# Model
# ----------------------------------------------------------------------------
def small_basic_block_v2(x, p, ch_out, tm_base):
    # relu(block(x) + shortcut(x)) followed by the backbone BN+ReLU; the BN
    # scale is pre-folded into c4/sc (valid because scale > 0: relu∘scale∘relu
    # == relu∘scale, and scale distributes over the sum).
    m = ch_out // 4
    y = conv2d_pallas(x, p["c1"], (1, 1), cout=m, relu=True, tm_base=tm_base)
    y = conv2d_pallas(y, p["c2"], (3, 1), (1, 0), cout=m, relu=True, tm_base=tm_base)
    y = conv2d_pallas(y, p["c3"], (1, 3), (0, 1), cout=m, relu=True, tm_base=tm_base)
    sc2d, _ = conv2d_pallas(x, p["sc"], (1, 1), tm_base=tm_base, return_2d=True)
    out2d, (N, Ho, Wo) = conv2d_pallas(y, p["c4"], (1, 1), relu=True,
                                       addend2d=sc2d, tm_base=tm_base,
                                       return_2d=True)
    return out2d[:N * Ho * Wo, :ch_out].reshape(N, Ho, Wo, ch_out)


def lprnet_forward(params, x, *, num_classes, tm_base):
    x = jnp.transpose(x, (0, 2, 3, 1))                       # NCHW -> NHWC
    keep = []
    x = conv2d_pallas(x, params["conv0"], (3, 3), cout=64, relu=True,
                      tm_base=tm_base)                       # layers 0-2
    keep.append(x)
    x = maxpool3d_133(x, 1, 1, 1)                            # layer 3
    x = small_basic_block_v2(x, params["block1"], 128, tm_base)   # 4-6
    keep.append(x)
    x = maxpool3d_133(x, 2, 1, 2)                            # layer 7
    x = small_basic_block_v2(x, params["block2"], 256, tm_base)   # 8-10
    x = small_basic_block_v2(x, params["block3"], 256, tm_base)   # 11-13
    keep.append(x)
    x = maxpool3d_133(x, 4, 1, 2)                            # layer 14
    # layer 15: Dropout (identity in eval)
    x = conv2d_pallas(x, params["conv16"], (1, 4), cout=256, relu=True,
                      tm_base=tm_base)                       # layers 16-18
    # layer 19: Dropout (identity in eval)
    x = conv2d_pallas(x, params["conv20"], (13, 1), cout=num_classes,
                      relu=True, tm_base=tm_base)            # layers 20-22
    keep.append(x)

    gc = []
    for i, f in enumerate(keep):
        if i in (0, 1):
            f = avgpool2d(f, 5, 5, 5, 5)
        elif i == 2:
            f = avgpool2d(f, 4, 10, 4, 2)
        f_mean = jnp.mean(f * f)          # scalar mean of squares, whole tensor
        gc.append(f / f_mean)
    g = jnp.concatenate(gc, axis=-1)      # channel concat (NHWC)

    N, Ho, Wo, C = g.shape
    xh = jnp.transpose(g, (1, 0, 2, 3)).reshape(Ho, N * Wo, C)
    logits2d = head_fused(xh, params["head"], num_classes)   # (N*Wo, classes)
    return logits2d.reshape(N, Wo, num_classes)              # == torch (B, 18, C)


# ----------------------------------------------------------------------------
# Parameters: PyTorch-style raw init + one-time prep (padding, transpose,
# BN-scale fold, bf16 cast) hoisted OUT of the jitted forward.
# ----------------------------------------------------------------------------
def init_raw_params(key, num_classes, in_channels=3):
    keys = iter(jax.random.split(key, 64))

    def conv(c_in, c_out, kh, kw):
        fan_out = c_out * kh * kw
        std = math.sqrt(2.0 / fan_out)          # kaiming_normal fan_out, relu
        w = std * jax.random.normal(next(keys), (c_out, c_in, kh, kw), jnp.float32)
        return {"w": w, "b": jnp.zeros((c_out,), jnp.float32)}

    def block(c_in, c_out):
        m = c_out // 4
        return {"c1": conv(c_in, m, 1, 1), "c2": conv(m, m, 3, 1),
                "c3": conv(m, m, 1, 3), "c4": conv(m, c_out, 1, 1),
                "sc": conv(c_in, c_out, 1, 1)}

    return {
        "conv0": conv(in_channels, 64, 3, 3),
        "block1": block(64, 128),
        "block2": block(64, 256),
        "block3": block(256, 256),
        "conv16": conv(64, 256, 1, 4),
        "conv20": conv(256, num_classes, 13, 1),
        "container": conv(448 + num_classes, num_classes, 1, 1),
    }


def _prep_conv(c, scale=1.0):
    # scale may be a scalar (fresh BN stats) or a per-channel vector (trained).
    w, b = c["w"], c["b"]
    cout, cin, kh, kw = w.shape
    K = cin * kh * kw
    Kp = _round_up(K, 16)
    Np = _round_up(cout, 128)
    s = jnp.asarray(scale, jnp.float32).reshape(-1, 1)
    wmat = (w.reshape(cout, K) * s).T
    wmat = jnp.pad(wmat, ((0, Kp - K), (0, Np - cout))).astype(jnp.bfloat16)
    bvec = jnp.pad((b * s[:, 0]).reshape(1, cout), ((0, 0), (0, Np - cout)))
    return {"w": wmat, "b": bvec.astype(jnp.float32)}


def _prep_head(c, num_classes):
    w, b = c["w"], c["b"]
    cout, cin, _, _ = w.shape
    Kp = _round_up(cin, 16)
    Np = _round_up(cout, 128)
    wmat = jnp.pad(w.reshape(cout, cin).T, ((0, Kp - cin), (0, Np - cout)))
    bvec = jnp.full((1, Np), -1e30, jnp.float32).at[0, :cout].set(b)
    return {"w": wmat.astype(jnp.float32), "b": bvec}


def prepare_params(raw, num_classes):
    p = {"conv0": _prep_conv(raw["conv0"], BN_SCALE),
         "conv16": _prep_conv(raw["conv16"], BN_SCALE),
         "conv20": _prep_conv(raw["conv20"], BN_SCALE),
         "head": _prep_head(raw["container"], num_classes)}
    for name in ("block1", "block2", "block3"):
        rb = raw[name]
        p[name] = {"c1": _prep_conv(rb["c1"]), "c2": _prep_conv(rb["c2"]),
                   "c3": _prep_conv(rb["c3"]),
                   "c4": _prep_conv(rb["c4"], BN_SCALE),
                   "sc": _prep_conv(rb["sc"], BN_SCALE)}
    return p


if __name__ == "__main__":
    num_classes = 16
    key = jax.random.PRNGKey(0)
    pkey, xkey = jax.random.split(key)
    raw = init_raw_params(pkey, num_classes)
    params = prepare_params(raw, num_classes)      # one-time, outside the jit
    # smallest geometry compatible with the LPRNet backbone (24x94 plate)
    x = jax.random.normal(xkey, (2, 3, 24, 94), jnp.float32)

    fwd = jax.jit(partial(lprnet_forward, num_classes=num_classes,
                          tm_base=_pick_tm_base()))
    logits = fwd(params, x)
    jax.block_until_ready(logits)
    assert logits.shape == (2, 18, num_classes), logits.shape
    assert bool(jnp.all(jnp.isfinite(logits)))
    print("KERNEL_OK")
</pallas_src>

<mosaic_0001>
module attributes {stable_mosaic.version = 11 : i64} {
  func.func @kernel(%arg0: i32, %arg1: memref<256x32xbf16, #tpu.memory_space<vmem>>, %arg2: memref<32x128xbf16, #tpu.memory_space<vmem>>, %arg3: memref<1x128xf32, #tpu.memory_space<vmem>>, %arg4: memref<256x128xf32, #tpu.memory_space<vmem>>) attributes {dimension_semantics = [#tpu.dimension_semantics<parallel>], iteration_bounds = array<i64: 16>, scalar_prefetch = 0 : i64, scratch_operands = 0 : i64, tpu.core_type = #tpu.core_type<tc>, window_params = [{transform_indices = @transform_0, window_bounds = array<i64: 256, 32>}, {pipeline_mode = #tpu.pipeline_mode<synchronous>, transform_indices = @transform_1, window_bounds = array<i64: 32, 128>}, {pipeline_mode = #tpu.pipeline_mode<synchronous>, transform_indices = @transform_2, window_bounds = array<i64: 1, 128>}, {transform_indices = @transform_3, window_bounds = array<i64: 256, 128>}]} {
    %c0 = arith.constant 0 : index
    %c0_0 = arith.constant 0 : index
    %0 = vector.load %arg1[%c0, %c0_0] : memref<256x32xbf16, #tpu.memory_space<vmem>>, vector<256x32xbf16>
    %c0_1 = arith.constant 0 : index
    %c0_2 = arith.constant 0 : index
    %1 = vector.load %arg2[%c0_1, %c0_2] : memref<32x128xbf16, #tpu.memory_space<vmem>>, vector<32x128xbf16>
    %cst = arith.constant dense<0.000000e+00> : vector<256x128xf32>
    %2 = tpu.matmul %0, %1, %cst {dimension_numbers = #tpu.dot_dimension_numbers<[1], [0], [0], [1], [0, 0, 1, 1], [], []>} : vector<256x32xbf16>, vector<32x128xbf16>, vector<256x128xf32> -> vector<256x128xf32>
    %c0_3 = arith.constant 0 : index
    %c0_4 = arith.constant 0 : index
    %3 = vector.load %arg3[%c0_3, %c0_4] : memref<1x128xf32, #tpu.memory_space<vmem>>, vector<1x128xf32>
    %4 = vector.broadcast %3 : vector<1x128xf32> to vector<256x128xf32>
    %5 = arith.addf %2, %4 : vector<256x128xf32>
    %cst_5 = arith.constant 0.000000e+00 : f32
    %6 = vector.broadcast %cst_5 : f32 to vector<256x128xf32>
    %7 = arith.maximumf %5, %6 : vector<256x128xf32>
    %c0_6 = arith.constant 0 : index
    %c0_7 = arith.constant 0 : index
    %8 = vector.load %arg4[%c0_6, %c0_7] : memref<256x128xf32, #tpu.memory_space<vmem>>, vector<256x128xf32>
    tpu.vector_store %arg4[%c0_6, %c0_7], %7 {strides = array<i32>} : memref<256x128xf32, #tpu.memory_space<vmem>>, vector<256x128xf32>,
    return
  }
  func.func @transform_0(%arg0: i32) -> (i32, i32) {
    %c0_i32 = arith.constant 0 : i32
    %c0_i32_0 = arith.constant 0 : i32
    return %arg0, %c0_i32 : i32, i32
  }
  func.func @transform_1(%arg0: i32) -> (i32, i32) {
    %c0_i32 = arith.constant 0 : i32
    %c0_i32_0 = arith.constant 0 : i32
    %c0_i32_1 = arith.constant 0 : i32
    return %c0_i32, %c0_i32_0 : i32, i32
  }
  func.func @transform_2(%arg0: i32) -> (i32, i32) {
    %c0_i32 = arith.constant 0 : i32
    %c0_i32_0 = arith.constant 0 : i32
    %c0_i32_1 = arith.constant 0 : i32
    return %c0_i32, %c0_i32_0 : i32, i32
  }
  func.func @transform_3(%arg0: i32) -> (i32, i32) {
    %c0_i32 = arith.constant 0 : i32
    %c0_i32_0 = arith.constant 0 : i32
    return %arg0, %c0_i32 : i32, i32
  }
}

module attributes {stable_mosaic.version = 11 : i64} {
  func.func @kernel(%arg0: i32, %arg1: memref<240x64xbf16, #tpu.memory_space<vmem>>, %arg2: memref<64x128xbf16, #tpu.memory_space<vmem>>, %arg3: memref<1x128xf32, #tpu.memory_space<vmem>>, %arg4: memref<240x128xf32, #tpu.memory_space<vmem>>) attributes {dimension_semantics = [#tpu.dimension_semantics<parallel>], iteration_bounds = array<i64: 15>, scalar_prefetch = 0 : i64, scratch_operands = 0 : i64, tpu.core_type = #tpu.core_type<tc>, window_params = [{transform_indices = @transform_0, window_bounds = array<i64: 240, 64>}, {pipeline_mode = #tpu.pipeline_mode<synchronous>, transform_indices = @transform_1, window_bounds = array<i64: 64, 128>}, {pipeline_mode = #tpu.pipeline_mode<synchronous>, transform_indices = @transform_2, window_bounds = array<i64: 1, 128>}, {transform_indices = @transform_3, window_bounds = array<i64: 240, 128>}]} {
    %c0 = arith.constant 0 : index
    %c0_0 = arith.constant 0 : index
    %0 = vector.load %arg1[%c0, %c0_0] : memref<240x64xbf16, #tpu.memory_space<vmem>>, vector<240x64xbf16>
    %c0_1 = arith.constant 0 : index
    %c0_2 = arith.constant 0 : index
    %1 = vector.load %arg2[%c0_1, %c0_2] : memref<64x128xbf16, #tpu.memory_space<vmem>>, vector<64x128xbf16>
    %cst = arith.constant dense<0.000000e+00> : vector<240x128xf32>
    %2 = tpu.matmul %0, %1, %cst {dimension_numbers = #tpu.dot_dimension_numbers<[1], [0], [0], [1], [0, 0, 1, 1], [], []>} : vector<240x64xbf16>, vector<64x128xbf16>, vector<240x128xf32> -> vector<240x128xf32>
    %c0_3 = arith.constant 0 : index
    %c0_4 = arith.constant 0 : index
    %3 = vector.load %arg3[%c0_3, %c0_4] : memref<1x128xf32, #tpu.memory_space<vmem>>, vector<1x128xf32>
    %4 = vector.broadcast %3 : vector<1x128xf32> to vector<240x128xf32>
    %5 = arith.addf %2, %4 : vector<240x128xf32>
    %c0_5 = arith.constant 0 : index
    %c0_6 = arith.constant 0 : index
    %6 = vector.load %arg4[%c0_5, %c0_6] : memref<240x128xf32, #tpu.memory_space<vmem>>, vector<240x128xf32>
    tpu.vector_store %arg4[%c0_5, %c0_6], %5 {strides = array<i32>} : memref<240x128xf32, #tpu.memory_space<vmem>>, vector<240x128xf32>,
    return
  }
  func.func @transform_0(%arg0: i32) -> (i32, i32) {
    %c0_i32 = arith.constant 0 : i32
    %c0_i32_0 = arith.constant 0 : i32
    return %arg0, %c0_i32 : i32, i32
  }
  func.func @transform_1(%arg0: i32) -> (i32, i32) {
    %c0_i32 = arith.constant 0 : i32
    %c0_i32_0 = arith.constant 0 : i32
    %c0_i32_1 = arith.constant 0 : i32
    return %c0_i32, %c0_i32_0 : i32, i32
  }
  func.func @transform_2(%arg0: i32) -> (i32, i32) {
    %c0_i32 = arith.constant 0 : i32
    %c0_i32_0 = arith.constant 0 : i32
    %c0_i32_1 = arith.constant 0 : i32
    return %c0_i32, %c0_i32_0 : i32, i32
  }
  func.func @transform_3(%arg0: i32) -> (i32, i32) {
    %c0_i32 = arith.constant 0 : i32
    %c0_i32_0 = arith.constant 0 : i32
    return %arg0, %c0_i32 : i32, i32
  }
}

module attributes {stable_mosaic.version = 11 : i64} {
  func.func @kernel(%arg0: i32, %arg1: memref<240x64xbf16, #tpu.memory_space<vmem>>, %arg2: memref<64x128xbf16, #tpu.memory_space<vmem>>, %arg3: memref<1x128xf32, #tpu.memory_space<vmem>>, %arg4: memref<240x128xf32, #tpu.memory_space<vmem>>) attributes {dimension_semantics = [#tpu.dimension_semantics<parallel>], iteration_bounds = array<i64: 15>, scalar_prefetch = 0 : i64, scratch_operands = 0 : i64, tpu.core_type = #tpu.core_type<tc>, window_params = [{transform_indices = @transform_0, window_bounds = array<i64: 240, 64>}, {pipeline_mode = #tpu.pipeline_mode<synchronous>, transform_indices = @transform_1, window_bounds = array<i64: 64, 128>}, {pipeline_mode = #tpu.pipeline_mode<synchronous>, transform_indices = @transform_2, window_bounds = array<i64: 1, 128>}, {transform_indices = @transform_3, window_bounds = array<i64: 240, 128>}]} {
    %c0 = arith.constant 0 : index
    %c0_0 = arith.constant 0 : index
    %0 = vector.load %arg1[%c0, %c0_0] : memref<240x64xbf16, #tpu.memory_space<vmem>>, vector<240x64xbf16>
    %c0_1 = arith.constant 0 : index
    %c0_2 = arith.constant 0 : index
    %1 = vector.load %arg2[%c0_1, %c0_2] : memref<64x128xbf16, #tpu.memory_space<vmem>>, vector<64x128xbf16>
    %cst = arith.constant dense<0.000000e+00> : vector<240x128xf32>
    %2 = tpu.matmul %0, %1, %cst {dimension_numbers = #tpu.dot_dimension_numbers<[1], [0], [0], [1], [0, 0, 1, 1], [], []>} : vector<240x64xbf16>, vector<64x128xbf16>, vector<240x128xf32> -> vector<240x128xf32>
    %c0_3 = arith.constant 0 : index
    %c0_4 = arith.constant 0 : index
    %3 = vector.load %arg3[%c0_3, %c0_4] : memref<1x128xf32, #tpu.memory_space<vmem>>, vector<1x128xf32>
    %4 = vector.broadcast %3 : vector<1x128xf32> to vector<240x128xf32>
    %5 = arith.addf %2, %4 : vector<240x128xf32>
    %cst_5 = arith.constant 0.000000e+00 : f32
    %6 = vector.broadcast %cst_5 : f32 to vector<240x128xf32>
    %7 = arith.maximumf %5, %6 : vector<240x128xf32>
    %c0_6 = arith.constant 0 : index
    %c0_7 = arith.constant 0 : index
    %8 = vector.load %arg4[%c0_6, %c0_7] : memref<240x128xf32, #tpu.memory_space<vmem>>, vector<240x128xf32>
    tpu.vector_store %arg4[%c0_6, %c0_7], %7 {strides = array<i32>} : memref<240x128xf32, #tpu.memory_space<vmem>>, vector<240x128xf32>,
    return
  }
  func.func @transform_0(%arg0: i32) -> (i32, i32) {
    %c0_i32 = arith.constant 0 : i32
    %c0_i32_0 = arith.constant 0 : i32
    return %arg0, %c0_i32 : i32, i32
  }
  func.func @transform_1(%arg0: i32) -> (i32, i32) {
    %c0_i32 = arith.constant 0 : i32
    %c0_i32_0 = arith.constant 0 : i32
    %c0_i32_1 = arith.constant 0 : i32
    return %c0_i32, %c0_i32_0 : i32, i32
  }
  func.func @transform_2(%arg0: i32) -> (i32, i32) {
    %c0_i32 = arith.constant 0 : i32
    %c0_i32_0 = arith.constant 0 : i32
    %c0_i32_1 = arith.constant 0 : i32
    return %c0_i32, %c0_i32_0 : i32, i32
  }
  func.func @transform_3(%arg0: i32) -> (i32, i32) {
    %c0_i32 = arith.constant 0 : i32
    %c0_i32_0 = arith.constant 0 : i32
    return %arg0, %c0_i32 : i32, i32
  }
}

module attributes {stable_mosaic.version = 11 : i64} {
  func.func @kernel(%arg0: i32, %arg1: memref<240x96xbf16, #tpu.memory_space<vmem>>, %arg2: memref<96x128xbf16, #tpu.memory_space<vmem>>, %arg3: memref<1x128xf32, #tpu.memory_space<vmem>>, %arg4: memref<240x128xf32, #tpu.memory_space<vmem>>) attributes {dimension_semantics = [#tpu.dimension_semantics<parallel>], iteration_bounds = array<i64: 15>, scalar_prefetch = 0 : i64, scratch_operands = 0 : i64, tpu.core_type = #tpu.core_type<tc>, window_params = [{transform_indices = @transform_0, window_bounds = array<i64: 240, 96>}, {pipeline_mode = #tpu.pipeline_mode<synchronous>, transform_indices = @transform_1, window_bounds = array<i64: 96, 128>}, {pipeline_mode = #tpu.pipeline_mode<synchronous>, transform_indices = @transform_2, window_bounds = array<i64: 1, 128>}, {transform_indices = @transform_3, window_bounds = array<i64: 240, 128>}]} {
    %c0 = arith.constant 0 : index
    %c0_0 = arith.constant 0 : index
    %0 = vector.load %arg1[%c0, %c0_0] : memref<240x96xbf16, #tpu.memory_space<vmem>>, vector<240x96xbf16>
    %c0_1 = arith.constant 0 : index
    %c0_2 = arith.constant 0 : index
    %1 = vector.load %arg2[%c0_1, %c0_2] : memref<96x128xbf16, #tpu.memory_space<vmem>>, vector<96x128xbf16>
    %cst = arith.constant dense<0.000000e+00> : vector<240x128xf32>
    %2 = tpu.matmul %0, %1, %cst {dimension_numbers = #tpu.dot_dimension_numbers<[1], [0], [0], [1], [0, 0, 1, 1], [], []>} : vector<240x96xbf16>, vector<96x128xbf16>, vector<240x128xf32> -> vector<240x128xf32>
    %c0_3 = arith.constant 0 : index
    %c0_4 = arith.constant 0 : index
    %3 = vector.load %arg3[%c0_3, %c0_4] : memref<1x128xf32, #tpu.memory_space<vmem>>, vector<1x128xf32>
    %4 = vector.broadcast %3 : vector<1x128xf32> to vector<240x128xf32>
    %5 = arith.addf %2, %4 : vector<240x128xf32>
    %cst_5 = arith.constant 0.000000e+00 : f32
    %6 = vector.broadcast %cst_5 : f32 to vector<240x128xf32>
    %7 = arith.maximumf %5, %6 : vector<240x128xf32>
    %c0_6 = arith.constant 0 : index
    %c0_7 = arith.constant 0 : index
    %8 = vector.load %arg4[%c0_6, %c0_7] : memref<240x128xf32, #tpu.memory_space<vmem>>, vector<240x128xf32>
    tpu.vector_store %arg4[%c0_6, %c0_7], %7 {strides = array<i32>} : memref<240x128xf32, #tpu.memory_space<vmem>>, vector<240x128xf32>,
    return
  }
  func.func @transform_0(%arg0: i32) -> (i32, i32) {
    %c0_i32 = arith.constant 0 : i32
    %c0_i32_0 = arith.constant 0 : i32
    return %arg0, %c0_i32 : i32, i32
  }
  func.func @transform_1(%arg0: i32) -> (i32, i32) {
    %c0_i32 = arith.constant 0 : i32
    %c0_i32_0 = arith.constant 0 : i32
    %c0_i32_1 = arith.constant 0 : i32
    return %c0_i32, %c0_i32_0 : i32, i32
  }
  func.func @transform_2(%arg0: i32) -> (i32, i32) {
    %c0_i32 = arith.constant 0 : i32
    %c0_i32_0 = arith.constant 0 : i32
    %c0_i32_1 = arith.constant 0 : i32
    return %c0_i32, %c0_i32_0 : i32, i32
  }
  func.func @transform_3(%arg0: i32) -> (i32, i32) {
    %c0_i32 = arith.constant 0 : i32
    %c0_i32_0 = arith.constant 0 : i32
    return %arg0, %c0_i32 : i32, i32
  }
}

module attributes {stable_mosaic.version = 11 : i64} {
  func.func @kernel(%arg0: i32, %arg1: memref<240x32xbf16, #tpu.memory_space<vmem>>, %arg2: memref<32x128xbf16, #tpu.memory_space<vmem>>, %arg3: memref<1x128xf32, #tpu.memory_space<vmem>>, %arg4: memref<240x128xf32, #tpu.memory_space<vmem>>, %arg5: memref<240x128xf32, #tpu.memory_space<vmem>>) attributes {dimension_semantics = [#tpu.dimension_semantics<parallel>], iteration_bounds = array<i64: 15>, scalar_prefetch = 0 : i64, scratch_operands = 0 : i64, tpu.core_type = #tpu.core_type<tc>, window_params = [{transform_indices = @transform_0, window_bounds = array<i64: 240, 32>}, {pipeline_mode = #tpu.pipeline_mode<synchronous>, transform_indices = @transform_1, window_bounds = array<i64: 32, 128>}, {pipeline_mode = #tpu.pipeline_mode<synchronous>, transform_indices = @transform_2, window_bounds = array<i64: 1, 128>}, {transform_indices = @transform_3, window_bounds = array<i64: 240, 128>}, {transform_indices = @transform_4, window_bounds = array<i64: 240, 128>}]} {
    %c0 = arith.constant 0 : index
    %c0_0 = arith.constant 0 : index
    %0 = vector.load %arg1[%c0, %c0_0] : memref<240x32xbf16, #tpu.memory_space<vmem>>, vector<240x32xbf16>
    %c0_1 = arith.constant 0 : index
    %c0_2 = arith.constant 0 : index
    %1 = vector.load %arg2[%c0_1, %c0_2] : memref<32x128xbf16, #tpu.memory_space<vmem>>, vector<32x128xbf16>
    %cst = arith.constant dense<0.000000e+00> : vector<240x128xf32>
    %2 = tpu.matmul %0, %1, %cst {dimension_numbers = #tpu.dot_dimension_numbers<[1], [0], [0], [1], [0, 0, 1, 1], [], []>} : vector<240x32xbf16>, vector<32x128xbf16>, vector<240x128xf32> -> vector<240x128xf32>
    %c0_3 = arith.constant 0 : index
    %c0_4 = arith.constant 0 : index
    %3 = vector.load %arg3[%c0_3, %c0_4] : memref<1x128xf32, #tpu.memory_space<vmem>>, vector<1x128xf32>
    %4 = vector.broadcast %3 : vector<1x128xf32> to vector<240x128xf32>
    %5 = arith.addf %2, %4 : vector<240x128xf32>
    %c0_5 = arith.constant 0 : index
    %c0_6 = arith.constant 0 : index
    %6 = vector.load %arg4[%c0_5, %c0_6] : memref<240x128xf32, #tpu.memory_space<vmem>>, vector<240x128xf32>
    %7 = arith.addf %5, %6 : vector<240x128xf32>
    %cst_7 = arith.constant 0.000000e+00 : f32
    %8 = vector.broadcast %cst_7 : f32 to vector<240x128xf32>
    %9 = arith.maximumf %7, %8 : vector<240x128xf32>
    %c0_8 = arith.constant 0 : index
    %c0_9 = arith.constant 0 : index
    %10 = vector.load %arg5[%c0_8, %c0_9] : memref<240x128xf32, #tpu.memory_space<vmem>>, vector<240x128xf32>
    tpu.vector_store %arg5[%c0_8, %c0_9], %9 {strides = array<i32>} : memref<240x128xf32, #tpu.memory_space<vmem>>, vector<240x128xf32>,
    return
  }
  func.func @transform_0(%arg0: i32) -> (i32, i32) {
    %c0_i32 = arith.constant 0 : i32
    %c0_i32_0 = arith.constant 0 : i32
    return %arg0, %c0_i32 : i32, i32
  }
  func.func @transform_1(%arg0: i32) -> (i32, i32) {
    %c0_i32 = arith.constant 0 : i32
    %c0_i32_0 = arith.constant 0 : i32
    %c0_i32_1 = arith.constant 0 : i32
    return %c0_i32, %c0_i32_0 : i32, i32
  }
  func.func @transform_2(%arg0: i32) -> (i32, i32) {
    %c0_i32 = arith.constant 0 : i32
    %c0_i32_0 = arith.constant 0 : i32
    %c0_i32_1 = arith.constant 0 : i32
    return %c0_i32, %c0_i32_0 : i32, i32
  }
  func.func @transform_3(%arg0: i32) -> (i32, i32) {
    %c0_i32 = arith.constant 0 : i32
    %c0_i32_0 = arith.constant 0 : i32
    return %arg0, %c0_i32 : i32, i32
  }
  func.func @transform_4(%arg0: i32) -> (i32, i32) {
    %c0_i32 = arith.constant 0 : i32
    %c0_i32_0 = arith.constant 0 : i32
    return %arg0, %c0_i32 : i32, i32
  }
}

module attributes {stable_mosaic.version = 11 : i64} {
  func.func @kernel(%arg0: i32, %arg1: memref<240x64xbf16, #tpu.memory_space<vmem>>, %arg2: memref<64x128xbf16, #tpu.memory_space<vmem>>, %arg3: memref<1x128xf32, #tpu.memory_space<vmem>>, %arg4: memref<240x128xf32, #tpu.memory_space<vmem>>) attributes {dimension_semantics = [#tpu.dimension_semantics<parallel>], iteration_bounds = array<i64: 7>, scalar_prefetch = 0 : i64, scratch_operands = 0 : i64, tpu.core_type = #tpu.core_type<tc>, window_params = [{transform_indices = @transform_0, window_bounds = array<i64: 240, 64>}, {pipeline_mode = #tpu.pipeline_mode<synchronous>, transform_indices = @transform_1, window_bounds = array<i64: 64, 128>}, {pipeline_mode = #tpu.pipeline_mode<synchronous>, transform_indices = @transform_2, window_bounds = array<i64: 1, 128>}, {transform_indices = @transform_3, window_bounds = array<i64: 240, 128>}]} {
    %c0 = arith.constant 0 : index
    %c0_0 = arith.constant 0 : index
    %0 = vector.load %arg1[%c0, %c0_0] : memref<240x64xbf16, #tpu.memory_space<vmem>>, vector<240x64xbf16>
    %c0_1 = arith.constant 0 : index
    %c0_2 = arith.constant 0 : index
    %1 = vector.load %arg2[%c0_1, %c0_2] : memref<64x128xbf16, #tpu.memory_space<vmem>>, vector<64x128xbf16>
    %cst = arith.constant dense<0.000000e+00> : vector<240x128xf32>
    %2 = tpu.matmul %0, %1, %cst {dimension_numbers = #tpu.dot_dimension_numbers<[1], [0], [0], [1], [0, 0, 1, 1], [], []>} : vector<240x64xbf16>, vector<64x128xbf16>, vector<240x128xf32> -> vector<240x128xf32>
    %c0_3 = arith.constant 0 : index
    %c0_4 = arith.constant 0 : index
    %3 = vector.load %arg3[%c0_3, %c0_4] : memref<1x128xf32, #tpu.memory_space<vmem>>, vector<1x128xf32>
    %4 = vector.broadcast %3 : vector<1x128xf32> to vector<240x128xf32>
    %5 = arith.addf %2, %4 : vector<240x128xf32>
    %cst_5 = arith.constant 0.000000e+00 : f32
    %6 = vector.broadcast %cst_5 : f32 to vector<240x128xf32>
    %7 = arith.maximumf %5, %6 : vector<240x128xf32>
    %c0_6 = arith.constant 0 : index
    %c0_7 = arith.constant 0 : index
    %8 = vector.load %arg4[%c0_6, %c0_7] : memref<240x128xf32, #tpu.memory_space<vmem>>, vector<240x128xf32>
    tpu.vector_store %arg4[%c0_6, %c0_7], %7 {strides = array<i32>} : memref<240x128xf32, #tpu.memory_space<vmem>>, vector<240x128xf32>,
    return
  }
  func.func @transform_0(%arg0: i32) -> (i32, i32) {
    %c0_i32 = arith.constant 0 : i32
    %c0_i32_0 = arith.constant 0 : i32
    return %arg0, %c0_i32 : i32, i32
  }
  func.func @transform_1(%arg0: i32) -> (i32, i32) {
    %c0_i32 = arith.constant 0 : i32
    %c0_i32_0 = arith.constant 0 : i32
    %c0_i32_1 = arith.constant 0 : i32
    return %c0_i32, %c0_i32_0 : i32, i32
  }
  func.func @transform_2(%arg0: i32) -> (i32, i32) {
    %c0_i32 = arith.constant 0 : i32
    %c0_i32_0 = arith.constant 0 : i32
    %c0_i32_1 = arith.constant 0 : i32
    return %c0_i32, %c0_i32_0 : i32, i32
  }
  func.func @transform_3(%arg0: i32) -> (i32, i32) {
    %c0_i32 = arith.constant 0 : i32
    %c0_i32_0 = arith.constant 0 : i32
    return %arg0, %c0_i32 : i32, i32
  }
}

module attributes {stable_mosaic.version = 11 : i64} {
  func.func @kernel(%arg0: i32, %arg1: memref<240x192xbf16, #tpu.memory_space<vmem>>, %arg2: memref<192x128xbf16, #tpu.memory_space<vmem>>, %arg3: memref<1x128xf32, #tpu.memory_space<vmem>>, %arg4: memref<240x128xf32, #tpu.memory_space<vmem>>) attributes {dimension_semantics = [#tpu.dimension_semantics<parallel>], iteration_bounds = array<i64: 7>, scalar_prefetch = 0 : i64, scratch_operands = 0 : i64, tpu.core_type = #tpu.core_type<tc>, window_params = [{transform_indices = @transform_0, window_bounds = array<i64: 240, 192>}, {pipeline_mode = #tpu.pipeline_mode<synchronous>, transform_indices = @transform_1, window_bounds = array<i64: 192, 128>}, {pipeline_mode = #tpu.pipeline_mode<synchronous>, transform_indices = @transform_2, window_bounds = array<i64: 1, 128>}, {transform_indices = @transform_3, window_bounds = array<i64: 240, 128>}]} {
    %c0 = arith.constant 0 : index
    %c0_0 = arith.constant 0 : index
    %0 = vector.load %arg1[%c0, %c0_0] : memref<240x192xbf16, #tpu.memory_space<vmem>>, vector<240x192xbf16>
    %c0_1 = arith.constant 0 : index
    %c0_2 = arith.constant 0 : index
    %1 = vector.load %arg2[%c0_1, %c0_2] : memref<192x128xbf16, #tpu.memory_space<vmem>>, vector<192x128xbf16>
    %cst = arith.constant dense<0.000000e+00> : vector<240x128xf32>
    %2 = tpu.matmul %0, %1, %cst {dimension_numbers = #tpu.dot_dimension_numbers<[1], [0], [0], [1], [0, 0, 1, 1], [], []>} : vector<240x192xbf16>, vector<192x128xbf16>, vector<240x128xf32> -> vector<240x128xf32>
    %c0_3 = arith.constant 0 : index
    %c0_4 = arith.constant 0 : index
    %3 = vector.load %arg3[%c0_3, %c0_4] : memref<1x128xf32, #tpu.memory_space<vmem>>, vector<1x128xf32>
    %4 = vector.broadcast %3 : vector<1x128xf32> to vector<240x128xf32>
    %5 = arith.addf %2, %4 : vector<240x128xf32>
    %cst_5 = arith.constant 0.000000e+00 : f32
    %6 = vector.broadcast %cst_5 : f32 to vector<240x128xf32>
    %7 = arith.maximumf %5, %6 : vector<240x128xf32>
    %c0_6 = arith.constant 0 : index
    %c0_7 = arith.constant 0 : index
    %8 = vector.load %arg4[%c0_6, %c0_7] : memref<240x128xf32, #tpu.memory_space<vmem>>, vector<240x128xf32>
    tpu.vector_store %arg4[%c0_6, %c0_7], %7 {strides = array<i32>} : memref<240x128xf32, #tpu.memory_space<vmem>>, vector<240x128xf32>,
    return
  }
  func.func @transform_0(%arg0: i32) -> (i32, i32) {
    %c0_i32 = arith.constant 0 : i32
    %c0_i32_0 = arith.constant 0 : i32
    return %arg0, %c0_i32 : i32, i32
  }
  func.func @transform_1(%arg0: i32) -> (i32, i32) {
    %c0_i32 = arith.constant 0 : i32
    %c0_i32_0 = arith.constant 0 : i32
    %c0_i32_1 = arith.constant 0 : i32
    return %c0_i32, %c0_i32_0 : i32, i32
  }
  func.func @transform_2(%arg0: i32) -> (i32, i32) {
    %c0_i32 = arith.constant 0 : i32
    %c0_i32_0 = arith.constant 0 : i32
    %c0_i32_1 = arith.constant 0 : i32
    return %c0_i32, %c0_i32_0 : i32, i32
  }
  func.func @transform_3(%arg0: i32) -> (i32, i32) {
    %c0_i32 = arith.constant 0 : i32
    %c0_i32_0 = arith.constant 0 : i32
    return %arg0, %c0_i32 : i32, i32
  }
}

module attributes {stable_mosaic.version = 11 : i64} {
  func.func @kernel(%arg0: i32, %arg1: memref<240x64xbf16, #tpu.memory_space<vmem>>, %arg2: memref<64x256xbf16, #tpu.memory_space<vmem>>, %arg3: memref<1x256xf32, #tpu.memory_space<vmem>>, %arg4: memref<240x256xf32, #tpu.memory_space<vmem>>) attributes {dimension_semantics = [#tpu.dimension_semantics<parallel>], iteration_bounds = array<i64: 7>, scalar_prefetch = 0 : i64, scratch_operands = 0 : i64, tpu.core_type = #tpu.core_type<tc>, window_params = [{transform_indices = @transform_0, window_bounds = array<i64: 240, 64>}, {pipeline_mode = #tpu.pipeline_mode<synchronous>, transform_indices = @transform_1, window_bounds = array<i64: 64, 256>}, {pipeline_mode = #tpu.pipeline_mode<synchronous>, transform_indices = @transform_2, window_bounds = array<i64: 1, 256>}, {transform_indices = @transform_3, window_bounds = array<i64: 240, 256>}]} {
    %c0 = arith.constant 0 : index
    %c0_0 = arith.constant 0 : index
    %0 = vector.load %arg1[%c0, %c0_0] : memref<240x64xbf16, #tpu.memory_space<vmem>>, vector<240x64xbf16>
    %c0_1 = arith.constant 0 : index
    %c0_2 = arith.constant 0 : index
    %1 = vector.load %arg2[%c0_1, %c0_2] : memref<64x256xbf16, #tpu.memory_space<vmem>>, vector<64x256xbf16>
    %cst = arith.constant dense<0.000000e+00> : vector<240x256xf32>
    %2 = tpu.matmul %0, %1, %cst {dimension_numbers = #tpu.dot_dimension_numbers<[1], [0], [0], [1], [0, 0, 1, 1], [], []>} : vector<240x64xbf16>, vector<64x256xbf16>, vector<240x256xf32> -> vector<240x256xf32>
    %c0_3 = arith.constant 0 : index
    %c0_4 = arith.constant 0 : index
    %3 = vector.load %arg3[%c0_3, %c0_4] : memref<1x256xf32, #tpu.memory_space<vmem>>, vector<1x256xf32>
    %4 = vector.broadcast %3 : vector<1x256xf32> to vector<240x256xf32>
    %5 = arith.addf %2, %4 : vector<240x256xf32>
    %c0_5 = arith.constant 0 : index
    %c0_6 = arith.constant 0 : index
    %6 = vector.load %arg4[%c0_5, %c0_6] : memref<240x256xf32, #tpu.memory_space<vmem>>, vector<240x256xf32>
    tpu.vector_store %arg4[%c0_5, %c0_6], %5 {strides = array<i32>} : memref<240x256xf32, #tpu.memory_space<vmem>>, vector<240x256xf32>,
    return
  }
  func.func @transform_0(%arg0: i32) -> (i32, i32) {
    %c0_i32 = arith.constant 0 : i32
    %c0_i32_0 = arith.constant 0 : i32
    return %arg0, %c0_i32 : i32, i32
  }
  func.func @transform_1(%arg0: i32) -> (i32, i32) {
    %c0_i32 = arith.constant 0 : i32
    %c0_i32_0 = arith.constant 0 : i32
    %c0_i32_1 = arith.constant 0 : i32
    return %c0_i32, %c0_i32_0 : i32, i32
  }
  func.func @transform_2(%arg0: i32) -> (i32, i32) {
    %c0_i32 = arith.constant 0 : i32
    %c0_i32_0 = arith.constant 0 : i32
    %c0_i32_1 = arith.constant 0 : i32
    return %c0_i32, %c0_i32_0 : i32, i32
  }
  func.func @transform_3(%arg0: i32) -> (i32, i32) {
    %c0_i32 = arith.constant 0 : i32
    %c0_i32_0 = arith.constant 0 : i32
    return %arg0, %c0_i32 : i32, i32
  }
}

module attributes {stable_mosaic.version = 11 : i64} {
  func.func @kernel(%arg0: i32, %arg1: memref<240x64xbf16, #tpu.memory_space<vmem>>, %arg2: memref<64x256xbf16, #tpu.memory_space<vmem>>, %arg3: memref<1x256xf32, #tpu.memory_space<vmem>>, %arg4: memref<240x256xf32, #tpu.memory_space<vmem>>, %arg5: memref<240x256xf32, #tpu.memory_space<vmem>>) attributes {dimension_semantics = [#tpu.dimension_semantics<parallel>], iteration_bounds = array<i64: 7>, scalar_prefetch = 0 : i64, scratch_operands = 0 : i64, tpu.core_type = #tpu.core_type<tc>, window_params = [{transform_indices = @transform_0, window_bounds = array<i64: 240, 64>}, {pipeline_mode = #tpu.pipeline_mode<synchronous>, transform_indices = @transform_1, window_bounds = array<i64: 64, 256>}, {pipeline_mode = #tpu.pipeline_mode<synchronous>, transform_indices = @transform_2, window_bounds = array<i64: 1, 256>}, {transform_indices = @transform_3, window_bounds = array<i64: 240, 256>}, {transform_indices = @transform_4, window_bounds = array<i64: 240, 256>}]} {
    %c0 = arith.constant 0 : index
    %c0_0 = arith.constant 0 : index
    %0 = vector.load %arg1[%c0, %c0_0] : memref<240x64xbf16, #tpu.memory_space<vmem>>, vector<240x64xbf16>
    %c0_1 = arith.constant 0 : index
    %c0_2 = arith.constant 0 : index
    %1 = vector.load %arg2[%c0_1, %c0_2] : memref<64x256xbf16, #tpu.memory_space<vmem>>, vector<64x256xbf16>
    %cst = arith.constant dense<0.000000e+00> : vector<240x256xf32>
    %2 = tpu.matmul %0, %1, %cst {dimension_numbers = #tpu.dot_dimension_numbers<[1], [0], [0], [1], [0, 0, 1, 1], [], []>} : vector<240x64xbf16>, vector<64x256xbf16>, vector<240x256xf32> -> vector<240x256xf32>
    %c0_3 = arith.constant 0 : index
    %c0_4 = arith.constant 0 : index
    %3 = vector.load %arg3[%c0_3, %c0_4] : memref<1x256xf32, #tpu.memory_space<vmem>>, vector<1x256xf32>
    %4 = vector.broadcast %3 : vector<1x256xf32> to vector<240x256xf32>
    %5 = arith.addf %2, %4 : vector<240x256xf32>
    %c0_5 = arith.constant 0 : index
    %c0_6 = arith.constant 0 : index
    %6 = vector.load %arg4[%c0_5, %c0_6] : memref<240x256xf32, #tpu.memory_space<vmem>>, vector<240x256xf32>
    %7 = arith.addf %5, %6 : vector<240x256xf32>
    %cst_7 = arith.constant 0.000000e+00 : f32
    %8 = vector.broadcast %cst_7 : f32 to vector<240x256xf32>
    %9 = arith.maximumf %7, %8 : vector<240x256xf32>
    %c0_8 = arith.constant 0 : index
    %c0_9 = arith.constant 0 : index
    %10 = vector.load %arg5[%c0_8, %c0_9] : memref<240x256xf32, #tpu.memory_space<vmem>>, vector<240x256xf32>
    tpu.vector_store %arg5[%c0_8, %c0_9], %9 {strides = array<i32>} : memref<240x256xf32, #tpu.memory_space<vmem>>, vector<240x256xf32>,
    return
  }
  func.func @transform_0(%arg0: i32) -> (i32, i32) {
    %c0_i32 = arith.constant 0 : i32
    %c0_i32_0 = arith.constant 0 : i32
    return %arg0, %c0_i32 : i32, i32
  }
  func.func @transform_1(%arg0: i32) -> (i32, i32) {
    %c0_i32 = arith.constant 0 : i32
    %c0_i32_0 = arith.constant 0 : i32
    %c0_i32_1 = arith.constant 0 : i32
    return %c0_i32, %c0_i32_0 : i32, i32
  }
  func.func @transform_2(%arg0: i32) -> (i32, i32) {
    %c0_i32 = arith.constant 0 : i32
    %c0_i32_0 = arith.constant 0 : i32
    %c0_i32_1 = arith.constant 0 : i32
    return %c0_i32, %c0_i32_0 : i32, i32
  }
  func.func @transform_3(%arg0: i32) -> (i32, i32) {
    %c0_i32 = arith.constant 0 : i32
    %c0_i32_0 = arith.constant 0 : i32
    return %arg0, %c0_i32 : i32, i32
  }
  func.func @transform_4(%arg0: i32) -> (i32, i32) {
    %c0_i32 = arith.constant 0 : i32
    %c0_i32_0 = arith.constant 0 : i32
    return %arg0, %c0_i32 : i32, i32
  }
}

module attributes {stable_mosaic.version = 11 : i64} {
  func.func @kernel(%arg0: i32, %arg1: memref<240x256xbf16, #tpu.memory_space<vmem>>, %arg2: memref<256x128xbf16, #tpu.memory_space<vmem>>, %arg3: memref<1x128xf32, #tpu.memory_space<vmem>>, %arg4: memref<240x128xf32, #tpu.memory_space<vmem>>) attributes {dimension_semantics = [#tpu.dimension_semantics<parallel>], iteration_bounds = array<i64: 7>, scalar_prefetch = 0 : i64, scratch_operands = 0 : i64, tpu.core_type = #tpu.core_type<tc>, window_params = [{transform_indices = @transform_0, window_bounds = array<i64: 240, 256>}, {pipeline_mode = #tpu.pipeline_mode<synchronous>, transform_indices = @transform_1, window_bounds = array<i64: 256, 128>}, {pipeline_mode = #tpu.pipeline_mode<synchronous>, transform_indices = @transform_2, window_bounds = array<i64: 1, 128>}, {transform_indices = @transform_3, window_bounds = array<i64: 240, 128>}]} {
    %c0 = arith.constant 0 : index
    %c0_0 = arith.constant 0 : index
    %0 = vector.load %arg1[%c0, %c0_0] : memref<240x256xbf16, #tpu.memory_space<vmem>>, vector<240x256xbf16>
    %c0_1 = arith.constant 0 : index
    %c0_2 = arith.constant 0 : index
    %1 = vector.load %arg2[%c0_1, %c0_2] : memref<256x128xbf16, #tpu.memory_space<vmem>>, vector<256x128xbf16>
    %cst = arith.constant dense<0.000000e+00> : vector<240x128xf32>
    %2 = tpu.matmul %0, %1, %cst {dimension_numbers = #tpu.dot_dimension_numbers<[1], [0], [0], [1], [0, 0, 1, 1], [], []>} : vector<240x256xbf16>, vector<256x128xbf16>, vector<240x128xf32> -> vector<240x128xf32>
    %c0_3 = arith.constant 0 : index
    %c0_4 = arith.constant 0 : index
    %3 = vector.load %arg3[%c0_3, %c0_4] : memref<1x128xf32, #tpu.memory_space<vmem>>, vector<1x128xf32>
    %4 = vector.broadcast %3 : vector<1x128xf32> to vector<240x128xf32>
    %5 = arith.addf %2, %4 : vector<240x128xf32>
    %cst_5 = arith.constant 0.000000e+00 : f32
    %6 = vector.broadcast %cst_5 : f32 to vector<240x128xf32>
    %7 = arith.maximumf %5, %6 : vector<240x128xf32>
    %c0_6 = arith.constant 0 : index
    %c0_7 = arith.constant 0 : index
    %8 = vector.load %arg4[%c0_6, %c0_7] : memref<240x128xf32, #tpu.memory_space<vmem>>, vector<240x128xf32>
    tpu.vector_store %arg4[%c0_6, %c0_7], %7 {strides = array<i32>} : memref<240x128xf32, #tpu.memory_space<vmem>>, vector<240x128xf32>,
    return
  }
  func.func @transform_0(%arg0: i32) -> (i32, i32) {
    %c0_i32 = arith.constant 0 : i32
    %c0_i32_0 = arith.constant 0 : i32
    return %arg0, %c0_i32 : i32, i32
  }
  func.func @transform_1(%arg0: i32) -> (i32, i32) {
    %c0_i32 = arith.constant 0 : i32
    %c0_i32_0 = arith.constant 0 : i32
    %c0_i32_1 = arith.constant 0 : i32
    return %c0_i32, %c0_i32_0 : i32, i32
  }
  func.func @transform_2(%arg0: i32) -> (i32, i32) {
    %c0_i32 = arith.constant 0 : i32
    %c0_i32_0 = arith.constant 0 : i32
    %c0_i32_1 = arith.constant 0 : i32
    return %c0_i32, %c0_i32_0 : i32, i32
  }
  func.func @transform_3(%arg0: i32) -> (i32, i32) {
    %c0_i32 = arith.constant 0 : i32
    %c0_i32_0 = arith.constant 0 : i32
    return %arg0, %c0_i32 : i32, i32
  }
}

module attributes {stable_mosaic.version = 11 : i64} {
  func.func @kernel(%arg0: i32, %arg1: memref<240x256xbf16, #tpu.memory_space<vmem>>, %arg2: memref<256x256xbf16, #tpu.memory_space<vmem>>, %arg3: memref<1x256xf32, #tpu.memory_space<vmem>>, %arg4: memref<240x256xf32, #tpu.memory_space<vmem>>) attributes {dimension_semantics = [#tpu.dimension_semantics<parallel>], iteration_bounds = array<i64: 7>, scalar_prefetch = 0 : i64, scratch_operands = 0 : i64, tpu.core_type = #tpu.core_type<tc>, window_params = [{transform_indices = @transform_0, window_bounds = array<i64: 240, 256>}, {pipeline_mode = #tpu.pipeline_mode<synchronous>, transform_indices = @transform_1, window_bounds = array<i64: 256, 256>}, {pipeline_mode = #tpu.pipeline_mode<synchronous>, transform_indices = @transform_2, window_bounds = array<i64: 1, 256>}, {transform_indices = @transform_3, window_bounds = array<i64: 240, 256>}]} {
    %c0 = arith.constant 0 : index
    %c0_0 = arith.constant 0 : index
    %0 = vector.load %arg1[%c0, %c0_0] : memref<240x256xbf16, #tpu.memory_space<vmem>>, vector<240x256xbf16>
    %c0_1 = arith.constant 0 : index
    %c0_2 = arith.constant 0 : index
    %1 = vector.load %arg2[%c0_1, %c0_2] : memref<256x256xbf16, #tpu.memory_space<vmem>>, vector<256x256xbf16>
    %cst = arith.constant dense<0.000000e+00> : vector<240x256xf32>
    %2 = tpu.matmul %0, %1, %cst {dimension_numbers = #tpu.dot_dimension_numbers<[1], [0], [0], [1], [0, 0, 1, 1], [], []>} : vector<240x256xbf16>, vector<256x256xbf16>, vector<240x256xf32> -> vector<240x256xf32>
    %c0_3 = arith.constant 0 : index
    %c0_4 = arith.constant 0 : index
    %3 = vector.load %arg3[%c0_3, %c0_4] : memref<1x256xf32, #tpu.memory_space<vmem>>, vector<1x256xf32>
    %4 = vector.broadcast %3 : vector<1x256xf32> to vector<240x256xf32>
    %5 = arith.addf %2, %4 : vector<240x256xf32>
    %c0_5 = arith.constant 0 : index
    %c0_6 = arith.constant 0 : index
    %6 = vector.load %arg4[%c0_5, %c0_6] : memref<240x256xf32, #tpu.memory_space<vmem>>, vector<240x256xf32>
    tpu.vector_store %arg4[%c0_5, %c0_6], %5 {strides = array<i32>} : memref<240x256xf32, #tpu.memory_space<vmem>>, vector<240x256xf32>,
    return
  }
  func.func @transform_0(%arg0: i32) -> (i32, i32) {
    %c0_i32 = arith.constant 0 : i32
    %c0_i32_0 = arith.constant 0 : i32
    return %arg0, %c0_i32 : i32, i32
  }
  func.func @transform_1(%arg0: i32) -> (i32, i32) {
    %c0_i32 = arith.constant 0 : i32
    %c0_i32_0 = arith.constant 0 : i32
    %c0_i32_1 = arith.constant 0 : i32
    return %c0_i32, %c0_i32_0 : i32, i32
  }
  func.func @transform_2(%arg0: i32) -> (i32, i32) {
    %c0_i32 = arith.constant 0 : i32
    %c0_i32_0 = arith.constant 0 : i32
    %c0_i32_1 = arith.constant 0 : i32
    return %c0_i32, %c0_i32_0 : i32, i32
  }
  func.func @transform_3(%arg0: i32) -> (i32, i32) {
    %c0_i32 = arith.constant 0 : i32
    %c0_i32_0 = arith.constant 0 : i32
    return %arg0, %c0_i32 : i32, i32
  }
}

module attributes {stable_mosaic.version = 11 : i64} {
  func.func @kernel(%arg0: i32, %arg1: memref<192x256xbf16, #tpu.memory_space<vmem>>, %arg2: memref<256x256xbf16, #tpu.memory_space<vmem>>, %arg3: memref<1x256xf32, #tpu.memory_space<vmem>>, %arg4: memref<192x256xf32, #tpu.memory_space<vmem>>) attributes {dimension_semantics = [#tpu.dimension_semantics<parallel>], iteration_bounds = array<i64: 3>, scalar_prefetch = 0 : i64, scratch_operands = 0 : i64, tpu.core_type = #tpu.core_type<tc>, window_params = [{transform_indices = @transform_0, window_bounds = array<i64: 192, 256>}, {pipeline_mode = #tpu.pipeline_mode<synchronous>, transform_indices = @transform_1, window_bounds = array<i64: 256, 256>}, {pipeline_mode = #tpu.pipeline_mode<synchronous>, transform_indices = @transform_2, window_bounds = array<i64: 1, 256>}, {transform_indices = @transform_3, window_bounds = array<i64: 192, 256>}]} {
    %c0 = arith.constant 0 : index
    %c0_0 = arith.constant 0 : index
    %0 = vector.load %arg1[%c0, %c0_0] : memref<192x256xbf16, #tpu.memory_space<vmem>>, vector<192x256xbf16>
    %c0_1 = arith.constant 0 : index
    %c0_2 = arith.constant 0 : index
    %1 = vector.load %arg2[%c0_1, %c0_2] : memref<256x256xbf16, #tpu.memory_space<vmem>>, vector<256x256xbf16>
    %cst = arith.constant dense<0.000000e+00> : vector<192x256xf32>
    %2 = tpu.matmul %0, %1, %cst {dimension_numbers = #tpu.dot_dimension_numbers<[1], [0], [0], [1], [0, 0, 1, 1], [], []>} : vector<192x256xbf16>, vector<256x256xbf16>, vector<192x256xf32> -> vector<192x256xf32>
    %c0_3 = arith.constant 0 : index
    %c0_4 = arith.constant 0 : index
    %3 = vector.load %arg3[%c0_3, %c0_4] : memref<1x256xf32, #tpu.memory_space<vmem>>, vector<1x256xf32>
    %4 = vector.broadcast %3 : vector<1x256xf32> to vector<192x256xf32>
    %5 = arith.addf %2, %4 : vector<192x256xf32>
    %cst_5 = arith.constant 0.000000e+00 : f32
    %6 = vector.broadcast %cst_5 : f32 to vector<192x256xf32>
    %7 = arith.maximumf %5, %6 : vector<192x256xf32>
    %c0_6 = arith.constant 0 : index
    %c0_7 = arith.constant 0 : index
    %8 = vector.load %arg4[%c0_6, %c0_7] : memref<192x256xf32, #tpu.memory_space<vmem>>, vector<192x256xf32>
    tpu.vector_store %arg4[%c0_6, %c0_7], %7 {strides = array<i32>} : memref<192x256xf32, #tpu.memory_space<vmem>>, vector<192x256xf32>,
    return
  }
  func.func @transform_0(%arg0: i32) -> (i32, i32) {
    %c0_i32 = arith.constant 0 : i32
    %c0_i32_0 = arith.constant 0 : i32
    return %arg0, %c0_i32 : i32, i32
  }
  func.func @transform_1(%arg0: i32) -> (i32, i32) {
    %c0_i32 = arith.constant 0 : i32
    %c0_i32_0 = arith.constant 0 : i32
    %c0_i32_1 = arith.constant 0 : i32
    return %c0_i32, %c0_i32_0 : i32, i32
  }
  func.func @transform_2(%arg0: i32) -> (i32, i32) {
    %c0_i32 = arith.constant 0 : i32
    %c0_i32_0 = arith.constant 0 : i32
    %c0_i32_1 = arith.constant 0 : i32
    return %c0_i32, %c0_i32_0 : i32, i32
  }
  func.func @transform_3(%arg0: i32) -> (i32, i32) {
    %c0_i32 = arith.constant 0 : i32
    %c0_i32_0 = arith.constant 0 : i32
    return %arg0, %c0_i32 : i32, i32
  }
}

module attributes {stable_mosaic.version = 11 : i64} {
  func.func @kernel(%arg0: i32, %arg1: memref<144x3328xbf16, #tpu.memory_space<vmem>>, %arg2: memref<3328x128xbf16, #tpu.memory_space<vmem>>, %arg3: memref<1x128xf32, #tpu.memory_space<vmem>>, %arg4: memref<144x128xf32, #tpu.memory_space<vmem>>) attributes {dimension_semantics = [#tpu.dimension_semantics<parallel>], iteration_bounds = array<i64: 1>, scalar_prefetch = 0 : i64, scratch_operands = 0 : i64, tpu.core_type = #tpu.core_type<tc>, window_params = [{transform_indices = @transform_0, window_bounds = array<i64: 144, 3328>}, {pipeline_mode = #tpu.pipeline_mode<synchronous>, transform_indices = @transform_1, window_bounds = array<i64: 3328, 128>}, {pipeline_mode = #tpu.pipeline_mode<synchronous>, transform_indices = @transform_2, window_bounds = array<i64: 1, 128>}, {transform_indices = @transform_3, window_bounds = array<i64: 144, 128>}]} {
    %c0 = arith.constant 0 : index
    %c0_0 = arith.constant 0 : index
    %0 = vector.load %arg1[%c0, %c0_0] : memref<144x3328xbf16, #tpu.memory_space<vmem>>, vector<144x3328xbf16>
    %c0_1 = arith.constant 0 : index
    %c0_2 = arith.constant 0 : index
    %1 = vector.load %arg2[%c0_1, %c0_2] : memref<3328x128xbf16, #tpu.memory_space<vmem>>, vector<3328x128xbf16>
    %cst = arith.constant dense<0.000000e+00> : vector<144x128xf32>
    %2 = tpu.matmul %0, %1, %cst {dimension_numbers = #tpu.dot_dimension_numbers<[1], [0], [0], [1], [0, 0, 1, 1], [], []>} : vector<144x3328xbf16>, vector<3328x128xbf16>, vector<144x128xf32> -> vector<144x128xf32>
    %c0_3 = arith.constant 0 : index
    %c0_4 = arith.constant 0 : index
    %3 = vector.load %arg3[%c0_3, %c0_4] : memref<1x128xf32, #tpu.memory_space<vmem>>, vector<1x128xf32>
    %4 = vector.broadcast %3 : vector<1x128xf32> to vector<144x128xf32>
    %5 = arith.addf %2, %4 : vector<144x128xf32>
    %cst_5 = arith.constant 0.000000e+00 : f32
    %6 = vector.broadcast %cst_5 : f32 to vector<144x128xf32>
    %7 = arith.maximumf %5, %6 : vector<144x128xf32>
    %c0_6 = arith.constant 0 : index
    %c0_7 = arith.constant 0 : index
    %8 = vector.load %arg4[%c0_6, %c0_7] : memref<144x128xf32, #tpu.memory_space<vmem>>, vector<144x128xf32>
    tpu.vector_store %arg4[%c0_6, %c0_7], %7 {strides = array<i32>} : memref<144x128xf32, #tpu.memory_space<vmem>>, vector<144x128xf32>,
    return
  }
  func.func @transform_0(%arg0: i32) -> (i32, i32) {
    %c0_i32 = arith.constant 0 : i32
    %c0_i32_0 = arith.constant 0 : i32
    return %arg0, %c0_i32 : i32, i32
  }
  func.func @transform_1(%arg0: i32) -> (i32, i32) {
    %c0_i32 = arith.constant 0 : i32
    %c0_i32_0 = arith.constant 0 : i32
    %c0_i32_1 = arith.constant 0 : i32
    return %c0_i32, %c0_i32_0 : i32, i32
  }
  func.func @transform_2(%arg0: i32) -> (i32, i32) {
    %c0_i32 = arith.constant 0 : i32
    %c0_i32_0 = arith.constant 0 : i32
    %c0_i32_1 = arith.constant 0 : i32
    return %c0_i32, %c0_i32_0 : i32, i32
  }
  func.func @transform_3(%arg0: i32) -> (i32, i32) {
    %c0_i32 = arith.constant 0 : i32
    %c0_i32_0 = arith.constant 0 : i32
    return %arg0, %c0_i32 : i32, i32
  }
}

module attributes {stable_mosaic.version = 11 : i64} {
  func.func @_head_kernel(%arg0: memref<4x40x464xf32, #tpu.memory_space<vmem>>, %arg1: memref<464x128xf32, #tpu.memory_space<vmem>>, %arg2: memref<1x128xf32, #tpu.memory_space<vmem>>, %arg3: memref<40x128xf32, #tpu.memory_space<vmem>>) attributes {dimension_semantics = [], scalar_prefetch = 0 : i64, scratch_operands = 0 : i64, tpu.core_type = #tpu.core_type<tc>} {
    %c0 = arith.constant 0 : index
    %c0_0 = arith.constant 0 : index
    %c0_1 = arith.constant 0 : index
    %0 = vector.load %arg0[%c0, %c0_0, %c0_1] : memref<4x40x464xf32, #tpu.memory_space<vmem>>, vector<1x40x464xf32>
    %1 = vector.shape_cast %0 : vector<1x40x464xf32> to vector<40x464xf32>
    %c1 = arith.constant 1 : index
    %c0_2 = arith.constant 0 : index
    %c0_3 = arith.constant 0 : index
    %2 = vector.load %arg0[%c1, %c0_2, %c0_3] : memref<4x40x464xf32, #tpu.memory_space<vmem>>, vector<1x40x464xf32>
    %3 = vector.shape_cast %2 : vector<1x40x464xf32> to vector<40x464xf32>
    %4 = arith.addf %1, %3 : vector<40x464xf32>
    %c2 = arith.constant 2 : index
    %c0_4 = arith.constant 0 : index
    %c0_5 = arith.constant 0 : index
    %5 = vector.load %arg0[%c2, %c0_4, %c0_5] : memref<4x40x464xf32, #tpu.memory_space<vmem>>, vector<1x40x464xf32>
    %6 = vector.shape_cast %5 : vector<1x40x464xf32> to vector<40x464xf32>
    %7 = arith.addf %4, %6 : vector<40x464xf32>
    %c3 = arith.constant 3 : index
    %c0_6 = arith.constant 0 : index
    %c0_7 = arith.constant 0 : index
    %8 = vector.load %arg0[%c3, %c0_6, %c0_7] : memref<4x40x464xf32, #tpu.memory_space<vmem>>, vector<1x40x464xf32>
    %9 = vector.shape_cast %8 : vector<1x40x464xf32> to vector<40x464xf32>
    %10 = arith.addf %7, %9 : vector<40x464xf32>
    %cst = arith.constant 2.500000e-01 : f32
    %11 = vector.broadcast %cst : f32 to vector<40x464xf32>
    %12 = arith.mulf %10, %11 : vector<40x464xf32>
    %c0_8 = arith.constant 0 : index
    %c0_9 = arith.constant 0 : index
    %13 = vector.load %arg1[%c0_8, %c0_9] : memref<464x128xf32, #tpu.memory_space<vmem>>, vector<464x128xf32>
    %cst_10 = arith.constant dense<0.000000e+00> : vector<40x128xf32>
    %14 = tpu.matmul %12, %13, %cst_10 {dimension_numbers = #tpu.dot_dimension_numbers<[1], [0], [0], [1], [0, 0, 1, 1], [], []>} : vector<40x464xf32>, vector<464x128xf32>, vector<40x128xf32> -> vector<40x128xf32>
    %c0_11 = arith.constant 0 : index
    %c0_12 = arith.constant 0 : index
    %15 = vector.load %arg2[%c0_11, %c0_12] : memref<1x128xf32, #tpu.memory_space<vmem>>, vector<1x128xf32>
    %16 = vector.broadcast %15 : vector<1x128xf32> to vector<40x128xf32>
    %17 = arith.addf %14, %16 : vector<40x128xf32>
    %cst_13 = arith.constant dense<0xFF800000> : vector<40xf32>
    %18 = vector.multi_reduction <maximumf>, %17, %cst_13 [1] : vector<40x128xf32> to vector<40xf32>
    %19 = vector.shape_cast %18 : vector<40xf32> to vector<40x1xf32>
    %20 = vector.broadcast %19 : vector<40x1xf32> to vector<40x128xf32>
    %21 = arith.subf %17, %20 : vector<40x128xf32>
    %22 = math.exp %21 : vector<40x128xf32>
    %cst_14 = arith.constant dense<0.000000e+00> : vector<40xf32>
    %23 = vector.multi_reduction <add>, %22, %cst_14 [1] : vector<40x128xf32> to vector<40xf32>
    %24 = vector.shape_cast %23 : vector<40xf32> to vector<40x1xf32>
    %25 = math.log %24 : vector<40x1xf32>
    %26 = vector.broadcast %25 : vector<40x1xf32> to vector<40x128xf32>
    %27 = arith.subf %21, %26 : vector<40x128xf32>
    %c0_15 = arith.constant 0 : index
    %c0_16 = arith.constant 0 : index
    %28 = vector.load %arg3[%c0_15, %c0_16] : memref<40x128xf32, #tpu.memory_space<vmem>>, vector<40x128xf32>
    tpu.vector_store %arg3[%c0_15, %c0_16], %27 {strides = array<i32>} : memref<40x128xf32, #tpu.memory_space<vmem>>, vector<40x128xf32>,
    return
  }
}

</mosaic_0001>

<bundles_post_ra>
// kernel: lprnet_forward.19
= control target key start
LH: loop header
LB: loop body
LE: loop exit
PB: predicated region body
PF: predicated region fallthrough
CT: control target
= control target key end

     0   :  { %s798_s12 = smov 0   ;;  %s930_s0 = inlined_call_operand.vmem [shape: bf16[4096,32], index: 0, kind: input, shape index: {}]   ;;  %s931_s1 = inlined_call_operand.vmem [shape: bf16[32,128], index: 1, kind: input, shape index: {}]   ;;  %s932_s2 = inlined_call_operand.vmem [shape: f32[1,128], index: 2, kind: input, shape index: {}]   ;;  %s933_s3 = inlined_call_operand.vmem [shape: f32[4096,128], index: 3, kind: output, shape index: {}]  }
   0x1 LB: > { %s640_s13 = sadd.s32 4294967295, %s776_s12   ;;  %p644_p0 = scmp.ge.s32.totalorder %s776_s12, 1  ;;  %s776_s12 = sphi %s798_s12, %s13_s12  }
   0x2   : > { %p138_p1 = scmp.lt.s32.totalorder %s776_s12, 17 }
   0x4   : > { %p139_p2 = pnand %p644_p0, %p138_p1 }
   0x5   : > { %v752_v0 = vld [vmem:[%s931_s1] sm:$0xff] (!%p139_p2)   ;;  %s645_s16 = sshll.u32 (!%p139_p2), %s640_s13, 5  ;;  %v753_v1 = vld [vmem:[%s931_s1 + $0x8] sm:$0xff] (!%p139_p2)   ;;  %vm310_vm0 = vcmask (!%p139_p2), 261120  }
   0x6   : > { %142 = sbr.rel (%p139_p2) target bundleno = 263 (0x107), region = 32  ;;  %p163_p3 = scmp.lt.s32.totalorder (!%p139_p2), %s645_s16, 511  ;;  %704 = vmatprep.subr.bf16.mxu0 (!%p139_p2), %v752_v0  ;;  %740 = vmatprep.subr.bf16.mxu1 (!%p139_p2), %v752_v0  ;;  %v855_v18 = vld [vmem:[%s932_s2] ss:$0 sm:$0xff] (!%p139_p2) }
   0x7   : > { %705 = vmatpush3.bf16.msra.mxu0 (!%p139_p2), %v752_v0  ;;  %742 = vmatpush3.bf16.msra.mxu1 (!%p139_p2), %v752_v0 }
   0x8   : > { %706 = vmatprep.subr.bf16.mxu0 (!%p139_p2), %v753_v1  ;;  %741 = vmatprep.subr.bf16.mxu1 (!%p139_p2), %v753_v1 }
   0xb   : > { %707 = vmatpush3.bf16.msra.mxu0 (!%p139_p2), %v753_v1  ;;  %743 = vmatpush3.bf16.msra.mxu1 (!%p139_p2), %v753_v1 }
   0xd   : > { %s935_s16 = smov (!%p163_p3, %s645_s16), 511 }
   0xe   : > { %s646_s19 = sshll.u32 %s935_s16, 2  ;;  %s648_s25 = sshll.u32 %s935_s16, 3 }
   0xf   : > { %s818_s22 = scalar_lea.vmem %s930_s0, %s646_s19  ;;  %s862_s28 = scalar_lea.vmem %s933_s3, %s648_s25 }
  0x10   : > { %v754_v2 = vld [vmem:[%s818_s22] sm:$0xff]   ;;  %v756_v4 = vld [vmem:[%s818_s22 + $0x8] sm:$0xff]   ;;  %v758_v6 = vld [vmem:[%s818_s22 + $0x10] sm:$0xff]  }
  0x11   : > { %v755_v3 = vld [vmem:[%s818_s22 + $0x40] sm:$0xff]   ;;  %708 = vmatprep.mubr.msk.bf16.mxu0 %vm310_vm0, %v754_v2  ;;  %v757_v5 = vld [vmem:[%s818_s22 + $0x48] sm:$0xff]   ;;  %v759_v7 = vld [vmem:[%s818_s22 + $0x50] sm:$0xff]  }
  0x12   : > { %724 = vmatprep.mubr.msk.bf16.mxu1 %vm310_vm0, %v755_v3  ;;  %709 = vmatmul.mubr.msk.bf16.vlgmr.msra.gmra.mrb[0].mxu0 %vm310_vm0, %v756_v4  ;;  %v760_v8 = vld [vmem:[%s818_s22 + $0x18] sm:$0xff]   ;;  %v762_v10 = vld [vmem:[%s818_s22 + $0x20] sm:$0xff]   ;;  %v764_v12 = vld [vmem:[%s818_s22 + $0x28] sm:$0xff]  }
  0x13   : > { %725 = vmatmul.mubr.msk.bf16.vlgmr.msra.gmra.mrb[0].mxu1 %vm310_vm0, %v757_v5  ;;  %712 = vmatprep.mubr.msk.bf16.mxu0 %vm310_vm0, %v758_v6  ;;  %v761_v9 = vld [vmem:[%s818_s22 + $0x58] sm:$0xff]   ;;  %v763_v11 = vld [vmem:[%s818_s22 + $0x60] sm:$0xff]   ;;  %v765_v13 = vld [vmem:[%s818_s22 + $0x68] sm:$0xff]  }
  0x14   : > { %728 = vmatprep.mubr.msk.bf16.mxu1 %vm310_vm0, %v759_v7  ;;  %v766_v14 = vld [vmem:[%s818_s22 + $0x30] sm:$0xff]   ;;  %v768_v16 = vld [vmem:[%s818_s22 + $0x38] sm:$0xff]  }
  0x15   : > { %v767_v15 = vld [vmem:[%s818_s22 + $0x70] sm:$0xff]   ;;  %v769_v17 = vld [vmem:[%s818_s22 + $0x78] sm:$0xff]  }
  0x1a   : > { %713 = vmatmul.mubr.msk.bf16.gmra.mrb[4].mxu0 %vm310_vm0, %v760_v8 }
  0x1b   : > { %729 = vmatmul.mubr.msk.bf16.gmra.mrb[4].mxu1 %vm310_vm0, %v761_v9  ;;  %716 = vmatprep.mubr.msk.bf16.mxu0 %vm310_vm0, %v762_v10 }
  0x1c   : > { %732 = vmatprep.mubr.msk.bf16.mxu1 %vm310_vm0, %v763_v11 }
  0x22   : > { %717 = vmatmul.mubr.msk.bf16.gmra.mrb[8].mxu0 %vm310_vm0, %v764_v12 }
  0x23   : > { %733 = vmatmul.mubr.msk.bf16.gmra.mrb[8].mxu1 %vm310_vm0, %v765_v13  ;;  %720 = vmatprep.mubr.msk.bf16.mxu0 %vm310_vm0, %v766_v14 }
  0x24   : > { %736 = vmatprep.mubr.msk.bf16.mxu1 %vm310_vm0, %v767_v15 }
  0x2a   : > { %721 = vmatmul.mubr.msk.bf16.gmra.mrb[12].mxu0 %vm310_vm0, %v768_v16 }
  0x2b   : > { %737 = vmatmul.mubr.msk.bf16.gmra.mrb[12].mxu1 %vm310_vm0, %v769_v17 }
  0xe5   : > { %v710_v19 = vpop.f32.mrb[0].mxu0 }
  0xe6   : > { %v402_v20 = vadd.f32 %v710_v19, %v855_v18  ;;  %v726_v21 = vpop.f32.mrb[0].mxu1  ;;  %v393_v22 = vpop.f32.mrb[1].mxu0 }
  0xe7   : > { %v466_v23 = vadd.f32 %v726_v21, %v855_v18  ;;  %v394_v24 = vadd.f32 %v855_v18, %v393_v22  ;;  %v457_v25 = vpop.f32.mrb[1].mxu1  ;;  %v711_v26 = vpop.f32.mrb[2].mxu0 }
  0xe8   : > { %v522_v27 = vmax.f32 %v402_v20, 0.0  ;;  %v458_v28 = vadd.f32 %v855_v18, %v457_v25  ;;  %v405_v29 = vadd.f32 %v711_v26, %v855_v18  ;;  %v727_v30 = vpop.f32.mrb[2].mxu1  ;;  %v396_v31 = vpop.f32.mrb[3].mxu0 }
  0xe9   : > { %v538_v32 = vmax.f32 %v466_v23, 0.0  ;;  %v520_v33 = vmax.f32 %v394_v24, 0.0  ;;  %v469_v34 = vadd.f32 %v727_v30, %v855_v18  ;;  %v397_v35 = vadd.f32 %v855_v18, %v396_v31  ;;  %v460_v36 = vpop.f32.mrb[3].mxu1 }
  0xea   : > { %554 = vst [vmem:[%s862_s28 + $0x10] sm:$0xff] %v522_v27  ;;  %v536_v37 = vmax.f32 %v458_v28, 0.0  ;;  %v523_v38 = vmax.f32 %v405_v29, 0.0  ;;  %v461_v39 = vadd.f32 %v855_v18, %v460_v36 }
  0xeb   : > { %570 = vst [vmem:[%s862_s28 + $0x90] sm:$0xff] %v538_v32  ;;  %552 = vst [vmem:[%s862_s28] sm:$0xff] %v520_v33  ;;  %v539_v40 = vmax.f32 %v469_v34, 0.0  ;;  %v521_v41 = vmax.f32 %v397_v35, 0.0 }
  0xec   : > { %568 = vst [vmem:[%s862_s28 + $0x80] sm:$0xff] %v536_v37  ;;  %555 = vst [vmem:[%s862_s28 + $0x18] sm:$0xff] %v523_v38  ;;  %v537_v42 = vmax.f32 %v461_v39, 0.0 }
  0xed   : > { %571 = vst [vmem:[%s862_s28 + $0x98] sm:$0xff] %v539_v40  ;;  %553 = vst [vmem:[%s862_s28 + $0x8] sm:$0xff] %v521_v41  ;;  %v714_v43 = vpop.f32.mrb[4].mxu0 }
  0xee   : > { %569 = vst [vmem:[%s862_s28 + $0x88] sm:$0xff] %v537_v42  ;;  %v418_v44 = vadd.f32 %v714_v43, %v855_v18  ;;  %v730_v45 = vpop.f32.mrb[4].mxu1  ;;  %v409_v46 = vpop.f32.mrb[5].mxu0 }
  0xef   : > { %v482_v47 = vadd.f32 %v730_v45, %v855_v18  ;;  %v410_v48 = vadd.f32 %v855_v18, %v409_v46  ;;  %v473_v49 = vpop.f32.mrb[5].mxu1  ;;  %v715_v50 = vpop.f32.mrb[6].mxu0 }
  0xf0   : > { %v526_v51 = vmax.f32 %v418_v44, 0.0  ;;  %v474_v52 = vadd.f32 %v855_v18, %v473_v49  ;;  %v421_v53 = vadd.f32 %v715_v50, %v855_v18  ;;  %v731_v54 = vpop.f32.mrb[6].mxu1  ;;  %v412_v55 = vpop.f32.mrb[7].mxu0 }
  0xf1   : > { %v542_v56 = vmax.f32 %v482_v47, 0.0  ;;  %v524_v57 = vmax.f32 %v410_v48, 0.0  ;;  %v485_v58 = vadd.f32 %v731_v54, %v855_v18  ;;  %v413_v59 = vadd.f32 %v855_v18, %v412_v55  ;;  %v476_v60 = vpop.f32.mrb[7].mxu1 }
  0xf2   : > { %558 = vst [vmem:[%s862_s28 + $0x30] sm:$0xff] %v526_v51  ;;  %v540_v61 = vmax.f32 %v474_v52, 0.0  ;;  %v527_v62 = vmax.f32 %v421_v53, 0.0  ;;  %v477_v63 = vadd.f32 %v855_v18, %v476_v60 }
  0xf3   : > { %574 = vst [vmem:[%s862_s28 + $0xb0] sm:$0xff] %v542_v56  ;;  %556 = vst [vmem:[%s862_s28 + $0x20] sm:$0xff] %v524_v57  ;;  %v543_v0 = vmax.f32 %v485_v58, 0.0  ;;  %v525_v1 = vmax.f32 %v413_v59, 0.0 }
  0xf4   : > { %572 = vst [vmem:[%s862_s28 + $0xa0] sm:$0xff] %v540_v61  ;;  %559 = vst [vmem:[%s862_s28 + $0x38] sm:$0xff] %v527_v62  ;;  %v541_v2 = vmax.f32 %v477_v63, 0.0 }
  0xf5   : > { %575 = vst [vmem:[%s862_s28 + $0xb8] sm:$0xff] %v543_v0  ;;  %557 = vst [vmem:[%s862_s28 + $0x28] sm:$0xff] %v525_v1  ;;  %v718_v3 = vpop.f32.mrb[8].mxu0 }
  0xf6   : > { %573 = vst [vmem:[%s862_s28 + $0xa8] sm:$0xff] %v541_v2  ;;  %v434_v4 = vadd.f32 %v718_v3, %v855_v18  ;;  %v734_v5 = vpop.f32.mrb[8].mxu1  ;;  %v425_v6 = vpop.f32.mrb[9].mxu0 }
  0xf7   : > { %v498_v7 = vadd.f32 %v734_v5, %v855_v18  ;;  %v426_v8 = vadd.f32 %v855_v18, %v425_v6  ;;  %v489_v9 = vpop.f32.mrb[9].mxu1  ;;  %v719_v10 = vpop.f32.mrb[10].mxu0 }
  0xf8   : > { %v530_v11 = vmax.f32 %v434_v4, 0.0  ;;  %v490_v12 = vadd.f32 %v855_v18, %v489_v9  ;;  %v437_v13 = vadd.f32 %v719_v10, %v855_v18  ;;  %v735_v14 = vpop.f32.mrb[10].mxu1  ;;  %v428_v15 = vpop.f32.mrb[11].mxu0 }
  0xf9   : > { %v546_v16 = vmax.f32 %v498_v7, 0.0  ;;  %v528_v17 = vmax.f32 %v426_v8, 0.0  ;;  %v501_v19 = vadd.f32 %v735_v14, %v855_v18  ;;  %v429_v20 = vadd.f32 %v855_v18, %v428_v15  ;;  %v492_v21 = vpop.f32.mrb[11].mxu1 }
  0xfa   : > { %562 = vst [vmem:[%s862_s28 + $0x50] sm:$0xff] %v530_v11  ;;  %v544_v22 = vmax.f32 %v490_v12, 0.0  ;;  %v531_v23 = vmax.f32 %v437_v13, 0.0  ;;  %v493_v24 = vadd.f32 %v855_v18, %v492_v21 }
  0xfb   : > { %578 = vst [vmem:[%s862_s28 + $0xd0] sm:$0xff] %v546_v16  ;;  %560 = vst [vmem:[%s862_s28 + $0x40] sm:$0xff] %v528_v17  ;;  %v547_v25 = vmax.f32 %v501_v19, 0.0  ;;  %v529_v26 = vmax.f32 %v429_v20, 0.0 }
  0xfc   : > { %576 = vst [vmem:[%s862_s28 + $0xc0] sm:$0xff] %v544_v22  ;;  %563 = vst [vmem:[%s862_s28 + $0x58] sm:$0xff] %v531_v23  ;;  %v545_v27 = vmax.f32 %v493_v24, 0.0 }
  0xfd   : > { %579 = vst [vmem:[%s862_s28 + $0xd8] sm:$0xff] %v547_v25  ;;  %561 = vst [vmem:[%s862_s28 + $0x48] sm:$0xff] %v529_v26  ;;  %v722_v28 = vpop.f32.mrb[12].mxu0 }
  0xfe   : > { %577 = vst [vmem:[%s862_s28 + $0xc8] sm:$0xff] %v545_v27  ;;  %v450_v29 = vadd.f32 %v722_v28, %v855_v18  ;;  %v738_v30 = vpop.f32.mrb[12].mxu1  ;;  %v441_v31 = vpop.f32.mrb[13].mxu0 }
  0xff   : > { %v514_v32 = vadd.f32 %v738_v30, %v855_v18  ;;  %v442_v33 = vadd.f32 %v855_v18, %v441_v31  ;;  %v505_v34 = vpop.f32.mrb[13].mxu1  ;;  %v723_v35 = vpop.f32.mrb[14].mxu0 }
 0x100   : > { %v534_v36 = vmax.f32 %v450_v29, 0.0  ;;  %v506_v37 = vadd.f32 %v855_v18, %v505_v34  ;;  %v453_v38 = vadd.f32 %v723_v35, %v855_v18  ;;  %v739_v39 = vpop.f32.mrb[14].mxu1  ;;  %v444_v40 = vpop.f32.mrb[15].mxu0 }
 0x101   : > { %v550_v41 = vmax.f32 %v514_v32, 0.0  ;;  %v532_v42 = vmax.f32 %v442_v33, 0.0  ;;  %v517_v43 = vadd.f32 %v739_v39, %v855_v18  ;;  %v445_v44 = vadd.f32 %v855_v18, %v444_v40  ;;  %v508_v45 = vpop.f32.mrb[15].mxu1 }
 0x102   : > { %566 = vst [vmem:[%s862_s28 + $0x70] sm:$0xff] %v534_v36  ;;  %v548_v46 = vmax.f32 %v506_v37, 0.0  ;;  %v535_v47 = vmax.f32 %v453_v38, 0.0  ;;  %v509_v48 = vadd.f32 %v855_v18, %v508_v45 }
 0x103   : > { %582 = vst [vmem:[%s862_s28 + $0xf0] sm:$0xff] %v550_v41  ;;  %564 = vst [vmem:[%s862_s28 + $0x60] sm:$0xff] %v532_v42  ;;  %v551_v49 = vmax.f32 %v517_v43, 0.0  ;;  %v533_v50 = vmax.f32 %v445_v44, 0.0 }
 0x104   : > { %580 = vst [vmem:[%s862_s28 + $0xe0] sm:$0xff] %v548_v46  ;;  %567 = vst [vmem:[%s862_s28 + $0x78] sm:$0xff] %v535_v47  ;;  %v549_v51 = vmax.f32 %v509_v48, 0.0 }
 0x105   : > { %583 = vst [vmem:[%s862_s28 + $0xf8] sm:$0xff] %v551_v49  ;;  %565 = vst [vmem:[%s862_s28 + $0x68] sm:$0xff] %v533_v50 }
 0x106   : > { %581 = vst [vmem:[%s862_s28 + $0xe8] sm:$0xff] %v549_v51 }
 0x107 PF: > { %s13_s12 = sadd.s32 1, %s776_s12  }
 0x108   : > { %p10_p4 = scmp.ge.s32.totalorder %s13_s12, 18  }
 0x10a   :  { %12 = sbr.rel (!%p10_p4) target bundleno = 1 (0x1), region = 62 }

// kernel: lprnet_forward.23
= control target key start
LH: loop header
LB: loop body
LE: loop exit
PB: predicated region body
PF: predicated region fallthrough
CT: control target
= control target key end

     0   :  { %s802_s12 = smov 0   ;;  %s972_s0 = inlined_call_operand.vmem [shape: bf16[3600,64], index: 0, kind: input, shape index: {}]   ;;  %s973_s1 = inlined_call_operand.vmem [shape: bf16[64,128], index: 1, kind: input, shape index: {}]   ;;  %s974_s2 = inlined_call_operand.vmem [shape: f32[1,128], index: 2, kind: input, shape index: {}]   ;;  %s975_s3 = inlined_call_operand.vmem [shape: f32[3600,128], index: 3, kind: output, shape index: {}]  }
   0x1 LB: > { %s604_s13 = sadd.s32 4294967295, %s778_s12   ;;  %p608_p0 = scmp.ge.s32.totalorder %s778_s12, 1  ;;  %s778_s12 = sphi %s802_s12, %s13_s12  }
   0x2   : > { %p138_p1 = scmp.lt.s32.totalorder %s778_s12, 16 }
   0x4   : > { %p139_p2 = pnand %p608_p0, %p138_p1 }
   0x5   : > { %v753_v0 = vld [vmem:[%s973_s1] sm:$0xff] (!%p139_p2)   ;;  %v780_v1 = vmov (!%p139_p2), 0.0   ;;  %v754_v2 = vld [vmem:[%s973_s1 + $0x8] sm:$0xff] (!%p139_p2)   ;;  %s162_s18 = smul.u32 (!%p139_p2), 30, %s604_s13  ;;  %vm781_vm0 = vmmov (!%p139_p2), 0   ;;  %v755_v3 = vld [vmem:[%s973_s1 + $0x10] sm:$0xff] (!%p139_p2)  }
   0x6   : > { %142 = sbr.rel (%p139_p2) target bundleno = 295 (0x127), region = 32  ;;  %667 = vmatprep.subr.bf16.mxu0 (!%p139_p2), %v780_v1  ;;  %735 = vmatprep.subr.bf16.mxu1 (!%p139_p2), %v780_v1  ;;  %v756_v4 = vld [vmem:[%s973_s1 + $0x18] sm:$0xff] (!%p139_p2)   ;;  %vm319_vm1 = vcmask (!%p139_p2), 523264   ;;  %v902_v20 = vld [vmem:[%s974_s2] ss:$0 sm:$0xff] (!%p139_p2) }
   0x7   : > { %668 = vmatpush3.bf16.msra.mxu0 (!%p139_p2), %v753_v0  ;;  %739 = vmatpush3.bf16.msra.mxu1 (!%p139_p2), %v753_v0  ;;  %p163_p3 = scmp.lt.s32.totalorder (!%p139_p2), %s162_s18, 449 }
   0x8   : > { %669 = vmatprep.subr.bf16.mxu0 (!%p139_p2), %v780_v1  ;;  %736 = vmatprep.subr.bf16.mxu1 (!%p139_p2), %v780_v1 }
   0x9   : > { %675 = vmatprep.mubr.msk.bf16.mxu0 (!%p139_p2), %vm781_vm0, %v780_v1  ;;  %707 = vmatprep.mubr.msk.bf16.mxu1 (!%p139_p2), %vm781_vm0, %v780_v1 }
   0xb   : > { %670 = vmatpush3.bf16.msra.mxu0 (!%p139_p2), %v754_v2  ;;  %740 = vmatpush3.bf16.msra.mxu1 (!%p139_p2), %v754_v2 }
   0xc   : > { %671 = vmatprep.subr.bf16.mxu0 (!%p139_p2), %v780_v1  ;;  %737 = vmatprep.subr.bf16.mxu1 (!%p139_p2), %v780_v1 }
   0xd   : > { %s977_s18 = smov (!%p163_p3, %s162_s18), 449 }
   0xe   : > { %s609_s21 = sshll.u32 %s977_s18, 2  ;;  %s610_s27 = sshll.u32 %s977_s18, 3 }
   0xf   : > { %s835_s24 = scalar_lea.vmem %s972_s0, %s609_s21  ;;  %672 = vmatpush3.bf16.msra.mxu0 %v755_v3  ;;  %741 = vmatpush3.bf16.msra.mxu1 %v755_v3  ;;  %s907_s5 = scalar_lea.vmem %s975_s3, %s610_s27 }
  0x10   : > { %673 = vmatprep.subr.bf16.mxu0 %v780_v1  ;;  %738 = vmatprep.subr.bf16.mxu1 %v780_v1  ;;  %v757_v5 = vld [vmem:[%s835_s24] sm:$0xff]   ;;  %v759_v7 = vld [vmem:[%s835_s24 + $0x8] sm:$0xff]   ;;  %v761_v9 = vld [vmem:[%s835_s24 + $0x10] sm:$0xff]  }
  0x11   : > { %v758_v6 = vld [vmem:[%s835_s24 + $0x40] sm:$0xff]   ;;  %v760_v8 = vld [vmem:[%s835_s24 + $0x48] sm:$0xff]   ;;  %v762_v10 = vld [vmem:[%s835_s24 + $0x50] sm:$0xff]  }
  0x12   : > { %v763_v11 = vld [vmem:[%s835_s24 + $0x18] sm:$0xff]   ;;  %v765_v13 = vld [vmem:[%s835_s24 + $0x20] sm:$0xff]   ;;  %v767_v15 = vld [vmem:[%s835_s24 + $0x28] sm:$0xff]  }
  0x13   : > { %674 = vmatpush3.bf16.msra.mxu0 %v756_v4  ;;  %742 = vmatpush3.bf16.msra.mxu1 %v756_v4  ;;  %v764_v12 = vld [vmem:[%s835_s24 + $0x58] sm:$0xff]   ;;  %v766_v14 = vld [vmem:[%s835_s24 + $0x60] sm:$0xff]   ;;  %v768_v16 = vld [vmem:[%s835_s24 + $0x68] sm:$0xff]  }
  0x14   : > { %v769_v17 = vld [vmem:[%s835_s24 + $0x30] sm:$0xff]   ;;  %v771_v19 = vld [vmem:[%s835_s24 + $0x38] sm:$0xff]  }
  0x15   : > { %v770_v18 = vld [vmem:[%s835_s24 + $0x70] sm:$0xff]  }
  0x16   : > { %676 = vmatmul.mubr.msk.bf16.vlgmr.msra.gmra.mrb[0].mxu0 %vm319_vm1, %v757_v5  ;;  %708 = vmatmul.mubr.msk.bf16.vlgmr.msra.gmra.mrb[0].mxu1 %vm319_vm1, %v758_v6 }
  0x17   : > { %679 = vmatprep.mubr.msk.bf16.mxu0 %vm781_vm0, %v780_v1  ;;  %711 = vmatprep.mubr.msk.bf16.mxu1 %vm781_vm0, %v780_v1 }
  0x1e   : > { %680 = vmatmul.mubr.msk.bf16.gmra.mrb[4].mxu0 %vm319_vm1, %v759_v7  ;;  %712 = vmatmul.mubr.msk.bf16.gmra.mrb[4].mxu1 %vm319_vm1, %v760_v8 }
  0x1f   : > { %683 = vmatprep.mubr.msk.bf16.mxu0 %vm781_vm0, %v780_v1  ;;  %715 = vmatprep.mubr.msk.bf16.mxu1 %vm781_vm0, %v780_v1 }
  0x26   : > { %684 = vmatmul.mubr.msk.bf16.gmra.mrb[8].mxu0 %vm319_vm1, %v761_v9  ;;  %716 = vmatmul.mubr.msk.bf16.gmra.mrb[8].mxu1 %vm319_vm1, %v762_v10 }
  0x27   : > { %687 = vmatprep.mubr.msk.bf16.mxu0 %vm781_vm0, %v780_v1  ;;  %719 = vmatprep.mubr.msk.bf16.mxu1 %vm781_vm0, %v780_v1 }
  0x2e   : > { %688 = vmatmul.mubr.msk.bf16.gmra.mrb[12].mxu0 %vm319_vm1, %v763_v11  ;;  %720 = vmatmul.mubr.msk.bf16.gmra.mrb[12].mxu1 %vm319_vm1, %v764_v12 }
  0x2f   : > { %691 = vmatprep.mubr.msk.bf16.mxu0 %vm781_vm0, %v780_v1  ;;  %723 = vmatprep.mubr.msk.bf16.mxu1 %vm781_vm0, %v780_v1 }
  0x36   : > { %692 = vmatmul.mubr.msk.bf16.gmra.mrb[16].mxu0 %vm319_vm1, %v765_v13  ;;  %724 = vmatmul.mubr.msk.bf16.gmra.mrb[16].mxu1 %vm319_vm1, %v766_v14 }
  0x37   : > { %695 = vmatprep.mubr.msk.bf16.mxu0 %vm781_vm0, %v780_v1  ;;  %727 = vmatprep.mubr.msk.bf16.mxu1 %vm781_vm0, %v780_v1 }
  0x3e   : > { %696 = vmatmul.mubr.msk.bf16.gmra.mrb[20].mxu0 %vm319_vm1, %v767_v15  ;;  %728 = vmatmul.mubr.msk.bf16.gmra.mrb[20].mxu1 %vm319_vm1, %v768_v16 }
  0x3f   : > { %699 = vmatprep.mubr.msk.bf16.mxu0 %vm781_vm0, %v780_v1  ;;  %731 = vmatprep.mubr.msk.bf16.mxu1 %vm781_vm0, %v780_v1 }
  0x46   : > { %700 = vmatmul.mubr.msk.bf16.gmra.mrb[24].mxu0 %vm319_vm1, %v769_v17  ;;  %732 = vmatmul.mubr.msk.bf16.gmra.mrb[24].mxu1 %vm319_vm1, %v770_v18 }
  0x47   : > { %703 = vmatprep.mubr.msk.bf16.mxu0 %vm781_vm0, %v780_v1 }
  0x4e   : > { %704 = vmatmul.mubr.msk.bf16.gmra.mrb[28].mxu0 %vm319_vm1, %v771_v19 }
  0xe9   : > { %v399_v21 = vpop.f32.mrb[0].mxu0  ;;  %v463_v22 = vpop.f32.mrb[0].mxu1 }
  0xea   : > { %v400_v23 = vadd.f32 %v902_v20, %v399_v21  ;;  %v677_v24 = vpop.f32.mrb[1].mxu0  ;;  %v464_v25 = vadd.f32 %v902_v20, %v463_v22  ;;  %v709_v26 = vpop.f32.mrb[1].mxu1 }
  0xeb   : > { %v402_v27 = vpop.f32.mrb[2].mxu0  ;;  %v466_v28 = vpop.f32.mrb[2].mxu1 }
  0xec   : > { %518 = vst [vmem:[%s907_s5] sm:$0xff] %v400_v23  ;;  %v403_v29 = vadd.f32 %v902_v20, %v402_v27  ;;  %v678_v30 = vpop.f32.mrb[3].mxu0  ;;  %534 = vst [vmem:[%s907_s5 + $0x80] sm:$0xff] %v464_v25  ;;  %v467_v31 = vadd.f32 %v902_v20, %v466_v28  ;;  %v710_v32 = vpop.f32.mrb[3].mxu1 }
  0xee   : > { %519 = vst [vmem:[%s907_s5 + $0x8] sm:$0xff] %v403_v29  ;;  %535 = vst [vmem:[%s907_s5 + $0x88] sm:$0xff] %v467_v31 }
  0xf1   : > { %v407_v33 = vpop.f32.mrb[4].mxu0  ;;  %v471_v34 = vpop.f32.mrb[4].mxu1 }
  0xf2   : > { %v408_v35 = vadd.f32 %v902_v20, %v407_v33  ;;  %v681_v36 = vpop.f32.mrb[5].mxu0  ;;  %v472_v37 = vadd.f32 %v902_v20, %v471_v34  ;;  %v713_v38 = vpop.f32.mrb[5].mxu1 }
  0xf3   : > { %v410_v39 = vpop.f32.mrb[6].mxu0  ;;  %v474_v40 = vpop.f32.mrb[6].mxu1 }
  0xf4   : > { %520 = vst [vmem:[%s907_s5 + $0x10] sm:$0xff] %v408_v35  ;;  %v411_v41 = vadd.f32 %v902_v20, %v410_v39  ;;  %v682_v42 = vpop.f32.mrb[7].mxu0  ;;  %536 = vst [vmem:[%s907_s5 + $0x90] sm:$0xff] %v472_v37  ;;  %v475_v43 = vadd.f32 %v902_v20, %v474_v40  ;;  %v714_v44 = vpop.f32.mrb[7].mxu1 }
  0xf6   : > { %521 = vst [vmem:[%s907_s5 + $0x18] sm:$0xff] %v411_v41  ;;  %537 = vst [vmem:[%s907_s5 + $0x98] sm:$0xff] %v475_v43 }
  0xf9   : > { %v415_v45 = vpop.f32.mrb[8].mxu0  ;;  %v479_v46 = vpop.f32.mrb[8].mxu1 }
  0xfa   : > { %v416_v47 = vadd.f32 %v902_v20, %v415_v45  ;;  %v685_v48 = vpop.f32.mrb[9].mxu0  ;;  %v480_v49 = vadd.f32 %v902_v20, %v479_v46  ;;  %v717_v50 = vpop.f32.mrb[9].mxu1 }
  0xfb   : > { %v418_v51 = vpop.f32.mrb[10].mxu0  ;;  %v482_v52 = vpop.f32.mrb[10].mxu1 }
  0xfc   : > { %522 = vst [vmem:[%s907_s5 + $0x20] sm:$0xff] %v416_v47  ;;  %v419_v53 = vadd.f32 %v902_v20, %v418_v51  ;;  %v686_v54 = vpop.f32.mrb[11].mxu0  ;;  %538 = vst [vmem:[%s907_s5 + $0xa0] sm:$0xff] %v480_v49  ;;  %v483_v55 = vadd.f32 %v902_v20, %v482_v52  ;;  %v718_v56 = vpop.f32.mrb[11].mxu1 }
  0xfe   : > { %523 = vst [vmem:[%s907_s5 + $0x28] sm:$0xff] %v419_v53  ;;  %539 = vst [vmem:[%s907_s5 + $0xa8] sm:$0xff] %v483_v55 }
 0x101   : > { %v423_v57 = vpop.f32.mrb[12].mxu0  ;;  %v487_v58 = vpop.f32.mrb[12].mxu1 }
 0x102   : > { %v424_v59 = vadd.f32 %v902_v20, %v423_v57  ;;  %v689_v60 = vpop.f32.mrb[13].mxu0  ;;  %v488_v61 = vadd.f32 %v902_v20, %v487_v58  ;;  %v721_v62 = vpop.f32.mrb[13].mxu1 }
 0x103   : > { %v426_v63 = vpop.f32.mrb[14].mxu0  ;;  %v490_v0 = vpop.f32.mrb[14].mxu1 }
 0x104   : > { %524 = vst [vmem:[%s907_s5 + $0x30] sm:$0xff] %v424_v59  ;;  %v427_v1 = vadd.f32 %v902_v20, %v426_v63  ;;  %v690_v2 = vpop.f32.mrb[15].mxu0  ;;  %540 = vst [vmem:[%s907_s5 + $0xb0] sm:$0xff] %v488_v61  ;;  %v491_v3 = vadd.f32 %v902_v20, %v490_v0  ;;  %v722_v4 = vpop.f32.mrb[15].mxu1 }
 0x106   : > { %525 = vst [vmem:[%s907_s5 + $0x38] sm:$0xff] %v427_v1  ;;  %541 = vst [vmem:[%s907_s5 + $0xb8] sm:$0xff] %v491_v3 }
 0x109   : > { %v431_v5 = vpop.f32.mrb[16].mxu0  ;;  %v495_v6 = vpop.f32.mrb[16].mxu1 }
 0x10a   : > { %v432_v7 = vadd.f32 %v902_v20, %v431_v5  ;;  %v693_v8 = vpop.f32.mrb[17].mxu0  ;;  %v496_v9 = vadd.f32 %v902_v20, %v495_v6  ;;  %v725_v10 = vpop.f32.mrb[17].mxu1 }
 0x10b   : > { %v434_v11 = vpop.f32.mrb[18].mxu0  ;;  %v498_v12 = vpop.f32.mrb[18].mxu1 }
 0x10c   : > { %526 = vst [vmem:[%s907_s5 + $0x40] sm:$0xff] %v432_v7  ;;  %v435_v13 = vadd.f32 %v902_v20, %v434_v11  ;;  %v694_v14 = vpop.f32.mrb[19].mxu0  ;;  %542 = vst [vmem:[%s907_s5 + $0xc0] sm:$0xff] %v496_v9  ;;  %v499_v15 = vadd.f32 %v902_v20, %v498_v12  ;;  %v726_v16 = vpop.f32.mrb[19].mxu1 }
 0x10e   : > { %527 = vst [vmem:[%s907_s5 + $0x48] sm:$0xff] %v435_v13  ;;  %543 = vst [vmem:[%s907_s5 + $0xc8] sm:$0xff] %v499_v15 }
 0x111   : > { %v439_v17 = vpop.f32.mrb[20].mxu0  ;;  %v503_v18 = vpop.f32.mrb[20].mxu1 }
 0x112   : > { %v440_v19 = vadd.f32 %v902_v20, %v439_v17  ;;  %v697_v21 = vpop.f32.mrb[21].mxu0  ;;  %v504_v22 = vadd.f32 %v902_v20, %v503_v18  ;;  %v729_v23 = vpop.f32.mrb[21].mxu1 }
 0x113   : > { %v442_v24 = vpop.f32.mrb[22].mxu0  ;;  %v506_v25 = vpop.f32.mrb[22].mxu1 }
 0x114   : > { %528 = vst [vmem:[%s907_s5 + $0x50] sm:$0xff] %v440_v19  ;;  %v443_v26 = vadd.f32 %v902_v20, %v442_v24  ;;  %v698_v27 = vpop.f32.mrb[23].mxu0  ;;  %544 = vst [vmem:[%s907_s5 + $0xd0] sm:$0xff] %v504_v22  ;;  %v507_v28 = vadd.f32 %v902_v20, %v506_v25  ;;  %v730_v29 = vpop.f32.mrb[23].mxu1 }
 0x116   : > { %529 = vst [vmem:[%s907_s5 + $0x58] sm:$0xff] %v443_v26  ;;  %545 = vst [vmem:[%s907_s5 + $0xd8] sm:$0xff] %v507_v28 }
 0x119   : > { %v447_v30 = vpop.f32.mrb[24].mxu0  ;;  %v511_v31 = vpop.f32.mrb[24].mxu1 }
 0x11a   : > { %v448_v32 = vadd.f32 %v902_v20, %v447_v30  ;;  %v701_v33 = vpop.f32.mrb[25].mxu0  ;;  %v512_v34 = vadd.f32 %v902_v20, %v511_v31  ;;  %v733_v35 = vpop.f32.mrb[25].mxu1 }
 0x11b   : > { %v450_v36 = vpop.f32.mrb[26].mxu0  ;;  %v514_v37 = vpop.f32.mrb[26].mxu1 }
 0x11c   : > { %530 = vst [vmem:[%s907_s5 + $0x60] sm:$0xff] %v448_v32  ;;  %v451_v38 = vadd.f32 %v902_v20, %v450_v36  ;;  %v702_v39 = vpop.f32.mrb[27].mxu0  ;;  %546 = vst [vmem:[%s907_s5 + $0xe0] sm:$0xff] %v512_v34  ;;  %v515_v40 = vadd.f32 %v902_v20, %v514_v37  ;;  %v734_v41 = vpop.f32.mrb[27].mxu1 }
 0x11e   : > { %531 = vst [vmem:[%s907_s5 + $0x68] sm:$0xff] %v451_v38  ;;  %547 = vst [vmem:[%s907_s5 + $0xe8] sm:$0xff] %v515_v40 }
 0x121   : > { %v455_v42 = vpop.f32.mrb[28].mxu0 }
 0x122   : > { %v456_v43 = vadd.f32 %v902_v20, %v455_v42  ;;  %v705_v44 = vpop.f32.mrb[29].mxu0 }
 0x123   : > { %v458_v45 = vpop.f32.mrb[30].mxu0 }
 0x124   : > { %532 = vst [vmem:[%s907_s5 + $0x70] sm:$0xff] %v456_v43  ;;  %v459_v46 = vadd.f32 %v902_v20, %v458_v45  ;;  %v706_v47 = vpop.f32.mrb[31].mxu0 }
 0x126   : > { %533 = vst [vmem:[%s907_s5 + $0x78] sm:$0xff] %v459_v46 }
 0x127 PF: > { %s13_s12 = sadd.s32 1, %s778_s12  }
 0x128   : > { %p10_p4 = scmp.ge.s32.totalorder %s13_s12, 17  }
 0x12a   :  { %12 = sbr.rel (!%p10_p4) target bundleno = 1 (0x1), region = 62 }

// kernel: lprnet_forward.20
= control target key start
LH: loop header
LB: loop body
LE: loop exit
PB: predicated region body
PF: predicated region fallthrough
CT: control target
= control target key end

     0   :  { %s832_s12 = smov 0   ;;  %s1002_s0 = inlined_call_operand.vmem [shape: bf16[3600,64], index: 0, kind: input, shape index: {}]   ;;  %s1003_s1 = inlined_call_operand.vmem [shape: bf16[64,128], index: 1, kind: input, shape index: {}]   ;;  %s1004_s2 = inlined_call_operand.vmem [shape: f32[1,128], index: 2, kind: input, shape index: {}]   ;;  %s1005_s3 = inlined_call_operand.vmem [shape: f32[3600,128], index: 3, kind: output, shape index: {}]  }
   0x1 LB: > { %s634_s13 = sadd.s32 4294967295, %s808_s12   ;;  %p638_p0 = scmp.ge.s32.totalorder %s808_s12, 1  ;;  %s808_s12 = sphi %s832_s12, %s13_s12  }
   0x2   : > { %p138_p1 = scmp.lt.s32.totalorder %s808_s12, 16 }
   0x4   : > { %p139_p2 = pnand %p638_p0, %p138_p1 }
   0x5   : > { %v783_v0 = vld [vmem:[%s1003_s1] sm:$0xff] (!%p139_p2)   ;;  %v810_v1 = vmov (!%p139_p2), 0.0   ;;  %v784_v2 = vld [vmem:[%s1003_s1 + $0x8] sm:$0xff] (!%p139_p2)   ;;  %s162_s18 = smul.u32 (!%p139_p2), 30, %s634_s13  ;;  %vm811_vm0 = vmmov (!%p139_p2), 0   ;;  %v785_v3 = vld [vmem:[%s1003_s1 + $0x10] sm:$0xff] (!%p139_p2)  }
   0x6   : > { %142 = sbr.rel (%p139_p2) target bundleno = 297 (0x129), region = 32  ;;  %697 = vmatprep.subr.bf16.mxu0 (!%p139_p2), %v810_v1  ;;  %765 = vmatprep.subr.bf16.mxu1 (!%p139_p2), %v810_v1  ;;  %v786_v4 = vld [vmem:[%s1003_s1 + $0x18] sm:$0xff] (!%p139_p2)   ;;  %vm319_vm1 = vcmask (!%p139_p2), 523264   ;;  %v931_v20 = vld [vmem:[%s1004_s2] ss:$0 sm:$0xff] (!%p139_p2) }
   0x7   : > { %698 = vmatpush3.bf16.msra.mxu0 (!%p139_p2), %v783_v0  ;;  %769 = vmatpush3.bf16.msra.mxu1 (!%p139_p2), %v783_v0  ;;  %p163_p3 = scmp.lt.s32.totalorder (!%p139_p2), %s162_s18, 449 }
   0x8   : > { %699 = vmatprep.subr.bf16.mxu0 (!%p139_p2), %v810_v1  ;;  %766 = vmatprep.subr.bf16.mxu1 (!%p139_p2), %v810_v1 }
   0x9   : > { %705 = vmatprep.mubr.msk.bf16.mxu0 (!%p139_p2), %vm811_vm0, %v810_v1  ;;  %737 = vmatprep.mubr.msk.bf16.mxu1 (!%p139_p2), %vm811_vm0, %v810_v1 }
   0xb   : > { %700 = vmatpush3.bf16.msra.mxu0 (!%p139_p2), %v784_v2  ;;  %770 = vmatpush3.bf16.msra.mxu1 (!%p139_p2), %v784_v2 }
   0xc   : > { %701 = vmatprep.subr.bf16.mxu0 (!%p139_p2), %v810_v1  ;;  %767 = vmatprep.subr.bf16.mxu1 (!%p139_p2), %v810_v1 }
   0xd   : > { %s1007_s18 = smov (!%p163_p3, %s162_s18), 449 }
   0xe   : > { %s639_s21 = sshll.u32 %s1007_s18, 2  ;;  %s640_s29 = sshll.u32 %s1007_s18, 3 }
   0xf   : > { %s865_s24 = scalar_lea.vmem %s1002_s0, %s639_s21  ;;  %702 = vmatpush3.bf16.msra.mxu0 %v785_v3  ;;  %771 = vmatpush3.bf16.msra.mxu1 %v785_v3  ;;  %s939_s5 = scalar_lea.vmem %s1005_s3, %s640_s29 }
  0x10   : > { %703 = vmatprep.subr.bf16.mxu0 %v810_v1  ;;  %768 = vmatprep.subr.bf16.mxu1 %v810_v1  ;;  %v787_v5 = vld [vmem:[%s865_s24] sm:$0xff]   ;;  %v789_v7 = vld [vmem:[%s865_s24 + $0x8] sm:$0xff]   ;;  %v791_v9 = vld [vmem:[%s865_s24 + $0x10] sm:$0xff]  }
  0x11   : > { %v788_v6 = vld [vmem:[%s865_s24 + $0x40] sm:$0xff]   ;;  %v790_v8 = vld [vmem:[%s865_s24 + $0x48] sm:$0xff]   ;;  %v792_v10 = vld [vmem:[%s865_s24 + $0x50] sm:$0xff]  }
  0x12   : > { %v793_v11 = vld [vmem:[%s865_s24 + $0x18] sm:$0xff]   ;;  %v795_v13 = vld [vmem:[%s865_s24 + $0x20] sm:$0xff]   ;;  %v797_v15 = vld [vmem:[%s865_s24 + $0x28] sm:$0xff]  }
  0x13   : > { %704 = vmatpush3.bf16.msra.mxu0 %v786_v4  ;;  %772 = vmatpush3.bf16.msra.mxu1 %v786_v4  ;;  %v794_v12 = vld [vmem:[%s865_s24 + $0x58] sm:$0xff]   ;;  %v796_v14 = vld [vmem:[%s865_s24 + $0x60] sm:$0xff]   ;;  %v798_v16 = vld [vmem:[%s865_s24 + $0x68] sm:$0xff]  }
  0x14   : > { %v799_v17 = vld [vmem:[%s865_s24 + $0x30] sm:$0xff]   ;;  %v801_v19 = vld [vmem:[%s865_s24 + $0x38] sm:$0xff]  }
  0x15   : > { %v800_v18 = vld [vmem:[%s865_s24 + $0x70] sm:$0xff]  }
  0x16   : > { %706 = vmatmul.mubr.msk.bf16.vlgmr.msra.gmra.mrb[0].mxu0 %vm319_vm1, %v787_v5  ;;  %738 = vmatmul.mubr.msk.bf16.vlgmr.msra.gmra.mrb[0].mxu1 %vm319_vm1, %v788_v6 }
  0x17   : > { %709 = vmatprep.mubr.msk.bf16.mxu0 %vm811_vm0, %v810_v1  ;;  %741 = vmatprep.mubr.msk.bf16.mxu1 %vm811_vm0, %v810_v1 }
  0x1e   : > { %710 = vmatmul.mubr.msk.bf16.gmra.mrb[4].mxu0 %vm319_vm1, %v789_v7  ;;  %742 = vmatmul.mubr.msk.bf16.gmra.mrb[4].mxu1 %vm319_vm1, %v790_v8 }
  0x1f   : > { %713 = vmatprep.mubr.msk.bf16.mxu0 %vm811_vm0, %v810_v1  ;;  %745 = vmatprep.mubr.msk.bf16.mxu1 %vm811_vm0, %v810_v1 }
  0x26   : > { %714 = vmatmul.mubr.msk.bf16.gmra.mrb[8].mxu0 %vm319_vm1, %v791_v9  ;;  %746 = vmatmul.mubr.msk.bf16.gmra.mrb[8].mxu1 %vm319_vm1, %v792_v10 }
  0x27   : > { %717 = vmatprep.mubr.msk.bf16.mxu0 %vm811_vm0, %v810_v1  ;;  %749 = vmatprep.mubr.msk.bf16.mxu1 %vm811_vm0, %v810_v1 }
  0x2e   : > { %718 = vmatmul.mubr.msk.bf16.gmra.mrb[12].mxu0 %vm319_vm1, %v793_v11  ;;  %750 = vmatmul.mubr.msk.bf16.gmra.mrb[12].mxu1 %vm319_vm1, %v794_v12 }
  0x2f   : > { %721 = vmatprep.mubr.msk.bf16.mxu0 %vm811_vm0, %v810_v1  ;;  %753 = vmatprep.mubr.msk.bf16.mxu1 %vm811_vm0, %v810_v1 }
  0x36   : > { %722 = vmatmul.mubr.msk.bf16.gmra.mrb[16].mxu0 %vm319_vm1, %v795_v13  ;;  %754 = vmatmul.mubr.msk.bf16.gmra.mrb[16].mxu1 %vm319_vm1, %v796_v14 }
  0x37   : > { %725 = vmatprep.mubr.msk.bf16.mxu0 %vm811_vm0, %v810_v1  ;;  %757 = vmatprep.mubr.msk.bf16.mxu1 %vm811_vm0, %v810_v1 }
  0x3e   : > { %726 = vmatmul.mubr.msk.bf16.gmra.mrb[20].mxu0 %vm319_vm1, %v797_v15  ;;  %758 = vmatmul.mubr.msk.bf16.gmra.mrb[20].mxu1 %vm319_vm1, %v798_v16 }
  0x3f   : > { %729 = vmatprep.mubr.msk.bf16.mxu0 %vm811_vm0, %v810_v1  ;;  %761 = vmatprep.mubr.msk.bf16.mxu1 %vm811_vm0, %v810_v1 }
  0x46   : > { %730 = vmatmul.mubr.msk.bf16.gmra.mrb[24].mxu0 %vm319_vm1, %v799_v17  ;;  %762 = vmatmul.mubr.msk.bf16.gmra.mrb[24].mxu1 %vm319_vm1, %v800_v18 }
  0x47   : > { %733 = vmatprep.mubr.msk.bf16.mxu0 %vm811_vm0, %v810_v1 }
  0x4e   : > { %734 = vmatmul.mubr.msk.bf16.gmra.mrb[28].mxu0 %vm319_vm1, %v801_v19 }
  0xe9   : > { %v399_v21 = vpop.f32.mrb[0].mxu0  ;;  %v463_v22 = vpop.f32.mrb[0].mxu1 }
  0xea   : > { %v400_v23 = vadd.f32 %v931_v20, %v399_v21  ;;  %v707_v24 = vpop.f32.mrb[1].mxu0  ;;  %v464_v25 = vadd.f32 %v931_v20, %v463_v22  ;;  %v739_v26 = vpop.f32.mrb[1].mxu1 }
  0xeb   : > { %v402_v27 = vpop.f32.mrb[2].mxu0  ;;  %v466_v28 = vpop.f32.mrb[2].mxu1 }
  0xec   : > { %v518_v29 = vmax.f32 %v400_v23, 0.0  ;;  %v403_v30 = vadd.f32 %v931_v20, %v402_v27  ;;  %v708_v31 = vpop.f32.mrb[3].mxu0  ;;  %v534_v32 = vmax.f32 %v464_v25, 0.0  ;;  %v467_v33 = vadd.f32 %v931_v20, %v466_v28  ;;  %v740_v34 = vpop.f32.mrb[3].mxu1 }
  0xee   : > { %548 = vst [vmem:[%s939_s5] sm:$0xff] %v518_v29  ;;  %v519_v35 = vmax.f32 %v403_v30, 0.0  ;;  %564 = vst [vmem:[%s939_s5 + $0x80] sm:$0xff] %v534_v32  ;;  %v535_v36 = vmax.f32 %v467_v33, 0.0 }
  0xf0   : > { %549 = vst [vmem:[%s939_s5 + $0x8] sm:$0xff] %v519_v35  ;;  %565 = vst [vmem:[%s939_s5 + $0x88] sm:$0xff] %v535_v36 }
  0xf1   : > { %v407_v37 = vpop.f32.mrb[4].mxu0  ;;  %v471_v38 = vpop.f32.mrb[4].mxu1 }
  0xf2   : > { %v408_v39 = vadd.f32 %v931_v20, %v407_v37  ;;  %v711_v40 = vpop.f32.mrb[5].mxu0  ;;  %v472_v41 = vadd.f32 %v931_v20, %v471_v38  ;;  %v743_v42 = vpop.f32.mrb[5].mxu1 }
  0xf3   : > { %v410_v43 = vpop.f32.mrb[6].mxu0  ;;  %v474_v44 = vpop.f32.mrb[6].mxu1 }
  0xf4   : > { %v520_v45 = vmax.f32 %v408_v39, 0.0  ;;  %v411_v46 = vadd.f32 %v931_v20, %v410_v43  ;;  %v712_v47 = vpop.f32.mrb[7].mxu0  ;;  %v536_v48 = vmax.f32 %v472_v41, 0.0  ;;  %v475_v49 = vadd.f32 %v931_v20, %v474_v44  ;;  %v744_v50 = vpop.f32.mrb[7].mxu1 }
  0xf6   : > { %550 = vst [vmem:[%s939_s5 + $0x10] sm:$0xff] %v520_v45  ;;  %v521_v51 = vmax.f32 %v411_v46, 0.0  ;;  %566 = vst [vmem:[%s939_s5 + $0x90] sm:$0xff] %v536_v48  ;;  %v537_v52 = vmax.f32 %v475_v49, 0.0 }
  0xf8   : > { %551 = vst [vmem:[%s939_s5 + $0x18] sm:$0xff] %v521_v51  ;;  %567 = vst [vmem:[%s939_s5 + $0x98] sm:$0xff] %v537_v52 }
  0xf9   : > { %v415_v53 = vpop.f32.mrb[8].mxu0  ;;  %v479_v54 = vpop.f32.mrb[8].mxu1 }
  0xfa   : > { %v416_v55 = vadd.f32 %v931_v20, %v415_v53  ;;  %v715_v56 = vpop.f32.mrb[9].mxu0  ;;  %v480_v57 = vadd.f32 %v931_v20, %v479_v54  ;;  %v747_v58 = vpop.f32.mrb[9].mxu1 }
  0xfb   : > { %v418_v59 = vpop.f32.mrb[10].mxu0  ;;  %v482_v60 = vpop.f32.mrb[10].mxu1 }
  0xfc   : > { %v522_v61 = vmax.f32 %v416_v55, 0.0  ;;  %v419_v62 = vadd.f32 %v931_v20, %v418_v59  ;;  %v716_v63 = vpop.f32.mrb[11].mxu0  ;;  %v538_v0 = vmax.f32 %v480_v57, 0.0  ;;  %v483_v1 = vadd.f32 %v931_v20, %v482_v60  ;;  %v748_v2 = vpop.f32.mrb[11].mxu1 }
  0xfe   : > { %552 = vst [vmem:[%s939_s5 + $0x20] sm:$0xff] %v522_v61  ;;  %v523_v3 = vmax.f32 %v419_v62, 0.0  ;;  %568 = vst [vmem:[%s939_s5 + $0xa0] sm:$0xff] %v538_v0  ;;  %v539_v4 = vmax.f32 %v483_v1, 0.0 }
 0x100   : > { %553 = vst [vmem:[%s939_s5 + $0x28] sm:$0xff] %v523_v3  ;;  %569 = vst [vmem:[%s939_s5 + $0xa8] sm:$0xff] %v539_v4 }
 0x101   : > { %v423_v5 = vpop.f32.mrb[12].mxu0  ;;  %v487_v6 = vpop.f32.mrb[12].mxu1 }
 0x102   : > { %v424_v7 = vadd.f32 %v931_v20, %v423_v5  ;;  %v719_v8 = vpop.f32.mrb[13].mxu0  ;;  %v488_v9 = vadd.f32 %v931_v20, %v487_v6  ;;  %v751_v10 = vpop.f32.mrb[13].mxu1 }
 0x103   : > { %v426_v11 = vpop.f32.mrb[14].mxu0  ;;  %v490_v12 = vpop.f32.mrb[14].mxu1 }
 0x104   : > { %v524_v13 = vmax.f32 %v424_v7, 0.0  ;;  %v427_v14 = vadd.f32 %v931_v20, %v426_v11  ;;  %v720_v15 = vpop.f32.mrb[15].mxu0  ;;  %v540_v16 = vmax.f32 %v488_v9, 0.0  ;;  %v491_v17 = vadd.f32 %v931_v20, %v490_v12  ;;  %v752_v18 = vpop.f32.mrb[15].mxu1 }
 0x106   : > { %554 = vst [vmem:[%s939_s5 + $0x30] sm:$0xff] %v524_v13  ;;  %v525_v19 = vmax.f32 %v427_v14, 0.0  ;;  %570 = vst [vmem:[%s939_s5 + $0xb0] sm:$0xff] %v540_v16  ;;  %v541_v21 = vmax.f32 %v491_v17, 0.0 }
 0x108   : > { %555 = vst [vmem:[%s939_s5 + $0x38] sm:$0xff] %v525_v19  ;;  %571 = vst [vmem:[%s939_s5 + $0xb8] sm:$0xff] %v541_v21 }
 0x109   : > { %v431_v22 = vpop.f32.mrb[16].mxu0  ;;  %v495_v23 = vpop.f32.mrb[16].mxu1 }
 0x10a   : > { %v432_v24 = vadd.f32 %v931_v20, %v431_v22  ;;  %v723_v25 = vpop.f32.mrb[17].mxu0  ;;  %v496_v26 = vadd.f32 %v931_v20, %v495_v23  ;;  %v755_v27 = vpop.f32.mrb[17].mxu1 }
 0x10b   : > { %v434_v28 = vpop.f32.mrb[18].mxu0  ;;  %v498_v29 = vpop.f32.mrb[18].mxu1 }
 0x10c   : > { %v526_v30 = vmax.f32 %v432_v24, 0.0  ;;  %v435_v31 = vadd.f32 %v931_v20, %v434_v28  ;;  %v724_v32 = vpop.f32.mrb[19].mxu0  ;;  %v542_v33 = vmax.f32 %v496_v26, 0.0  ;;  %v499_v34 = vadd.f32 %v931_v20, %v498_v29  ;;  %v756_v35 = vpop.f32.mrb[19].mxu1 }
 0x10e   : > { %556 = vst [vmem:[%s939_s5 + $0x40] sm:$0xff] %v526_v30  ;;  %v527_v36 = vmax.f32 %v435_v31, 0.0  ;;  %572 = vst [vmem:[%s939_s5 + $0xc0] sm:$0xff] %v542_v33  ;;  %v543_v37 = vmax.f32 %v499_v34, 0.0 }
 0x110   : > { %557 = vst [vmem:[%s939_s5 + $0x48] sm:$0xff] %v527_v36  ;;  %573 = vst [vmem:[%s939_s5 + $0xc8] sm:$0xff] %v543_v37 }
 0x111   : > { %v439_v38 = vpop.f32.mrb[20].mxu0  ;;  %v503_v39 = vpop.f32.mrb[20].mxu1 }
 0x112   : > { %v440_v40 = vadd.f32 %v931_v20, %v439_v38  ;;  %v727_v41 = vpop.f32.mrb[21].mxu0  ;;  %v504_v42 = vadd.f32 %v931_v20, %v503_v39  ;;  %v759_v43 = vpop.f32.mrb[21].mxu1 }
 0x113   : > { %v442_v44 = vpop.f32.mrb[22].mxu0  ;;  %v506_v45 = vpop.f32.mrb[22].mxu1 }
 0x114   : > { %v528_v46 = vmax.f32 %v440_v40, 0.0  ;;  %v443_v47 = vadd.f32 %v931_v20, %v442_v44  ;;  %v728_v48 = vpop.f32.mrb[23].mxu0  ;;  %v544_v49 = vmax.f32 %v504_v42, 0.0  ;;  %v507_v50 = vadd.f32 %v931_v20, %v506_v45  ;;  %v760_v51 = vpop.f32.mrb[23].mxu1 }
 0x116   : > { %558 = vst [vmem:[%s939_s5 + $0x50] sm:$0xff] %v528_v46  ;;  %v529_v52 = vmax.f32 %v443_v47, 0.0  ;;  %574 = vst [vmem:[%s939_s5 + $0xd0] sm:$0xff] %v544_v49  ;;  %v545_v53 = vmax.f32 %v507_v50, 0.0 }
 0x118   : > { %559 = vst [vmem:[%s939_s5 + $0x58] sm:$0xff] %v529_v52  ;;  %575 = vst [vmem:[%s939_s5 + $0xd8] sm:$0xff] %v545_v53 }
 0x119   : > { %v447_v54 = vpop.f32.mrb[24].mxu0  ;;  %v511_v55 = vpop.f32.mrb[24].mxu1 }
 0x11a   : > { %v448_v56 = vadd.f32 %v931_v20, %v447_v54  ;;  %v731_v57 = vpop.f32.mrb[25].mxu0  ;;  %v512_v58 = vadd.f32 %v931_v20, %v511_v55  ;;  %v763_v59 = vpop.f32.mrb[25].mxu1 }
 0x11b   : > { %v450_v60 = vpop.f32.mrb[26].mxu0  ;;  %v514_v61 = vpop.f32.mrb[26].mxu1 }
 0x11c   : > { %v530_v62 = vmax.f32 %v448_v56, 0.0  ;;  %v451_v63 = vadd.f32 %v931_v20, %v450_v60  ;;  %v732_v0 = vpop.f32.mrb[27].mxu0  ;;  %v546_v1 = vmax.f32 %v512_v58, 0.0  ;;  %v515_v2 = vadd.f32 %v931_v20, %v514_v61  ;;  %v764_v3 = vpop.f32.mrb[27].mxu1 }
 0x11e   : > { %560 = vst [vmem:[%s939_s5 + $0x60] sm:$0xff] %v530_v62  ;;  %v531_v4 = vmax.f32 %v451_v63, 0.0  ;;  %576 = vst [vmem:[%s939_s5 + $0xe0] sm:$0xff] %v546_v1  ;;  %v547_v5 = vmax.f32 %v515_v2, 0.0 }
 0x120   : > { %561 = vst [vmem:[%s939_s5 + $0x68] sm:$0xff] %v531_v4  ;;  %577 = vst [vmem:[%s939_s5 + $0xe8] sm:$0xff] %v547_v5 }
 0x121   : > { %v455_v6 = vpop.f32.mrb[28].mxu0 }
 0x122   : > { %v456_v7 = vadd.f32 %v931_v20, %v455_v6  ;;  %v735_v8 = vpop.f32.mrb[29].mxu0 }
 0x123   : > { %v458_v9 = vpop.f32.mrb[30].mxu0 }
 0x124   : > { %v532_v10 = vmax.f32 %v456_v7, 0.0  ;;  %v459_v11 = vadd.f32 %v931_v20, %v458_v9  ;;  %v736_v12 = vpop.f32.mrb[31].mxu0 }
 0x126   : > { %562 = vst [vmem:[%s939_s5 + $0x70] sm:$0xff] %v532_v10  ;;  %v533_v13 = vmax.f32 %v459_v11, 0.0 }
 0x128   : > { %563 = vst [vmem:[%s939_s5 + $0x78] sm:$0xff] %v533_v13 }
 0x129 PF: > { %s13_s12 = sadd.s32 1, %s808_s12  }
 0x12a   : > { %p10_p4 = scmp.ge.s32.totalorder %s13_s12, 17  }
 0x12c   :  { %12 = sbr.rel (!%p10_p4) target bundleno = 1 (0x1), region = 62 }

// kernel: lprnet_forward.21
= control target key start
LH: loop header
LB: loop body
LE: loop exit
PB: predicated region body
PF: predicated region fallthrough
CT: control target
= control target key end

     0   :  { %s862_s12 = smov 0   ;;  %s1042_s0 = inlined_call_operand.vmem [shape: bf16[3600,96], index: 0, kind: input, shape index: {}]   ;;  %s1043_s1 = inlined_call_operand.vmem [shape: bf16[96,128], index: 1, kind: input, shape index: {}]   ;;  %s1044_s2 = inlined_call_operand.vmem [shape: f32[1,128], index: 2, kind: input, shape index: {}]   ;;  %s1045_s3 = inlined_call_operand.vmem [shape: f32[3600,128], index: 3, kind: output, shape index: {}]  }
   0x1 LB: > { %s650_s13 = sadd.s32 4294967295, %s838_s12   ;;  %p654_p0 = scmp.ge.s32.totalorder %s838_s12, 1  ;;  %s838_s12 = sphi %s862_s12, %s13_s12  }
   0x2   : > { %p138_p1 = scmp.lt.s32.totalorder %s838_s12, 16 }
   0x4   : > { %p139_p2 = pnand %p654_p0, %p138_p1 }
   0x5   : > { %v811_v0 = vld [vmem:[%s1043_s1] sm:$0xff] (!%p139_p2)   ;;  %v840_v1 = vmov (!%p139_p2), 0.0   ;;  %v812_v2 = vld [vmem:[%s1043_s1 + $0x8] sm:$0xff] (!%p139_p2)   ;;  %s162_s18 = smul.u32 (!%p139_p2), 30, %s650_s13  ;;  %vm841_vm0 = vmmov (!%p139_p2), 0   ;;  %v813_v3 = vld [vmem:[%s1043_s1 + $0x10] sm:$0xff] (!%p139_p2)  }
   0x6   : > { %142 = sbr.rel (%p139_p2) target bundleno = 305 (0x131), region = 32  ;;  %717 = vmatprep.subr.bf16.mxu0 (!%p139_p2), %v840_v1  ;;  %789 = vmatprep.subr.bf16.mxu1 (!%p139_p2), %v840_v1  ;;  %v814_v4 = vld [vmem:[%s1043_s1 + $0x18] sm:$0xff] (!%p139_p2)   ;;  %v815_v5 = vld [vmem:[%s1043_s1 + $0x20] sm:$0xff] (!%p139_p2)   ;;  %v816_v6 = vld [vmem:[%s1043_s1 + $0x28] sm:$0xff] (!%p139_p2)   ;;  %vm335_vm1 = vcmask (!%p139_p2), 785408  }
   0x7   : > { %718 = vmatpush3.bf16.msra.mxu0 (!%p139_p2), %v811_v0  ;;  %795 = vmatpush3.bf16.msra.mxu1 (!%p139_p2), %v811_v0  ;;  %p163_p3 = scmp.lt.s32.totalorder (!%p139_p2), %s162_s18, 449  ;;  %v971_v22 = vld [vmem:[%s1044_s2] ss:$0 sm:$0xff] (!%p139_p2) }
   0x8   : > { %719 = vmatprep.subr.bf16.mxu0 (!%p139_p2), %v840_v1  ;;  %790 = vmatprep.subr.bf16.mxu1 (!%p139_p2), %v840_v1 }
   0x9   : > { %729 = vmatprep.mubr.msk.bf16.mxu0 (!%p139_p2), %vm841_vm0, %v840_v1  ;;  %761 = vmatprep.mubr.msk.bf16.mxu1 (!%p139_p2), %vm841_vm0, %v840_v1 }
   0xb   : > { %720 = vmatpush3.bf16.msra.mxu0 (!%p139_p2), %v812_v2  ;;  %796 = vmatpush3.bf16.msra.mxu1 (!%p139_p2), %v812_v2 }
   0xc   : > { %721 = vmatprep.subr.bf16.mxu0 (!%p139_p2), %v840_v1  ;;  %791 = vmatprep.subr.bf16.mxu1 (!%p139_p2), %v840_v1 }
   0xd   : > { %s1047_s18 = smov (!%p163_p3, %s162_s18), 449 }
   0xe   : > { %s655_s21 = sshll.u32 %s1047_s18, 2  ;;  %s656_s6 = sshll.u32 %s1047_s18, 3 }
   0xf   : > { %s895_s24 = scalar_lea.vmem %s1042_s0, %s655_s21  ;;  %722 = vmatpush3.bf16.msra.mxu0 %v813_v3  ;;  %797 = vmatpush3.bf16.msra.mxu1 %v813_v3  ;;  %s979_s9 = scalar_lea.vmem %s1045_s3, %s656_s6 }
  0x10   : > { %723 = vmatprep.subr.bf16.mxu0 %v840_v1  ;;  %792 = vmatprep.subr.bf16.mxu1 %v840_v1  ;;  %v817_v7 = vld [vmem:[%s895_s24] sm:$0xff]   ;;  %v819_v9 = vld [vmem:[%s895_s24 + $0x8] sm:$0xff]   ;;  %v821_v11 = vld [vmem:[%s895_s24 + $0x10] sm:$0xff]  }
  0x11   : > { %v818_v8 = vld [vmem:[%s895_s24 + $0x40] sm:$0xff]   ;;  %v820_v10 = vld [vmem:[%s895_s24 + $0x48] sm:$0xff]   ;;  %v822_v12 = vld [vmem:[%s895_s24 + $0x50] sm:$0xff]  }
  0x12   : > { %v823_v13 = vld [vmem:[%s895_s24 + $0x18] sm:$0xff]   ;;  %v825_v15 = vld [vmem:[%s895_s24 + $0x20] sm:$0xff]   ;;  %v827_v17 = vld [vmem:[%s895_s24 + $0x28] sm:$0xff]  }
  0x13   : > { %724 = vmatpush3.bf16.msra.mxu0 %v814_v4  ;;  %798 = vmatpush3.bf16.msra.mxu1 %v814_v4  ;;  %v824_v14 = vld [vmem:[%s895_s24 + $0x58] sm:$0xff]   ;;  %v826_v16 = vld [vmem:[%s895_s24 + $0x60] sm:$0xff]   ;;  %v828_v18 = vld [vmem:[%s895_s24 + $0x68] sm:$0xff]  }
  0x14   : > { %725 = vmatprep.subr.bf16.mxu0 %v840_v1  ;;  %793 = vmatprep.subr.bf16.mxu1 %v840_v1  ;;  %v829_v19 = vld [vmem:[%s895_s24 + $0x30] sm:$0xff]   ;;  %v831_v21 = vld [vmem:[%s895_s24 + $0x38] sm:$0xff]  }
  0x15   : > { %v830_v20 = vld [vmem:[%s895_s24 + $0x70] sm:$0xff]  }
  0x17   : > { %726 = vmatpush3.bf16.msra.mxu0 %v815_v5  ;;  %799 = vmatpush3.bf16.msra.mxu1 %v815_v5 }
  0x18   : > { %727 = vmatprep.subr.bf16.mxu0 %v840_v1  ;;  %794 = vmatprep.subr.bf16.mxu1 %v840_v1 }
  0x1b   : > { %728 = vmatpush3.bf16.msra.mxu0 %v816_v6  ;;  %800 = vmatpush3.bf16.msra.mxu1 %v816_v6 }
  0x1e   : > { %730 = vmatmul.mubr.msk.bf16.vlgmr.msra.gmra.mrb[0].mxu0 %vm335_vm1, %v817_v7  ;;  %762 = vmatmul.mubr.msk.bf16.vlgmr.msra.gmra.mrb[0].mxu1 %vm335_vm1, %v818_v8 }
  0x1f   : > { %733 = vmatprep.mubr.msk.bf16.mxu0 %vm841_vm0, %v840_v1  ;;  %765 = vmatprep.mubr.msk.bf16.mxu1 %vm841_vm0, %v840_v1 }
  0x26   : > { %734 = vmatmul.mubr.msk.bf16.gmra.mrb[4].mxu0 %vm335_vm1, %v819_v9  ;;  %766 = vmatmul.mubr.msk.bf16.gmra.mrb[4].mxu1 %vm335_vm1, %v820_v10 }
  0x27   : > { %737 = vmatprep.mubr.msk.bf16.mxu0 %vm841_vm0, %v840_v1  ;;  %769 = vmatprep.mubr.msk.bf16.mxu1 %vm841_vm0, %v840_v1 }
  0x2e   : > { %738 = vmatmul.mubr.msk.bf16.gmra.mrb[8].mxu0 %vm335_vm1, %v821_v11  ;;  %770 = vmatmul.mubr.msk.bf16.gmra.mrb[8].mxu1 %vm335_vm1, %v822_v12 }
  0x2f   : > { %741 = vmatprep.mubr.msk.bf16.mxu0 %vm841_vm0, %v840_v1  ;;  %773 = vmatprep.mubr.msk.bf16.mxu1 %vm841_vm0, %v840_v1 }
  0x36   : > { %742 = vmatmul.mubr.msk.bf16.gmra.mrb[12].mxu0 %vm335_vm1, %v823_v13  ;;  %774 = vmatmul.mubr.msk.bf16.gmra.mrb[12].mxu1 %vm335_vm1, %v824_v14 }
  0x37   : > { %745 = vmatprep.mubr.msk.bf16.mxu0 %vm841_vm0, %v840_v1  ;;  %777 = vmatprep.mubr.msk.bf16.mxu1 %vm841_vm0, %v840_v1 }
  0x3e   : > { %746 = vmatmul.mubr.msk.bf16.gmra.mrb[16].mxu0 %vm335_vm1, %v825_v15  ;;  %778 = vmatmul.mubr.msk.bf16.gmra.mrb[16].mxu1 %vm335_vm1, %v826_v16 }
  0x3f   : > { %749 = vmatprep.mubr.msk.bf16.mxu0 %vm841_vm0, %v840_v1  ;;  %781 = vmatprep.mubr.msk.bf16.mxu1 %vm841_vm0, %v840_v1 }
  0x46   : > { %750 = vmatmul.mubr.msk.bf16.gmra.mrb[20].mxu0 %vm335_vm1, %v827_v17  ;;  %782 = vmatmul.mubr.msk.bf16.gmra.mrb[20].mxu1 %vm335_vm1, %v828_v18 }
  0x47   : > { %753 = vmatprep.mubr.msk.bf16.mxu0 %vm841_vm0, %v840_v1  ;;  %785 = vmatprep.mubr.msk.bf16.mxu1 %vm841_vm0, %v840_v1 }
  0x4e   : > { %754 = vmatmul.mubr.msk.bf16.gmra.mrb[24].mxu0 %vm335_vm1, %v829_v19  ;;  %786 = vmatmul.mubr.msk.bf16.gmra.mrb[24].mxu1 %vm335_vm1, %v830_v20 }
  0x4f   : > { %757 = vmatprep.mubr.msk.bf16.mxu0 %vm841_vm0, %v840_v1 }
  0x56   : > { %758 = vmatmul.mubr.msk.bf16.gmra.mrb[28].mxu0 %vm335_vm1, %v831_v21 }
  0xf1   : > { %v415_v23 = vpop.f32.mrb[0].mxu0  ;;  %v479_v24 = vpop.f32.mrb[0].mxu1 }
  0xf2   : > { %v416_v25 = vadd.f32 %v971_v22, %v415_v23  ;;  %v731_v26 = vpop.f32.mrb[1].mxu0  ;;  %v480_v27 = vadd.f32 %v971_v22, %v479_v24  ;;  %v763_v28 = vpop.f32.mrb[1].mxu1 }
  0xf3   : > { %v418_v29 = vpop.f32.mrb[2].mxu0  ;;  %v482_v30 = vpop.f32.mrb[2].mxu1 }
  0xf4   : > { %v534_v31 = vmax.f32 %v416_v25, 0.0  ;;  %v419_v32 = vadd.f32 %v971_v22, %v418_v29  ;;  %v732_v33 = vpop.f32.mrb[3].mxu0  ;;  %v550_v34 = vmax.f32 %v480_v27, 0.0  ;;  %v483_v35 = vadd.f32 %v971_v22, %v482_v30  ;;  %v764_v36 = vpop.f32.mrb[3].mxu1 }
  0xf6   : > { %564 = vst [vmem:[%s979_s9] sm:$0xff] %v534_v31  ;;  %v535_v37 = vmax.f32 %v419_v32, 0.0  ;;  %580 = vst [vmem:[%s979_s9 + $0x80] sm:$0xff] %v550_v34  ;;  %v551_v38 = vmax.f32 %v483_v35, 0.0 }
  0xf8   : > { %565 = vst [vmem:[%s979_s9 + $0x8] sm:$0xff] %v535_v37  ;;  %581 = vst [vmem:[%s979_s9 + $0x88] sm:$0xff] %v551_v38 }
  0xf9   : > { %v423_v39 = vpop.f32.mrb[4].mxu0  ;;  %v487_v40 = vpop.f32.mrb[4].mxu1 }
  0xfa   : > { %v424_v41 = vadd.f32 %v971_v22, %v423_v39  ;;  %v735_v42 = vpop.f32.mrb[5].mxu0  ;;  %v488_v43 = vadd.f32 %v971_v22, %v487_v40  ;;  %v767_v44 = vpop.f32.mrb[5].mxu1 }
  0xfb   : > { %v426_v45 = vpop.f32.mrb[6].mxu0  ;;  %v490_v46 = vpop.f32.mrb[6].mxu1 }
  0xfc   : > { %v536_v47 = vmax.f32 %v424_v41, 0.0  ;;  %v427_v48 = vadd.f32 %v971_v22, %v426_v45  ;;  %v736_v49 = vpop.f32.mrb[7].mxu0  ;;  %v552_v50 = vmax.f32 %v488_v43, 0.0  ;;  %v491_v51 = vadd.f32 %v971_v22, %v490_v46  ;;  %v768_v52 = vpop.f32.mrb[7].mxu1 }
  0xfe   : > { %566 = vst [vmem:[%s979_s9 + $0x10] sm:$0xff] %v536_v47  ;;  %v537_v53 = vmax.f32 %v427_v48, 0.0  ;;  %582 = vst [vmem:[%s979_s9 + $0x90] sm:$0xff] %v552_v50  ;;  %v553_v54 = vmax.f32 %v491_v51, 0.0 }
 0x100   : > { %567 = vst [vmem:[%s979_s9 + $0x18] sm:$0xff] %v537_v53  ;;  %583 = vst [vmem:[%s979_s9 + $0x98] sm:$0xff] %v553_v54 }
 0x101   : > { %v431_v55 = vpop.f32.mrb[8].mxu0  ;;  %v495_v56 = vpop.f32.mrb[8].mxu1 }
 0x102   : > { %v432_v57 = vadd.f32 %v971_v22, %v431_v55  ;;  %v739_v58 = vpop.f32.mrb[9].mxu0  ;;  %v496_v59 = vadd.f32 %v971_v22, %v495_v56  ;;  %v771_v60 = vpop.f32.mrb[9].mxu1 }
 0x103   : > { %v434_v61 = vpop.f32.mrb[10].mxu0  ;;  %v498_v62 = vpop.f32.mrb[10].mxu1 }
 0x104   : > { %v538_v63 = vmax.f32 %v432_v57, 0.0  ;;  %v435_v0 = vadd.f32 %v971_v22, %v434_v61  ;;  %v740_v1 = vpop.f32.mrb[11].mxu0  ;;  %v554_v2 = vmax.f32 %v496_v59, 0.0  ;;  %v499_v3 = vadd.f32 %v971_v22, %v498_v62  ;;  %v772_v4 = vpop.f32.mrb[11].mxu1 }
 0x106   : > { %568 = vst [vmem:[%s979_s9 + $0x20] sm:$0xff] %v538_v63  ;;  %v539_v5 = vmax.f32 %v435_v0, 0.0  ;;  %584 = vst [vmem:[%s979_s9 + $0xa0] sm:$0xff] %v554_v2  ;;  %v555_v6 = vmax.f32 %v499_v3, 0.0 }
 0x108   : > { %569 = vst [vmem:[%s979_s9 + $0x28] sm:$0xff] %v539_v5  ;;  %585 = vst [vmem:[%s979_s9 + $0xa8] sm:$0xff] %v555_v6 }
 0x109   : > { %v439_v7 = vpop.f32.mrb[12].mxu0  ;;  %v503_v8 = vpop.f32.mrb[12].mxu1 }
 0x10a   : > { %v440_v9 = vadd.f32 %v971_v22, %v439_v7  ;;  %v743_v10 = vpop.f32.mrb[13].mxu0  ;;  %v504_v11 = vadd.f32 %v971_v22, %v503_v8  ;;  %v775_v12 = vpop.f32.mrb[13].mxu1 }
 0x10b   : > { %v442_v13 = vpop.f32.mrb[14].mxu0  ;;  %v506_v14 = vpop.f32.mrb[14].mxu1 }
 0x10c   : > { %v540_v15 = vmax.f32 %v440_v9, 0.0  ;;  %v443_v16 = vadd.f32 %v971_v22, %v442_v13  ;;  %v744_v17 = vpop.f32.mrb[15].mxu0  ;;  %v556_v18 = vmax.f32 %v504_v11, 0.0  ;;  %v507_v19 = vadd.f32 %v971_v22, %v506_v14  ;;  %v776_v20 = vpop.f32.mrb[15].mxu1 }
 0x10e   : > { %570 = vst [vmem:[%s979_s9 + $0x30] sm:$0xff] %v540_v15  ;;  %v541_v21 = vmax.f32 %v443_v16, 0.0  ;;  %586 = vst [vmem:[%s979_s9 + $0xb0] sm:$0xff] %v556_v18  ;;  %v557_v23 = vmax.f32 %v507_v19, 0.0 }
 0x110   : > { %571 = vst [vmem:[%s979_s9 + $0x38] sm:$0xff] %v541_v21  ;;  %587 = vst [vmem:[%s979_s9 + $0xb8] sm:$0xff] %v557_v23 }
 0x111   : > { %v447_v24 = vpop.f32.mrb[16].mxu0  ;;  %v511_v25 = vpop.f32.mrb[16].mxu1 }
 0x112   : > { %v448_v26 = vadd.f32 %v971_v22, %v447_v24  ;;  %v747_v27 = vpop.f32.mrb[17].mxu0  ;;  %v512_v28 = vadd.f32 %v971_v22, %v511_v25  ;;  %v779_v29 = vpop.f32.mrb[17].mxu1 }
 0x113   : > { %v450_v30 = vpop.f32.mrb[18].mxu0  ;;  %v514_v31 = vpop.f32.mrb[18].mxu1 }
 0x114   : > { %v542_v32 = vmax.f32 %v448_v26, 0.0  ;;  %v451_v33 = vadd.f32 %v971_v22, %v450_v30  ;;  %v748_v34 = vpop.f32.mrb[19].mxu0  ;;  %v558_v35 = vmax.f32 %v512_v28, 0.0  ;;  %v515_v36 = vadd.f32 %v971_v22, %v514_v31  ;;  %v780_v37 = vpop.f32.mrb[19].mxu1 }
 0x116   : > { %572 = vst [vmem:[%s979_s9 + $0x40] sm:$0xff] %v542_v32  ;;  %v543_v38 = vmax.f32 %v451_v33, 0.0  ;;  %588 = vst [vmem:[%s979_s9 + $0xc0] sm:$0xff] %v558_v35  ;;  %v559_v39 = vmax.f32 %v515_v36, 0.0 }
 0x118   : > { %573 = vst [vmem:[%s979_s9 + $0x48] sm:$0xff] %v543_v38  ;;  %589 = vst [vmem:[%s979_s9 + $0xc8] sm:$0xff] %v559_v39 }
 0x119   : > { %v455_v40 = vpop.f32.mrb[20].mxu0  ;;  %v519_v41 = vpop.f32.mrb[20].mxu1 }
 0x11a   : > { %v456_v42 = vadd.f32 %v971_v22, %v455_v40  ;;  %v751_v43 = vpop.f32.mrb[21].mxu0  ;;  %v520_v44 = vadd.f32 %v971_v22, %v519_v41  ;;  %v783_v45 = vpop.f32.mrb[21].mxu1 }
 0x11b   : > { %v458_v46 = vpop.f32.mrb[22].mxu0  ;;  %v522_v47 = vpop.f32.mrb[22].mxu1 }
 0x11c   : > { %v544_v48 = vmax.f32 %v456_v42, 0.0  ;;  %v459_v49 = vadd.f32 %v971_v22, %v458_v46  ;;  %v752_v50 = vpop.f32.mrb[23].mxu0  ;;  %v560_v51 = vmax.f32 %v520_v44, 0.0  ;;  %v523_v52 = vadd.f32 %v971_v22, %v522_v47  ;;  %v784_v53 = vpop.f32.mrb[23].mxu1 }
 0x11e   : > { %574 = vst [vmem:[%s979_s9 + $0x50] sm:$0xff] %v544_v48  ;;  %v545_v54 = vmax.f32 %v459_v49, 0.0  ;;  %590 = vst [vmem:[%s979_s9 + $0xd0] sm:$0xff] %v560_v51  ;;  %v561_v55 = vmax.f32 %v523_v52, 0.0 }
 0x120   : > { %575 = vst [vmem:[%s979_s9 + $0x58] sm:$0xff] %v545_v54  ;;  %591 = vst [vmem:[%s979_s9 + $0xd8] sm:$0xff] %v561_v55 }
 0x121   : > { %v463_v56 = vpop.f32.mrb[24].mxu0  ;;  %v527_v57 = vpop.f32.mrb[24].mxu1 }
 0x122   : > { %v464_v58 = vadd.f32 %v971_v22, %v463_v56  ;;  %v755_v59 = vpop.f32.mrb[25].mxu0  ;;  %v528_v60 = vadd.f32 %v971_v22, %v527_v57  ;;  %v787_v61 = vpop.f32.mrb[25].mxu1 }
 0x123   : > { %v466_v62 = vpop.f32.mrb[26].mxu0  ;;  %v530_v63 = vpop.f32.mrb[26].mxu1 }
 0x124   : > { %v546_v0 = vmax.f32 %v464_v58, 0.0  ;;  %v467_v1 = vadd.f32 %v971_v22, %v466_v62  ;;  %v756_v2 = vpop.f32.mrb[27].mxu0  ;;  %v562_v3 = vmax.f32 %v528_v60, 0.0  ;;  %v531_v4 = vadd.f32 %v971_v22, %v530_v63  ;;  %v788_v5 = vpop.f32.mrb[27].mxu1 }
 0x126   : > { %576 = vst [vmem:[%s979_s9 + $0x60] sm:$0xff] %v546_v0  ;;  %v547_v6 = vmax.f32 %v467_v1, 0.0  ;;  %592 = vst [vmem:[%s979_s9 + $0xe0] sm:$0xff] %v562_v3  ;;  %v563_v7 = vmax.f32 %v531_v4, 0.0 }
 0x128   : > { %577 = vst [vmem:[%s979_s9 + $0x68] sm:$0xff] %v547_v6  ;;  %593 = vst [vmem:[%s979_s9 + $0xe8] sm:$0xff] %v563_v7 }
 0x129   : > { %v471_v8 = vpop.f32.mrb[28].mxu0 }
 0x12a   : > { %v472_v9 = vadd.f32 %v971_v22, %v471_v8  ;;  %v759_v10 = vpop.f32.mrb[29].mxu0 }
 0x12b   : > { %v474_v11 = vpop.f32.mrb[30].mxu0 }
 0x12c   : > { %v548_v12 = vmax.f32 %v472_v9, 0.0  ;;  %v475_v13 = vadd.f32 %v971_v22, %v474_v11  ;;  %v760_v14 = vpop.f32.mrb[31].mxu0 }
 0x12e   : > { %578 = vst [vmem:[%s979_s9 + $0x70] sm:$0xff] %v548_v12  ;;  %v549_v15 = vmax.f32 %v475_v13, 0.0 }
 0x130   : > { %579 = vst [vmem:[%s979_s9 + $0x78] sm:$0xff] %v549_v15 }
 0x131 PF: > { %s13_s12 = sadd.s32 1, %s838_s12  }
 0x132   : > { %p10_p4 = scmp.ge.s32.totalorder %s13_s12, 17  }
 0x134   :  { %12 = sbr.rel (!%p10_p4) target bundleno = 1 (0x1), region = 62 }

// kernel: lprnet_forward.24
= control target key start
LH: loop header
LB: loop body
LE: loop exit
PB: predicated region body
PF: predicated region fallthrough
CT: control target
= control target key end

     0   :  { %s929_s15 = smov 0   ;;  %s1105_s0 = inlined_call_operand.vmem [shape: bf16[3600,32], index: 0, kind: input, shape index: {}]   ;;  %s1106_s1 = inlined_call_operand.vmem [shape: bf16[32,128], index: 1, kind: input, shape index: {}]   ;;  %s1107_s2 = inlined_call_operand.vmem [shape: f32[1,128], index: 2, kind: input, shape index: {}]   ;;  %s1108_s3 = inlined_call_operand.vmem [shape: f32[3600,128], index: 3, kind: input, shape index: {}]   ;;  %s1109_s4 = inlined_call_operand.vmem [shape: f32[3600,128], index: 4, kind: output, shape index: {}]  }
   0x1 LB: > { %s739_s16 = sadd.s32 4294967295, %s900_s15   ;;  %p743_p0 = scmp.ge.s32.totalorder %s900_s15, 1  ;;  %s900_s15 = sphi %s929_s15, %s14_s15  }
   0x2   : > { %p174_p1 = scmp.lt.s32.totalorder %s900_s15, 16 }
   0x4   : > { %p175_p2 = pnand %p743_p0, %p174_p1 }
   0x5   : > { %v877_v0 = vld [vmem:[%s1106_s1] sm:$0xff] (!%p175_p2)   ;;  %v902_v1 = vmov (!%p175_p2), 0.0   ;;  %v878_v2 = vld [vmem:[%s1106_s1 + $0x8] sm:$0xff] (!%p175_p2)   ;;  %s205_s21 = smul.u32 (!%p175_p2), 30, %s739_s16  ;;  %vm903_vm0 = vmmov (!%p175_p2), 0   ;;  %vm352_vm1 = vcmask (!%p175_p2), 261120  }
   0x6   : > { %178 = sbr.rel (%p175_p2) target bundleno = 294 (0x126), region = 36  ;;  %799 = vmatprep.subr.bf16.mxu0 (!%p175_p2), %v902_v1  ;;  %863 = vmatprep.subr.bf16.mxu1 (!%p175_p2), %v902_v1  ;;  %v1005_v18 = vld [vmem:[%s1107_s2] ss:$0 sm:$0xff] (!%p175_p2) }
   0x7   : > { %800 = vmatpush3.bf16.msra.mxu0 (!%p175_p2), %v877_v0  ;;  %865 = vmatpush3.bf16.msra.mxu1 (!%p175_p2), %v877_v0  ;;  %p206_p3 = scmp.lt.s32.totalorder (!%p175_p2), %s205_s21, 449 }
   0x8   : > { %801 = vmatprep.subr.bf16.mxu0 (!%p175_p2), %v902_v1  ;;  %803 = vmatprep.mubr.msk.bf16.mxu0 (!%p175_p2), %vm903_vm0, %v902_v1 }
   0x9   : > { %864 = vmatprep.subr.bf16.mxu1 (!%p175_p2), %v902_v1  ;;  %835 = vmatprep.mubr.msk.bf16.mxu1 (!%p175_p2), %vm903_vm0, %v902_v1 }
   0xb   : > { %802 = vmatpush3.bf16.msra.mxu0 (!%p175_p2), %v878_v2  ;;  %866 = vmatpush3.bf16.msra.mxu1 (!%p175_p2), %v878_v2 }
   0xd   : > { %s1111_s21 = smov (!%p206_p3, %s205_s21), 449 }
   0xe   : > { %s744_s22 = sshll.u32 %s1111_s21, 2  ;;  %s745_s26 = sshll.u32 %s1111_s21, 3 }
   0xf   : > { %s951_s25 = scalar_lea.vmem %s1105_s0, %s744_s22  ;;  %s1000_s29 = scalar_lea.vmem %s1108_s3, %s745_s26 }
  0x10   : > { %v879_v3 = vld [vmem:[%s951_s25] sm:$0xff]   ;;  %v881_v5 = vld [vmem:[%s951_s25 + $0x8] sm:$0xff]   ;;  %v883_v7 = vld [vmem:[%s951_s25 + $0x10] sm:$0xff]   ;;  %s1017_s8 = scalar_lea.vmem %s1109_s4, %s745_s26 }
  0x11   : > { %v880_v4 = vld [vmem:[%s951_s25 + $0x40] sm:$0xff]   ;;  %804 = vmatmul.mubr.msk.bf16.vlgmr.msra.gmra.mrb[0].mxu0 %vm352_vm1, %v879_v3  ;;  %v882_v6 = vld [vmem:[%s951_s25 + $0x48] sm:$0xff]   ;;  %v884_v8 = vld [vmem:[%s951_s25 + $0x50] sm:$0xff]  }
  0x12   : > { %836 = vmatmul.mubr.msk.bf16.vlgmr.msra.gmra.mrb[0].mxu1 %vm352_vm1, %v880_v4  ;;  %807 = vmatprep.mubr.msk.bf16.mxu0 %vm903_vm0, %v902_v1  ;;  %v885_v9 = vld [vmem:[%s951_s25 + $0x18] sm:$0xff]   ;;  %v887_v11 = vld [vmem:[%s951_s25 + $0x20] sm:$0xff]   ;;  %v889_v13 = vld [vmem:[%s951_s25 + $0x28] sm:$0xff]  }
  0x13   : > { %839 = vmatprep.mubr.msk.bf16.mxu1 %vm903_vm0, %v902_v1  ;;  %v886_v10 = vld [vmem:[%s951_s25 + $0x58] sm:$0xff]   ;;  %v888_v12 = vld [vmem:[%s951_s25 + $0x60] sm:$0xff]   ;;  %v890_v14 = vld [vmem:[%s951_s25 + $0x68] sm:$0xff]  }
  0x14   : > { %v891_v15 = vld [vmem:[%s951_s25 + $0x30] sm:$0xff]   ;;  %v893_v17 = vld [vmem:[%s951_s25 + $0x38] sm:$0xff]   ;;  %v551_v20 = vld [vmem:[%s1000_s29] sm:$0xff] }
  0x15   : > { %v892_v16 = vld [vmem:[%s951_s25 + $0x70] sm:$0xff]   ;;  %v567_v24 = vld [vmem:[%s1000_s29 + $0x80] sm:$0xff]  ;;  %v552_v26 = vld [vmem:[%s1000_s29 + $0x8] sm:$0xff] }
  0x16   : > { %v568_v33 = vld [vmem:[%s1000_s29 + $0x88] sm:$0xff]  ;;  %v553_v44 = vld [vmem:[%s1000_s29 + $0x10] sm:$0xff]  ;;  %v554_v50 = vld [vmem:[%s1000_s29 + $0x18] sm:$0xff] }
  0x17   : > { %v569_v48 = vld [vmem:[%s1000_s29 + $0x90] sm:$0xff]  ;;  %v570_v57 = vld [vmem:[%s1000_s29 + $0x98] sm:$0xff]  ;;  %v555_v4 = vld [vmem:[%s1000_s29 + $0x20] sm:$0xff] }
  0x19   : > { %808 = vmatmul.mubr.msk.bf16.gmra.mrb[4].mxu0 %vm352_vm1, %v881_v5 }
  0x1a   : > { %840 = vmatmul.mubr.msk.bf16.gmra.mrb[4].mxu1 %vm352_vm1, %v882_v6  ;;  %811 = vmatprep.mubr.msk.bf16.mxu0 %vm903_vm0, %v902_v1 }
  0x1b   : > { %843 = vmatprep.mubr.msk.bf16.mxu1 %vm903_vm0, %v902_v1 }
  0x21   : > { %812 = vmatmul.mubr.msk.bf16.gmra.mrb[8].mxu0 %vm352_vm1, %v883_v7 }
  0x22   : > { %844 = vmatmul.mubr.msk.bf16.gmra.mrb[8].mxu1 %vm352_vm1, %v884_v8  ;;  %815 = vmatprep.mubr.msk.bf16.mxu0 %vm903_vm0, %v902_v1  ;;  %v571_v8 = vld [vmem:[%s1000_s29 + $0xa0] sm:$0xff] }
  0x23   : > { %847 = vmatprep.mubr.msk.bf16.mxu1 %vm903_vm0, %v902_v1 }
  0x29   : > { %816 = vmatmul.mubr.msk.bf16.gmra.mrb[12].mxu0 %vm352_vm1, %v885_v9 }
  0x2a   : > { %848 = vmatmul.mubr.msk.bf16.gmra.mrb[12].mxu1 %vm352_vm1, %v886_v10  ;;  %819 = vmatprep.mubr.msk.bf16.mxu0 %vm903_vm0, %v902_v1  ;;  %v556_v10 = vld [vmem:[%s1000_s29 + $0x28] sm:$0xff] }
  0x2b   : > { %851 = vmatprep.mubr.msk.bf16.mxu1 %vm903_vm0, %v902_v1 }
  0x31   : > { %820 = vmatmul.mubr.msk.bf16.gmra.mrb[16].mxu0 %vm352_vm1, %v887_v11 }
  0x32   : > { %852 = vmatmul.mubr.msk.bf16.gmra.mrb[16].mxu1 %vm352_vm1, %v888_v12  ;;  %823 = vmatprep.mubr.msk.bf16.mxu0 %vm903_vm0, %v902_v1 }
  0x33   : > { %855 = vmatprep.mubr.msk.bf16.mxu1 %vm903_vm0, %v902_v1 }
  0x39   : > { %824 = vmatmul.mubr.msk.bf16.gmra.mrb[20].mxu0 %vm352_vm1, %v889_v13 }
  0x3a   : > { %856 = vmatmul.mubr.msk.bf16.gmra.mrb[20].mxu1 %vm352_vm1, %v890_v14  ;;  %827 = vmatprep.mubr.msk.bf16.mxu0 %vm903_vm0, %v902_v1 }
  0x3b   : > { %859 = vmatprep.mubr.msk.bf16.mxu1 %vm903_vm0, %v902_v1 }
  0x41   : > { %828 = vmatmul.mubr.msk.bf16.gmra.mrb[24].mxu0 %vm352_vm1, %v891_v15 }
  0x42   : > { %860 = vmatmul.mubr.msk.bf16.gmra.mrb[24].mxu1 %vm352_vm1, %v892_v16  ;;  %831 = vmatprep.mubr.msk.bf16.mxu0 %vm903_vm0, %v902_v1 }
  0x49   : > { %832 = vmatmul.mubr.msk.bf16.gmra.mrb[28].mxu0 %vm352_vm1, %v893_v17  ;;  %v572_v17 = vld [vmem:[%s1000_s29 + $0xa8] sm:$0xff] }
  0xe4   : > { %v432_v19 = vpop.f32.mrb[0].mxu0 }
  0xe5   : > { %v433_v21 = vadd.f32 %v1005_v18, %v432_v19  ;;  %v805_v22 = vpop.f32.mrb[1].mxu0  ;;  %v496_v23 = vpop.f32.mrb[0].mxu1 }
  0xe6   : > { %v435_v25 = vpop.f32.mrb[2].mxu0  ;;  %v497_v27 = vadd.f32 %v1005_v18, %v496_v23  ;;  %v837_v28 = vpop.f32.mrb[1].mxu1 }
  0xe7   : > { %v581_v29 = vadd.f32 %v551_v20, %v433_v21  ;;  %v436_v30 = vadd.f32 %v1005_v18, %v435_v25  ;;  %v806_v31 = vpop.f32.mrb[3].mxu0  ;;  %v499_v32 = vpop.f32.mrb[2].mxu1 }
  0xe8   : > { %v597_v34 = vadd.f32 %v567_v24, %v497_v27  ;;  %v500_v35 = vadd.f32 %v1005_v18, %v499_v32  ;;  %v838_v36 = vpop.f32.mrb[3].mxu1 }
  0xe9   : > { %v611_v37 = vmax.f32 %v581_v29, 0.0  ;;  %v582_v38 = vadd.f32 %v552_v26, %v436_v30  ;;  %v557_v29 = vld [vmem:[%s1000_s29 + $0x30] sm:$0xff] }
  0xea   : > { %v627_v39 = vmax.f32 %v597_v34, 0.0  ;;  %v598_v40 = vadd.f32 %v568_v33, %v500_v35  ;;  %v573_v33 = vld [vmem:[%s1000_s29 + $0xb0] sm:$0xff]  ;;  %v558_v35 = vld [vmem:[%s1000_s29 + $0x38] sm:$0xff] }
  0xeb   : > { %641 = vst [vmem:[%s1017_s8] sm:$0xff] %v611_v37  ;;  %v612_v41 = vmax.f32 %v582_v38, 0.0 }
  0xec   : > { %657 = vst [vmem:[%s1017_s8 + $0x80] sm:$0xff] %v627_v39  ;;  %v628_v42 = vmax.f32 %v598_v40, 0.0  ;;  %v440_v43 = vpop.f32.mrb[4].mxu0 }
  0xed   : > { %642 = vst [vmem:[%s1017_s8 + $0x8] sm:$0xff] %v612_v41  ;;  %v441_v45 = vadd.f32 %v1005_v18, %v440_v43  ;;  %v809_v46 = vpop.f32.mrb[5].mxu0  ;;  %v504_v47 = vpop.f32.mrb[4].mxu1 }
  0xee   : > { %658 = vst [vmem:[%s1017_s8 + $0x88] sm:$0xff] %v628_v42  ;;  %v443_v49 = vpop.f32.mrb[6].mxu0  ;;  %v505_v51 = vadd.f32 %v1005_v18, %v504_v47  ;;  %v841_v52 = vpop.f32.mrb[5].mxu1  ;;  %v574_v42 = vld [vmem:[%s1000_s29 + $0xb8] sm:$0xff] }
  0xef   : > { %v583_v53 = vadd.f32 %v553_v44, %v441_v45  ;;  %v444_v54 = vadd.f32 %v1005_v18, %v443_v49  ;;  %v810_v55 = vpop.f32.mrb[7].mxu0  ;;  %v507_v56 = vpop.f32.mrb[6].mxu1 }
  0xf0   : > { %v599_v58 = vadd.f32 %v569_v48, %v505_v51  ;;  %v508_v59 = vadd.f32 %v1005_v18, %v507_v56  ;;  %v842_v60 = vpop.f32.mrb[7].mxu1 }
  0xf1   : > { %v613_v61 = vmax.f32 %v583_v53, 0.0  ;;  %v584_v62 = vadd.f32 %v554_v50, %v444_v54  ;;  %v559_v53 = vld [vmem:[%s1000_s29 + $0x40] sm:$0xff] }
  0xf2   : > { %v629_v63 = vmax.f32 %v599_v58, 0.0  ;;  %v600_v0 = vadd.f32 %v570_v57, %v508_v59  ;;  %v575_v57 = vld [vmem:[%s1000_s29 + $0xc0] sm:$0xff]  ;;  %v560_v59 = vld [vmem:[%s1000_s29 + $0x48] sm:$0xff] }
  0xf3   : > { %643 = vst [vmem:[%s1017_s8 + $0x10] sm:$0xff] %v613_v61  ;;  %v614_v1 = vmax.f32 %v584_v62, 0.0 }
  0xf4   : > { %659 = vst [vmem:[%s1017_s8 + $0x90] sm:$0xff] %v629_v63  ;;  %v630_v2 = vmax.f32 %v600_v0, 0.0  ;;  %v448_v3 = vpop.f32.mrb[8].mxu0 }
  0xf5   : > { %644 = vst [vmem:[%s1017_s8 + $0x18] sm:$0xff] %v614_v1  ;;  %v449_v5 = vadd.f32 %v1005_v18, %v448_v3  ;;  %v813_v6 = vpop.f32.mrb[9].mxu0  ;;  %v512_v7 = vpop.f32.mrb[8].mxu1 }
  0xf6   : > { %660 = vst [vmem:[%s1017_s8 + $0x98] sm:$0xff] %v630_v2  ;;  %v451_v9 = vpop.f32.mrb[10].mxu0  ;;  %v513_v11 = vadd.f32 %v1005_v18, %v512_v7  ;;  %v845_v12 = vpop.f32.mrb[9].mxu1  ;;  %v576_v2 = vld [vmem:[%s1000_s29 + $0xc8] sm:$0xff] }
  0xf7   : > { %v585_v13 = vadd.f32 %v555_v4, %v449_v5  ;;  %v452_v14 = vadd.f32 %v1005_v18, %v451_v9  ;;  %v814_v15 = vpop.f32.mrb[11].mxu0  ;;  %v515_v16 = vpop.f32.mrb[10].mxu1 }
  0xf8   : > { %v601_v19 = vadd.f32 %v571_v8, %v513_v11  ;;  %v516_v20 = vadd.f32 %v1005_v18, %v515_v16  ;;  %v846_v21 = vpop.f32.mrb[11].mxu1 }
  0xf9   : > { %v615_v22 = vmax.f32 %v585_v13, 0.0  ;;  %v586_v23 = vadd.f32 %v556_v10, %v452_v14  ;;  %v561_v13 = vld [vmem:[%s1000_s29 + $0x50] sm:$0xff] }
  0xfa   : > { %v631_v24 = vmax.f32 %v601_v19, 0.0  ;;  %v602_v25 = vadd.f32 %v572_v17, %v516_v20  ;;  %v577_v17 = vld [vmem:[%s1000_s29 + $0xd0] sm:$0xff]  ;;  %v562_v20 = vld [vmem:[%s1000_s29 + $0x58] sm:$0xff] }
  0xfb   : > { %645 = vst [vmem:[%s1017_s8 + $0x20] sm:$0xff] %v615_v22  ;;  %v616_v26 = vmax.f32 %v586_v23, 0.0 }
  0xfc   : > { %661 = vst [vmem:[%s1017_s8 + $0xa0] sm:$0xff] %v631_v24  ;;  %v632_v27 = vmax.f32 %v602_v25, 0.0  ;;  %v456_v28 = vpop.f32.mrb[12].mxu0 }
  0xfd   : > { %646 = vst [vmem:[%s1017_s8 + $0x28] sm:$0xff] %v616_v26  ;;  %v457_v30 = vadd.f32 %v1005_v18, %v456_v28  ;;  %v817_v31 = vpop.f32.mrb[13].mxu0  ;;  %v520_v32 = vpop.f32.mrb[12].mxu1 }
  0xfe   : > { %662 = vst [vmem:[%s1017_s8 + $0xa8] sm:$0xff] %v632_v27  ;;  %v459_v34 = vpop.f32.mrb[14].mxu0  ;;  %v521_v36 = vadd.f32 %v1005_v18, %v520_v32  ;;  %v849_v37 = vpop.f32.mrb[13].mxu1  ;;  %v578_v27 = vld [vmem:[%s1000_s29 + $0xd8] sm:$0xff] }
  0xff   : > { %v587_v38 = vadd.f32 %v557_v29, %v457_v30  ;;  %v460_v39 = vadd.f32 %v1005_v18, %v459_v34  ;;  %v818_v40 = vpop.f32.mrb[15].mxu0  ;;  %v523_v41 = vpop.f32.mrb[14].mxu1 }
 0x100   : > { %v603_v43 = vadd.f32 %v573_v33, %v521_v36  ;;  %v524_v44 = vadd.f32 %v1005_v18, %v523_v41  ;;  %v850_v45 = vpop.f32.mrb[15].mxu1 }
 0x101   : > { %v617_v46 = vmax.f32 %v587_v38, 0.0  ;;  %v588_v47 = vadd.f32 %v558_v35, %v460_v39  ;;  %v563_v38 = vld [vmem:[%s1000_s29 + $0x60] sm:$0xff] }
 0x102   : > { %v633_v48 = vmax.f32 %v603_v43, 0.0  ;;  %v604_v49 = vadd.f32 %v574_v42, %v524_v44  ;;  %v579_v42 = vld [vmem:[%s1000_s29 + $0xe0] sm:$0xff]  ;;  %v564_v44 = vld [vmem:[%s1000_s29 + $0x68] sm:$0xff] }
 0x103   : > { %647 = vst [vmem:[%s1017_s8 + $0x30] sm:$0xff] %v617_v46  ;;  %v618_v50 = vmax.f32 %v588_v47, 0.0 }
 0x104   : > { %663 = vst [vmem:[%s1017_s8 + $0xb0] sm:$0xff] %v633_v48  ;;  %v634_v51 = vmax.f32 %v604_v49, 0.0  ;;  %v464_v52 = vpop.f32.mrb[16].mxu0 }
 0x105   : > { %648 = vst [vmem:[%s1017_s8 + $0x38] sm:$0xff] %v618_v50  ;;  %v465_v54 = vadd.f32 %v1005_v18, %v464_v52  ;;  %v821_v55 = vpop.f32.mrb[17].mxu0  ;;  %v528_v56 = vpop.f32.mrb[16].mxu1 }
 0x106   : > { %664 = vst [vmem:[%s1017_s8 + $0xb8] sm:$0xff] %v634_v51  ;;  %v467_v58 = vpop.f32.mrb[18].mxu0  ;;  %v529_v60 = vadd.f32 %v1005_v18, %v528_v56  ;;  %v853_v61 = vpop.f32.mrb[17].mxu1  ;;  %v580_v51 = vld [vmem:[%s1000_s29 + $0xe8] sm:$0xff] }
 0x107   : > { %v589_v62 = vadd.f32 %v559_v53, %v465_v54  ;;  %v468_v63 = vadd.f32 %v1005_v18, %v467_v58  ;;  %v822_v0 = vpop.f32.mrb[19].mxu0  ;;  %v531_v1 = vpop.f32.mrb[18].mxu1 }
 0x108   : > { %v605_v3 = vadd.f32 %v575_v57, %v529_v60  ;;  %v532_v4 = vadd.f32 %v1005_v18, %v531_v1  ;;  %v854_v5 = vpop.f32.mrb[19].mxu1 }
 0x109   : > { %v619_v6 = vmax.f32 %v589_v62, 0.0  ;;  %v590_v7 = vadd.f32 %v560_v59, %v468_v63  ;;  %v565_v62 = vld [vmem:[%s1000_s29 + $0x70] sm:$0xff] }
 0x10a   : > { %v635_v8 = vmax.f32 %v605_v3, 0.0  ;;  %v606_v9 = vadd.f32 %v576_v2, %v532_v4  ;;  %v566_v2 = vld [vmem:[%s1000_s29 + $0x78] sm:$0xff] }
 0x10b   : > { %649 = vst [vmem:[%s1017_s8 + $0x40] sm:$0xff] %v619_v6  ;;  %v620_v10 = vmax.f32 %v590_v7, 0.0 }
 0x10c   : > { %665 = vst [vmem:[%s1017_s8 + $0xc0] sm:$0xff] %v635_v8  ;;  %v636_v11 = vmax.f32 %v606_v9, 0.0  ;;  %v472_v12 = vpop.f32.mrb[20].mxu0 }
 0x10d   : > { %650 = vst [vmem:[%s1017_s8 + $0x48] sm:$0xff] %v620_v10  ;;  %v473_v14 = vadd.f32 %v1005_v18, %v472_v12  ;;  %v825_v15 = vpop.f32.mrb[21].mxu0  ;;  %v536_v16 = vpop.f32.mrb[20].mxu1 }
 0x10e   : > { %666 = vst [vmem:[%s1017_s8 + $0xc8] sm:$0xff] %v636_v11  ;;  %v475_v19 = vpop.f32.mrb[22].mxu0  ;;  %v537_v21 = vadd.f32 %v1005_v18, %v536_v16  ;;  %v857_v22 = vpop.f32.mrb[21].mxu1 }
 0x10f   : > { %v591_v23 = vadd.f32 %v561_v13, %v473_v14  ;;  %v476_v24 = vadd.f32 %v1005_v18, %v475_v19  ;;  %v826_v25 = vpop.f32.mrb[23].mxu0  ;;  %v539_v26 = vpop.f32.mrb[22].mxu1 }
 0x110   : > { %v607_v28 = vadd.f32 %v577_v17, %v537_v21  ;;  %v540_v29 = vadd.f32 %v1005_v18, %v539_v26  ;;  %v858_v30 = vpop.f32.mrb[23].mxu1 }
 0x111   : > { %v621_v31 = vmax.f32 %v591_v23, 0.0  ;;  %v592_v32 = vadd.f32 %v562_v20, %v476_v24 }
 0x112   : > { %v637_v33 = vmax.f32 %v607_v28, 0.0  ;;  %v608_v34 = vadd.f32 %v578_v27, %v540_v29 }
 0x113   : > { %651 = vst [vmem:[%s1017_s8 + $0x50] sm:$0xff] %v621_v31  ;;  %v622_v35 = vmax.f32 %v592_v32, 0.0 }
 0x114   : > { %667 = vst [vmem:[%s1017_s8 + $0xd0] sm:$0xff] %v637_v33  ;;  %v638_v36 = vmax.f32 %v608_v34, 0.0  ;;  %v480_v37 = vpop.f32.mrb[24].mxu0 }
 0x115   : > { %652 = vst [vmem:[%s1017_s8 + $0x58] sm:$0xff] %v622_v35  ;;  %v481_v39 = vadd.f32 %v1005_v18, %v480_v37  ;;  %v829_v40 = vpop.f32.mrb[25].mxu0  ;;  %v544_v41 = vpop.f32.mrb[24].mxu1 }
 0x116   : > { %668 = vst [vmem:[%s1017_s8 + $0xd8] sm:$0xff] %v638_v36  ;;  %v483_v43 = vpop.f32.mrb[26].mxu0  ;;  %v545_v45 = vadd.f32 %v1005_v18, %v544_v41  ;;  %v861_v46 = vpop.f32.mrb[25].mxu1 }
 0x117   : > { %v593_v47 = vadd.f32 %v563_v38, %v481_v39  ;;  %v484_v48 = vadd.f32 %v1005_v18, %v483_v43  ;;  %v830_v49 = vpop.f32.mrb[27].mxu0  ;;  %v547_v50 = vpop.f32.mrb[26].mxu1 }
 0x118   : > { %v609_v52 = vadd.f32 %v579_v42, %v545_v45  ;;  %v548_v53 = vadd.f32 %v1005_v18, %v547_v50  ;;  %v862_v54 = vpop.f32.mrb[27].mxu1 }
 0x119   : > { %v623_v55 = vmax.f32 %v593_v47, 0.0  ;;  %v594_v56 = vadd.f32 %v564_v44, %v484_v48 }
 0x11a   : > { %v639_v57 = vmax.f32 %v609_v52, 0.0  ;;  %v610_v58 = vadd.f32 %v580_v51, %v548_v53 }
 0x11b   : > { %653 = vst [vmem:[%s1017_s8 + $0x60] sm:$0xff] %v623_v55  ;;  %v624_v59 = vmax.f32 %v594_v56, 0.0 }
 0x11c   : > { %669 = vst [vmem:[%s1017_s8 + $0xe0] sm:$0xff] %v639_v57  ;;  %v640_v60 = vmax.f32 %v610_v58, 0.0  ;;  %v488_v61 = vpop.f32.mrb[28].mxu0 }
 0x11d   : > { %654 = vst [vmem:[%s1017_s8 + $0x68] sm:$0xff] %v624_v59  ;;  %v489_v63 = vadd.f32 %v1005_v18, %v488_v61  ;;  %v833_v0 = vpop.f32.mrb[29].mxu0 }
 0x11e   : > { %670 = vst [vmem:[%s1017_s8 + $0xe8] sm:$0xff] %v640_v60  ;;  %v491_v1 = vpop.f32.mrb[30].mxu0 }
 0x11f   : > { %v595_v3 = vadd.f32 %v565_v62, %v489_v63  ;;  %v492_v4 = vadd.f32 %v1005_v18, %v491_v1  ;;  %v834_v5 = vpop.f32.mrb[31].mxu0 }
 0x121   : > { %v625_v6 = vmax.f32 %v595_v3, 0.0  ;;  %v596_v7 = vadd.f32 %v566_v2, %v492_v4 }
 0x123   : > { %655 = vst [vmem:[%s1017_s8 + $0x70] sm:$0xff] %v625_v6  ;;  %v626_v8 = vmax.f32 %v596_v7, 0.0 }
 0x125   : > { %656 = vst [vmem:[%s1017_s8 + $0x78] sm:$0xff] %v626_v8 }
 0x126 PF: > { %s14_s15 = sadd.s32 1, %s900_s15  }
 0x127   : > { %p11_p4 = scmp.ge.s32.totalorder %s14_s15, 17  }
 0x129   :  { %13 = sbr.rel (!%p11_p4) target bundleno = 1 (0x1), region = 69 }

// kernel: lprnet_forward.25
= control target key start
LH: loop header
LB: loop body
LE: loop exit
PB: predicated region body
PF: predicated region fallthrough
CT: control target
= control target key end

     0   :  { %s832_s12 = smov 0   ;;  %s1002_s0 = inlined_call_operand.vmem [shape: bf16[1680,64], index: 0, kind: input, shape index: {}]   ;;  %s1003_s1 = inlined_call_operand.vmem [shape: bf16[64,128], index: 1, kind: input, shape index: {}]   ;;  %s1004_s2 = inlined_call_operand.vmem [shape: f32[1,128], index: 2, kind: input, shape index: {}]   ;;  %s1005_s3 = inlined_call_operand.vmem [shape: f32[1680,128], index: 3, kind: output, shape index: {}]  }
   0x1 LB: > { %s634_s13 = sadd.s32 4294967295, %s808_s12   ;;  %p638_p0 = scmp.ge.s32.totalorder %s808_s12, 1  ;;  %s808_s12 = sphi %s832_s12, %s13_s12  }
   0x2   : > { %p138_p1 = scmp.lt.s32.totalorder %s808_s12, 8 }
   0x4   : > { %p139_p2 = pnand %p638_p0, %p138_p1 }
   0x5   : > { %v783_v0 = vld [vmem:[%s1003_s1] sm:$0xff] (!%p139_p2)   ;;  %v810_v1 = vmov (!%p139_p2), 0.0   ;;  %v784_v2 = vld [vmem:[%s1003_s1 + $0x8] sm:$0xff] (!%p139_p2)   ;;  %s162_s18 = smul.u32 (!%p139_p2), 30, %s634_s13  ;;  %vm811_vm0 = vmmov (!%p139_p2), 0   ;;  %v785_v3 = vld [vmem:[%s1003_s1 + $0x10] sm:$0xff] (!%p139_p2)  }
   0x6   : > { %142 = sbr.rel (%p139_p2) target bundleno = 297 (0x129), region = 32  ;;  %697 = vmatprep.subr.bf16.mxu0 (!%p139_p2), %v810_v1  ;;  %765 = vmatprep.subr.bf16.mxu1 (!%p139_p2), %v810_v1  ;;  %v786_v4 = vld [vmem:[%s1003_s1 + $0x18] sm:$0xff] (!%p139_p2)   ;;  %vm319_vm1 = vcmask (!%p139_p2), 523264   ;;  %v931_v20 = vld [vmem:[%s1004_s2] ss:$0 sm:$0xff] (!%p139_p2) }
   0x7   : > { %698 = vmatpush3.bf16.msra.mxu0 (!%p139_p2), %v783_v0  ;;  %769 = vmatpush3.bf16.msra.mxu1 (!%p139_p2), %v783_v0  ;;  %p163_p3 = scmp.lt.s32.totalorder (!%p139_p2), %s162_s18, 209 }
   0x8   : > { %699 = vmatprep.subr.bf16.mxu0 (!%p139_p2), %v810_v1  ;;  %766 = vmatprep.subr.bf16.mxu1 (!%p139_p2), %v810_v1 }
   0x9   : > { %705 = vmatprep.mubr.msk.bf16.mxu0 (!%p139_p2), %vm811_vm0, %v810_v1  ;;  %737 = vmatprep.mubr.msk.bf16.mxu1 (!%p139_p2), %vm811_vm0, %v810_v1 }
   0xb   : > { %700 = vmatpush3.bf16.msra.mxu0 (!%p139_p2), %v784_v2  ;;  %770 = vmatpush3.bf16.msra.mxu1 (!%p139_p2), %v784_v2 }
   0xc   : > { %701 = vmatprep.subr.bf16.mxu0 (!%p139_p2), %v810_v1  ;;  %767 = vmatprep.subr.bf16.mxu1 (!%p139_p2), %v810_v1 }
   0xd   : > { %s1007_s18 = smov (!%p163_p3, %s162_s18), 209 }
   0xe   : > { %s639_s21 = sshll.u32 %s1007_s18, 2  ;;  %s640_s29 = sshll.u32 %s1007_s18, 3 }
   0xf   : > { %s865_s24 = scalar_lea.vmem %s1002_s0, %s639_s21  ;;  %702 = vmatpush3.bf16.msra.mxu0 %v785_v3  ;;  %771 = vmatpush3.bf16.msra.mxu1 %v785_v3  ;;  %s939_s5 = scalar_lea.vmem %s1005_s3, %s640_s29 }
  0x10   : > { %703 = vmatprep.subr.bf16.mxu0 %v810_v1  ;;  %768 = vmatprep.subr.bf16.mxu1 %v810_v1  ;;  %v787_v5 = vld [vmem:[%s865_s24] sm:$0xff]   ;;  %v789_v7 = vld [vmem:[%s865_s24 + $0x8] sm:$0xff]   ;;  %v791_v9 = vld [vmem:[%s865_s24 + $0x10] sm:$0xff]  }
  0x11   : > { %v788_v6 = vld [vmem:[%s865_s24 + $0x40] sm:$0xff]   ;;  %v790_v8 = vld [vmem:[%s865_s24 + $0x48] sm:$0xff]   ;;  %v792_v10 = vld [vmem:[%s865_s24 + $0x50] sm:$0xff]  }
  0x12   : > { %v793_v11 = vld [vmem:[%s865_s24 + $0x18] sm:$0xff]   ;;  %v795_v13 = vld [vmem:[%s865_s24 + $0x20] sm:$0xff]   ;;  %v797_v15 = vld [vmem:[%s865_s24 + $0x28] sm:$0xff]  }
  0x13   : > { %704 = vmatpush3.bf16.msra.mxu0 %v786_v4  ;;  %772 = vmatpush3.bf16.msra.mxu1 %v786_v4  ;;  %v794_v12 = vld [vmem:[%s865_s24 + $0x58] sm:$0xff]   ;;  %v796_v14 = vld [vmem:[%s865_s24 + $0x60] sm:$0xff]   ;;  %v798_v16 = vld [vmem:[%s865_s24 + $0x68] sm:$0xff]  }
  0x14   : > { %v799_v17 = vld [vmem:[%s865_s24 + $0x30] sm:$0xff]   ;;  %v801_v19 = vld [vmem:[%s865_s24 + $0x38] sm:$0xff]  }
  0x15   : > { %v800_v18 = vld [vmem:[%s865_s24 + $0x70] sm:$0xff]  }
  0x16   : > { %706 = vmatmul.mubr.msk.bf16.vlgmr.msra.gmra.mrb[0].mxu0 %vm319_vm1, %v787_v5  ;;  %738 = vmatmul.mubr.msk.bf16.vlgmr.msra.gmra.mrb[0].mxu1 %vm319_vm1, %v788_v6 }
  0x17   : > { %709 = vmatprep.mubr.msk.bf16.mxu0 %vm811_vm0, %v810_v1  ;;  %741 = vmatprep.mubr.msk.bf16.mxu1 %vm811_vm0, %v810_v1 }
  0x1e   : > { %710 = vmatmul.mubr.msk.bf16.gmra.mrb[4].mxu0 %vm319_vm1, %v789_v7  ;;  %742 = vmatmul.mubr.msk.bf16.gmra.mrb[4].mxu1 %vm319_vm1, %v790_v8 }
  0x1f   : > { %713 = vmatprep.mubr.msk.bf16.mxu0 %vm811_vm0, %v810_v1  ;;  %745 = vmatprep.mubr.msk.bf16.mxu1 %vm811_vm0, %v810_v1 }
  0x26   : > { %714 = vmatmul.mubr.msk.bf16.gmra.mrb[8].mxu0 %vm319_vm1, %v791_v9  ;;  %746 = vmatmul.mubr.msk.bf16.gmra.mrb[8].mxu1 %vm319_vm1, %v792_v10 }
  0x27   : > { %717 = vmatprep.mubr.msk.bf16.mxu0 %vm811_vm0, %v810_v1  ;;  %749 = vmatprep.mubr.msk.bf16.mxu1 %vm811_vm0, %v810_v1 }
  0x2e   : > { %718 = vmatmul.mubr.msk.bf16.gmra.mrb[12].mxu0 %vm319_vm1, %v793_v11  ;;  %750 = vmatmul.mubr.msk.bf16.gmra.mrb[12].mxu1 %vm319_vm1, %v794_v12 }
  0x2f   : > { %721 = vmatprep.mubr.msk.bf16.mxu0 %vm811_vm0, %v810_v1  ;;  %753 = vmatprep.mubr.msk.bf16.mxu1 %vm811_vm0, %v810_v1 }
  0x36   : > { %722 = vmatmul.mubr.msk.bf16.gmra.mrb[16].mxu0 %vm319_vm1, %v795_v13  ;;  %754 = vmatmul.mubr.msk.bf16.gmra.mrb[16].mxu1 %vm319_vm1, %v796_v14 }
  0x37   : > { %725 = vmatprep.mubr.msk.bf16.mxu0 %vm811_vm0, %v810_v1  ;;  %757 = vmatprep.mubr.msk.bf16.mxu1 %vm811_vm0, %v810_v1 }
  0x3e   : > { %726 = vmatmul.mubr.msk.bf16.gmra.mrb[20].mxu0 %vm319_vm1, %v797_v15  ;;  %758 = vmatmul.mubr.msk.bf16.gmra.mrb[20].mxu1 %vm319_vm1, %v798_v16 }
  0x3f   : > { %729 = vmatprep.mubr.msk.bf16.mxu0 %vm811_vm0, %v810_v1  ;;  %761 = vmatprep.mubr.msk.bf16.mxu1 %vm811_vm0, %v810_v1 }
  0x46   : > { %730 = vmatmul.mubr.msk.bf16.gmra.mrb[24].mxu0 %vm319_vm1, %v799_v17  ;;  %762 = vmatmul.mubr.msk.bf16.gmra.mrb[24].mxu1 %vm319_vm1, %v800_v18 }
  0x47   : > { %733 = vmatprep.mubr.msk.bf16.mxu0 %vm811_vm0, %v810_v1 }
  0x4e   : > { %734 = vmatmul.mubr.msk.bf16.gmra.mrb[28].mxu0 %vm319_vm1, %v801_v19 }
  0xe9   : > { %v399_v21 = vpop.f32.mrb[0].mxu0  ;;  %v463_v22 = vpop.f32.mrb[0].mxu1 }
  0xea   : > { %v400_v23 = vadd.f32 %v931_v20, %v399_v21  ;;  %v707_v24 = vpop.f32.mrb[1].mxu0  ;;  %v464_v25 = vadd.f32 %v931_v20, %v463_v22  ;;  %v739_v26 = vpop.f32.mrb[1].mxu1 }
  0xeb   : > { %v402_v27 = vpop.f32.mrb[2].mxu0  ;;  %v466_v28 = vpop.f32.mrb[2].mxu1 }
  0xec   : > { %v518_v29 = vmax.f32 %v400_v23, 0.0  ;;  %v403_v30 = vadd.f32 %v931_v20, %v402_v27  ;;  %v708_v31 = vpop.f32.mrb[3].mxu0  ;;  %v534_v32 = vmax.f32 %v464_v25, 0.0  ;;  %v467_v33 = vadd.f32 %v931_v20, %v466_v28  ;;  %v740_v34 = vpop.f32.mrb[3].mxu1 }
  0xee   : > { %548 = vst [vmem:[%s939_s5] sm:$0xff] %v518_v29  ;;  %v519_v35 = vmax.f32 %v403_v30, 0.0  ;;  %564 = vst [vmem:[%s939_s5 + $0x80] sm:$0xff] %v534_v32  ;;  %v535_v36 = vmax.f32 %v467_v33, 0.0 }
  0xf0   : > { %549 = vst [vmem:[%s939_s5 + $0x8] sm:$0xff] %v519_v35  ;;  %565 = vst [vmem:[%s939_s5 + $0x88] sm:$0xff] %v535_v36 }
  0xf1   : > { %v407_v37 = vpop.f32.mrb[4].mxu0  ;;  %v471_v38 = vpop.f32.mrb[4].mxu1 }
  0xf2   : > { %v408_v39 = vadd.f32 %v931_v20, %v407_v37  ;;  %v711_v40 = vpop.f32.mrb[5].mxu0  ;;  %v472_v41 = vadd.f32 %v931_v20, %v471_v38  ;;  %v743_v42 = vpop.f32.mrb[5].mxu1 }
  0xf3   : > { %v410_v43 = vpop.f32.mrb[6].mxu0  ;;  %v474_v44 = vpop.f32.mrb[6].mxu1 }
  0xf4   : > { %v520_v45 = vmax.f32 %v408_v39, 0.0  ;;  %v411_v46 = vadd.f32 %v931_v20, %v410_v43  ;;  %v712_v47 = vpop.f32.mrb[7].mxu0  ;;  %v536_v48 = vmax.f32 %v472_v41, 0.0  ;;  %v475_v49 = vadd.f32 %v931_v20, %v474_v44  ;;  %v744_v50 = vpop.f32.mrb[7].mxu1 }
  0xf6   : > { %550 = vst [vmem:[%s939_s5 + $0x10] sm:$0xff] %v520_v45  ;;  %v521_v51 = vmax.f32 %v411_v46, 0.0  ;;  %566 = vst [vmem:[%s939_s5 + $0x90] sm:$0xff] %v536_v48  ;;  %v537_v52 = vmax.f32 %v475_v49, 0.0 }
  0xf8   : > { %551 = vst [vmem:[%s939_s5 + $0x18] sm:$0xff] %v521_v51  ;;  %567 = vst [vmem:[%s939_s5 + $0x98] sm:$0xff] %v537_v52 }
  0xf9   : > { %v415_v53 = vpop.f32.mrb[8].mxu0  ;;  %v479_v54 = vpop.f32.mrb[8].mxu1 }
  0xfa   : > { %v416_v55 = vadd.f32 %v931_v20, %v415_v53  ;;  %v715_v56 = vpop.f32.mrb[9].mxu0  ;;  %v480_v57 = vadd.f32 %v931_v20, %v479_v54  ;;  %v747_v58 = vpop.f32.mrb[9].mxu1 }
  0xfb   : > { %v418_v59 = vpop.f32.mrb[10].mxu0  ;;  %v482_v60 = vpop.f32.mrb[10].mxu1 }
  0xfc   : > { %v522_v61 = vmax.f32 %v416_v55, 0.0  ;;  %v419_v62 = vadd.f32 %v931_v20, %v418_v59  ;;  %v716_v63 = vpop.f32.mrb[11].mxu0  ;;  %v538_v0 = vmax.f32 %v480_v57, 0.0  ;;  %v483_v1 = vadd.f32 %v931_v20, %v482_v60  ;;  %v748_v2 = vpop.f32.mrb[11].mxu1 }
  0xfe   : > { %552 = vst [vmem:[%s939_s5 + $0x20] sm:$0xff] %v522_v61  ;;  %v523_v3 = vmax.f32 %v419_v62, 0.0  ;;  %568 = vst [vmem:[%s939_s5 + $0xa0] sm:$0xff] %v538_v0  ;;  %v539_v4 = vmax.f32 %v483_v1, 0.0 }
 0x100   : > { %553 = vst [vmem:[%s939_s5 + $0x28] sm:$0xff] %v523_v3  ;;  %569 = vst [vmem:[%s939_s5 + $0xa8] sm:$0xff] %v539_v4 }
 0x101   : > { %v423_v5 = vpop.f32.mrb[12].mxu0  ;;  %v487_v6 = vpop.f32.mrb[12].mxu1 }
 0x102   : > { %v424_v7 = vadd.f32 %v931_v20, %v423_v5  ;;  %v719_v8 = vpop.f32.mrb[13].mxu0  ;;  %v488_v9 = vadd.f32 %v931_v20, %v487_v6  ;;  %v751_v10 = vpop.f32.mrb[13].mxu1 }
 0x103   : > { %v426_v11 = vpop.f32.mrb[14].mxu0  ;;  %v490_v12 = vpop.f32.mrb[14].mxu1 }
 0x104   : > { %v524_v13 = vmax.f32 %v424_v7, 0.0  ;;  %v427_v14 = vadd.f32 %v931_v20, %v426_v11  ;;  %v720_v15 = vpop.f32.mrb[15].mxu0  ;;  %v540_v16 = vmax.f32 %v488_v9, 0.0  ;;  %v491_v17 = vadd.f32 %v931_v20, %v490_v12  ;;  %v752_v18 = vpop.f32.mrb[15].mxu1 }
 0x106   : > { %554 = vst [vmem:[%s939_s5 + $0x30] sm:$0xff] %v524_v13  ;;  %v525_v19 = vmax.f32 %v427_v14, 0.0  ;;  %570 = vst [vmem:[%s939_s5 + $0xb0] sm:$0xff] %v540_v16  ;;  %v541_v21 = vmax.f32 %v491_v17, 0.0 }
 0x108   : > { %555 = vst [vmem:[%s939_s5 + $0x38] sm:$0xff] %v525_v19  ;;  %571 = vst [vmem:[%s939_s5 + $0xb8] sm:$0xff] %v541_v21 }
 0x109   : > { %v431_v22 = vpop.f32.mrb[16].mxu0  ;;  %v495_v23 = vpop.f32.mrb[16].mxu1 }
 0x10a   : > { %v432_v24 = vadd.f32 %v931_v20, %v431_v22  ;;  %v723_v25 = vpop.f32.mrb[17].mxu0  ;;  %v496_v26 = vadd.f32 %v931_v20, %v495_v23  ;;  %v755_v27 = vpop.f32.mrb[17].mxu1 }
 0x10b   : > { %v434_v28 = vpop.f32.mrb[18].mxu0  ;;  %v498_v29 = vpop.f32.mrb[18].mxu1 }
 0x10c   : > { %v526_v30 = vmax.f32 %v432_v24, 0.0  ;;  %v435_v31 = vadd.f32 %v931_v20, %v434_v28  ;;  %v724_v32 = vpop.f32.mrb[19].mxu0  ;;  %v542_v33 = vmax.f32 %v496_v26, 0.0  ;;  %v499_v34 = vadd.f32 %v931_v20, %v498_v29  ;;  %v756_v35 = vpop.f32.mrb[19].mxu1 }
 0x10e   : > { %556 = vst [vmem:[%s939_s5 + $0x40] sm:$0xff] %v526_v30  ;;  %v527_v36 = vmax.f32 %v435_v31, 0.0  ;;  %572 = vst [vmem:[%s939_s5 + $0xc0] sm:$0xff] %v542_v33  ;;  %v543_v37 = vmax.f32 %v499_v34, 0.0 }
 0x110   : > { %557 = vst [vmem:[%s939_s5 + $0x48] sm:$0xff] %v527_v36  ;;  %573 = vst [vmem:[%s939_s5 + $0xc8] sm:$0xff] %v543_v37 }
 0x111   : > { %v439_v38 = vpop.f32.mrb[20].mxu0  ;;  %v503_v39 = vpop.f32.mrb[20].mxu1 }
 0x112   : > { %v440_v40 = vadd.f32 %v931_v20, %v439_v38  ;;  %v727_v41 = vpop.f32.mrb[21].mxu0  ;;  %v504_v42 = vadd.f32 %v931_v20, %v503_v39  ;;  %v759_v43 = vpop.f32.mrb[21].mxu1 }
 0x113   : > { %v442_v44 = vpop.f32.mrb[22].mxu0  ;;  %v506_v45 = vpop.f32.mrb[22].mxu1 }
 0x114   : > { %v528_v46 = vmax.f32 %v440_v40, 0.0  ;;  %v443_v47 = vadd.f32 %v931_v20, %v442_v44  ;;  %v728_v48 = vpop.f32.mrb[23].mxu0  ;;  %v544_v49 = vmax.f32 %v504_v42, 0.0  ;;  %v507_v50 = vadd.f32 %v931_v20, %v506_v45  ;;  %v760_v51 = vpop.f32.mrb[23].mxu1 }
 0x116   : > { %558 = vst [vmem:[%s939_s5 + $0x50] sm:$0xff] %v528_v46  ;;  %v529_v52 = vmax.f32 %v443_v47, 0.0  ;;  %574 = vst [vmem:[%s939_s5 + $0xd0] sm:$0xff] %v544_v49  ;;  %v545_v53 = vmax.f32 %v507_v50, 0.0 }
 0x118   : > { %559 = vst [vmem:[%s939_s5 + $0x58] sm:$0xff] %v529_v52  ;;  %575 = vst [vmem:[%s939_s5 + $0xd8] sm:$0xff] %v545_v53 }
 0x119   : > { %v447_v54 = vpop.f32.mrb[24].mxu0  ;;  %v511_v55 = vpop.f32.mrb[24].mxu1 }
 0x11a   : > { %v448_v56 = vadd.f32 %v931_v20, %v447_v54  ;;  %v731_v57 = vpop.f32.mrb[25].mxu0  ;;  %v512_v58 = vadd.f32 %v931_v20, %v511_v55  ;;  %v763_v59 = vpop.f32.mrb[25].mxu1 }
 0x11b   : > { %v450_v60 = vpop.f32.mrb[26].mxu0  ;;  %v514_v61 = vpop.f32.mrb[26].mxu1 }
 0x11c   : > { %v530_v62 = vmax.f32 %v448_v56, 0.0  ;;  %v451_v63 = vadd.f32 %v931_v20, %v450_v60  ;;  %v732_v0 = vpop.f32.mrb[27].mxu0  ;;  %v546_v1 = vmax.f32 %v512_v58, 0.0  ;;  %v515_v2 = vadd.f32 %v931_v20, %v514_v61  ;;  %v764_v3 = vpop.f32.mrb[27].mxu1 }
 0x11e   : > { %560 = vst [vmem:[%s939_s5 + $0x60] sm:$0xff] %v530_v62  ;;  %v531_v4 = vmax.f32 %v451_v63, 0.0  ;;  %576 = vst [vmem:[%s939_s5 + $0xe0] sm:$0xff] %v546_v1  ;;  %v547_v5 = vmax.f32 %v515_v2, 0.0 }
 0x120   : > { %561 = vst [vmem:[%s939_s5 + $0x68] sm:$0xff] %v531_v4  ;;  %577 = vst [vmem:[%s939_s5 + $0xe8] sm:$0xff] %v547_v5 }
 0x121   : > { %v455_v6 = vpop.f32.mrb[28].mxu0 }
 0x122   : > { %v456_v7 = vadd.f32 %v931_v20, %v455_v6  ;;  %v735_v8 = vpop.f32.mrb[29].mxu0 }
 0x123   : > { %v458_v9 = vpop.f32.mrb[30].mxu0 }
 0x124   : > { %v532_v10 = vmax.f32 %v456_v7, 0.0  ;;  %v459_v11 = vadd.f32 %v931_v20, %v458_v9  ;;  %v736_v12 = vpop.f32.mrb[31].mxu0 }
 0x126   : > { %562 = vst [vmem:[%s939_s5 + $0x70] sm:$0xff] %v532_v10  ;;  %v533_v13 = vmax.f32 %v459_v11, 0.0 }
 0x128   : > { %563 = vst [vmem:[%s939_s5 + $0x78] sm:$0xff] %v533_v13 }
 0x129 PF: > { %s13_s12 = sadd.s32 1, %s808_s12  }
 0x12a   : > { %p10_p4 = scmp.ge.s32.totalorder %s13_s12, 9  }
 0x12c   :  { %12 = sbr.rel (!%p10_p4) target bundleno = 1 (0x1), region = 62 }

// kernel: lprnet_forward.26
= control target key start
LH: loop header
LB: loop body
LE: loop exit
PB: predicated region body
PF: predicated region fallthrough
CT: control target
= control target key end

     0   :  { %s949_s12 = smov 0   ;;  %s1147_s0 = inlined_call_operand.vmem [shape: bf16[1680,192], index: 0, kind: input, shape index: {}]   ;;  %s1148_s1 = inlined_call_operand.vmem [shape: bf16[192,128], index: 1, kind: input, shape index: {}]   ;;  %s1149_s2 = inlined_call_operand.vmem [shape: f32[1,128], index: 2, kind: input, shape index: {}]   ;;  %s1150_s3 = inlined_call_operand.vmem [shape: f32[1680,128], index: 3, kind: output, shape index: {}]  }
   0x1 LB: > { %s761_s13 = sadd.s32 4294967295, %s926_s12   ;;  %p765_p0 = scmp.ge.s32.totalorder %s926_s12, 1  ;;  %s926_s12 = sphi %s949_s12, %s13_s12  }
   0x2   : > { %p139_p1 = scmp.lt.s32.totalorder %s926_s12, 8 }
   0x4   : > { %p140_p2 = pnand %p765_p0, %p139_p1 }
   0x5   : > { %v863_v0 = vld [vmem:[%s1148_s1] sm:$0xff] (!%p140_p2)   ;;  %v928_v1 = vmov (!%p140_p2), 0   ;;  %s164_s16 = smul.u32 (!%p140_p2), 30, %s761_s13  ;;  %v864_v2 = vld [vmem:[%s1148_s1 + $0x8] sm:$0xff] (!%p140_p2)   ;;  %v865_v3 = vld [vmem:[%s1148_s1 + $0x10] sm:$0xff] (!%p140_p2)   ;;  %vm446_vm0 = vcmask (!%p140_p2), 523264  }
   0x6   : > { %143 = sbr.rel (%p140_p2) target bundleno = 329 (0x149), region = 32  ;;  %492 = vmatprep.subr.bf16.mxu0 (!%p140_p2), %v928_v1  ;;  %830 = vmatprep.subr.bf16.mxu1 (!%p140_p2), %v928_v1  ;;  %v866_v4 = vld [vmem:[%s1148_s1 + $0x18] sm:$0xff] (!%p140_p2)   ;;  %v867_v6 = vld [vmem:[%s1148_s1 + $0x20] sm:$0xff] (!%p140_p2)   ;;  %v868_v8 = vld [vmem:[%s1148_s1 + $0x28] sm:$0xff] (!%p140_p2)  }
   0x7   : > { %493 = vmatpush1.bf16.msra.mxu0 (!%p140_p2), %v863_v0  ;;  %842 = vmatpush1.bf16.msra.mxu1 (!%p140_p2), %v863_v0  ;;  %p165_p3 = scmp.lt.s32.totalorder (!%p140_p2), %s164_s16, 209  ;;  %v869_v9 = vld [vmem:[%s1148_s1 + $0x30] sm:$0xff] (!%p140_p2)   ;;  %v870_v10 = vld [vmem:[%s1148_s1 + $0x38] sm:$0xff] (!%p140_p2)   ;;  %v871_v11 = vld [vmem:[%s1148_s1 + $0x40] sm:$0xff] (!%p140_p2)  }
   0x8   : > { %494 = vmatprep.subr.bf16.mxu0 (!%p140_p2), %v928_v1  ;;  %831 = vmatprep.subr.bf16.mxu1 (!%p140_p2), %v928_v1  ;;  %v872_v12 = vld [vmem:[%s1148_s1 + $0x48] sm:$0xff] (!%p140_p2)   ;;  %v873_v13 = vld [vmem:[%s1148_s1 + $0x50] sm:$0xff] (!%p140_p2)   ;;  %v874_v14 = vld [vmem:[%s1148_s1 + $0x58] sm:$0xff] (!%p140_p2)  }
   0x9   : > { %v1075_v43 = vld [vmem:[%s1149_s2] ss:$0 sm:$0xff] (!%p140_p2) }
   0xb   : > { %495 = vmatpush1.bf16.msra.mxu0 (!%p140_p2), %v864_v2  ;;  %843 = vmatpush1.bf16.msra.mxu1 (!%p140_p2), %v864_v2 }
   0xc   : > { %496 = vmatprep.subr.bf16.mxu0 (!%p140_p2), %v928_v1  ;;  %832 = vmatprep.subr.bf16.mxu1 (!%p140_p2), %v928_v1 }
   0xd   : > { %s1152_s16 = smov (!%p165_p3, %s164_s16), 209 }
   0xe   : > { %s829_s21 = sshll.u32 %s1152_s16, 3 }
   0xf   : > { %497 = vmatpush1.bf16.msra.mxu0 %v865_v3  ;;  %844 = vmatpush1.bf16.msra.mxu1 %v865_v3  ;;  %s983_s26 = scalar_lea.vmem %s1147_s0, %s829_s21  ;;  %s1084_s23 = scalar_lea.vmem %s1150_s3, %s829_s21 }
  0x10   : > { %498 = vmatprep.subr.bf16.mxu0 %v928_v1  ;;  %833 = vmatprep.subr.bf16.mxu1 %v928_v1  ;;  %v877_v5 = vld [vmem:[%s983_s26 + $0x4] ss:$8 sps:$4 sm:$0xff]   ;;  %v875_v15 = vld [vmem:[%s983_s26] ss:$8 sps:$4 sm:$0xff]   ;;  %v881_v17 = vld [vmem:[%s983_s26 + $0x14] ss:$8 sps:$4 sm:$0xff]  }
  0x11   : > { %v880_v7 = vld [vmem:[%s983_s26 + $0x84] ss:$8 sps:$4 sm:$0xff]   ;;  %812 = vmatprep.mubr.msk.bf16.mxu0 %vm446_vm0, %v877_v5  ;;  %v878_v16 = vld [vmem:[%s983_s26 + $0x80] ss:$8 sps:$4 sm:$0xff]   ;;  %v884_v18 = vld [vmem:[%s983_s26 + $0x94] ss:$8 sps:$4 sm:$0xff]  }
  0x12   : > { %820 = vmatprep.mubr.msk.bf16.mxu1 %vm446_vm0, %v880_v7  ;;  %v883_v19 = vld [vmem:[%s983_s26 + $0x10] ss:$8 sps:$4 sm:$0xff]   ;;  %v887_v21 = vld [vmem:[%s983_s26 + $0x24] ss:$8 sps:$4 sm:$0xff]   ;;  %v889_v23 = vld [vmem:[%s983_s26 + $0x20] ss:$8 sps:$4 sm:$0xff]  }
  0x13   : > { %499 = vmatpush1.bf16.msra.mxu0 %v866_v4  ;;  %845 = vmatpush1.bf16.msra.mxu1 %v866_v4  ;;  %v886_v20 = vld [vmem:[%s983_s26 + $0x90] ss:$8 sps:$4 sm:$0xff]   ;;  %v890_v22 = vld [vmem:[%s983_s26 + $0xa4] ss:$8 sps:$4 sm:$0xff]   ;;  %v892_v24 = vld [vmem:[%s983_s26 + $0xa0] ss:$8 sps:$4 sm:$0xff]  }
  0x14   : > { %500 = vmatprep.subr.bf16.mxu0 %v928_v1  ;;  %834 = vmatprep.subr.bf16.mxu1 %v928_v1  ;;  %v893_v25 = vld [vmem:[%s983_s26 + $0x34] ss:$8 sps:$4 sm:$0xff]   ;;  %v895_v27 = vld [vmem:[%s983_s26 + $0x30] ss:$8 sps:$4 sm:$0xff]   ;;  %v899_v29 = vld [vmem:[%s983_s26 + $0x44] ss:$8 sps:$4 sm:$0xff]  }
  0x15   : > { %v896_v26 = vld [vmem:[%s983_s26 + $0xb4] ss:$8 sps:$4 sm:$0xff]   ;;  %v898_v28 = vld [vmem:[%s983_s26 + $0xb0] ss:$8 sps:$4 sm:$0xff]   ;;  %v902_v30 = vld [vmem:[%s983_s26 + $0xc4] ss:$8 sps:$4 sm:$0xff]  }
  0x16   : > { %v901_v31 = vld [vmem:[%s983_s26 + $0x40] ss:$8 sps:$4 sm:$0xff]   ;;  %v905_v33 = vld [vmem:[%s983_s26 + $0x54] ss:$8 sps:$4 sm:$0xff]   ;;  %v907_v35 = vld [vmem:[%s983_s26 + $0x50] ss:$8 sps:$4 sm:$0xff]  }
  0x17   : > { %501 = vmatpush1.bf16.msra.mxu0 %v867_v6  ;;  %846 = vmatpush1.bf16.msra.mxu1 %v867_v6  ;;  %v904_v32 = vld [vmem:[%s983_s26 + $0xc0] ss:$8 sps:$4 sm:$0xff]   ;;  %v908_v34 = vld [vmem:[%s983_s26 + $0xd4] ss:$8 sps:$4 sm:$0xff]   ;;  %v910_v36 = vld [vmem:[%s983_s26 + $0xd0] ss:$8 sps:$4 sm:$0xff]  }
  0x18   : > { %502 = vmatprep.subr.bf16.mxu0 %v928_v1  ;;  %835 = vmatprep.subr.bf16.mxu1 %v928_v1  ;;  %v911_v37 = vld [vmem:[%s983_s26 + $0x64] ss:$8 sps:$4 sm:$0xff]   ;;  %v913_v39 = vld [vmem:[%s983_s26 + $0x60] ss:$8 sps:$4 sm:$0xff]   ;;  %v917_v41 = vld [vmem:[%s983_s26 + $0x74] ss:$8 sps:$4 sm:$0xff]  }
  0x19   : > { %v914_v38 = vld [vmem:[%s983_s26 + $0xe4] ss:$8 sps:$4 sm:$0xff]   ;;  %v916_v40 = vld [vmem:[%s983_s26 + $0xe0] ss:$8 sps:$4 sm:$0xff]   ;;  %v919_v42 = vld [vmem:[%s983_s26 + $0x70] ss:$8 sps:$4 sm:$0xff]  }
  0x1b   : > { %503 = vmatpush1.bf16.msra.mxu0 %v868_v8  ;;  %847 = vmatpush1.bf16.msra.mxu1 %v868_v8 }
  0x1c   : > { %504 = vmatprep.subr.bf16.mxu0 %v928_v1  ;;  %836 = vmatprep.subr.bf16.mxu1 %v928_v1 }
  0x1f   : > { %505 = vmatpush1.bf16.msra.mxu0 %v869_v9  ;;  %848 = vmatpush1.bf16.msra.mxu1 %v869_v9 }
  0x20   : > { %506 = vmatprep.subr.bf16.mxu0 %v928_v1  ;;  %837 = vmatprep.subr.bf16.mxu1 %v928_v1 }
  0x23   : > { %507 = vmatpush1.bf16.msra.mxu0 %v870_v10  ;;  %849 = vmatpush1.bf16.msra.mxu1 %v870_v10 }
  0x24   : > { %508 = vmatprep.subr.bf16.mxu0 %v928_v1  ;;  %838 = vmatprep.subr.bf16.mxu1 %v928_v1 }
  0x27   : > { %509 = vmatpush1.bf16.msra.mxu0 %v871_v11  ;;  %850 = vmatpush1.bf16.msra.mxu1 %v871_v11 }
  0x28   : > { %510 = vmatprep.subr.bf16.mxu0 %v928_v1  ;;  %839 = vmatprep.subr.bf16.mxu1 %v928_v1 }
  0x2b   : > { %511 = vmatpush1.bf16.msra.mxu0 %v872_v12  ;;  %851 = vmatpush1.bf16.msra.mxu1 %v872_v12 }
  0x2c   : > { %512 = vmatprep.subr.bf16.mxu0 %v928_v1  ;;  %840 = vmatprep.subr.bf16.mxu1 %v928_v1 }
  0x2f   : > { %513 = vmatpush1.bf16.msra.mxu0 %v873_v13  ;;  %852 = vmatpush1.bf16.msra.mxu1 %v873_v13 }
  0x30   : > { %514 = vmatprep.subr.bf16.mxu0 %v928_v1  ;;  %841 = vmatprep.subr.bf16.mxu1 %v928_v1 }
  0x33   : > { %515 = vmatpush1.bf16.msra.mxu0 %v874_v14  ;;  %853 = vmatpush1.bf16.msra.mxu1 %v874_v14 }
  0x36   : > { %525 = vmatmul.mubr.bf16.vlgmr.msra.gmra.mrb[0].mxu0 %v875_v15  ;;  %589 = vmatmul.mubr.bf16.vlgmr.msra.gmra.mrb[0].mxu1 %v878_v16 }
  0x37   : > { %813 = vmatprep.mubr.msk.bf16.mxu0 %vm446_vm0, %v881_v17  ;;  %821 = vmatprep.mubr.msk.bf16.mxu1 %vm446_vm0, %v884_v18 }
  0x3e   : > { %533 = vmatmul.mubr.bf16.gmra.mrb[4].mxu0 %v883_v19  ;;  %597 = vmatmul.mubr.bf16.gmra.mrb[4].mxu1 %v886_v20 }
  0x3f   : > { %814 = vmatprep.mubr.msk.bf16.mxu0 %vm446_vm0, %v887_v21  ;;  %822 = vmatprep.mubr.msk.bf16.mxu1 %vm446_vm0, %v890_v22 }
  0x46   : > { %541 = vmatmul.mubr.bf16.gmra.mrb[8].mxu0 %v889_v23  ;;  %605 = vmatmul.mubr.bf16.gmra.mrb[8].mxu1 %v892_v24 }
  0x47   : > { %815 = vmatprep.mubr.msk.bf16.mxu0 %vm446_vm0, %v893_v25  ;;  %823 = vmatprep.mubr.msk.bf16.mxu1 %vm446_vm0, %v896_v26 }
  0x4e   : > { %549 = vmatmul.mubr.bf16.gmra.mrb[12].mxu0 %v895_v27  ;;  %613 = vmatmul.mubr.bf16.gmra.mrb[12].mxu1 %v898_v28 }
  0x4f   : > { %816 = vmatprep.mubr.msk.bf16.mxu0 %vm446_vm0, %v899_v29  ;;  %824 = vmatprep.mubr.msk.bf16.mxu1 %vm446_vm0, %v902_v30 }
  0x56   : > { %557 = vmatmul.mubr.bf16.gmra.mrb[16].mxu0 %v901_v31  ;;  %621 = vmatmul.mubr.bf16.gmra.mrb[16].mxu1 %v904_v32 }
  0x57   : > { %817 = vmatprep.mubr.msk.bf16.mxu0 %vm446_vm0, %v905_v33  ;;  %825 = vmatprep.mubr.msk.bf16.mxu1 %vm446_vm0, %v908_v34 }
  0x5e   : > { %565 = vmatmul.mubr.bf16.gmra.mrb[20].mxu0 %v907_v35  ;;  %629 = vmatmul.mubr.bf16.gmra.mrb[20].mxu1 %v910_v36 }
  0x5f   : > { %818 = vmatprep.mubr.msk.bf16.mxu0 %vm446_vm0, %v911_v37  ;;  %826 = vmatprep.mubr.msk.bf16.mxu1 %vm446_vm0, %v914_v38 }
  0x66   : > { %573 = vmatmul.mubr.bf16.gmra.mrb[24].mxu0 %v913_v39  ;;  %637 = vmatmul.mubr.bf16.gmra.mrb[24].mxu1 %v916_v40 }
  0x67   : > { %819 = vmatprep.mubr.msk.bf16.mxu0 %vm446_vm0, %v917_v41 }
  0x6e   : > { %581 = vmatmul.mubr.bf16.gmra.mrb[28].mxu0 %v919_v42 }
 0x109   : > { %v526_v44 = vpop.f32.mrb[0].mxu0  ;;  %v590_v45 = vpop.f32.mrb[0].mxu1 }
 0x10a   : > { %v527_v46 = vadd.f32 %v1075_v43, %v526_v44  ;;  %v528_v47 = vpop.f32.mrb[1].mxu0  ;;  %v591_v48 = vadd.f32 %v1075_v43, %v590_v45  ;;  %v592_v49 = vpop.f32.mrb[1].mxu1 }
 0x10b   : > { %v529_v50 = vpop.f32.mrb[2].mxu0  ;;  %v593_v51 = vpop.f32.mrb[2].mxu1 }
 0x10c   : > { %v645_v52 = vmax.f32 %v527_v46, 0.0  ;;  %v530_v53 = vadd.f32 %v1075_v43, %v529_v50  ;;  %v531_v54 = vpop.f32.mrb[3].mxu0  ;;  %v661_v55 = vmax.f32 %v591_v48, 0.0  ;;  %v594_v56 = vadd.f32 %v1075_v43, %v593_v51  ;;  %v595_v57 = vpop.f32.mrb[3].mxu1 }
 0x10e   : > { %675 = vst [vmem:[%s1084_s23] sm:$0xff] %v645_v52  ;;  %v646_v58 = vmax.f32 %v530_v53, 0.0  ;;  %691 = vst [vmem:[%s1084_s23 + $0x80] sm:$0xff] %v661_v55  ;;  %v662_v59 = vmax.f32 %v594_v56, 0.0 }
 0x110   : > { %676 = vst [vmem:[%s1084_s23 + $0x8] sm:$0xff] %v646_v58  ;;  %692 = vst [vmem:[%s1084_s23 + $0x88] sm:$0xff] %v662_v59 }
 0x111   : > { %v534_v60 = vpop.f32.mrb[4].mxu0  ;;  %v598_v61 = vpop.f32.mrb[4].mxu1 }
 0x112   : > { %v535_v62 = vadd.f32 %v1075_v43, %v534_v60  ;;  %v536_v63 = vpop.f32.mrb[5].mxu0  ;;  %v599_v0 = vadd.f32 %v1075_v43, %v598_v61  ;;  %v600_v1 = vpop.f32.mrb[5].mxu1 }
 0x113   : > { %v537_v2 = vpop.f32.mrb[6].mxu0  ;;  %v601_v3 = vpop.f32.mrb[6].mxu1 }
 0x114   : > { %v647_v4 = vmax.f32 %v535_v62, 0.0  ;;  %v538_v5 = vadd.f32 %v1075_v43, %v537_v2  ;;  %v539_v6 = vpop.f32.mrb[7].mxu0  ;;  %v663_v7 = vmax.f32 %v599_v0, 0.0  ;;  %v602_v8 = vadd.f32 %v1075_v43, %v601_v3  ;;  %v603_v9 = vpop.f32.mrb[7].mxu1 }
 0x116   : > { %677 = vst [vmem:[%s1084_s23 + $0x10] sm:$0xff] %v647_v4  ;;  %v648_v10 = vmax.f32 %v538_v5, 0.0  ;;  %693 = vst [vmem:[%s1084_s23 + $0x90] sm:$0xff] %v663_v7  ;;  %v664_v11 = vmax.f32 %v602_v8, 0.0 }
 0x118   : > { %678 = vst [vmem:[%s1084_s23 + $0x18] sm:$0xff] %v648_v10  ;;  %694 = vst [vmem:[%s1084_s23 + $0x98] sm:$0xff] %v664_v11 }
 0x119   : > { %v542_v12 = vpop.f32.mrb[8].mxu0  ;;  %v606_v13 = vpop.f32.mrb[8].mxu1 }
 0x11a   : > { %v543_v14 = vadd.f32 %v1075_v43, %v542_v12  ;;  %v544_v15 = vpop.f32.mrb[9].mxu0  ;;  %v607_v16 = vadd.f32 %v1075_v43, %v606_v13  ;;  %v608_v17 = vpop.f32.mrb[9].mxu1 }
 0x11b   : > { %v545_v18 = vpop.f32.mrb[10].mxu0  ;;  %v609_v19 = vpop.f32.mrb[10].mxu1 }
 0x11c   : > { %v649_v20 = vmax.f32 %v543_v14, 0.0  ;;  %v546_v21 = vadd.f32 %v1075_v43, %v545_v18  ;;  %v547_v22 = vpop.f32.mrb[11].mxu0  ;;  %v665_v23 = vmax.f32 %v607_v16, 0.0  ;;  %v610_v24 = vadd.f32 %v1075_v43, %v609_v19  ;;  %v611_v25 = vpop.f32.mrb[11].mxu1 }
 0x11e   : > { %679 = vst [vmem:[%s1084_s23 + $0x20] sm:$0xff] %v649_v20  ;;  %v650_v26 = vmax.f32 %v546_v21, 0.0  ;;  %695 = vst [vmem:[%s1084_s23 + $0xa0] sm:$0xff] %v665_v23  ;;  %v666_v27 = vmax.f32 %v610_v24, 0.0 }
 0x120   : > { %680 = vst [vmem:[%s1084_s23 + $0x28] sm:$0xff] %v650_v26  ;;  %696 = vst [vmem:[%s1084_s23 + $0xa8] sm:$0xff] %v666_v27 }
 0x121   : > { %v550_v28 = vpop.f32.mrb[12].mxu0  ;;  %v614_v29 = vpop.f32.mrb[12].mxu1 }
 0x122   : > { %v551_v30 = vadd.f32 %v1075_v43, %v550_v28  ;;  %v552_v31 = vpop.f32.mrb[13].mxu0  ;;  %v615_v32 = vadd.f32 %v1075_v43, %v614_v29  ;;  %v616_v33 = vpop.f32.mrb[13].mxu1 }
 0x123   : > { %v553_v34 = vpop.f32.mrb[14].mxu0  ;;  %v617_v35 = vpop.f32.mrb[14].mxu1 }
 0x124   : > { %v651_v36 = vmax.f32 %v551_v30, 0.0  ;;  %v554_v37 = vadd.f32 %v1075_v43, %v553_v34  ;;  %v555_v38 = vpop.f32.mrb[15].mxu0  ;;  %v667_v39 = vmax.f32 %v615_v32, 0.0  ;;  %v618_v40 = vadd.f32 %v1075_v43, %v617_v35  ;;  %v619_v41 = vpop.f32.mrb[15].mxu1 }
 0x126   : > { %681 = vst [vmem:[%s1084_s23 + $0x30] sm:$0xff] %v651_v36  ;;  %v652_v42 = vmax.f32 %v554_v37, 0.0  ;;  %697 = vst [vmem:[%s1084_s23 + $0xb0] sm:$0xff] %v667_v39  ;;  %v668_v44 = vmax.f32 %v618_v40, 0.0 }
 0x128   : > { %682 = vst [vmem:[%s1084_s23 + $0x38] sm:$0xff] %v652_v42  ;;  %698 = vst [vmem:[%s1084_s23 + $0xb8] sm:$0xff] %v668_v44 }
 0x129   : > { %v558_v45 = vpop.f32.mrb[16].mxu0  ;;  %v622_v46 = vpop.f32.mrb[16].mxu1 }
 0x12a   : > { %v559_v47 = vadd.f32 %v1075_v43, %v558_v45  ;;  %v560_v48 = vpop.f32.mrb[17].mxu0  ;;  %v623_v49 = vadd.f32 %v1075_v43, %v622_v46  ;;  %v624_v50 = vpop.f32.mrb[17].mxu1 }
 0x12b   : > { %v561_v51 = vpop.f32.mrb[18].mxu0  ;;  %v625_v52 = vpop.f32.mrb[18].mxu1 }
 0x12c   : > { %v653_v53 = vmax.f32 %v559_v47, 0.0  ;;  %v562_v54 = vadd.f32 %v1075_v43, %v561_v51  ;;  %v563_v55 = vpop.f32.mrb[19].mxu0  ;;  %v669_v56 = vmax.f32 %v623_v49, 0.0  ;;  %v626_v57 = vadd.f32 %v1075_v43, %v625_v52  ;;  %v627_v58 = vpop.f32.mrb[19].mxu1 }
 0x12e   : > { %683 = vst [vmem:[%s1084_s23 + $0x40] sm:$0xff] %v653_v53  ;;  %v654_v59 = vmax.f32 %v562_v54, 0.0  ;;  %699 = vst [vmem:[%s1084_s23 + $0xc0] sm:$0xff] %v669_v56  ;;  %v670_v60 = vmax.f32 %v626_v57, 0.0 }
 0x130   : > { %684 = vst [vmem:[%s1084_s23 + $0x48] sm:$0xff] %v654_v59  ;;  %700 = vst [vmem:[%s1084_s23 + $0xc8] sm:$0xff] %v670_v60 }
 0x131   : > { %v566_v61 = vpop.f32.mrb[20].mxu0  ;;  %v630_v62 = vpop.f32.mrb[20].mxu1 }
 0x132   : > { %v567_v63 = vadd.f32 %v1075_v43, %v566_v61  ;;  %v568_v0 = vpop.f32.mrb[21].mxu0  ;;  %v631_v1 = vadd.f32 %v1075_v43, %v630_v62  ;;  %v632_v2 = vpop.f32.mrb[21].mxu1 }
 0x133   : > { %v569_v3 = vpop.f32.mrb[22].mxu0  ;;  %v633_v4 = vpop.f32.mrb[22].mxu1 }
 0x134   : > { %v655_v5 = vmax.f32 %v567_v63, 0.0  ;;  %v570_v6 = vadd.f32 %v1075_v43, %v569_v3  ;;  %v571_v7 = vpop.f32.mrb[23].mxu0  ;;  %v671_v8 = vmax.f32 %v631_v1, 0.0  ;;  %v634_v9 = vadd.f32 %v1075_v43, %v633_v4  ;;  %v635_v10 = vpop.f32.mrb[23].mxu1 }
 0x136   : > { %685 = vst [vmem:[%s1084_s23 + $0x50] sm:$0xff] %v655_v5  ;;  %v656_v11 = vmax.f32 %v570_v6, 0.0  ;;  %701 = vst [vmem:[%s1084_s23 + $0xd0] sm:$0xff] %v671_v8  ;;  %v672_v12 = vmax.f32 %v634_v9, 0.0 }
 0x138   : > { %686 = vst [vmem:[%s1084_s23 + $0x58] sm:$0xff] %v656_v11  ;;  %702 = vst [vmem:[%s1084_s23 + $0xd8] sm:$0xff] %v672_v12 }
 0x139   : > { %v574_v13 = vpop.f32.mrb[24].mxu0  ;;  %v638_v14 = vpop.f32.mrb[24].mxu1 }
 0x13a   : > { %v575_v15 = vadd.f32 %v1075_v43, %v574_v13  ;;  %v576_v16 = vpop.f32.mrb[25].mxu0  ;;  %v639_v17 = vadd.f32 %v1075_v43, %v638_v14  ;;  %v640_v18 = vpop.f32.mrb[25].mxu1 }
 0x13b   : > { %v577_v19 = vpop.f32.mrb[26].mxu0  ;;  %v641_v20 = vpop.f32.mrb[26].mxu1 }
 0x13c   : > { %v657_v21 = vmax.f32 %v575_v15, 0.0  ;;  %v578_v22 = vadd.f32 %v1075_v43, %v577_v19  ;;  %v579_v23 = vpop.f32.mrb[27].mxu0  ;;  %v673_v24 = vmax.f32 %v639_v17, 0.0  ;;  %v642_v25 = vadd.f32 %v1075_v43, %v641_v20  ;;  %v643_v26 = vpop.f32.mrb[27].mxu1 }
 0x13e   : > { %687 = vst [vmem:[%s1084_s23 + $0x60] sm:$0xff] %v657_v21  ;;  %v658_v27 = vmax.f32 %v578_v22, 0.0  ;;  %703 = vst [vmem:[%s1084_s23 + $0xe0] sm:$0xff] %v673_v24  ;;  %v674_v28 = vmax.f32 %v642_v25, 0.0 }
 0x140   : > { %688 = vst [vmem:[%s1084_s23 + $0x68] sm:$0xff] %v658_v27  ;;  %704 = vst [vmem:[%s1084_s23 + $0xe8] sm:$0xff] %v674_v28 }
 0x141   : > { %v582_v29 = vpop.f32.mrb[28].mxu0 }
 0x142   : > { %v583_v30 = vadd.f32 %v1075_v43, %v582_v29  ;;  %v584_v31 = vpop.f32.mrb[29].mxu0 }
 0x143   : > { %v585_v32 = vpop.f32.mrb[30].mxu0 }
 0x144   : > { %v659_v33 = vmax.f32 %v583_v30, 0.0  ;;  %v586_v34 = vadd.f32 %v1075_v43, %v585_v32  ;;  %v587_v35 = vpop.f32.mrb[31].mxu0 }
 0x146   : > { %689 = vst [vmem:[%s1084_s23 + $0x70] sm:$0xff] %v659_v33  ;;  %v660_v36 = vmax.f32 %v586_v34, 0.0 }
 0x148   : > { %690 = vst [vmem:[%s1084_s23 + $0x78] sm:$0xff] %v660_v36 }
 0x149 PF: > { %s13_s12 = sadd.s32 1, %s926_s12  }
 0x14a   : > { %p10_p4 = scmp.ge.s32.totalorder %s13_s12, 9  }
 0x14c   :  { %12 = sbr.rel (!%p10_p4) target bundleno = 1 (0x1), region = 62 }

// kernel: lprnet_forward.28
= control target key start
LH: loop header
LB: loop body
LE: loop exit
PB: predicated region body
PF: predicated region fallthrough
CT: control target
= control target key end

     0   :  { %s811_s12 = smov 0   ;;  %s1032_s0 = inlined_call_operand.vmem [shape: bf16[1680,64], index: 0, kind: input, shape index: {}]   ;;  %s1033_s1 = inlined_call_operand.vmem [shape: bf16[64,256], index: 1, kind: input, shape index: {}]   ;;  %s1034_s2 = inlined_call_operand.vmem [shape: f32[1,256], index: 2, kind: input, shape index: {}]   ;;  %s1035_s3 = inlined_call_operand.vmem [shape: f32[1680,256], index: 3, kind: output, shape index: {}]  }
   0x1 LB: > { %s689_s13 = sadd.s32 4294967295, %s788_s12   ;;  %p693_p0 = scmp.ge.s32.totalorder %s788_s12, 1  ;;  %s788_s12 = sphi %s811_s12, %s13_s12  }
   0x2   : > { %p138_p1 = scmp.lt.s32.totalorder %s788_s12, 8 }
   0x4   : > { %p139_p2 = pnand %p693_p0, %p138_p1 }
   0x5   : > { %v755_v0 = vld [vmem:[%s1033_s1 + $0x4] ss:$8 sps:$4 sm:$0xff] (!%p139_p2)   ;;  %s163_s16 = smul.u32 (!%p139_p2), 30, %s689_s13  ;;  %v757_v1 = vld [vmem:[%s1033_s1] ss:$8 sps:$4 sm:$0xff] (!%p139_p2)   ;;  %v790_v2 = vmov (!%p139_p2), 0   ;;  %v217_v24 = vlaneseq (!%p139_p2) }
   0x6   : > { %142 = sbr.rel (%p139_p2) target bundleno = 297 (0x129), region = 32  ;;  %420 = vmatprep.mubr.bf16.mxu0 (!%p139_p2), %v790_v2  ;;  %500 = vmatprep.mubr.bf16.mxu1 (!%p139_p2), %v790_v2  ;;  %v758_v3 = vld [vmem:[%s1033_s1 + $0x14] ss:$8 sps:$4 sm:$0xff] (!%p139_p2)   ;;  %v760_v4 = vld [vmem:[%s1033_s1 + $0x10] ss:$8 sps:$4 sm:$0xff] (!%p139_p2)   ;;  %vm342_vm0 = vcmask (!%p139_p2), 523264  }
   0x7   : > { %388 = vmatprep.subr.bf16.mxu0 (!%p139_p2), %v755_v0  ;;  %738 = vmatprep.subr.bf16.mxu1 (!%p139_p2), %v755_v0  ;;  %p164_p3 = scmp.lt.s32.totalorder (!%p139_p2), %s163_s16, 209  ;;  %v761_v5 = vld [vmem:[%s1033_s1 + $0x24] ss:$8 sps:$4 sm:$0xff] (!%p139_p2)   ;;  %v763_v6 = vld [vmem:[%s1033_s1 + $0x20] ss:$8 sps:$4 sm:$0xff] (!%p139_p2)   ;;  %v218_v25 = vshrl.u32 (!%p139_p2), %v217_v24, 7 }
   0x8   : > { %389 = vmatpush1.bf16.msra.mxu0 (!%p139_p2), %v757_v1  ;;  %742 = vmatpush1.bf16.msra.mxu1 (!%p139_p2), %v757_v1  ;;  %v764_v7 = vld [vmem:[%s1033_s1 + $0x34] ss:$8 sps:$4 sm:$0xff] (!%p139_p2)   ;;  %v766_v8 = vld [vmem:[%s1033_s1 + $0x30] ss:$8 sps:$4 sm:$0xff] (!%p139_p2)   ;;  %v215_v27 = vld [vmem:[%s1034_s2] sm:$0x3] (!%p139_p2) }
   0x9   : > { %390 = vmatprep.subr.bf16.mxu0 (!%p139_p2), %v758_v3  ;;  %739 = vmatprep.subr.bf16.mxu1 (!%p139_p2), %v758_v3  ;;  %v219_v26 = vsub.s32 (!%p139_p2), 0, %v218_v25  ;;  %v223_v28 = vsub.s32 (!%p139_p2), 1, %v218_v25 }
   0xb   : > { %v900_v29 = vrot.slane (!%p139_p2), %v215_v27, %v219_v26  ;;  %v902_v30 = vrot.slane (!%p139_p2), %v215_v27, %v223_v28 }
   0xc   : > { %391 = vmatpush1.bf16.msra.mxu0 (!%p139_p2), %v760_v4  ;;  %743 = vmatpush1.bf16.msra.mxu1 (!%p139_p2), %v760_v4 }
   0xd   : > { %s1037_s16 = smov (!%p164_p3, %s163_s16), 209  ;;  %392 = vmatprep.subr.bf16.mxu0 %v761_v5  ;;  %740 = vmatprep.subr.bf16.mxu1 %v761_v5 }
   0xe   : > { %s694_s25 = sshll.u32 %s1037_s16, 2  ;;  %s737_s10 = sshll.u32 %s1037_s16, 4 }
   0xf   : > { %s845_s30 = scalar_lea.vmem %s1032_s0, %s694_s25  ;;  %s907_s14 = scalar_lea.vmem %s1035_s3, %s737_s10 }
  0x10   : > { %393 = vmatpush1.bf16.msra.mxu0 %v763_v6  ;;  %744 = vmatpush1.bf16.msra.mxu1 %v763_v6  ;;  %v767_v9 = vld [vmem:[%s845_s30] sm:$0xff]   ;;  %v769_v11 = vld [vmem:[%s845_s30 + $0x8] sm:$0xff]   ;;  %v771_v13 = vld [vmem:[%s845_s30 + $0x10] sm:$0xff]  }
  0x11   : > { %394 = vmatprep.subr.bf16.mxu0 %v764_v7  ;;  %741 = vmatprep.subr.bf16.mxu1 %v764_v7  ;;  %v768_v10 = vld [vmem:[%s845_s30 + $0x40] sm:$0xff]   ;;  %v770_v12 = vld [vmem:[%s845_s30 + $0x48] sm:$0xff]   ;;  %v772_v14 = vld [vmem:[%s845_s30 + $0x50] sm:$0xff]  }
  0x12   : > { %v773_v15 = vld [vmem:[%s845_s30 + $0x18] sm:$0xff]   ;;  %v775_v17 = vld [vmem:[%s845_s30 + $0x20] sm:$0xff]   ;;  %v777_v19 = vld [vmem:[%s845_s30 + $0x28] sm:$0xff]  }
  0x13   : > { %v774_v16 = vld [vmem:[%s845_s30 + $0x58] sm:$0xff]   ;;  %v776_v18 = vld [vmem:[%s845_s30 + $0x60] sm:$0xff]   ;;  %v778_v20 = vld [vmem:[%s845_s30 + $0x68] sm:$0xff]  }
  0x14   : > { %395 = vmatpush1.bf16.msra.mxu0 %v766_v8  ;;  %745 = vmatpush1.bf16.msra.mxu1 %v766_v8  ;;  %v779_v21 = vld [vmem:[%s845_s30 + $0x30] sm:$0xff]   ;;  %v781_v23 = vld [vmem:[%s845_s30 + $0x38] sm:$0xff]  }
  0x15   : > { %v780_v22 = vld [vmem:[%s845_s30 + $0x70] sm:$0xff]  }
  0x17   : > { %720 = vmatmul.mubr.msk.bf16.vlgmr.msra.gmra.mrb[0].mxu0 %vm342_vm0, %v767_v9  ;;  %728 = vmatmul.mubr.msk.bf16.vlgmr.msra.gmra.mrb[0].mxu1 %vm342_vm0, %v768_v10 }
  0x18   : > { %430 = vmatprep.mubr.bf16.mxu0 %v790_v2  ;;  %510 = vmatprep.mubr.bf16.mxu1 %v790_v2 }
  0x1f   : > { %721 = vmatmul.mubr.msk.bf16.gmra.mrb[4].mxu0 %vm342_vm0, %v769_v11  ;;  %729 = vmatmul.mubr.msk.bf16.gmra.mrb[4].mxu1 %vm342_vm0, %v770_v12 }
  0x20   : > { %440 = vmatprep.mubr.bf16.mxu0 %v790_v2  ;;  %520 = vmatprep.mubr.bf16.mxu1 %v790_v2 }
  0x27   : > { %722 = vmatmul.mubr.msk.bf16.gmra.mrb[8].mxu0 %vm342_vm0, %v771_v13  ;;  %730 = vmatmul.mubr.msk.bf16.gmra.mrb[8].mxu1 %vm342_vm0, %v772_v14 }
  0x28   : > { %450 = vmatprep.mubr.bf16.mxu0 %v790_v2  ;;  %530 = vmatprep.mubr.bf16.mxu1 %v790_v2 }
  0x2f   : > { %723 = vmatmul.mubr.msk.bf16.gmra.mrb[12].mxu0 %vm342_vm0, %v773_v15  ;;  %731 = vmatmul.mubr.msk.bf16.gmra.mrb[12].mxu1 %vm342_vm0, %v774_v16 }
  0x30   : > { %460 = vmatprep.mubr.bf16.mxu0 %v790_v2  ;;  %540 = vmatprep.mubr.bf16.mxu1 %v790_v2 }
  0x37   : > { %724 = vmatmul.mubr.msk.bf16.gmra.mrb[16].mxu0 %vm342_vm0, %v775_v17  ;;  %732 = vmatmul.mubr.msk.bf16.gmra.mrb[16].mxu1 %vm342_vm0, %v776_v18 }
  0x38   : > { %470 = vmatprep.mubr.bf16.mxu0 %v790_v2  ;;  %550 = vmatprep.mubr.bf16.mxu1 %v790_v2 }
  0x3f   : > { %725 = vmatmul.mubr.msk.bf16.gmra.mrb[20].mxu0 %vm342_vm0, %v777_v19  ;;  %733 = vmatmul.mubr.msk.bf16.gmra.mrb[20].mxu1 %vm342_vm0, %v778_v20 }
  0x40   : > { %480 = vmatprep.mubr.bf16.mxu0 %v790_v2  ;;  %560 = vmatprep.mubr.bf16.mxu1 %v790_v2 }
  0x47   : > { %726 = vmatmul.mubr.msk.bf16.gmra.mrb[24].mxu0 %vm342_vm0, %v779_v21  ;;  %734 = vmatmul.mubr.msk.bf16.gmra.mrb[24].mxu1 %vm342_vm0, %v780_v22 }
  0x48   : > { %490 = vmatprep.mubr.bf16.mxu0 %v790_v2 }
  0x4f   : > { %727 = vmatmul.mubr.msk.bf16.gmra.mrb[28].mxu0 %vm342_vm0, %v781_v23 }
  0xea   : > { %v422_v31 = vpop.f32.mrb[0].mxu0  ;;  %v502_v32 = vpop.f32.mrb[0].mxu1 }
  0xeb   : > { %v423_v33 = vadd.f32 %v422_v31, %v900_v29  ;;  %v424_v34 = vpop.f32.mrb[1].mxu0  ;;  %v503_v35 = vadd.f32 %v502_v32, %v900_v29  ;;  %v504_v36 = vpop.f32.mrb[1].mxu1 }
  0xec   : > { %v425_v37 = vadd.f32 %v424_v34, %v902_v30  ;;  %v426_v38 = vpop.f32.mrb[2].mxu0  ;;  %v505_v39 = vadd.f32 %v504_v36, %v902_v30  ;;  %v506_v40 = vpop.f32.mrb[2].mxu1 }
  0xed   : > { %571 = vst [vmem:[%s907_s14] sm:$0xff] %v423_v33  ;;  %v427_v41 = vadd.f32 %v426_v38, %v900_v29  ;;  %v428_v42 = vpop.f32.mrb[3].mxu0  ;;  %603 = vst [vmem:[%s907_s14 + $0x100] sm:$0xff] %v503_v35  ;;  %v507_v43 = vadd.f32 %v506_v40, %v900_v29  ;;  %v508_v44 = vpop.f32.mrb[3].mxu1 }
  0xee   : > { %572 = vst [vmem:[%s907_s14 + $0x8] sm:$0xff] %v425_v37  ;;  %v429_v45 = vadd.f32 %v428_v42, %v902_v30  ;;  %604 = vst [vmem:[%s907_s14 + $0x108] sm:$0xff] %v505_v39  ;;  %v509_v46 = vadd.f32 %v508_v44, %v902_v30 }
  0xef   : > { %573 = vst [vmem:[%s907_s14 + $0x10] sm:$0xff] %v427_v41  ;;  %605 = vst [vmem:[%s907_s14 + $0x110] sm:$0xff] %v507_v43 }
  0xf0   : > { %574 = vst [vmem:[%s907_s14 + $0x18] sm:$0xff] %v429_v45  ;;  %606 = vst [vmem:[%s907_s14 + $0x118] sm:$0xff] %v509_v46 }
  0xf2   : > { %v432_v47 = vpop.f32.mrb[4].mxu0  ;;  %v512_v48 = vpop.f32.mrb[4].mxu1 }
  0xf3   : > { %v433_v49 = vadd.f32 %v432_v47, %v900_v29  ;;  %v434_v50 = vpop.f32.mrb[5].mxu0  ;;  %v513_v51 = vadd.f32 %v512_v48, %v900_v29  ;;  %v514_v52 = vpop.f32.mrb[5].mxu1 }
  0xf4   : > { %v435_v53 = vadd.f32 %v434_v50, %v902_v30  ;;  %v436_v54 = vpop.f32.mrb[6].mxu0  ;;  %v515_v55 = vadd.f32 %v514_v52, %v902_v30  ;;  %v516_v56 = vpop.f32.mrb[6].mxu1 }
  0xf5   : > { %575 = vst [vmem:[%s907_s14 + $0x20] sm:$0xff] %v433_v49  ;;  %v437_v57 = vadd.f32 %v436_v54, %v900_v29  ;;  %v438_v58 = vpop.f32.mrb[7].mxu0  ;;  %607 = vst [vmem:[%s907_s14 + $0x120] sm:$0xff] %v513_v51  ;;  %v517_v59 = vadd.f32 %v516_v56, %v900_v29  ;;  %v518_v60 = vpop.f32.mrb[7].mxu1 }
  0xf6   : > { %576 = vst [vmem:[%s907_s14 + $0x28] sm:$0xff] %v435_v53  ;;  %v439_v61 = vadd.f32 %v438_v58, %v902_v30  ;;  %608 = vst [vmem:[%s907_s14 + $0x128] sm:$0xff] %v515_v55  ;;  %v519_v62 = vadd.f32 %v518_v60, %v902_v30 }
  0xf7   : > { %577 = vst [vmem:[%s907_s14 + $0x30] sm:$0xff] %v437_v57  ;;  %609 = vst [vmem:[%s907_s14 + $0x130] sm:$0xff] %v517_v59 }
  0xf8   : > { %578 = vst [vmem:[%s907_s14 + $0x38] sm:$0xff] %v439_v61  ;;  %610 = vst [vmem:[%s907_s14 + $0x138] sm:$0xff] %v519_v62 }
  0xfa   : > { %v442_v63 = vpop.f32.mrb[8].mxu0  ;;  %v522_v0 = vpop.f32.mrb[8].mxu1 }
  0xfb   : > { %v443_v1 = vadd.f32 %v442_v63, %v900_v29  ;;  %v444_v2 = vpop.f32.mrb[9].mxu0  ;;  %v523_v3 = vadd.f32 %v522_v0, %v900_v29  ;;  %v524_v4 = vpop.f32.mrb[9].mxu1 }
  0xfc   : > { %v445_v5 = vadd.f32 %v444_v2, %v902_v30  ;;  %v446_v6 = vpop.f32.mrb[10].mxu0  ;;  %v525_v7 = vadd.f32 %v524_v4, %v902_v30  ;;  %v526_v8 = vpop.f32.mrb[10].mxu1 }
  0xfd   : > { %579 = vst [vmem:[%s907_s14 + $0x40] sm:$0xff] %v443_v1  ;;  %v447_v9 = vadd.f32 %v446_v6, %v900_v29  ;;  %v448_v10 = vpop.f32.mrb[11].mxu0  ;;  %611 = vst [vmem:[%s907_s14 + $0x140] sm:$0xff] %v523_v3  ;;  %v527_v11 = vadd.f32 %v526_v8, %v900_v29  ;;  %v528_v12 = vpop.f32.mrb[11].mxu1 }
  0xfe   : > { %580 = vst [vmem:[%s907_s14 + $0x48] sm:$0xff] %v445_v5  ;;  %v449_v13 = vadd.f32 %v448_v10, %v902_v30  ;;  %612 = vst [vmem:[%s907_s14 + $0x148] sm:$0xff] %v525_v7  ;;  %v529_v14 = vadd.f32 %v528_v12, %v902_v30 }
  0xff   : > { %581 = vst [vmem:[%s907_s14 + $0x50] sm:$0xff] %v447_v9  ;;  %613 = vst [vmem:[%s907_s14 + $0x150] sm:$0xff] %v527_v11 }
 0x100   : > { %582 = vst [vmem:[%s907_s14 + $0x58] sm:$0xff] %v449_v13  ;;  %614 = vst [vmem:[%s907_s14 + $0x158] sm:$0xff] %v529_v14 }
 0x102   : > { %v452_v15 = vpop.f32.mrb[12].mxu0  ;;  %v532_v16 = vpop.f32.mrb[12].mxu1 }
 0x103   : > { %v453_v17 = vadd.f32 %v452_v15, %v900_v29  ;;  %v454_v18 = vpop.f32.mrb[13].mxu0  ;;  %v533_v19 = vadd.f32 %v532_v16, %v900_v29  ;;  %v534_v20 = vpop.f32.mrb[13].mxu1 }
 0x104   : > { %v455_v21 = vadd.f32 %v454_v18, %v902_v30  ;;  %v456_v22 = vpop.f32.mrb[14].mxu0  ;;  %v535_v23 = vadd.f32 %v534_v20, %v902_v30  ;;  %v536_v24 = vpop.f32.mrb[14].mxu1 }
 0x105   : > { %583 = vst [vmem:[%s907_s14 + $0x60] sm:$0xff] %v453_v17  ;;  %v457_v25 = vadd.f32 %v456_v22, %v900_v29  ;;  %v458_v26 = vpop.f32.mrb[15].mxu0  ;;  %615 = vst [vmem:[%s907_s14 + $0x160] sm:$0xff] %v533_v19  ;;  %v537_v27 = vadd.f32 %v536_v24, %v900_v29  ;;  %v538_v28 = vpop.f32.mrb[15].mxu1 }
 0x106   : > { %584 = vst [vmem:[%s907_s14 + $0x68] sm:$0xff] %v455_v21  ;;  %v459_v31 = vadd.f32 %v458_v26, %v902_v30  ;;  %616 = vst [vmem:[%s907_s14 + $0x168] sm:$0xff] %v535_v23  ;;  %v539_v32 = vadd.f32 %v538_v28, %v902_v30 }
 0x107   : > { %585 = vst [vmem:[%s907_s14 + $0x70] sm:$0xff] %v457_v25  ;;  %617 = vst [vmem:[%s907_s14 + $0x170] sm:$0xff] %v537_v27 }
 0x108   : > { %586 = vst [vmem:[%s907_s14 + $0x78] sm:$0xff] %v459_v31  ;;  %618 = vst [vmem:[%s907_s14 + $0x178] sm:$0xff] %v539_v32 }
 0x10a   : > { %v462_v33 = vpop.f32.mrb[16].mxu0  ;;  %v542_v34 = vpop.f32.mrb[16].mxu1 }
 0x10b   : > { %v463_v35 = vadd.f32 %v462_v33, %v900_v29  ;;  %v464_v36 = vpop.f32.mrb[17].mxu0  ;;  %v543_v37 = vadd.f32 %v542_v34, %v900_v29  ;;  %v544_v38 = vpop.f32.mrb[17].mxu1 }
 0x10c   : > { %v465_v39 = vadd.f32 %v464_v36, %v902_v30  ;;  %v466_v40 = vpop.f32.mrb[18].mxu0  ;;  %v545_v41 = vadd.f32 %v544_v38, %v902_v30  ;;  %v546_v42 = vpop.f32.mrb[18].mxu1 }
 0x10d   : > { %587 = vst [vmem:[%s907_s14 + $0x80] sm:$0xff] %v463_v35  ;;  %v467_v43 = vadd.f32 %v466_v40, %v900_v29  ;;  %v468_v44 = vpop.f32.mrb[19].mxu0  ;;  %619 = vst [vmem:[%s907_s14 + $0x180] sm:$0xff] %v543_v37  ;;  %v547_v45 = vadd.f32 %v546_v42, %v900_v29  ;;  %v548_v46 = vpop.f32.mrb[19].mxu1 }
 0x10e   : > { %588 = vst [vmem:[%s907_s14 + $0x88] sm:$0xff] %v465_v39  ;;  %v469_v47 = vadd.f32 %v468_v44, %v902_v30  ;;  %620 = vst [vmem:[%s907_s14 + $0x188] sm:$0xff] %v545_v41  ;;  %v549_v48 = vadd.f32 %v548_v46, %v902_v30 }
 0x10f   : > { %589 = vst [vmem:[%s907_s14 + $0x90] sm:$0xff] %v467_v43  ;;  %621 = vst [vmem:[%s907_s14 + $0x190] sm:$0xff] %v547_v45 }
 0x110   : > { %590 = vst [vmem:[%s907_s14 + $0x98] sm:$0xff] %v469_v47  ;;  %622 = vst [vmem:[%s907_s14 + $0x198] sm:$0xff] %v549_v48 }
 0x112   : > { %v472_v49 = vpop.f32.mrb[20].mxu0  ;;  %v552_v50 = vpop.f32.mrb[20].mxu1 }
 0x113   : > { %v473_v51 = vadd.f32 %v472_v49, %v900_v29  ;;  %v474_v52 = vpop.f32.mrb[21].mxu0  ;;  %v553_v53 = vadd.f32 %v552_v50, %v900_v29  ;;  %v554_v54 = vpop.f32.mrb[21].mxu1 }
 0x114   : > { %v475_v55 = vadd.f32 %v474_v52, %v902_v30  ;;  %v476_v56 = vpop.f32.mrb[22].mxu0  ;;  %v555_v57 = vadd.f32 %v554_v54, %v902_v30  ;;  %v556_v58 = vpop.f32.mrb[22].mxu1 }
 0x115   : > { %591 = vst [vmem:[%s907_s14 + $0xa0] sm:$0xff] %v473_v51  ;;  %v477_v59 = vadd.f32 %v476_v56, %v900_v29  ;;  %v478_v60 = vpop.f32.mrb[23].mxu0  ;;  %623 = vst [vmem:[%s907_s14 + $0x1a0] sm:$0xff] %v553_v53  ;;  %v557_v61 = vadd.f32 %v556_v58, %v900_v29  ;;  %v558_v62 = vpop.f32.mrb[23].mxu1 }
 0x116   : > { %592 = vst [vmem:[%s907_s14 + $0xa8] sm:$0xff] %v475_v55  ;;  %v479_v63 = vadd.f32 %v478_v60, %v902_v30  ;;  %624 = vst [vmem:[%s907_s14 + $0x1a8] sm:$0xff] %v555_v57  ;;  %v559_v0 = vadd.f32 %v558_v62, %v902_v30 }
 0x117   : > { %593 = vst [vmem:[%s907_s14 + $0xb0] sm:$0xff] %v477_v59  ;;  %625 = vst [vmem:[%s907_s14 + $0x1b0] sm:$0xff] %v557_v61 }
 0x118   : > { %594 = vst [vmem:[%s907_s14 + $0xb8] sm:$0xff] %v479_v63  ;;  %626 = vst [vmem:[%s907_s14 + $0x1b8] sm:$0xff] %v559_v0 }
 0x11a   : > { %v482_v1 = vpop.f32.mrb[24].mxu0  ;;  %v562_v2 = vpop.f32.mrb[24].mxu1 }
 0x11b   : > { %v483_v3 = vadd.f32 %v482_v1, %v900_v29  ;;  %v484_v4 = vpop.f32.mrb[25].mxu0  ;;  %v563_v5 = vadd.f32 %v562_v2, %v900_v29  ;;  %v564_v6 = vpop.f32.mrb[25].mxu1 }
 0x11c   : > { %v485_v7 = vadd.f32 %v484_v4, %v902_v30  ;;  %v486_v8 = vpop.f32.mrb[26].mxu0  ;;  %v565_v9 = vadd.f32 %v564_v6, %v902_v30  ;;  %v566_v10 = vpop.f32.mrb[26].mxu1 }
 0x11d   : > { %595 = vst [vmem:[%s907_s14 + $0xc0] sm:$0xff] %v483_v3  ;;  %v487_v11 = vadd.f32 %v486_v8, %v900_v29  ;;  %v488_v12 = vpop.f32.mrb[27].mxu0  ;;  %627 = vst [vmem:[%s907_s14 + $0x1c0] sm:$0xff] %v563_v5  ;;  %v567_v13 = vadd.f32 %v566_v10, %v900_v29  ;;  %v568_v14 = vpop.f32.mrb[27].mxu1 }
 0x11e   : > { %596 = vst [vmem:[%s907_s14 + $0xc8] sm:$0xff] %v485_v7  ;;  %v489_v15 = vadd.f32 %v488_v12, %v902_v30  ;;  %628 = vst [vmem:[%s907_s14 + $0x1c8] sm:$0xff] %v565_v9  ;;  %v569_v16 = vadd.f32 %v568_v14, %v902_v30 }
 0x11f   : > { %597 = vst [vmem:[%s907_s14 + $0xd0] sm:$0xff] %v487_v11  ;;  %629 = vst [vmem:[%s907_s14 + $0x1d0] sm:$0xff] %v567_v13 }
 0x120   : > { %598 = vst [vmem:[%s907_s14 + $0xd8] sm:$0xff] %v489_v15  ;;  %630 = vst [vmem:[%s907_s14 + $0x1d8] sm:$0xff] %v569_v16 }
 0x122   : > { %v492_v17 = vpop.f32.mrb[28].mxu0 }
 0x123   : > { %v493_v18 = vadd.f32 %v492_v17, %v900_v29  ;;  %v494_v19 = vpop.f32.mrb[29].mxu0 }
 0x124   : > { %v495_v20 = vadd.f32 %v494_v19, %v902_v30  ;;  %v496_v21 = vpop.f32.mrb[30].mxu0 }
 0x125   : > { %599 = vst [vmem:[%s907_s14 + $0xe0] sm:$0xff] %v493_v18  ;;  %v497_v22 = vadd.f32 %v496_v21, %v900_v29  ;;  %v498_v23 = vpop.f32.mrb[31].mxu0 }
 0x126   : > { %600 = vst [vmem:[%s907_s14 + $0xe8] sm:$0xff] %v495_v20  ;;  %v499_v24 = vadd.f32 %v498_v23, %v902_v30 }
 0x127   : > { %601 = vst [vmem:[%s907_s14 + $0xf0] sm:$0xff] %v497_v22 }
 0x128   : > { %602 = vst [vmem:[%s907_s14 + $0xf8] sm:$0xff] %v499_v24 }
 0x129 PF: > { %s13_s12 = sadd.s32 1, %s788_s12  }
 0x12a   : > { %p10_p4 = scmp.ge.s32.totalorder %s13_s12, 9  }
 0x12c   :  { %12 = sbr.rel (!%p10_p4) target bundleno = 1 (0x1), region = 62 }

// kernel: lprnet_forward.29
= control target key start
LH: loop header
LB: loop body
LE: loop exit
PB: predicated region body
PF: predicated region fallthrough
CT: control target
= control target key end

     0   :  { %s1063_s15 = smov 0   ;;  %s1353_s0 = inlined_call_operand.vmem [shape: bf16[1680,64], index: 0, kind: input, shape index: {}]   ;;  %s1354_s1 = inlined_call_operand.vmem [shape: bf16[64,256], index: 1, kind: input, shape index: {}]   ;;  %s1355_s2 = inlined_call_operand.vmem [shape: f32[1,256], index: 2, kind: input, shape index: {}]   ;;  %s1356_s3 = inlined_call_operand.vmem [shape: f32[1680,256], index: 3, kind: input, shape index: {}]   ;;  %s1357_s4 = inlined_call_operand.vmem [shape: f32[1680,256], index: 4, kind: output, shape index: {}]  }
   0x1 LB: > { %s933_s16 = sadd.s32 4294967295, %s1035_s15   ;;  %p937_p0 = scmp.ge.s32.totalorder %s1035_s15, 1  ;;  %s1035_s15 = sphi %s1063_s15, %s14_s15  }
   0x2   : > { %p175_p1 = scmp.lt.s32.totalorder %s1035_s15, 8 }
   0x4   : > { %p176_p2 = pnand %p937_p0, %p175_p1 }
   0x5   : > { %v1002_v0 = vld [vmem:[%s1354_s1 + $0x4] ss:$8 sps:$4 sm:$0xff] (!%p176_p2)   ;;  %s208_s19 = smul.u32 (!%p176_p2), 30, %s933_s16  ;;  %v1004_v1 = vld [vmem:[%s1354_s1] ss:$8 sps:$4 sm:$0xff] (!%p176_p2)   ;;  %v1037_v2 = vmov (!%p176_p2), 0   ;;  %v269_v24 = vlaneseq (!%p176_p2) }
   0x6   : > { %179 = sbr.rel (%p176_p2) target bundleno = 301 (0x12d), region = 36  ;;  %472 = vmatprep.mubr.bf16.mxu0 (!%p176_p2), %v1037_v2  ;;  %552 = vmatprep.mubr.bf16.mxu1 (!%p176_p2), %v1037_v2  ;;  %v1005_v3 = vld [vmem:[%s1354_s1 + $0x14] ss:$8 sps:$4 sm:$0xff] (!%p176_p2)   ;;  %v1007_v4 = vld [vmem:[%s1354_s1 + $0x10] ss:$8 sps:$4 sm:$0xff] (!%p176_p2)   ;;  %vm394_vm0 = vcmask (!%p176_p2), 523264  }
   0x7   : > { %440 = vmatprep.subr.bf16.mxu0 (!%p176_p2), %v1002_v0  ;;  %985 = vmatprep.subr.bf16.mxu1 (!%p176_p2), %v1002_v0  ;;  %p209_p3 = scmp.lt.s32.totalorder (!%p176_p2), %s208_s19, 209  ;;  %v1008_v5 = vld [vmem:[%s1354_s1 + $0x24] ss:$8 sps:$4 sm:$0xff] (!%p176_p2)   ;;  %v1010_v6 = vld [vmem:[%s1354_s1 + $0x20] ss:$8 sps:$4 sm:$0xff] (!%p176_p2)   ;;  %v270_v25 = vshrl.u32 (!%p176_p2), %v269_v24, 7 }
   0x8   : > { %441 = vmatpush1.bf16.msra.mxu0 (!%p176_p2), %v1004_v1  ;;  %989 = vmatpush1.bf16.msra.mxu1 (!%p176_p2), %v1004_v1  ;;  %v1011_v7 = vld [vmem:[%s1354_s1 + $0x34] ss:$8 sps:$4 sm:$0xff] (!%p176_p2)   ;;  %v1013_v8 = vld [vmem:[%s1354_s1 + $0x30] ss:$8 sps:$4 sm:$0xff] (!%p176_p2)   ;;  %v267_v27 = vld [vmem:[%s1355_s2] sm:$0x3] (!%p176_p2) }
   0x9   : > { %442 = vmatprep.subr.bf16.mxu0 (!%p176_p2), %v1005_v3  ;;  %986 = vmatprep.subr.bf16.mxu1 (!%p176_p2), %v1005_v3  ;;  %v271_v26 = vsub.s32 (!%p176_p2), 0, %v270_v25  ;;  %v275_v28 = vsub.s32 (!%p176_p2), 1, %v270_v25 }
   0xb   : > { %v1159_v29 = vrot.slane (!%p176_p2), %v267_v27, %v271_v26  ;;  %v1161_v30 = vrot.slane (!%p176_p2), %v267_v27, %v275_v28 }
   0xc   : > { %443 = vmatpush1.bf16.msra.mxu0 (!%p176_p2), %v1007_v4  ;;  %990 = vmatpush1.bf16.msra.mxu1 (!%p176_p2), %v1007_v4 }
   0xd   : > { %s1359_s19 = smov (!%p209_p3, %s208_s19), 209  ;;  %444 = vmatprep.subr.bf16.mxu0 %v1008_v5  ;;  %987 = vmatprep.subr.bf16.mxu1 %v1008_v5 }
   0xe   : > { %s938_s28 = sshll.u32 %s1359_s19, 2  ;;  %s983_s12 = sshll.u32 %s1359_s19, 4 }
   0xf   : > { %s1097_s7 = scalar_lea.vmem %s1353_s0, %s938_s28  ;;  %s1157_s18 = scalar_lea.vmem %s1356_s3, %s983_s12 }
  0x10   : > { %445 = vmatpush1.bf16.msra.mxu0 %v1010_v6  ;;  %991 = vmatpush1.bf16.msra.mxu1 %v1010_v6  ;;  %v1014_v9 = vld [vmem:[%s1097_s7] sm:$0xff]   ;;  %v1016_v11 = vld [vmem:[%s1097_s7 + $0x8] sm:$0xff]   ;;  %v1018_v13 = vld [vmem:[%s1097_s7 + $0x10] sm:$0xff]   ;;  %s1182_s22 = scalar_lea.vmem %s1357_s4, %s983_s12 }
  0x11   : > { %446 = vmatprep.subr.bf16.mxu0 %v1011_v7  ;;  %988 = vmatprep.subr.bf16.mxu1 %v1011_v7  ;;  %v1015_v10 = vld [vmem:[%s1097_s7 + $0x40] sm:$0xff]   ;;  %v1017_v12 = vld [vmem:[%s1097_s7 + $0x48] sm:$0xff]   ;;  %v1019_v14 = vld [vmem:[%s1097_s7 + $0x50] sm:$0xff]  }
  0x12   : > { %v1020_v15 = vld [vmem:[%s1097_s7 + $0x18] sm:$0xff]   ;;  %v1022_v17 = vld [vmem:[%s1097_s7 + $0x20] sm:$0xff]   ;;  %v1024_v19 = vld [vmem:[%s1097_s7 + $0x28] sm:$0xff]  }
  0x13   : > { %v1021_v16 = vld [vmem:[%s1097_s7 + $0x58] sm:$0xff]   ;;  %v1023_v18 = vld [vmem:[%s1097_s7 + $0x60] sm:$0xff]   ;;  %v1025_v20 = vld [vmem:[%s1097_s7 + $0x68] sm:$0xff]  }
  0x14   : > { %447 = vmatpush1.bf16.msra.mxu0 %v1013_v8  ;;  %992 = vmatpush1.bf16.msra.mxu1 %v1013_v8  ;;  %v1026_v21 = vld [vmem:[%s1097_s7 + $0x30] sm:$0xff]   ;;  %v1028_v23 = vld [vmem:[%s1097_s7 + $0x38] sm:$0xff]   ;;  %v623_v32 = vld [vmem:[%s1157_s18] sm:$0xff] }
  0x15   : > { %v1027_v22 = vld [vmem:[%s1097_s7 + $0x70] sm:$0xff]   ;;  %v655_v34 = vld [vmem:[%s1157_s18 + $0x100] sm:$0xff]  ;;  %v624_v37 = vld [vmem:[%s1157_s18 + $0x8] sm:$0xff] }
  0x16   : > { %v656_v40 = vld [vmem:[%s1157_s18 + $0x108] sm:$0xff]  ;;  %v625_v43 = vld [vmem:[%s1157_s18 + $0x10] sm:$0xff]  ;;  %v626_v50 = vld [vmem:[%s1157_s18 + $0x18] sm:$0xff] }
  0x17   : > { %966 = vmatmul.mubr.msk.bf16.vlgmr.msra.gmra.mrb[0].mxu0 %vm394_vm0, %v1014_v9  ;;  %974 = vmatmul.mubr.msk.bf16.vlgmr.msra.gmra.mrb[0].mxu1 %vm394_vm0, %v1015_v10  ;;  %v657_v46 = vld [vmem:[%s1157_s18 + $0x110] sm:$0xff]  ;;  %v658_v54 = vld [vmem:[%s1157_s18 + $0x118] sm:$0xff]  ;;  %v627_v7 = vld [vmem:[%s1157_s18 + $0x20] sm:$0xff] }
  0x18   : > { %482 = vmatprep.mubr.bf16.mxu0 %v1037_v2  ;;  %562 = vmatprep.mubr.bf16.mxu1 %v1037_v2  ;;  %v659_v10 = vld [vmem:[%s1157_s18 + $0x120] sm:$0xff]  ;;  %v630_v26 = vld [vmem:[%s1157_s18 + $0x38] sm:$0xff] }
  0x1f   : > { %967 = vmatmul.mubr.msk.bf16.gmra.mrb[4].mxu0 %vm394_vm0, %v1016_v11  ;;  %975 = vmatmul.mubr.msk.bf16.gmra.mrb[4].mxu1 %vm394_vm0, %v1017_v12 }
  0x20   : > { %492 = vmatprep.mubr.bf16.mxu0 %v1037_v2  ;;  %572 = vmatprep.mubr.bf16.mxu1 %v1037_v2 }
  0x27   : > { %968 = vmatmul.mubr.msk.bf16.gmra.mrb[8].mxu0 %vm394_vm0, %v1018_v13  ;;  %976 = vmatmul.mubr.msk.bf16.gmra.mrb[8].mxu1 %vm394_vm0, %v1019_v14  ;;  %v628_v13 = vld [vmem:[%s1157_s18 + $0x28] sm:$0xff] }
  0x28   : > { %502 = vmatprep.mubr.bf16.mxu0 %v1037_v2  ;;  %582 = vmatprep.mubr.bf16.mxu1 %v1037_v2 }
  0x2f   : > { %969 = vmatmul.mubr.msk.bf16.gmra.mrb[12].mxu0 %vm394_vm0, %v1020_v15  ;;  %977 = vmatmul.mubr.msk.bf16.gmra.mrb[12].mxu1 %vm394_vm0, %v1021_v16  ;;  %v660_v16 = vld [vmem:[%s1157_s18 + $0x128] sm:$0xff] }
  0x30   : > { %512 = vmatprep.mubr.bf16.mxu0 %v1037_v2  ;;  %592 = vmatprep.mubr.bf16.mxu1 %v1037_v2 }
  0x37   : > { %970 = vmatmul.mubr.msk.bf16.gmra.mrb[16].mxu0 %vm394_vm0, %v1022_v17  ;;  %978 = vmatmul.mubr.msk.bf16.gmra.mrb[16].mxu1 %vm394_vm0, %v1023_v18 }
  0x38   : > { %522 = vmatprep.mubr.bf16.mxu0 %v1037_v2  ;;  %602 = vmatprep.mubr.bf16.mxu1 %v1037_v2 }
  0x3f   : > { %971 = vmatmul.mubr.msk.bf16.gmra.mrb[20].mxu0 %vm394_vm0, %v1024_v19  ;;  %979 = vmatmul.mubr.msk.bf16.gmra.mrb[20].mxu1 %vm394_vm0, %v1025_v20  ;;  %v629_v19 = vld [vmem:[%s1157_s18 + $0x30] sm:$0xff] }
  0x40   : > { %532 = vmatprep.mubr.bf16.mxu0 %v1037_v2  ;;  %612 = vmatprep.mubr.bf16.mxu1 %v1037_v2 }
  0x47   : > { %972 = vmatmul.mubr.msk.bf16.gmra.mrb[24].mxu0 %vm394_vm0, %v1026_v21  ;;  %980 = vmatmul.mubr.msk.bf16.gmra.mrb[24].mxu1 %vm394_vm0, %v1027_v22  ;;  %v661_v22 = vld [vmem:[%s1157_s18 + $0x130] sm:$0xff] }
  0x48   : > { %542 = vmatprep.mubr.bf16.mxu0 %v1037_v2 }
  0x4f   : > { %973 = vmatmul.mubr.msk.bf16.gmra.mrb[28].mxu0 %vm394_vm0, %v1028_v23 }
  0xea   : > { %v474_v31 = vpop.f32.mrb[0].mxu0  ;;  %v554_v33 = vpop.f32.mrb[0].mxu1 }
  0xeb   : > { %v475_v35 = vadd.f32 %v474_v31, %v1159_v29  ;;  %v476_v36 = vpop.f32.mrb[1].mxu0  ;;  %v555_v38 = vadd.f32 %v554_v33, %v1159_v29  ;;  %v556_v39 = vpop.f32.mrb[1].mxu1 }
  0xec   : > { %v477_v41 = vadd.f32 %v476_v36, %v1161_v30  ;;  %v478_v42 = vpop.f32.mrb[2].mxu0  ;;  %v557_v44 = vadd.f32 %v556_v39, %v1161_v30  ;;  %v558_v45 = vpop.f32.mrb[2].mxu1 }
  0xed   : > { %v683_v47 = vadd.f32 %v623_v32, %v475_v35  ;;  %v479_v48 = vadd.f32 %v478_v42, %v1159_v29  ;;  %v480_v49 = vpop.f32.mrb[3].mxu0  ;;  %v715_v51 = vadd.f32 %v655_v34, %v555_v38  ;;  %v559_v52 = vadd.f32 %v558_v45, %v1159_v29  ;;  %v560_v53 = vpop.f32.mrb[3].mxu1  ;;  %v662_v32 = vld [vmem:[%s1157_s18 + $0x138] sm:$0xff] }
  0xee   : > { %v684_v55 = vadd.f32 %v624_v37, %v477_v41  ;;  %v481_v56 = vadd.f32 %v480_v49, %v1161_v30  ;;  %v716_v57 = vadd.f32 %v656_v40, %v557_v44  ;;  %v561_v58 = vadd.f32 %v560_v53, %v1161_v30  ;;  %v631_v49 = vld [vmem:[%s1157_s18 + $0x40] sm:$0xff] }
  0xef   : > { %v743_v59 = vmax.f32 %v683_v47, 0.0  ;;  %v685_v60 = vadd.f32 %v625_v43, %v479_v48  ;;  %v775_v61 = vmax.f32 %v715_v51, 0.0  ;;  %v717_v62 = vadd.f32 %v657_v46, %v559_v52  ;;  %v663_v52 = vld [vmem:[%s1157_s18 + $0x140] sm:$0xff] }
  0xf0   : > { %v744_v63 = vmax.f32 %v684_v55, 0.0  ;;  %v686_v0 = vadd.f32 %v626_v50, %v481_v56  ;;  %v776_v1 = vmax.f32 %v716_v57, 0.0  ;;  %v718_v2 = vadd.f32 %v658_v54, %v561_v58  ;;  %v632_v55 = vld [vmem:[%s1157_s18 + $0x48] sm:$0xff] }
  0xf1   : > { %803 = vst [vmem:[%s1182_s22] sm:$0xff] %v743_v59  ;;  %v745_v3 = vmax.f32 %v685_v60, 0.0  ;;  %835 = vst [vmem:[%s1182_s22 + $0x100] sm:$0xff] %v775_v61  ;;  %v777_v4 = vmax.f32 %v717_v62, 0.0  ;;  %v664_v58 = vld [vmem:[%s1157_s18 + $0x148] sm:$0xff]  ;;  %v633_v61 = vld [vmem:[%s1157_s18 + $0x50] sm:$0xff] }
  0xf2   : > { %804 = vst [vmem:[%s1182_s22 + $0x8] sm:$0xff] %v744_v63  ;;  %v746_v5 = vmax.f32 %v686_v0, 0.0  ;;  %836 = vst [vmem:[%s1182_s22 + $0x108] sm:$0xff] %v776_v1  ;;  %v484_v6 = vpop.f32.mrb[4].mxu0  ;;  %v778_v8 = vmax.f32 %v718_v2, 0.0  ;;  %v564_v9 = vpop.f32.mrb[4].mxu1 }
  0xf3   : > { %805 = vst [vmem:[%s1182_s22 + $0x10] sm:$0xff] %v745_v3  ;;  %837 = vst [vmem:[%s1182_s22 + $0x110] sm:$0xff] %v777_v4  ;;  %v485_v11 = vadd.f32 %v484_v6, %v1159_v29  ;;  %v486_v12 = vpop.f32.mrb[5].mxu0  ;;  %v565_v14 = vadd.f32 %v564_v9, %v1159_v29  ;;  %v566_v15 = vpop.f32.mrb[5].mxu1  ;;  %v665_v0 = vld [vmem:[%s1157_s18 + $0x150] sm:$0xff]  ;;  %v634_v4 = vld [vmem:[%s1157_s18 + $0x58] sm:$0xff] }
  0xf4   : > { %806 = vst [vmem:[%s1182_s22 + $0x18] sm:$0xff] %v746_v5  ;;  %838 = vst [vmem:[%s1182_s22 + $0x118] sm:$0xff] %v778_v8  ;;  %v487_v17 = vadd.f32 %v486_v12, %v1161_v30  ;;  %v488_v18 = vpop.f32.mrb[6].mxu0  ;;  %v567_v20 = vadd.f32 %v566_v15, %v1161_v30  ;;  %v568_v21 = vpop.f32.mrb[6].mxu1  ;;  %v666_v8 = vld [vmem:[%s1157_s18 + $0x158] sm:$0xff] }
  0xf5   : > { %v687_v23 = vadd.f32 %v627_v7, %v485_v11  ;;  %v489_v24 = vadd.f32 %v488_v18, %v1159_v29  ;;  %v490_v25 = vpop.f32.mrb[7].mxu0  ;;  %v719_v27 = vadd.f32 %v659_v10, %v565_v14  ;;  %v569_v28 = vadd.f32 %v568_v21, %v1159_v29  ;;  %v570_v31 = vpop.f32.mrb[7].mxu1 }
  0xf6   : > { %v688_v33 = vadd.f32 %v628_v13, %v487_v17  ;;  %v491_v34 = vadd.f32 %v490_v25, %v1161_v30  ;;  %v720_v35 = vadd.f32 %v660_v16, %v567_v20  ;;  %v571_v36 = vadd.f32 %v570_v31, %v1161_v30  ;;  %v635_v25 = vld [vmem:[%s1157_s18 + $0x60] sm:$0xff] }
  0xf7   : > { %v747_v37 = vmax.f32 %v687_v23, 0.0  ;;  %v689_v38 = vadd.f32 %v629_v19, %v489_v24  ;;  %v779_v39 = vmax.f32 %v719_v27, 0.0  ;;  %v721_v40 = vadd.f32 %v661_v22, %v569_v28  ;;  %v667_v28 = vld [vmem:[%s1157_s18 + $0x160] sm:$0xff] }
  0xf8   : > { %v748_v41 = vmax.f32 %v688_v33, 0.0  ;;  %v690_v42 = vadd.f32 %v630_v26, %v491_v34  ;;  %v780_v43 = vmax.f32 %v720_v35, 0.0  ;;  %v722_v44 = vadd.f32 %v662_v32, %v571_v36  ;;  %v636_v33 = vld [vmem:[%s1157_s18 + $0x68] sm:$0xff] }
  0xf9   : > { %807 = vst [vmem:[%s1182_s22 + $0x20] sm:$0xff] %v747_v37  ;;  %v749_v45 = vmax.f32 %v689_v38, 0.0  ;;  %839 = vst [vmem:[%s1182_s22 + $0x120] sm:$0xff] %v779_v39  ;;  %v781_v46 = vmax.f32 %v721_v40, 0.0  ;;  %v668_v36 = vld [vmem:[%s1157_s18 + $0x168] sm:$0xff]  ;;  %v637_v39 = vld [vmem:[%s1157_s18 + $0x70] sm:$0xff] }
  0xfa   : > { %808 = vst [vmem:[%s1182_s22 + $0x28] sm:$0xff] %v748_v41  ;;  %v750_v47 = vmax.f32 %v690_v42, 0.0  ;;  %840 = vst [vmem:[%s1182_s22 + $0x128] sm:$0xff] %v780_v43  ;;  %v494_v48 = vpop.f32.mrb[8].mxu0  ;;  %v782_v50 = vmax.f32 %v722_v44, 0.0  ;;  %v574_v51 = vpop.f32.mrb[8].mxu1 }
  0xfb   : > { %809 = vst [vmem:[%s1182_s22 + $0x30] sm:$0xff] %v749_v45  ;;  %841 = vst [vmem:[%s1182_s22 + $0x130] sm:$0xff] %v781_v46  ;;  %v495_v53 = vadd.f32 %v494_v48, %v1159_v29  ;;  %v496_v54 = vpop.f32.mrb[9].mxu0  ;;  %v575_v56 = vadd.f32 %v574_v51, %v1159_v29  ;;  %v576_v57 = vpop.f32.mrb[9].mxu1  ;;  %v669_v42 = vld [vmem:[%s1157_s18 + $0x170] sm:$0xff]  ;;  %v638_v46 = vld [vmem:[%s1157_s18 + $0x78] sm:$0xff] }
  0xfc   : > { %810 = vst [vmem:[%s1182_s22 + $0x38] sm:$0xff] %v750_v47  ;;  %842 = vst [vmem:[%s1182_s22 + $0x138] sm:$0xff] %v782_v50  ;;  %v497_v59 = vadd.f32 %v496_v54, %v1161_v30  ;;  %v498_v60 = vpop.f32.mrb[10].mxu0  ;;  %v577_v62 = vadd.f32 %v576_v57, %v1161_v30  ;;  %v578_v63 = vpop.f32.mrb[10].mxu1  ;;  %v670_v50 = vld [vmem:[%s1157_s18 + $0x178] sm:$0xff] }
  0xfd   : > { %v691_v1 = vadd.f32 %v631_v49, %v495_v53  ;;  %v499_v2 = vadd.f32 %v498_v60, %v1159_v29  ;;  %v500_v3 = vpop.f32.mrb[11].mxu0  ;;  %v723_v5 = vadd.f32 %v663_v52, %v575_v56  ;;  %v579_v6 = vadd.f32 %v578_v63, %v1159_v29  ;;  %v580_v7 = vpop.f32.mrb[11].mxu1 }
  0xfe   : > { %v692_v9 = vadd.f32 %v632_v55, %v497_v59  ;;  %v501_v10 = vadd.f32 %v500_v3, %v1161_v30  ;;  %v724_v11 = vadd.f32 %v664_v58, %v577_v62  ;;  %v581_v12 = vadd.f32 %v580_v7, %v1161_v30  ;;  %v639_v3 = vld [vmem:[%s1157_s18 + $0x80] sm:$0xff] }
  0xff   : > { %v751_v13 = vmax.f32 %v691_v1, 0.0  ;;  %v693_v14 = vadd.f32 %v633_v61, %v499_v2  ;;  %v783_v15 = vmax.f32 %v723_v5, 0.0  ;;  %v725_v16 = vadd.f32 %v665_v0, %v579_v6  ;;  %v671_v6 = vld [vmem:[%s1157_s18 + $0x180] sm:$0xff] }
 0x100   : > { %v752_v17 = vmax.f32 %v692_v9, 0.0  ;;  %v694_v18 = vadd.f32 %v634_v4, %v501_v10  ;;  %v784_v19 = vmax.f32 %v724_v11, 0.0  ;;  %v726_v20 = vadd.f32 %v666_v8, %v581_v12  ;;  %v640_v9 = vld [vmem:[%s1157_s18 + $0x88] sm:$0xff] }
 0x101   : > { %811 = vst [vmem:[%s1182_s22 + $0x40] sm:$0xff] %v751_v13  ;;  %v753_v21 = vmax.f32 %v693_v14, 0.0  ;;  %843 = vst [vmem:[%s1182_s22 + $0x140] sm:$0xff] %v783_v15  ;;  %v785_v22 = vmax.f32 %v725_v16, 0.0  ;;  %v672_v12 = vld [vmem:[%s1157_s18 + $0x188] sm:$0xff]  ;;  %v641_v15 = vld [vmem:[%s1157_s18 + $0x90] sm:$0xff] }
 0x102   : > { %812 = vst [vmem:[%s1182_s22 + $0x48] sm:$0xff] %v752_v17  ;;  %v754_v23 = vmax.f32 %v694_v18, 0.0  ;;  %844 = vst [vmem:[%s1182_s22 + $0x148] sm:$0xff] %v784_v19  ;;  %v504_v24 = vpop.f32.mrb[12].mxu0  ;;  %v786_v26 = vmax.f32 %v726_v20, 0.0  ;;  %v584_v27 = vpop.f32.mrb[12].mxu1 }
 0x103   : > { %813 = vst [vmem:[%s1182_s22 + $0x50] sm:$0xff] %v753_v21  ;;  %845 = vst [vmem:[%s1182_s22 + $0x150] sm:$0xff] %v785_v22  ;;  %v505_v31 = vadd.f32 %v504_v24, %v1159_v29  ;;  %v506_v32 = vpop.f32.mrb[13].mxu0  ;;  %v585_v34 = vadd.f32 %v584_v27, %v1159_v29  ;;  %v586_v35 = vpop.f32.mrb[13].mxu1  ;;  %v673_v18 = vld [vmem:[%s1157_s18 + $0x190] sm:$0xff]  ;;  %v642_v22 = vld [vmem:[%s1157_s18 + $0x98] sm:$0xff] }
 0x104   : > { %814 = vst [vmem:[%s1182_s22 + $0x58] sm:$0xff] %v754_v23  ;;  %846 = vst [vmem:[%s1182_s22 + $0x158] sm:$0xff] %v786_v26  ;;  %v507_v37 = vadd.f32 %v506_v32, %v1161_v30  ;;  %v508_v38 = vpop.f32.mrb[14].mxu0  ;;  %v587_v40 = vadd.f32 %v586_v35, %v1161_v30  ;;  %v588_v41 = vpop.f32.mrb[14].mxu1  ;;  %v674_v26 = vld [vmem:[%s1157_s18 + $0x198] sm:$0xff] }
 0x105   : > { %v695_v43 = vadd.f32 %v635_v25, %v505_v31  ;;  %v509_v44 = vadd.f32 %v508_v38, %v1159_v29  ;;  %v510_v45 = vpop.f32.mrb[15].mxu0  ;;  %v727_v47 = vadd.f32 %v667_v28, %v585_v34  ;;  %v589_v48 = vadd.f32 %v588_v41, %v1159_v29  ;;  %v590_v49 = vpop.f32.mrb[15].mxu1 }
 0x106   : > { %v696_v51 = vadd.f32 %v636_v33, %v507_v37  ;;  %v511_v52 = vadd.f32 %v510_v45, %v1161_v30  ;;  %v728_v53 = vadd.f32 %v668_v36, %v587_v40  ;;  %v591_v54 = vadd.f32 %v590_v49, %v1161_v30  ;;  %v643_v45 = vld [vmem:[%s1157_s18 + $0xa0] sm:$0xff] }
 0x107   : > { %v755_v55 = vmax.f32 %v695_v43, 0.0  ;;  %v697_v56 = vadd.f32 %v637_v39, %v509_v44  ;;  %v787_v57 = vmax.f32 %v727_v47, 0.0  ;;  %v729_v58 = vadd.f32 %v669_v42, %v589_v48  ;;  %v675_v48 = vld [vmem:[%s1157_s18 + $0x1a0] sm:$0xff] }
 0x108   : > { %v756_v59 = vmax.f32 %v696_v51, 0.0  ;;  %v698_v60 = vadd.f32 %v638_v46, %v511_v52  ;;  %v788_v61 = vmax.f32 %v728_v53, 0.0  ;;  %v730_v62 = vadd.f32 %v670_v50, %v591_v54  ;;  %v644_v51 = vld [vmem:[%s1157_s18 + $0xa8] sm:$0xff] }
 0x109   : > { %815 = vst [vmem:[%s1182_s22 + $0x60] sm:$0xff] %v755_v55  ;;  %v757_v63 = vmax.f32 %v697_v56, 0.0  ;;  %847 = vst [vmem:[%s1182_s22 + $0x160] sm:$0xff] %v787_v57  ;;  %v789_v0 = vmax.f32 %v729_v58, 0.0  ;;  %v676_v54 = vld [vmem:[%s1157_s18 + $0x1a8] sm:$0xff]  ;;  %v645_v57 = vld [vmem:[%s1157_s18 + $0xb0] sm:$0xff] }
 0x10a   : > { %816 = vst [vmem:[%s1182_s22 + $0x68] sm:$0xff] %v756_v59  ;;  %v758_v1 = vmax.f32 %v698_v60, 0.0  ;;  %848 = vst [vmem:[%s1182_s22 + $0x168] sm:$0xff] %v788_v61  ;;  %v514_v2 = vpop.f32.mrb[16].mxu0  ;;  %v790_v4 = vmax.f32 %v730_v62, 0.0  ;;  %v594_v5 = vpop.f32.mrb[16].mxu1 }
 0x10b   : > { %817 = vst [vmem:[%s1182_s22 + $0x70] sm:$0xff] %v757_v63  ;;  %849 = vst [vmem:[%s1182_s22 + $0x170] sm:$0xff] %v789_v0  ;;  %v515_v7 = vadd.f32 %v514_v2, %v1159_v29  ;;  %v516_v8 = vpop.f32.mrb[17].mxu0  ;;  %v595_v10 = vadd.f32 %v594_v5, %v1159_v29  ;;  %v596_v11 = vpop.f32.mrb[17].mxu1  ;;  %v677_v60 = vld [vmem:[%s1157_s18 + $0x1b0] sm:$0xff]  ;;  %v646_v0 = vld [vmem:[%s1157_s18 + $0xb8] sm:$0xff] }
 0x10c   : > { %818 = vst [vmem:[%s1182_s22 + $0x78] sm:$0xff] %v758_v1  ;;  %850 = vst [vmem:[%s1182_s22 + $0x178] sm:$0xff] %v790_v4  ;;  %v517_v13 = vadd.f32 %v516_v8, %v1161_v30  ;;  %v518_v14 = vpop.f32.mrb[18].mxu0  ;;  %v597_v16 = vadd.f32 %v596_v11, %v1161_v30  ;;  %v598_v17 = vpop.f32.mrb[18].mxu1  ;;  %v678_v4 = vld [vmem:[%s1157_s18 + $0x1b8] sm:$0xff] }
 0x10d   : > { %v699_v19 = vadd.f32 %v639_v3, %v515_v7  ;;  %v519_v20 = vadd.f32 %v518_v14, %v1159_v29  ;;  %v520_v21 = vpop.f32.mrb[19].mxu0  ;;  %v731_v23 = vadd.f32 %v671_v6, %v595_v10  ;;  %v599_v24 = vadd.f32 %v598_v17, %v1159_v29  ;;  %v600_v25 = vpop.f32.mrb[19].mxu1 }
 0x10e   : > { %v700_v27 = vadd.f32 %v640_v9, %v517_v13  ;;  %v521_v28 = vadd.f32 %v520_v21, %v1161_v30  ;;  %v732_v31 = vadd.f32 %v672_v12, %v597_v16  ;;  %v601_v32 = vadd.f32 %v600_v25, %v1161_v30  ;;  %v647_v21 = vld [vmem:[%s1157_s18 + $0xc0] sm:$0xff] }
 0x10f   : > { %v759_v33 = vmax.f32 %v699_v19, 0.0  ;;  %v701_v34 = vadd.f32 %v641_v15, %v519_v20  ;;  %v791_v35 = vmax.f32 %v731_v23, 0.0  ;;  %v733_v36 = vadd.f32 %v673_v18, %v599_v24  ;;  %v679_v24 = vld [vmem:[%s1157_s18 + $0x1c0] sm:$0xff] }
 0x110   : > { %v760_v37 = vmax.f32 %v700_v27, 0.0  ;;  %v702_v38 = vadd.f32 %v642_v22, %v521_v28  ;;  %v792_v39 = vmax.f32 %v732_v31, 0.0  ;;  %v734_v40 = vadd.f32 %v674_v26, %v601_v32  ;;  %v648_v27 = vld [vmem:[%s1157_s18 + $0xc8] sm:$0xff] }
 0x111   : > { %819 = vst [vmem:[%s1182_s22 + $0x80] sm:$0xff] %v759_v33  ;;  %v761_v41 = vmax.f32 %v701_v34, 0.0  ;;  %851 = vst [vmem:[%s1182_s22 + $0x180] sm:$0xff] %v791_v35  ;;  %v793_v42 = vmax.f32 %v733_v36, 0.0  ;;  %v680_v32 = vld [vmem:[%s1157_s18 + $0x1c8] sm:$0xff]  ;;  %v649_v35 = vld [vmem:[%s1157_s18 + $0xd0] sm:$0xff] }
 0x112   : > { %820 = vst [vmem:[%s1182_s22 + $0x88] sm:$0xff] %v760_v37  ;;  %v762_v43 = vmax.f32 %v702_v38, 0.0  ;;  %852 = vst [vmem:[%s1182_s22 + $0x188] sm:$0xff] %v792_v39  ;;  %v524_v44 = vpop.f32.mrb[20].mxu0  ;;  %v794_v46 = vmax.f32 %v734_v40, 0.0  ;;  %v604_v47 = vpop.f32.mrb[20].mxu1 }
 0x113   : > { %821 = vst [vmem:[%s1182_s22 + $0x90] sm:$0xff] %v761_v41  ;;  %853 = vst [vmem:[%s1182_s22 + $0x190] sm:$0xff] %v793_v42  ;;  %v525_v49 = vadd.f32 %v524_v44, %v1159_v29  ;;  %v526_v50 = vpop.f32.mrb[21].mxu0  ;;  %v605_v52 = vadd.f32 %v604_v47, %v1159_v29  ;;  %v606_v53 = vpop.f32.mrb[21].mxu1  ;;  %v681_v38 = vld [vmem:[%s1157_s18 + $0x1d0] sm:$0xff]  ;;  %v650_v42 = vld [vmem:[%s1157_s18 + $0xd8] sm:$0xff] }
 0x114   : > { %822 = vst [vmem:[%s1182_s22 + $0x98] sm:$0xff] %v762_v43  ;;  %854 = vst [vmem:[%s1182_s22 + $0x198] sm:$0xff] %v794_v46  ;;  %v527_v55 = vadd.f32 %v526_v50, %v1161_v30  ;;  %v528_v56 = vpop.f32.mrb[22].mxu0  ;;  %v607_v58 = vadd.f32 %v606_v53, %v1161_v30  ;;  %v608_v59 = vpop.f32.mrb[22].mxu1  ;;  %v682_v46 = vld [vmem:[%s1157_s18 + $0x1d8] sm:$0xff] }
 0x115   : > { %v703_v61 = vadd.f32 %v643_v45, %v525_v49  ;;  %v529_v62 = vadd.f32 %v528_v56, %v1159_v29  ;;  %v530_v63 = vpop.f32.mrb[23].mxu0  ;;  %v735_v1 = vadd.f32 %v675_v48, %v605_v52  ;;  %v609_v2 = vadd.f32 %v608_v59, %v1159_v29  ;;  %v610_v3 = vpop.f32.mrb[23].mxu1 }
 0x116   : > { %v704_v5 = vadd.f32 %v644_v51, %v527_v55  ;;  %v531_v6 = vadd.f32 %v530_v63, %v1161_v30  ;;  %v736_v7 = vadd.f32 %v676_v54, %v607_v58  ;;  %v611_v8 = vadd.f32 %v610_v3, %v1161_v30  ;;  %v651_v63 = vld [vmem:[%s1157_s18 + $0xe0] sm:$0xff]  ;;  %v652_v3 = vld [vmem:[%s1157_s18 + $0xe8] sm:$0xff] }
 0x117   : > { %v763_v9 = vmax.f32 %v703_v61, 0.0  ;;  %v705_v10 = vadd.f32 %v645_v57, %v529_v62  ;;  %v795_v11 = vmax.f32 %v735_v1, 0.0  ;;  %v737_v12 = vadd.f32 %v677_v60, %v609_v2 }
 0x118   : > { %v764_v13 = vmax.f32 %v704_v5, 0.0  ;;  %v706_v14 = vadd.f32 %v646_v0, %v531_v6  ;;  %v796_v15 = vmax.f32 %v736_v7, 0.0  ;;  %v738_v16 = vadd.f32 %v678_v4, %v611_v8  ;;  %v653_v6 = vld [vmem:[%s1157_s18 + $0xf0] sm:$0xff] }
 0x119   : > { %823 = vst [vmem:[%s1182_s22 + $0xa0] sm:$0xff] %v763_v9  ;;  %v765_v17 = vmax.f32 %v705_v10, 0.0  ;;  %855 = vst [vmem:[%s1182_s22 + $0x1a0] sm:$0xff] %v795_v11  ;;  %v797_v18 = vmax.f32 %v737_v12, 0.0  ;;  %v654_v10 = vld [vmem:[%s1157_s18 + $0xf8] sm:$0xff] }
 0x11a   : > { %824 = vst [vmem:[%s1182_s22 + $0xa8] sm:$0xff] %v764_v13  ;;  %v766_v19 = vmax.f32 %v706_v14, 0.0  ;;  %856 = vst [vmem:[%s1182_s22 + $0x1a8] sm:$0xff] %v796_v15  ;;  %v534_v20 = vpop.f32.mrb[24].mxu0  ;;  %v798_v22 = vmax.f32 %v738_v16, 0.0  ;;  %v614_v23 = vpop.f32.mrb[24].mxu1 }
 0x11b   : > { %825 = vst [vmem:[%s1182_s22 + $0xb0] sm:$0xff] %v765_v17  ;;  %857 = vst [vmem:[%s1182_s22 + $0x1b0] sm:$0xff] %v797_v18  ;;  %v535_v25 = vadd.f32 %v534_v20, %v1159_v29  ;;  %v536_v26 = vpop.f32.mrb[25].mxu0  ;;  %v615_v28 = vadd.f32 %v614_v23, %v1159_v29  ;;  %v616_v31 = vpop.f32.mrb[25].mxu1 }
 0x11c   : > { %826 = vst [vmem:[%s1182_s22 + $0xb8] sm:$0xff] %v766_v19  ;;  %858 = vst [vmem:[%s1182_s22 + $0x1b8] sm:$0xff] %v798_v22  ;;  %v537_v33 = vadd.f32 %v536_v26, %v1161_v30  ;;  %v538_v34 = vpop.f32.mrb[26].mxu0  ;;  %v617_v36 = vadd.f32 %v616_v31, %v1161_v30  ;;  %v618_v37 = vpop.f32.mrb[26].mxu1 }
 0x11d   : > { %v707_v39 = vadd.f32 %v647_v21, %v535_v25  ;;  %v539_v40 = vadd.f32 %v538_v34, %v1159_v29  ;;  %v540_v41 = vpop.f32.mrb[27].mxu0  ;;  %v739_v43 = vadd.f32 %v679_v24, %v615_v28  ;;  %v619_v44 = vadd.f32 %v618_v37, %v1159_v29  ;;  %v620_v45 = vpop.f32.mrb[27].mxu1 }
 0x11e   : > { %v708_v47 = vadd.f32 %v648_v27, %v537_v33  ;;  %v541_v48 = vadd.f32 %v540_v41, %v1161_v30  ;;  %v740_v49 = vadd.f32 %v680_v32, %v617_v36  ;;  %v621_v50 = vadd.f32 %v620_v45, %v1161_v30 }
 0x11f   : > { %v767_v51 = vmax.f32 %v707_v39, 0.0  ;;  %v709_v52 = vadd.f32 %v649_v35, %v539_v40  ;;  %v799_v53 = vmax.f32 %v739_v43, 0.0  ;;  %v741_v54 = vadd.f32 %v681_v38, %v619_v44 }
 0x120   : > { %v768_v55 = vmax.f32 %v708_v47, 0.0  ;;  %v710_v56 = vadd.f32 %v650_v42, %v541_v48  ;;  %v800_v57 = vmax.f32 %v740_v49, 0.0  ;;  %v742_v58 = vadd.f32 %v682_v46, %v621_v50 }
 0x121   : > { %827 = vst [vmem:[%s1182_s22 + $0xc0] sm:$0xff] %v767_v51  ;;  %v769_v59 = vmax.f32 %v709_v52, 0.0  ;;  %859 = vst [vmem:[%s1182_s22 + $0x1c0] sm:$0xff] %v799_v53  ;;  %v801_v60 = vmax.f32 %v741_v54, 0.0 }
 0x122   : > { %828 = vst [vmem:[%s1182_s22 + $0xc8] sm:$0xff] %v768_v55  ;;  %v770_v61 = vmax.f32 %v710_v56, 0.0  ;;  %860 = vst [vmem:[%s1182_s22 + $0x1c8] sm:$0xff] %v800_v57  ;;  %v544_v62 = vpop.f32.mrb[28].mxu0  ;;  %v802_v0 = vmax.f32 %v742_v58, 0.0 }
 0x123   : > { %829 = vst [vmem:[%s1182_s22 + $0xd0] sm:$0xff] %v769_v59  ;;  %861 = vst [vmem:[%s1182_s22 + $0x1d0] sm:$0xff] %v801_v60  ;;  %v545_v1 = vadd.f32 %v544_v62, %v1159_v29  ;;  %v546_v2 = vpop.f32.mrb[29].mxu0 }
 0x124   : > { %830 = vst [vmem:[%s1182_s22 + $0xd8] sm:$0xff] %v770_v61  ;;  %862 = vst [vmem:[%s1182_s22 + $0x1d8] sm:$0xff] %v802_v0  ;;  %v547_v4 = vadd.f32 %v546_v2, %v1161_v30  ;;  %v548_v5 = vpop.f32.mrb[30].mxu0 }
 0x125   : > { %v711_v7 = vadd.f32 %v651_v63, %v545_v1  ;;  %v549_v8 = vadd.f32 %v548_v5, %v1159_v29  ;;  %v550_v9 = vpop.f32.mrb[31].mxu0 }
 0x126   : > { %v712_v11 = vadd.f32 %v652_v3, %v547_v4  ;;  %v551_v12 = vadd.f32 %v550_v9, %v1161_v30 }
 0x127   : > { %v771_v13 = vmax.f32 %v711_v7, 0.0  ;;  %v713_v14 = vadd.f32 %v653_v6, %v549_v8 }
 0x128   : > { %v772_v15 = vmax.f32 %v712_v11, 0.0  ;;  %v714_v16 = vadd.f32 %v654_v10, %v551_v12 }
 0x129   : > { %831 = vst [vmem:[%s1182_s22 + $0xe0] sm:$0xff] %v771_v13  ;;  %v773_v17 = vmax.f32 %v713_v14, 0.0 }
 0x12a   : > { %832 = vst [vmem:[%s1182_s22 + $0xe8] sm:$0xff] %v772_v15  ;;  %v774_v18 = vmax.f32 %v714_v16, 0.0 }
 0x12b   : > { %833 = vst [vmem:[%s1182_s22 + $0xf0] sm:$0xff] %v773_v17 }
 0x12c   : > { %834 = vst [vmem:[%s1182_s22 + $0xf8] sm:$0xff] %v774_v18 }
 0x12d PF: > { %s14_s15 = sadd.s32 1, %s1035_s15  }
 0x12e   : > { %p11_p4 = scmp.ge.s32.totalorder %s14_s15, 9  }
 0x130   :  { %13 = sbr.rel (!%p11_p4) target bundleno = 1 (0x1), region = 69 }

// kernel: lprnet_forward.30
= control target key start
LH: loop header
LB: loop body
LE: loop exit
PB: predicated region body
PF: predicated region fallthrough
CT: control target
= control target key end

     0   :  { %s1039_s12 = smov 0   ;;  %s1210_s0 = inlined_call_operand.vmem [shape: bf16[1680,256], index: 0, kind: input, shape index: {}]   ;;  %s1211_s1 = inlined_call_operand.vmem [shape: bf16[256,128], index: 1, kind: input, shape index: {}]   ;;  %s1212_s2 = inlined_call_operand.vmem [shape: f32[1,128], index: 2, kind: input, shape index: {}]   ;;  %s1213_s3 = inlined_call_operand.vmem [shape: f32[1680,128], index: 3, kind: output, shape index: {}]  }
   0x1 LB: > { %s762_s13 = sadd.s32 4294967295, %s1017_s12   ;;  %p766_p0 = scmp.ge.s32.totalorder %s1017_s12, 1  ;;  %s1017_s12 = sphi %s1039_s12, %s13_s12  }
   0x2   : > { %p139_p1 = scmp.lt.s32.totalorder %s1017_s12, 8 }
   0x4   : > { %p140_p2 = pnand %p766_p0, %p139_p1 }
   0x5   : > { %v950_v0 = vld [vmem:[%s1211_s1 + $0x40] sm:$0xff] (!%p140_p2)   ;;  %s164_s16 = smul.u32 (!%p140_p2), 30, %s762_s13  ;;  %v952_v2 = vld [vmem:[%s1211_s1 + $0x48] sm:$0xff] (!%p140_p2)   ;;  %v954_v4 = vld [vmem:[%s1211_s1 + $0x50] sm:$0xff] (!%p140_p2)  }
   0x6   : > { %143 = sbr.rel (%p140_p2) target bundleno = 316 (0x13c), region = 32  ;;  %v951_v1 = vld [vmem:[%s1211_s1] sm:$0xff] (!%p140_p2)   ;;  %820 = vmatprep.subr.bf16.mxu0 (!%p140_p2), %v950_v0  ;;  %926 = vmatprep.subr.bf16.mxu1 (!%p140_p2), %v950_v0  ;;  %v953_v3 = vld [vmem:[%s1211_s1 + $0x8] sm:$0xff] (!%p140_p2)   ;;  %v955_v5 = vld [vmem:[%s1211_s1 + $0x10] sm:$0xff] (!%p140_p2)  }
   0x7   : > { %821 = vmatpush3.bf16.msra.mxu0 (!%p140_p2), %v951_v1  ;;  %934 = vmatpush3.bf16.msra.mxu1 (!%p140_p2), %v951_v1  ;;  %p165_p3 = scmp.lt.s32.totalorder (!%p140_p2), %s164_s16, 209  ;;  %v956_v6 = vld [vmem:[%s1211_s1 + $0x58] sm:$0xff] (!%p140_p2)   ;;  %v958_v8 = vld [vmem:[%s1211_s1 + $0x60] sm:$0xff] (!%p140_p2)   ;;  %v960_v10 = vld [vmem:[%s1211_s1 + $0x68] sm:$0xff] (!%p140_p2)  }
   0x8   : > { %822 = vmatprep.subr.bf16.mxu0 (!%p140_p2), %v952_v2  ;;  %927 = vmatprep.subr.bf16.mxu1 (!%p140_p2), %v952_v2  ;;  %v957_v7 = vld [vmem:[%s1211_s1 + $0x18] sm:$0xff] (!%p140_p2)   ;;  %v959_v9 = vld [vmem:[%s1211_s1 + $0x20] sm:$0xff] (!%p140_p2)   ;;  %v961_v13 = vld [vmem:[%s1211_s1 + $0x28] sm:$0xff] (!%p140_p2)  }
   0x9   : > { %v962_v14 = vld [vmem:[%s1211_s1 + $0x70] sm:$0xff] (!%p140_p2)   ;;  %v964_v16 = vld [vmem:[%s1211_s1 + $0x78] sm:$0xff] (!%p140_p2)   ;;  %v1138_v48 = vld [vmem:[%s1212_s2] ss:$0 sm:$0xff] (!%p140_p2) }
   0xa   : > { %v963_v15 = vld [vmem:[%s1211_s1 + $0x30] sm:$0xff] (!%p140_p2)   ;;  %v965_v17 = vld [vmem:[%s1211_s1 + $0x38] sm:$0xff] (!%p140_p2)  }
   0xb   : > { %823 = vmatpush3.bf16.msra.mxu0 (!%p140_p2), %v953_v3  ;;  %935 = vmatpush3.bf16.msra.mxu1 (!%p140_p2), %v953_v3 }
   0xc   : > { %824 = vmatprep.subr.bf16.mxu0 (!%p140_p2), %v954_v4  ;;  %928 = vmatprep.subr.bf16.mxu1 (!%p140_p2), %v954_v4 }
   0xd   : > { %s1215_s16 = smov (!%p165_p3, %s164_s16), 209 }
   0xe   : > { %s819_s4 = sshll.u32 %s1215_s16, 3 }
   0xf   : > { %825 = vmatpush3.bf16.msra.mxu0 %v955_v5  ;;  %936 = vmatpush3.bf16.msra.mxu1 %v955_v5  ;;  %s1082_s9 = scalar_lea.vmem %s1210_s0, %s819_s4  ;;  %s1147_s30 = scalar_lea.vmem %s1213_s3, %s819_s4 }
  0x10   : > { %826 = vmatprep.subr.bf16.mxu0 %v956_v6  ;;  %929 = vmatprep.subr.bf16.mxu1 %v956_v6  ;;  %v968_v11 = vld [vmem:[%s1082_s9 + $0x4] ss:$8 sps:$4 sm:$0xff]   ;;  %v966_v18 = vld [vmem:[%s1082_s9] ss:$8 sps:$4 sm:$0xff]   ;;  %v972_v20 = vld [vmem:[%s1082_s9 + $0x14] ss:$8 sps:$4 sm:$0xff]  }
  0x11   : > { %v971_v12 = vld [vmem:[%s1082_s9 + $0x84] ss:$8 sps:$4 sm:$0xff]   ;;  %525 = vmatprep.mubr.bf16.mxu0 %v968_v11  ;;  %v969_v19 = vld [vmem:[%s1082_s9 + $0x80] ss:$8 sps:$4 sm:$0xff]   ;;  %v975_v21 = vld [vmem:[%s1082_s9 + $0x94] ss:$8 sps:$4 sm:$0xff]  }
  0x12   : > { %589 = vmatprep.mubr.bf16.mxu1 %v971_v12  ;;  %v974_v22 = vld [vmem:[%s1082_s9 + $0x10] ss:$8 sps:$4 sm:$0xff]   ;;  %v978_v24 = vld [vmem:[%s1082_s9 + $0x24] ss:$8 sps:$4 sm:$0xff]   ;;  %v980_v26 = vld [vmem:[%s1082_s9 + $0x20] ss:$8 sps:$4 sm:$0xff]  }
  0x13   : > { %827 = vmatpush3.bf16.msra.mxu0 %v957_v7  ;;  %937 = vmatpush3.bf16.msra.mxu1 %v957_v7  ;;  %v977_v23 = vld [vmem:[%s1082_s9 + $0x90] ss:$8 sps:$4 sm:$0xff]   ;;  %v981_v25 = vld [vmem:[%s1082_s9 + $0xa4] ss:$8 sps:$4 sm:$0xff]   ;;  %v983_v27 = vld [vmem:[%s1082_s9 + $0xa0] ss:$8 sps:$4 sm:$0xff]  }
  0x14   : > { %828 = vmatprep.subr.bf16.mxu0 %v958_v8  ;;  %930 = vmatprep.subr.bf16.mxu1 %v958_v8  ;;  %v984_v28 = vld [vmem:[%s1082_s9 + $0x34] ss:$8 sps:$4 sm:$0xff]   ;;  %v986_v30 = vld [vmem:[%s1082_s9 + $0x30] ss:$8 sps:$4 sm:$0xff]   ;;  %v990_v32 = vld [vmem:[%s1082_s9 + $0x44] ss:$8 sps:$4 sm:$0xff]  }
  0x15   : > { %v987_v29 = vld [vmem:[%s1082_s9 + $0xb4] ss:$8 sps:$4 sm:$0xff]   ;;  %v989_v31 = vld [vmem:[%s1082_s9 + $0xb0] ss:$8 sps:$4 sm:$0xff]   ;;  %v993_v33 = vld [vmem:[%s1082_s9 + $0xc4] ss:$8 sps:$4 sm:$0xff]  }
  0x16   : > { %v992_v34 = vld [vmem:[%s1082_s9 + $0x40] ss:$8 sps:$4 sm:$0xff]   ;;  %v996_v36 = vld [vmem:[%s1082_s9 + $0x54] ss:$8 sps:$4 sm:$0xff]   ;;  %v998_v38 = vld [vmem:[%s1082_s9 + $0x50] ss:$8 sps:$4 sm:$0xff]  }
  0x17   : > { %829 = vmatpush3.bf16.msra.mxu0 %v959_v9  ;;  %938 = vmatpush3.bf16.msra.mxu1 %v959_v9  ;;  %v995_v35 = vld [vmem:[%s1082_s9 + $0xc0] ss:$8 sps:$4 sm:$0xff]   ;;  %v999_v37 = vld [vmem:[%s1082_s9 + $0xd4] ss:$8 sps:$4 sm:$0xff]   ;;  %v1001_v39 = vld [vmem:[%s1082_s9 + $0xd0] ss:$8 sps:$4 sm:$0xff]  }
  0x18   : > { %830 = vmatprep.subr.bf16.mxu0 %v960_v10  ;;  %931 = vmatprep.subr.bf16.mxu1 %v960_v10  ;;  %v1002_v40 = vld [vmem:[%s1082_s9 + $0x64] ss:$8 sps:$4 sm:$0xff]   ;;  %v1004_v42 = vld [vmem:[%s1082_s9 + $0x60] ss:$8 sps:$4 sm:$0xff]   ;;  %v1008_v44 = vld [vmem:[%s1082_s9 + $0x74] ss:$8 sps:$4 sm:$0xff]  }
  0x19   : > { %v1005_v41 = vld [vmem:[%s1082_s9 + $0xe4] ss:$8 sps:$4 sm:$0xff]   ;;  %v1007_v43 = vld [vmem:[%s1082_s9 + $0xe0] ss:$8 sps:$4 sm:$0xff]   ;;  %v1010_v45 = vld [vmem:[%s1082_s9 + $0x70] ss:$8 sps:$4 sm:$0xff]  }
  0x1b   : > { %831 = vmatpush3.bf16.msra.mxu0 %v961_v13  ;;  %939 = vmatpush3.bf16.msra.mxu1 %v961_v13 }
  0x1c   : > { %832 = vmatprep.subr.bf16.mxu0 %v962_v14  ;;  %932 = vmatprep.subr.bf16.mxu1 %v962_v14 }
  0x1f   : > { %833 = vmatpush3.bf16.msra.mxu0 %v963_v15  ;;  %940 = vmatpush3.bf16.msra.mxu1 %v963_v15 }
  0x20   : > { %834 = vmatprep.subr.bf16.mxu0 %v964_v16  ;;  %933 = vmatprep.subr.bf16.mxu1 %v964_v16 }
  0x23   : > { %835 = vmatpush3.bf16.msra.mxu0 %v965_v17  ;;  %941 = vmatpush3.bf16.msra.mxu1 %v965_v17 }
  0x26   : > { %526 = vmatmul.mubr.bf16.vlgmr.msra.gmra.mrb[0].mxu0 %v966_v18  ;;  %590 = vmatmul.mubr.bf16.vlgmr.msra.gmra.mrb[0].mxu1 %v969_v19 }
  0x27   : > { %533 = vmatprep.mubr.bf16.mxu0 %v972_v20  ;;  %597 = vmatprep.mubr.bf16.mxu1 %v975_v21 }
  0x2e   : > { %534 = vmatmul.mubr.bf16.gmra.mrb[4].mxu0 %v974_v22  ;;  %598 = vmatmul.mubr.bf16.gmra.mrb[4].mxu1 %v977_v23 }
  0x2f   : > { %541 = vmatprep.mubr.bf16.mxu0 %v978_v24  ;;  %605 = vmatprep.mubr.bf16.mxu1 %v981_v25 }
  0x36   : > { %542 = vmatmul.mubr.bf16.gmra.mrb[8].mxu0 %v980_v26  ;;  %606 = vmatmul.mubr.bf16.gmra.mrb[8].mxu1 %v983_v27 }
  0x37   : > { %549 = vmatprep.mubr.bf16.mxu0 %v984_v28  ;;  %613 = vmatprep.mubr.bf16.mxu1 %v987_v29 }
  0x3e   : > { %550 = vmatmul.mubr.bf16.gmra.mrb[12].mxu0 %v986_v30  ;;  %614 = vmatmul.mubr.bf16.gmra.mrb[12].mxu1 %v989_v31 }
  0x3f   : > { %557 = vmatprep.mubr.bf16.mxu0 %v990_v32  ;;  %621 = vmatprep.mubr.bf16.mxu1 %v993_v33 }
  0x46   : > { %558 = vmatmul.mubr.bf16.gmra.mrb[16].mxu0 %v992_v34  ;;  %622 = vmatmul.mubr.bf16.gmra.mrb[16].mxu1 %v995_v35 }
  0x47   : > { %565 = vmatprep.mubr.bf16.mxu0 %v996_v36  ;;  %629 = vmatprep.mubr.bf16.mxu1 %v999_v37 }
  0x4e   : > { %566 = vmatmul.mubr.bf16.gmra.mrb[20].mxu0 %v998_v38  ;;  %630 = vmatmul.mubr.bf16.gmra.mrb[20].mxu1 %v1001_v39 }
  0x4f   : > { %573 = vmatprep.mubr.bf16.mxu0 %v1002_v40  ;;  %637 = vmatprep.mubr.bf16.mxu1 %v1005_v41 }
  0x56   : > { %574 = vmatmul.mubr.bf16.gmra.mrb[24].mxu0 %v1004_v42  ;;  %638 = vmatmul.mubr.bf16.gmra.mrb[24].mxu1 %v1007_v43 }
  0x57   : > { %581 = vmatprep.mubr.bf16.mxu0 %v1008_v44 }
  0x5e   : > { %582 = vmatmul.mubr.bf16.gmra.mrb[28].mxu0 %v1010_v45 }
  0xf9   : > { %v836_v46 = vpop.f32.mrb[0].mxu0  ;;  %v884_v47 = vpop.f32.mrb[0].mxu1 }
  0xfa   : > { %v837_v49 = vpop.f32.mrb[1].mxu0  ;;  %v885_v50 = vpop.f32.mrb[1].mxu1 }
  0xfb   : > { %v838_v51 = vadd.f32 %v837_v49, %v836_v46  ;;  %v839_v52 = vpop.f32.mrb[2].mxu0  ;;  %v886_v53 = vadd.f32 %v885_v50, %v884_v47  ;;  %v887_v54 = vpop.f32.mrb[2].mxu1 }
  0xfc   : > { %v840_v55 = vpop.f32.mrb[3].mxu0  ;;  %v888_v56 = vpop.f32.mrb[3].mxu1 }
  0xfd   : > { %v528_v57 = vadd.f32 %v838_v51, %v1138_v48  ;;  %v841_v58 = vadd.f32 %v840_v55, %v839_v52  ;;  %v592_v59 = vadd.f32 %v886_v53, %v1138_v48  ;;  %v889_v60 = vadd.f32 %v888_v56, %v887_v54 }
  0xff   : > { %v646_v61 = vmax.f32 %v528_v57, 0.0  ;;  %v531_v62 = vadd.f32 %v841_v58, %v1138_v48  ;;  %v662_v63 = vmax.f32 %v592_v59, 0.0  ;;  %v595_v0 = vadd.f32 %v889_v60, %v1138_v48 }
 0x101   : > { %676 = vst [vmem:[%s1147_s30] sm:$0xff] %v646_v61  ;;  %v647_v1 = vmax.f32 %v531_v62, 0.0  ;;  %692 = vst [vmem:[%s1147_s30 + $0x80] sm:$0xff] %v662_v63  ;;  %v842_v2 = vpop.f32.mrb[4].mxu0  ;;  %v663_v3 = vmax.f32 %v595_v0, 0.0  ;;  %v890_v4 = vpop.f32.mrb[4].mxu1 }
 0x102   : > { %v843_v5 = vpop.f32.mrb[5].mxu0  ;;  %v891_v6 = vpop.f32.mrb[5].mxu1 }
 0x103   : > { %677 = vst [vmem:[%s1147_s30 + $0x8] sm:$0xff] %v647_v1  ;;  %693 = vst [vmem:[%s1147_s30 + $0x88] sm:$0xff] %v663_v3  ;;  %v844_v7 = vadd.f32 %v843_v5, %v842_v2  ;;  %v845_v8 = vpop.f32.mrb[6].mxu0  ;;  %v892_v9 = vadd.f32 %v891_v6, %v890_v4  ;;  %v893_v10 = vpop.f32.mrb[6].mxu1 }
 0x104   : > { %v846_v11 = vpop.f32.mrb[7].mxu0  ;;  %v894_v12 = vpop.f32.mrb[7].mxu1 }
 0x105   : > { %v536_v13 = vadd.f32 %v844_v7, %v1138_v48  ;;  %v847_v14 = vadd.f32 %v846_v11, %v845_v8  ;;  %v600_v15 = vadd.f32 %v892_v9, %v1138_v48  ;;  %v895_v16 = vadd.f32 %v894_v12, %v893_v10 }
 0x107   : > { %v648_v17 = vmax.f32 %v536_v13, 0.0  ;;  %v539_v18 = vadd.f32 %v847_v14, %v1138_v48  ;;  %v664_v19 = vmax.f32 %v600_v15, 0.0  ;;  %v603_v20 = vadd.f32 %v895_v16, %v1138_v48 }
 0x109   : > { %678 = vst [vmem:[%s1147_s30 + $0x10] sm:$0xff] %v648_v17  ;;  %v649_v21 = vmax.f32 %v539_v18, 0.0  ;;  %694 = vst [vmem:[%s1147_s30 + $0x90] sm:$0xff] %v664_v19  ;;  %v848_v22 = vpop.f32.mrb[8].mxu0  ;;  %v665_v23 = vmax.f32 %v603_v20, 0.0  ;;  %v896_v24 = vpop.f32.mrb[8].mxu1 }
 0x10a   : > { %v849_v25 = vpop.f32.mrb[9].mxu0  ;;  %v897_v26 = vpop.f32.mrb[9].mxu1 }
 0x10b   : > { %679 = vst [vmem:[%s1147_s30 + $0x18] sm:$0xff] %v649_v21  ;;  %695 = vst [vmem:[%s1147_s30 + $0x98] sm:$0xff] %v665_v23  ;;  %v850_v27 = vadd.f32 %v849_v25, %v848_v22  ;;  %v851_v28 = vpop.f32.mrb[10].mxu0  ;;  %v898_v29 = vadd.f32 %v897_v26, %v896_v24  ;;  %v899_v30 = vpop.f32.mrb[10].mxu1 }
 0x10c   : > { %v852_v31 = vpop.f32.mrb[11].mxu0  ;;  %v900_v32 = vpop.f32.mrb[11].mxu1 }
 0x10d   : > { %v544_v33 = vadd.f32 %v850_v27, %v1138_v48  ;;  %v853_v34 = vadd.f32 %v852_v31, %v851_v28  ;;  %v608_v35 = vadd.f32 %v898_v29, %v1138_v48  ;;  %v901_v36 = vadd.f32 %v900_v32, %v899_v30 }
 0x10f   : > { %v650_v37 = vmax.f32 %v544_v33, 0.0  ;;  %v547_v38 = vadd.f32 %v853_v34, %v1138_v48  ;;  %v666_v39 = vmax.f32 %v608_v35, 0.0  ;;  %v611_v40 = vadd.f32 %v901_v36, %v1138_v48 }
 0x111   : > { %680 = vst [vmem:[%s1147_s30 + $0x20] sm:$0xff] %v650_v37  ;;  %v651_v41 = vmax.f32 %v547_v38, 0.0  ;;  %696 = vst [vmem:[%s1147_s30 + $0xa0] sm:$0xff] %v666_v39  ;;  %v854_v42 = vpop.f32.mrb[12].mxu0  ;;  %v667_v43 = vmax.f32 %v611_v40, 0.0  ;;  %v902_v44 = vpop.f32.mrb[12].mxu1 }
 0x112   : > { %v855_v45 = vpop.f32.mrb[13].mxu0  ;;  %v903_v46 = vpop.f32.mrb[13].mxu1 }
 0x113   : > { %681 = vst [vmem:[%s1147_s30 + $0x28] sm:$0xff] %v651_v41  ;;  %697 = vst [vmem:[%s1147_s30 + $0xa8] sm:$0xff] %v667_v43  ;;  %v856_v47 = vadd.f32 %v855_v45, %v854_v42  ;;  %v857_v49 = vpop.f32.mrb[14].mxu0  ;;  %v904_v50 = vadd.f32 %v903_v46, %v902_v44  ;;  %v905_v51 = vpop.f32.mrb[14].mxu1 }
 0x114   : > { %v858_v52 = vpop.f32.mrb[15].mxu0  ;;  %v906_v53 = vpop.f32.mrb[15].mxu1 }
 0x115   : > { %v552_v54 = vadd.f32 %v856_v47, %v1138_v48  ;;  %v859_v55 = vadd.f32 %v858_v52, %v857_v49  ;;  %v616_v56 = vadd.f32 %v904_v50, %v1138_v48  ;;  %v907_v57 = vadd.f32 %v906_v53, %v905_v51 }
 0x117   : > { %v652_v58 = vmax.f32 %v552_v54, 0.0  ;;  %v555_v59 = vadd.f32 %v859_v55, %v1138_v48  ;;  %v668_v60 = vmax.f32 %v616_v56, 0.0  ;;  %v619_v61 = vadd.f32 %v907_v57, %v1138_v48 }
 0x119   : > { %682 = vst [vmem:[%s1147_s30 + $0x30] sm:$0xff] %v652_v58  ;;  %v653_v62 = vmax.f32 %v555_v59, 0.0  ;;  %698 = vst [vmem:[%s1147_s30 + $0xb0] sm:$0xff] %v668_v60  ;;  %v860_v63 = vpop.f32.mrb[16].mxu0  ;;  %v669_v0 = vmax.f32 %v619_v61, 0.0  ;;  %v908_v1 = vpop.f32.mrb[16].mxu1 }
 0x11a   : > { %v861_v2 = vpop.f32.mrb[17].mxu0  ;;  %v909_v3 = vpop.f32.mrb[17].mxu1 }
 0x11b   : > { %683 = vst [vmem:[%s1147_s30 + $0x38] sm:$0xff] %v653_v62  ;;  %699 = vst [vmem:[%s1147_s30 + $0xb8] sm:$0xff] %v669_v0  ;;  %v862_v4 = vadd.f32 %v861_v2, %v860_v63  ;;  %v863_v5 = vpop.f32.mrb[18].mxu0  ;;  %v910_v6 = vadd.f32 %v909_v3, %v908_v1  ;;  %v911_v7 = vpop.f32.mrb[18].mxu1 }
 0x11c   : > { %v864_v8 = vpop.f32.mrb[19].mxu0  ;;  %v912_v9 = vpop.f32.mrb[19].mxu1 }
 0x11d   : > { %v560_v10 = vadd.f32 %v862_v4, %v1138_v48  ;;  %v865_v11 = vadd.f32 %v864_v8, %v863_v5  ;;  %v624_v12 = vadd.f32 %v910_v6, %v1138_v48  ;;  %v913_v13 = vadd.f32 %v912_v9, %v911_v7 }
 0x11f   : > { %v654_v14 = vmax.f32 %v560_v10, 0.0  ;;  %v563_v15 = vadd.f32 %v865_v11, %v1138_v48  ;;  %v670_v16 = vmax.f32 %v624_v12, 0.0  ;;  %v627_v17 = vadd.f32 %v913_v13, %v1138_v48 }
 0x121   : > { %684 = vst [vmem:[%s1147_s30 + $0x40] sm:$0xff] %v654_v14  ;;  %v655_v18 = vmax.f32 %v563_v15, 0.0  ;;  %700 = vst [vmem:[%s1147_s30 + $0xc0] sm:$0xff] %v670_v16  ;;  %v866_v19 = vpop.f32.mrb[20].mxu0  ;;  %v671_v20 = vmax.f32 %v627_v17, 0.0  ;;  %v914_v21 = vpop.f32.mrb[20].mxu1 }
 0x122   : > { %v867_v22 = vpop.f32.mrb[21].mxu0  ;;  %v915_v23 = vpop.f32.mrb[21].mxu1 }
 0x123   : > { %685 = vst [vmem:[%s1147_s30 + $0x48] sm:$0xff] %v655_v18  ;;  %701 = vst [vmem:[%s1147_s30 + $0xc8] sm:$0xff] %v671_v20  ;;  %v868_v24 = vadd.f32 %v867_v22, %v866_v19  ;;  %v869_v25 = vpop.f32.mrb[22].mxu0  ;;  %v916_v26 = vadd.f32 %v915_v23, %v914_v21  ;;  %v917_v27 = vpop.f32.mrb[22].mxu1 }
 0x124   : > { %v870_v28 = vpop.f32.mrb[23].mxu0  ;;  %v918_v29 = vpop.f32.mrb[23].mxu1 }
 0x125   : > { %v568_v30 = vadd.f32 %v868_v24, %v1138_v48  ;;  %v871_v31 = vadd.f32 %v870_v28, %v869_v25  ;;  %v632_v32 = vadd.f32 %v916_v26, %v1138_v48  ;;  %v919_v33 = vadd.f32 %v918_v29, %v917_v27 }
 0x127   : > { %v656_v34 = vmax.f32 %v568_v30, 0.0  ;;  %v571_v35 = vadd.f32 %v871_v31, %v1138_v48  ;;  %v672_v36 = vmax.f32 %v632_v32, 0.0  ;;  %v635_v37 = vadd.f32 %v919_v33, %v1138_v48 }
 0x129   : > { %686 = vst [vmem:[%s1147_s30 + $0x50] sm:$0xff] %v656_v34  ;;  %v657_v38 = vmax.f32 %v571_v35, 0.0  ;;  %702 = vst [vmem:[%s1147_s30 + $0xd0] sm:$0xff] %v672_v36  ;;  %v872_v39 = vpop.f32.mrb[24].mxu0  ;;  %v673_v40 = vmax.f32 %v635_v37, 0.0  ;;  %v920_v41 = vpop.f32.mrb[24].mxu1 }
 0x12a   : > { %v873_v42 = vpop.f32.mrb[25].mxu0  ;;  %v921_v43 = vpop.f32.mrb[25].mxu1 }
 0x12b   : > { %687 = vst [vmem:[%s1147_s30 + $0x58] sm:$0xff] %v657_v38  ;;  %703 = vst [vmem:[%s1147_s30 + $0xd8] sm:$0xff] %v673_v40  ;;  %v874_v44 = vadd.f32 %v873_v42, %v872_v39  ;;  %v875_v45 = vpop.f32.mrb[26].mxu0  ;;  %v922_v46 = vadd.f32 %v921_v43, %v920_v41  ;;  %v923_v47 = vpop.f32.mrb[26].mxu1 }
 0x12c   : > { %v876_v49 = vpop.f32.mrb[27].mxu0  ;;  %v924_v50 = vpop.f32.mrb[27].mxu1 }
 0x12d   : > { %v576_v51 = vadd.f32 %v874_v44, %v1138_v48  ;;  %v877_v52 = vadd.f32 %v876_v49, %v875_v45  ;;  %v640_v53 = vadd.f32 %v922_v46, %v1138_v48  ;;  %v925_v54 = vadd.f32 %v924_v50, %v923_v47 }
 0x12f   : > { %v658_v55 = vmax.f32 %v576_v51, 0.0  ;;  %v579_v56 = vadd.f32 %v877_v52, %v1138_v48  ;;  %v674_v57 = vmax.f32 %v640_v53, 0.0  ;;  %v643_v58 = vadd.f32 %v925_v54, %v1138_v48 }
 0x131   : > { %688 = vst [vmem:[%s1147_s30 + $0x60] sm:$0xff] %v658_v55  ;;  %v659_v59 = vmax.f32 %v579_v56, 0.0  ;;  %704 = vst [vmem:[%s1147_s30 + $0xe0] sm:$0xff] %v674_v57  ;;  %v878_v60 = vpop.f32.mrb[28].mxu0  ;;  %v675_v61 = vmax.f32 %v643_v58, 0.0 }
 0x132   : > { %v879_v62 = vpop.f32.mrb[29].mxu0 }
 0x133   : > { %689 = vst [vmem:[%s1147_s30 + $0x68] sm:$0xff] %v659_v59  ;;  %705 = vst [vmem:[%s1147_s30 + $0xe8] sm:$0xff] %v675_v61  ;;  %v880_v63 = vadd.f32 %v879_v62, %v878_v60  ;;  %v881_v0 = vpop.f32.mrb[30].mxu0 }
 0x134   : > { %v882_v1 = vpop.f32.mrb[31].mxu0 }
 0x135   : > { %v584_v2 = vadd.f32 %v880_v63, %v1138_v48  ;;  %v883_v3 = vadd.f32 %v882_v1, %v881_v0 }
 0x137   : > { %v660_v4 = vmax.f32 %v584_v2, 0.0  ;;  %v587_v5 = vadd.f32 %v883_v3, %v1138_v48 }
 0x139   : > { %690 = vst [vmem:[%s1147_s30 + $0x70] sm:$0xff] %v660_v4  ;;  %v661_v6 = vmax.f32 %v587_v5, 0.0 }
 0x13b   : > { %691 = vst [vmem:[%s1147_s30 + $0x78] sm:$0xff] %v661_v6 }
 0x13c PF: > { %s13_s12 = sadd.s32 1, %s1017_s12  }
 0x13d   : > { %p10_p4 = scmp.ge.s32.totalorder %s13_s12, 9  }
 0x13f   :  { %12 = sbr.rel (!%p10_p4) target bundleno = 1 (0x1), region = 62 }

// kernel: lprnet_forward.33
= control target key start
LH: loop header
LB: loop body
LE: loop exit
PB: predicated region body
PF: predicated region fallthrough
CT: control target
= control target key end

     0   :  { %s1100_s12 = smov 0   ;;  %s1378_s0 = inlined_call_operand.vmem [shape: bf16[1680,256], index: 0, kind: input, shape index: {}]   ;;  %s1379_s1 = inlined_call_operand.vmem [shape: bf16[256,256], index: 1, kind: input, shape index: {}]   ;;  %s1380_s2 = inlined_call_operand.vmem [shape: f32[1,256], index: 2, kind: input, shape index: {}]   ;;  %s1381_s3 = inlined_call_operand.vmem [shape: f32[1680,256], index: 3, kind: output, shape index: {}]  }
   0x1 LB: > { %s864_s13 = sadd.s32 4294967295, %s1078_s12   ;;  %p868_p0 = scmp.ge.s32.totalorder %s1078_s12, 1  ;;  %s1078_s12 = sphi %s1100_s12, %s13_s12  }
   0x2   : > { %p139_p1 = scmp.lt.s32.totalorder %s1078_s12, 8 }
   0x4   : > { %p140_p2 = pnand %p868_p0, %p139_p1 }
   0x5   : > { %v979_v0 = vld [vmem:[%s1379_s1 + $0x4] ss:$8 sps:$4 sm:$0xff] (!%p140_p2)   ;;  %v981_v1 = vld [vmem:[%s1379_s1] ss:$8 sps:$4 sm:$0xff] (!%p140_p2)   ;;  %v982_v2 = vld [vmem:[%s1379_s1 + $0x14] ss:$8 sps:$4 sm:$0xff] (!%p140_p2)   ;;  %v243_v62 = vlaneseq (!%p140_p2) }
   0x6   : > { %143 = sbr.rel (%p140_p2) target bundleno = 344 (0x158), region = 32  ;;  %563 = vmatprep.subr.bf16.mxu0 (!%p140_p2), %v979_v0  ;;  %939 = vmatprep.subr.bf16.mxu1 (!%p140_p2), %v979_v0  ;;  %v984_v3 = vld [vmem:[%s1379_s1 + $0x10] ss:$8 sps:$4 sm:$0xff] (!%p140_p2)   ;;  %v985_v4 = vld [vmem:[%s1379_s1 + $0x24] ss:$8 sps:$4 sm:$0xff] (!%p140_p2)  }
   0x7   : > { %564 = vmatpush1.bf16.msra.mxu0 (!%p140_p2), %v981_v1  ;;  %955 = vmatpush1.bf16.msra.mxu1 (!%p140_p2), %v981_v1  ;;  %s165_s24 = smul.u32 (!%p140_p2), 30, %s864_s13  ;;  %v987_v5 = vld [vmem:[%s1379_s1 + $0x20] ss:$8 sps:$4 sm:$0xff] (!%p140_p2)   ;;  %v988_v6 = vld [vmem:[%s1379_s1 + $0x34] ss:$8 sps:$4 sm:$0xff] (!%p140_p2)   ;;  %v244_v63 = vshrl.u32 (!%p140_p2), %v243_v62, 7 }
   0x8   : > { %565 = vmatprep.subr.bf16.mxu0 (!%p140_p2), %v982_v2  ;;  %940 = vmatprep.subr.bf16.mxu1 (!%p140_p2), %v982_v2  ;;  %v990_v7 = vld [vmem:[%s1379_s1 + $0x30] ss:$8 sps:$4 sm:$0xff] (!%p140_p2)   ;;  %v991_v8 = vld [vmem:[%s1379_s1 + $0x44] ss:$8 sps:$4 sm:$0xff] (!%p140_p2)   ;;  %v993_v9 = vld [vmem:[%s1379_s1 + $0x40] ss:$8 sps:$4 sm:$0xff] (!%p140_p2)  }
   0x9   : > { %p166_p3 = scmp.lt.s32.totalorder (!%p140_p2), %s165_s24, 209  ;;  %v994_v10 = vld [vmem:[%s1379_s1 + $0x54] ss:$8 sps:$4 sm:$0xff] (!%p140_p2)   ;;  %v996_v11 = vld [vmem:[%s1379_s1 + $0x50] ss:$8 sps:$4 sm:$0xff] (!%p140_p2)   ;;  %v245_v0 = vsub.s32 (!%p140_p2), 0, %v244_v63 }
   0xa   : > { %v997_v12 = vld [vmem:[%s1379_s1 + $0x64] ss:$8 sps:$4 sm:$0xff] (!%p140_p2)   ;;  %v999_v14 = vld [vmem:[%s1379_s1 + $0x60] ss:$8 sps:$4 sm:$0xff] (!%p140_p2)   ;;  %v1000_v16 = vld [vmem:[%s1379_s1 + $0x74] ss:$8 sps:$4 sm:$0xff] (!%p140_p2)  }
   0xb   : > { %566 = vmatpush1.bf16.msra.mxu0 (!%p140_p2), %v984_v3  ;;  %956 = vmatpush1.bf16.msra.mxu1 (!%p140_p2), %v984_v3  ;;  %v1002_v17 = vld [vmem:[%s1379_s1 + $0x70] ss:$8 sps:$4 sm:$0xff] (!%p140_p2)   ;;  %v1003_v18 = vld [vmem:[%s1379_s1 + $0x84] ss:$8 sps:$4 sm:$0xff] (!%p140_p2)   ;;  %v1005_v19 = vld [vmem:[%s1379_s1 + $0x80] ss:$8 sps:$4 sm:$0xff] (!%p140_p2)  }
   0xc   : > { %567 = vmatprep.subr.bf16.mxu0 (!%p140_p2), %v985_v4  ;;  %941 = vmatprep.subr.bf16.mxu1 (!%p140_p2), %v985_v4  ;;  %v1006_v20 = vld [vmem:[%s1379_s1 + $0x94] ss:$8 sps:$4 sm:$0xff] (!%p140_p2)   ;;  %v1008_v21 = vld [vmem:[%s1379_s1 + $0x90] ss:$8 sps:$4 sm:$0xff] (!%p140_p2)   ;;  %v1009_v22 = vld [vmem:[%s1379_s1 + $0xa4] ss:$8 sps:$4 sm:$0xff] (!%p140_p2)  }
   0xd   : > { %s1383_s24 = smov (!%p166_p3, %s165_s24), 209  ;;  %v1011_v23 = vld [vmem:[%s1379_s1 + $0xa0] ss:$8 sps:$4 sm:$0xff]   ;;  %v1012_v24 = vld [vmem:[%s1379_s1 + $0xb4] ss:$8 sps:$4 sm:$0xff]   ;;  %v249_v2 = vsub.s32 1, %v244_v63 }
   0xe   : > { %s937_s10 = sshll.u32 %s1383_s24, 3  ;;  %v1014_v25 = vld [vmem:[%s1379_s1 + $0xb0] ss:$8 sps:$4 sm:$0xff]   ;;  %v1015_v26 = vld [vmem:[%s1379_s1 + $0xc4] ss:$8 sps:$4 sm:$0xff]   ;;  %s938_s9 = sshll.u32 %s1383_s24, 4 }
   0xf   : > { %568 = vmatpush1.bf16.msra.mxu0 %v987_v5  ;;  %957 = vmatpush1.bf16.msra.mxu1 %v987_v5  ;;  %s1150_s16 = scalar_lea.vmem %s1378_s0, %s937_s10  ;;  %v1017_v27 = vld [vmem:[%s1379_s1 + $0xc0] ss:$8 sps:$4 sm:$0xff]   ;;  %v1018_v28 = vld [vmem:[%s1379_s1 + $0xd4] ss:$8 sps:$4 sm:$0xff]   ;;  %v1020_v29 = vld [vmem:[%s1379_s1 + $0xd0] ss:$8 sps:$4 sm:$0xff]   ;;  %s1253_s13 = scalar_lea.vmem %s1381_s3, %s938_s9 }
  0x10   : > { %569 = vmatprep.subr.bf16.mxu0 %v988_v6  ;;  %942 = vmatprep.subr.bf16.mxu1 %v988_v6  ;;  %v1029_v13 = vld [vmem:[%s1150_s16 + $0x4] ss:$8 sps:$4 sm:$0xff]   ;;  %v1023_v31 = vld [vmem:[%s1379_s1 + $0xe0] ss:$8 sps:$4 sm:$0xff]   ;;  %v1024_v32 = vld [vmem:[%s1379_s1 + $0xf4] ss:$8 sps:$4 sm:$0xff]  }
  0x11   : > { %v1032_v15 = vld [vmem:[%s1150_s16 + $0x84] ss:$8 sps:$4 sm:$0xff]   ;;  %595 = vmatprep.mubr.bf16.mxu0 %v1029_v13  ;;  %v1026_v33 = vld [vmem:[%s1379_s1 + $0xf0] ss:$8 sps:$4 sm:$0xff]   ;;  %v1027_v34 = vld [vmem:[%s1150_s16] ss:$8 sps:$4 sm:$0xff]  }
  0x12   : > { %675 = vmatprep.mubr.bf16.mxu1 %v1032_v15  ;;  %v1021_v30 = vld [vmem:[%s1379_s1 + $0xe4] ss:$8 sps:$4 sm:$0xff]   ;;  %v1030_v35 = vld [vmem:[%s1150_s16 + $0x80] ss:$8 sps:$4 sm:$0xff]   ;;  %v1033_v36 = vld [vmem:[%s1150_s16 + $0x14] ss:$8 sps:$4 sm:$0xff]  }
  0x13   : > { %570 = vmatpush1.bf16.msra.mxu0 %v990_v7  ;;  %958 = vmatpush1.bf16.msra.mxu1 %v990_v7  ;;  %v1036_v37 = vld [vmem:[%s1150_s16 + $0x94] ss:$8 sps:$4 sm:$0xff]   ;;  %v1035_v38 = vld [vmem:[%s1150_s16 + $0x10] ss:$8 sps:$4 sm:$0xff]   ;;  %v1039_v40 = vld [vmem:[%s1150_s16 + $0x24] ss:$8 sps:$4 sm:$0xff]  }
  0x14   : > { %571 = vmatprep.subr.bf16.mxu0 %v991_v8  ;;  %943 = vmatprep.subr.bf16.mxu1 %v991_v8  ;;  %v1038_v39 = vld [vmem:[%s1150_s16 + $0x90] ss:$8 sps:$4 sm:$0xff]   ;;  %v1042_v41 = vld [vmem:[%s1150_s16 + $0xa4] ss:$8 sps:$4 sm:$0xff]   ;;  %v1041_v42 = vld [vmem:[%s1150_s16 + $0x20] ss:$8 sps:$4 sm:$0xff]  }
  0x15   : > { %v1044_v43 = vld [vmem:[%s1150_s16 + $0xa0] ss:$8 sps:$4 sm:$0xff]   ;;  %v1045_v44 = vld [vmem:[%s1150_s16 + $0x34] ss:$8 sps:$4 sm:$0xff]   ;;  %v1047_v46 = vld [vmem:[%s1150_s16 + $0x30] ss:$8 sps:$4 sm:$0xff]  }
  0x16   : > { %v1048_v45 = vld [vmem:[%s1150_s16 + $0xb4] ss:$8 sps:$4 sm:$0xff]   ;;  %v1050_v47 = vld [vmem:[%s1150_s16 + $0xb0] ss:$8 sps:$4 sm:$0xff]   ;;  %v1051_v48 = vld [vmem:[%s1150_s16 + $0x44] ss:$8 sps:$4 sm:$0xff]  }
  0x17   : > { %572 = vmatpush1.bf16.msra.mxu0 %v993_v9  ;;  %959 = vmatpush1.bf16.msra.mxu1 %v993_v9  ;;  %v1054_v49 = vld [vmem:[%s1150_s16 + $0xc4] ss:$8 sps:$4 sm:$0xff]   ;;  %v1053_v50 = vld [vmem:[%s1150_s16 + $0x40] ss:$8 sps:$4 sm:$0xff]   ;;  %v1057_v52 = vld [vmem:[%s1150_s16 + $0x54] ss:$8 sps:$4 sm:$0xff]  }
  0x18   : > { %573 = vmatprep.subr.bf16.mxu0 %v994_v10  ;;  %944 = vmatprep.subr.bf16.mxu1 %v994_v10  ;;  %v1056_v51 = vld [vmem:[%s1150_s16 + $0xc0] ss:$8 sps:$4 sm:$0xff]   ;;  %v1060_v53 = vld [vmem:[%s1150_s16 + $0xd4] ss:$8 sps:$4 sm:$0xff]   ;;  %v1059_v54 = vld [vmem:[%s1150_s16 + $0x50] ss:$8 sps:$4 sm:$0xff]  }
  0x19   : > { %v1062_v55 = vld [vmem:[%s1150_s16 + $0xd0] ss:$8 sps:$4 sm:$0xff]   ;;  %v1063_v56 = vld [vmem:[%s1150_s16 + $0x64] ss:$8 sps:$4 sm:$0xff]   ;;  %v1065_v58 = vld [vmem:[%s1150_s16 + $0x60] ss:$8 sps:$4 sm:$0xff]  }
  0x1a   : > { %v1066_v57 = vld [vmem:[%s1150_s16 + $0xe4] ss:$8 sps:$4 sm:$0xff]   ;;  %v1068_v59 = vld [vmem:[%s1150_s16 + $0xe0] ss:$8 sps:$4 sm:$0xff]   ;;  %v1069_v60 = vld [vmem:[%s1150_s16 + $0x74] ss:$8 sps:$4 sm:$0xff]  }
  0x1b   : > { %574 = vmatpush1.bf16.msra.mxu0 %v996_v11  ;;  %960 = vmatpush1.bf16.msra.mxu1 %v996_v11  ;;  %v1071_v61 = vld [vmem:[%s1150_s16 + $0x70] ss:$8 sps:$4 sm:$0xff]   ;;  %v241_v1 = vld [vmem:[%s1380_s2] sm:$0x3] }
  0x1c   : > { %575 = vmatprep.subr.bf16.mxu0 %v997_v12  ;;  %945 = vmatprep.subr.bf16.mxu1 %v997_v12  ;;  %v1246_v3 = vrot.slane %v241_v1, %v245_v0  ;;  %v1248_v4 = vrot.slane %v241_v1, %v249_v2 }
  0x1f   : > { %576 = vmatpush1.bf16.msra.mxu0 %v999_v14  ;;  %961 = vmatpush1.bf16.msra.mxu1 %v999_v14 }
  0x20   : > { %577 = vmatprep.subr.bf16.mxu0 %v1000_v16  ;;  %946 = vmatprep.subr.bf16.mxu1 %v1000_v16 }
  0x23   : > { %578 = vmatpush1.bf16.msra.mxu0 %v1002_v17  ;;  %962 = vmatpush1.bf16.msra.mxu1 %v1002_v17 }
  0x24   : > { %579 = vmatprep.subr.bf16.mxu0 %v1003_v18  ;;  %947 = vmatprep.subr.bf16.mxu1 %v1003_v18 }
  0x27   : > { %580 = vmatpush1.bf16.msra.mxu0 %v1005_v19  ;;  %963 = vmatpush1.bf16.msra.mxu1 %v1005_v19 }
  0x28   : > { %581 = vmatprep.subr.bf16.mxu0 %v1006_v20  ;;  %948 = vmatprep.subr.bf16.mxu1 %v1006_v20 }
  0x2b   : > { %582 = vmatpush1.bf16.msra.mxu0 %v1008_v21  ;;  %964 = vmatpush1.bf16.msra.mxu1 %v1008_v21 }
  0x2c   : > { %583 = vmatprep.subr.bf16.mxu0 %v1009_v22  ;;  %949 = vmatprep.subr.bf16.mxu1 %v1009_v22 }
  0x2f   : > { %584 = vmatpush1.bf16.msra.mxu0 %v1011_v23  ;;  %965 = vmatpush1.bf16.msra.mxu1 %v1011_v23 }
  0x30   : > { %585 = vmatprep.subr.bf16.mxu0 %v1012_v24  ;;  %950 = vmatprep.subr.bf16.mxu1 %v1012_v24 }
  0x33   : > { %586 = vmatpush1.bf16.msra.mxu0 %v1014_v25  ;;  %966 = vmatpush1.bf16.msra.mxu1 %v1014_v25 }
  0x34   : > { %587 = vmatprep.subr.bf16.mxu0 %v1015_v26  ;;  %951 = vmatprep.subr.bf16.mxu1 %v1015_v26 }
  0x37   : > { %588 = vmatpush1.bf16.msra.mxu0 %v1017_v27  ;;  %967 = vmatpush1.bf16.msra.mxu1 %v1017_v27 }
  0x38   : > { %589 = vmatprep.subr.bf16.mxu0 %v1018_v28  ;;  %952 = vmatprep.subr.bf16.mxu1 %v1018_v28 }
  0x3b   : > { %590 = vmatpush1.bf16.msra.mxu0 %v1020_v29  ;;  %968 = vmatpush1.bf16.msra.mxu1 %v1020_v29 }
  0x3c   : > { %591 = vmatprep.subr.bf16.mxu0 %v1021_v30  ;;  %953 = vmatprep.subr.bf16.mxu1 %v1021_v30 }
  0x3f   : > { %592 = vmatpush1.bf16.msra.mxu0 %v1023_v31  ;;  %969 = vmatpush1.bf16.msra.mxu1 %v1023_v31 }
  0x40   : > { %593 = vmatprep.subr.bf16.mxu0 %v1024_v32  ;;  %954 = vmatprep.subr.bf16.mxu1 %v1024_v32 }
  0x43   : > { %594 = vmatpush1.bf16.msra.mxu0 %v1026_v33  ;;  %970 = vmatpush1.bf16.msra.mxu1 %v1026_v33 }
  0x46   : > { %596 = vmatmul.mubr.bf16.vlgmr.msra.gmra.mrb[0].mxu0 %v1027_v34  ;;  %676 = vmatmul.mubr.bf16.vlgmr.msra.gmra.mrb[0].mxu1 %v1030_v35 }
  0x47   : > { %605 = vmatprep.mubr.bf16.mxu0 %v1033_v36  ;;  %685 = vmatprep.mubr.bf16.mxu1 %v1036_v37 }
  0x4e   : > { %606 = vmatmul.mubr.bf16.gmra.mrb[4].mxu0 %v1035_v38  ;;  %686 = vmatmul.mubr.bf16.gmra.mrb[4].mxu1 %v1038_v39 }
  0x4f   : > { %615 = vmatprep.mubr.bf16.mxu0 %v1039_v40  ;;  %695 = vmatprep.mubr.bf16.mxu1 %v1042_v41 }
  0x56   : > { %616 = vmatmul.mubr.bf16.gmra.mrb[8].mxu0 %v1041_v42  ;;  %696 = vmatmul.mubr.bf16.gmra.mrb[8].mxu1 %v1044_v43 }
  0x57   : > { %625 = vmatprep.mubr.bf16.mxu0 %v1045_v44  ;;  %705 = vmatprep.mubr.bf16.mxu1 %v1048_v45 }
  0x5e   : > { %626 = vmatmul.mubr.bf16.gmra.mrb[12].mxu0 %v1047_v46  ;;  %706 = vmatmul.mubr.bf16.gmra.mrb[12].mxu1 %v1050_v47 }
  0x5f   : > { %635 = vmatprep.mubr.bf16.mxu0 %v1051_v48  ;;  %715 = vmatprep.mubr.bf16.mxu1 %v1054_v49 }
  0x66   : > { %636 = vmatmul.mubr.bf16.gmra.mrb[16].mxu0 %v1053_v50  ;;  %716 = vmatmul.mubr.bf16.gmra.mrb[16].mxu1 %v1056_v51 }
  0x67   : > { %645 = vmatprep.mubr.bf16.mxu0 %v1057_v52  ;;  %725 = vmatprep.mubr.bf16.mxu1 %v1060_v53 }
  0x6e   : > { %646 = vmatmul.mubr.bf16.gmra.mrb[20].mxu0 %v1059_v54  ;;  %726 = vmatmul.mubr.bf16.gmra.mrb[20].mxu1 %v1062_v55 }
  0x6f   : > { %655 = vmatprep.mubr.bf16.mxu0 %v1063_v56  ;;  %735 = vmatprep.mubr.bf16.mxu1 %v1066_v57 }
  0x76   : > { %656 = vmatmul.mubr.bf16.gmra.mrb[24].mxu0 %v1065_v58  ;;  %736 = vmatmul.mubr.bf16.gmra.mrb[24].mxu1 %v1068_v59 }
  0x77   : > { %665 = vmatprep.mubr.bf16.mxu0 %v1069_v60 }
  0x7e   : > { %666 = vmatmul.mubr.bf16.gmra.mrb[28].mxu0 %v1071_v61 }
 0x119   : > { %v597_v5 = vpop.f32.mrb[0].mxu0  ;;  %v677_v6 = vpop.f32.mrb[0].mxu1 }
 0x11a   : > { %v598_v7 = vadd.f32 %v597_v5, %v1246_v3  ;;  %v599_v8 = vpop.f32.mrb[1].mxu0  ;;  %v678_v9 = vadd.f32 %v677_v6, %v1246_v3  ;;  %v679_v10 = vpop.f32.mrb[1].mxu1 }
 0x11b   : > { %v600_v11 = vadd.f32 %v599_v8, %v1248_v4  ;;  %v601_v12 = vpop.f32.mrb[2].mxu0  ;;  %v680_v13 = vadd.f32 %v679_v10, %v1248_v4  ;;  %v681_v14 = vpop.f32.mrb[2].mxu1 }
 0x11c   : > { %746 = vst [vmem:[%s1253_s13] sm:$0xff] %v598_v7  ;;  %v602_v15 = vadd.f32 %v601_v12, %v1246_v3  ;;  %v603_v16 = vpop.f32.mrb[3].mxu0  ;;  %778 = vst [vmem:[%s1253_s13 + $0x100] sm:$0xff] %v678_v9  ;;  %v682_v17 = vadd.f32 %v681_v14, %v1246_v3  ;;  %v683_v18 = vpop.f32.mrb[3].mxu1 }
 0x11d   : > { %747 = vst [vmem:[%s1253_s13 + $0x8] sm:$0xff] %v600_v11  ;;  %v604_v19 = vadd.f32 %v603_v16, %v1248_v4  ;;  %779 = vst [vmem:[%s1253_s13 + $0x108] sm:$0xff] %v680_v13  ;;  %v684_v20 = vadd.f32 %v683_v18, %v1248_v4 }
 0x11e   : > { %748 = vst [vmem:[%s1253_s13 + $0x10] sm:$0xff] %v602_v15  ;;  %780 = vst [vmem:[%s1253_s13 + $0x110] sm:$0xff] %v682_v17 }
 0x11f   : > { %749 = vst [vmem:[%s1253_s13 + $0x18] sm:$0xff] %v604_v19  ;;  %781 = vst [vmem:[%s1253_s13 + $0x118] sm:$0xff] %v684_v20 }
 0x121   : > { %v607_v21 = vpop.f32.mrb[4].mxu0  ;;  %v687_v22 = vpop.f32.mrb[4].mxu1 }
 0x122   : > { %v608_v23 = vadd.f32 %v607_v21, %v1246_v3  ;;  %v609_v24 = vpop.f32.mrb[5].mxu0  ;;  %v688_v25 = vadd.f32 %v687_v22, %v1246_v3  ;;  %v689_v26 = vpop.f32.mrb[5].mxu1 }
 0x123   : > { %v610_v27 = vadd.f32 %v609_v24, %v1248_v4  ;;  %v611_v28 = vpop.f32.mrb[6].mxu0  ;;  %v690_v29 = vadd.f32 %v689_v26, %v1248_v4  ;;  %v691_v30 = vpop.f32.mrb[6].mxu1 }
 0x124   : > { %750 = vst [vmem:[%s1253_s13 + $0x20] sm:$0xff] %v608_v23  ;;  %v612_v31 = vadd.f32 %v611_v28, %v1246_v3  ;;  %v613_v32 = vpop.f32.mrb[7].mxu0  ;;  %782 = vst [vmem:[%s1253_s13 + $0x120] sm:$0xff] %v688_v25  ;;  %v692_v33 = vadd.f32 %v691_v30, %v1246_v3  ;;  %v693_v34 = vpop.f32.mrb[7].mxu1 }
 0x125   : > { %751 = vst [vmem:[%s1253_s13 + $0x28] sm:$0xff] %v610_v27  ;;  %v614_v35 = vadd.f32 %v613_v32, %v1248_v4  ;;  %783 = vst [vmem:[%s1253_s13 + $0x128] sm:$0xff] %v690_v29  ;;  %v694_v36 = vadd.f32 %v693_v34, %v1248_v4 }
 0x126   : > { %752 = vst [vmem:[%s1253_s13 + $0x30] sm:$0xff] %v612_v31  ;;  %784 = vst [vmem:[%s1253_s13 + $0x130] sm:$0xff] %v692_v33 }
 0x127   : > { %753 = vst [vmem:[%s1253_s13 + $0x38] sm:$0xff] %v614_v35  ;;  %785 = vst [vmem:[%s1253_s13 + $0x138] sm:$0xff] %v694_v36 }
 0x129   : > { %v617_v37 = vpop.f32.mrb[8].mxu0  ;;  %v697_v38 = vpop.f32.mrb[8].mxu1 }
 0x12a   : > { %v618_v39 = vadd.f32 %v617_v37, %v1246_v3  ;;  %v619_v40 = vpop.f32.mrb[9].mxu0  ;;  %v698_v41 = vadd.f32 %v697_v38, %v1246_v3  ;;  %v699_v42 = vpop.f32.mrb[9].mxu1 }
 0x12b   : > { %v620_v43 = vadd.f32 %v619_v40, %v1248_v4  ;;  %v621_v44 = vpop.f32.mrb[10].mxu0  ;;  %v700_v45 = vadd.f32 %v699_v42, %v1248_v4  ;;  %v701_v46 = vpop.f32.mrb[10].mxu1 }
 0x12c   : > { %754 = vst [vmem:[%s1253_s13 + $0x40] sm:$0xff] %v618_v39  ;;  %v622_v47 = vadd.f32 %v621_v44, %v1246_v3  ;;  %v623_v48 = vpop.f32.mrb[11].mxu0  ;;  %786 = vst [vmem:[%s1253_s13 + $0x140] sm:$0xff] %v698_v41  ;;  %v702_v49 = vadd.f32 %v701_v46, %v1246_v3  ;;  %v703_v50 = vpop.f32.mrb[11].mxu1 }
 0x12d   : > { %755 = vst [vmem:[%s1253_s13 + $0x48] sm:$0xff] %v620_v43  ;;  %v624_v51 = vadd.f32 %v623_v48, %v1248_v4  ;;  %787 = vst [vmem:[%s1253_s13 + $0x148] sm:$0xff] %v700_v45  ;;  %v704_v52 = vadd.f32 %v703_v50, %v1248_v4 }
 0x12e   : > { %756 = vst [vmem:[%s1253_s13 + $0x50] sm:$0xff] %v622_v47  ;;  %788 = vst [vmem:[%s1253_s13 + $0x150] sm:$0xff] %v702_v49 }
 0x12f   : > { %757 = vst [vmem:[%s1253_s13 + $0x58] sm:$0xff] %v624_v51  ;;  %789 = vst [vmem:[%s1253_s13 + $0x158] sm:$0xff] %v704_v52 }
 0x131   : > { %v627_v53 = vpop.f32.mrb[12].mxu0  ;;  %v707_v54 = vpop.f32.mrb[12].mxu1 }
 0x132   : > { %v628_v55 = vadd.f32 %v627_v53, %v1246_v3  ;;  %v629_v56 = vpop.f32.mrb[13].mxu0  ;;  %v708_v57 = vadd.f32 %v707_v54, %v1246_v3  ;;  %v709_v58 = vpop.f32.mrb[13].mxu1 }
 0x133   : > { %v630_v59 = vadd.f32 %v629_v56, %v1248_v4  ;;  %v631_v60 = vpop.f32.mrb[14].mxu0  ;;  %v710_v61 = vadd.f32 %v709_v58, %v1248_v4  ;;  %v711_v62 = vpop.f32.mrb[14].mxu1 }
 0x134   : > { %758 = vst [vmem:[%s1253_s13 + $0x60] sm:$0xff] %v628_v55  ;;  %v632_v63 = vadd.f32 %v631_v60, %v1246_v3  ;;  %v633_v0 = vpop.f32.mrb[15].mxu0  ;;  %790 = vst [vmem:[%s1253_s13 + $0x160] sm:$0xff] %v708_v57  ;;  %v712_v1 = vadd.f32 %v711_v62, %v1246_v3  ;;  %v713_v2 = vpop.f32.mrb[15].mxu1 }
 0x135   : > { %759 = vst [vmem:[%s1253_s13 + $0x68] sm:$0xff] %v630_v59  ;;  %v634_v5 = vadd.f32 %v633_v0, %v1248_v4  ;;  %791 = vst [vmem:[%s1253_s13 + $0x168] sm:$0xff] %v710_v61  ;;  %v714_v6 = vadd.f32 %v713_v2, %v1248_v4 }
 0x136   : > { %760 = vst [vmem:[%s1253_s13 + $0x70] sm:$0xff] %v632_v63  ;;  %792 = vst [vmem:[%s1253_s13 + $0x170] sm:$0xff] %v712_v1 }
 0x137   : > { %761 = vst [vmem:[%s1253_s13 + $0x78] sm:$0xff] %v634_v5  ;;  %793 = vst [vmem:[%s1253_s13 + $0x178] sm:$0xff] %v714_v6 }
 0x139   : > { %v637_v7 = vpop.f32.mrb[16].mxu0  ;;  %v717_v8 = vpop.f32.mrb[16].mxu1 }
 0x13a   : > { %v638_v9 = vadd.f32 %v637_v7, %v1246_v3  ;;  %v639_v10 = vpop.f32.mrb[17].mxu0  ;;  %v718_v11 = vadd.f32 %v717_v8, %v1246_v3  ;;  %v719_v12 = vpop.f32.mrb[17].mxu1 }
 0x13b   : > { %v640_v13 = vadd.f32 %v639_v10, %v1248_v4  ;;  %v641_v14 = vpop.f32.mrb[18].mxu0  ;;  %v720_v15 = vadd.f32 %v719_v12, %v1248_v4  ;;  %v721_v16 = vpop.f32.mrb[18].mxu1 }
 0x13c   : > { %762 = vst [vmem:[%s1253_s13 + $0x80] sm:$0xff] %v638_v9  ;;  %v642_v17 = vadd.f32 %v641_v14, %v1246_v3  ;;  %v643_v18 = vpop.f32.mrb[19].mxu0  ;;  %794 = vst [vmem:[%s1253_s13 + $0x180] sm:$0xff] %v718_v11  ;;  %v722_v19 = vadd.f32 %v721_v16, %v1246_v3  ;;  %v723_v20 = vpop.f32.mrb[19].mxu1 }
 0x13d   : > { %763 = vst [vmem:[%s1253_s13 + $0x88] sm:$0xff] %v640_v13  ;;  %v644_v21 = vadd.f32 %v643_v18, %v1248_v4  ;;  %795 = vst [vmem:[%s1253_s13 + $0x188] sm:$0xff] %v720_v15  ;;  %v724_v22 = vadd.f32 %v723_v20, %v1248_v4 }
 0x13e   : > { %764 = vst [vmem:[%s1253_s13 + $0x90] sm:$0xff] %v642_v17  ;;  %796 = vst [vmem:[%s1253_s13 + $0x190] sm:$0xff] %v722_v19 }
 0x13f   : > { %765 = vst [vmem:[%s1253_s13 + $0x98] sm:$0xff] %v644_v21  ;;  %797 = vst [vmem:[%s1253_s13 + $0x198] sm:$0xff] %v724_v22 }
 0x141   : > { %v647_v23 = vpop.f32.mrb[20].mxu0  ;;  %v727_v24 = vpop.f32.mrb[20].mxu1 }
 0x142   : > { %v648_v25 = vadd.f32 %v647_v23, %v1246_v3  ;;  %v649_v26 = vpop.f32.mrb[21].mxu0  ;;  %v728_v27 = vadd.f32 %v727_v24, %v1246_v3  ;;  %v729_v28 = vpop.f32.mrb[21].mxu1 }
 0x143   : > { %v650_v29 = vadd.f32 %v649_v26, %v1248_v4  ;;  %v651_v30 = vpop.f32.mrb[22].mxu0  ;;  %v730_v31 = vadd.f32 %v729_v28, %v1248_v4  ;;  %v731_v32 = vpop.f32.mrb[22].mxu1 }
 0x144   : > { %766 = vst [vmem:[%s1253_s13 + $0xa0] sm:$0xff] %v648_v25  ;;  %v652_v33 = vadd.f32 %v651_v30, %v1246_v3  ;;  %v653_v34 = vpop.f32.mrb[23].mxu0  ;;  %798 = vst [vmem:[%s1253_s13 + $0x1a0] sm:$0xff] %v728_v27  ;;  %v732_v35 = vadd.f32 %v731_v32, %v1246_v3  ;;  %v733_v36 = vpop.f32.mrb[23].mxu1 }
 0x145   : > { %767 = vst [vmem:[%s1253_s13 + $0xa8] sm:$0xff] %v650_v29  ;;  %v654_v37 = vadd.f32 %v653_v34, %v1248_v4  ;;  %799 = vst [vmem:[%s1253_s13 + $0x1a8] sm:$0xff] %v730_v31  ;;  %v734_v38 = vadd.f32 %v733_v36, %v1248_v4 }
 0x146   : > { %768 = vst [vmem:[%s1253_s13 + $0xb0] sm:$0xff] %v652_v33  ;;  %800 = vst [vmem:[%s1253_s13 + $0x1b0] sm:$0xff] %v732_v35 }
 0x147   : > { %769 = vst [vmem:[%s1253_s13 + $0xb8] sm:$0xff] %v654_v37  ;;  %801 = vst [vmem:[%s1253_s13 + $0x1b8] sm:$0xff] %v734_v38 }
 0x149   : > { %v657_v39 = vpop.f32.mrb[24].mxu0  ;;  %v737_v40 = vpop.f32.mrb[24].mxu1 }
 0x14a   : > { %v658_v41 = vadd.f32 %v657_v39, %v1246_v3  ;;  %v659_v42 = vpop.f32.mrb[25].mxu0  ;;  %v738_v43 = vadd.f32 %v737_v40, %v1246_v3  ;;  %v739_v44 = vpop.f32.mrb[25].mxu1 }
 0x14b   : > { %v660_v45 = vadd.f32 %v659_v42, %v1248_v4  ;;  %v661_v46 = vpop.f32.mrb[26].mxu0  ;;  %v740_v47 = vadd.f32 %v739_v44, %v1248_v4  ;;  %v741_v48 = vpop.f32.mrb[26].mxu1 }
 0x14c   : > { %770 = vst [vmem:[%s1253_s13 + $0xc0] sm:$0xff] %v658_v41  ;;  %v662_v49 = vadd.f32 %v661_v46, %v1246_v3  ;;  %v663_v50 = vpop.f32.mrb[27].mxu0  ;;  %802 = vst [vmem:[%s1253_s13 + $0x1c0] sm:$0xff] %v738_v43  ;;  %v742_v51 = vadd.f32 %v741_v48, %v1246_v3  ;;  %v743_v52 = vpop.f32.mrb[27].mxu1 }
 0x14d   : > { %771 = vst [vmem:[%s1253_s13 + $0xc8] sm:$0xff] %v660_v45  ;;  %v664_v53 = vadd.f32 %v663_v50, %v1248_v4  ;;  %803 = vst [vmem:[%s1253_s13 + $0x1c8] sm:$0xff] %v740_v47  ;;  %v744_v54 = vadd.f32 %v743_v52, %v1248_v4 }
 0x14e   : > { %772 = vst [vmem:[%s1253_s13 + $0xd0] sm:$0xff] %v662_v49  ;;  %804 = vst [vmem:[%s1253_s13 + $0x1d0] sm:$0xff] %v742_v51 }
 0x14f   : > { %773 = vst [vmem:[%s1253_s13 + $0xd8] sm:$0xff] %v664_v53  ;;  %805 = vst [vmem:[%s1253_s13 + $0x1d8] sm:$0xff] %v744_v54 }
 0x151   : > { %v667_v55 = vpop.f32.mrb[28].mxu0 }
 0x152   : > { %v668_v56 = vadd.f32 %v667_v55, %v1246_v3  ;;  %v669_v57 = vpop.f32.mrb[29].mxu0 }
 0x153   : > { %v670_v58 = vadd.f32 %v669_v57, %v1248_v4  ;;  %v671_v59 = vpop.f32.mrb[30].mxu0 }
 0x154   : > { %774 = vst [vmem:[%s1253_s13 + $0xe0] sm:$0xff] %v668_v56  ;;  %v672_v60 = vadd.f32 %v671_v59, %v1246_v3  ;;  %v673_v61 = vpop.f32.mrb[31].mxu0 }
 0x155   : > { %775 = vst [vmem:[%s1253_s13 + $0xe8] sm:$0xff] %v670_v58  ;;  %v674_v62 = vadd.f32 %v673_v61, %v1248_v4 }
 0x156   : > { %776 = vst [vmem:[%s1253_s13 + $0xf0] sm:$0xff] %v672_v60 }
 0x157   : > { %777 = vst [vmem:[%s1253_s13 + $0xf8] sm:$0xff] %v674_v62 }
 0x158 PF: > { %s13_s12 = sadd.s32 1, %s1078_s12  }
 0x159   : > { %p10_p4 = scmp.ge.s32.totalorder %s13_s12, 9  }
 0x15b   :  { %12 = sbr.rel (!%p10_p4) target bundleno = 1 (0x1), region = 62 }

// kernel: lprnet_forward.35
= control target key start
LH: loop header
LB: loop body
LE: loop exit
PB: predicated region body
PF: predicated region fallthrough
CT: control target
= control target key end

     0   :  { %s1055_s12 = smov 0   ;;  %s1303_s0 = inlined_call_operand.vmem [shape: bf16[576,256], index: 0, kind: input, shape index: {}]   ;;  %s1304_s1 = inlined_call_operand.vmem [shape: bf16[256,256], index: 1, kind: input, shape index: {}]   ;;  %s1305_s2 = inlined_call_operand.vmem [shape: f32[1,256], index: 2, kind: input, shape index: {}]   ;;  %s1306_s3 = inlined_call_operand.vmem [shape: f32[576,256], index: 3, kind: output, shape index: {}]  }
   0x1 LB: > { %s834_s13 = sadd.s32 4294967295, %s1033_s12   ;;  %p838_p0 = scmp.ge.s32.totalorder %s1033_s12, 1  ;;  %s1033_s12 = sphi %s1055_s12, %s13_s12  }
   0x2   : > { %p139_p1 = scmp.lt.s32.totalorder %s1033_s12, 4 }
   0x4   : > { %p140_p2 = pnand %p838_p0, %p139_p1 }
   0x5   : > { %v943_v0 = vld [vmem:[%s1304_s1 + $0x4] ss:$8 sps:$4 sm:$0xff] (!%p140_p2)   ;;  %v945_v1 = vld [vmem:[%s1304_s1] ss:$8 sps:$4 sm:$0xff] (!%p140_p2)   ;;  %v946_v2 = vld [vmem:[%s1304_s1 + $0x14] ss:$8 sps:$4 sm:$0xff] (!%p140_p2)   ;;  %v237_v56 = vlaneseq (!%p140_p2) }
   0x6   : > { %143 = sbr.rel (%p140_p2) target bundleno = 330 (0x14a), region = 32  ;;  %527 = vmatprep.subr.bf16.mxu0 (!%p140_p2), %v943_v0  ;;  %903 = vmatprep.subr.bf16.mxu1 (!%p140_p2), %v943_v0  ;;  %v948_v3 = vld [vmem:[%s1304_s1 + $0x10] ss:$8 sps:$4 sm:$0xff] (!%p140_p2)   ;;  %v949_v4 = vld [vmem:[%s1304_s1 + $0x24] ss:$8 sps:$4 sm:$0xff] (!%p140_p2)  }
   0x7   : > { %528 = vmatpush1.bf16.msra.mxu0 (!%p140_p2), %v945_v1  ;;  %919 = vmatpush1.bf16.msra.mxu1 (!%p140_p2), %v945_v1  ;;  %s165_s24 = smul.u32 (!%p140_p2), 24, %s834_s13  ;;  %v951_v5 = vld [vmem:[%s1304_s1 + $0x20] ss:$8 sps:$4 sm:$0xff] (!%p140_p2)   ;;  %v952_v6 = vld [vmem:[%s1304_s1 + $0x34] ss:$8 sps:$4 sm:$0xff] (!%p140_p2)   ;;  %v238_v57 = vshrl.u32 (!%p140_p2), %v237_v56, 7 }
   0x8   : > { %529 = vmatprep.subr.bf16.mxu0 (!%p140_p2), %v946_v2  ;;  %904 = vmatprep.subr.bf16.mxu1 (!%p140_p2), %v946_v2  ;;  %v954_v7 = vld [vmem:[%s1304_s1 + $0x30] ss:$8 sps:$4 sm:$0xff] (!%p140_p2)   ;;  %v955_v8 = vld [vmem:[%s1304_s1 + $0x44] ss:$8 sps:$4 sm:$0xff] (!%p140_p2)   ;;  %v957_v9 = vld [vmem:[%s1304_s1 + $0x40] ss:$8 sps:$4 sm:$0xff] (!%p140_p2)  }
   0x9   : > { %p166_p3 = scmp.lt.s32.totalorder (!%p140_p2), %s165_s24, 71  ;;  %v958_v10 = vld [vmem:[%s1304_s1 + $0x54] ss:$8 sps:$4 sm:$0xff] (!%p140_p2)   ;;  %v960_v11 = vld [vmem:[%s1304_s1 + $0x50] ss:$8 sps:$4 sm:$0xff] (!%p140_p2)   ;;  %v239_v58 = vsub.s32 (!%p140_p2), 0, %v238_v57 }
   0xa   : > { %v961_v12 = vld [vmem:[%s1304_s1 + $0x64] ss:$8 sps:$4 sm:$0xff] (!%p140_p2)   ;;  %v963_v14 = vld [vmem:[%s1304_s1 + $0x60] ss:$8 sps:$4 sm:$0xff] (!%p140_p2)   ;;  %v964_v16 = vld [vmem:[%s1304_s1 + $0x74] ss:$8 sps:$4 sm:$0xff] (!%p140_p2)  }
   0xb   : > { %530 = vmatpush1.bf16.msra.mxu0 (!%p140_p2), %v948_v3  ;;  %920 = vmatpush1.bf16.msra.mxu1 (!%p140_p2), %v948_v3  ;;  %v966_v17 = vld [vmem:[%s1304_s1 + $0x70] ss:$8 sps:$4 sm:$0xff] (!%p140_p2)   ;;  %v967_v18 = vld [vmem:[%s1304_s1 + $0x84] ss:$8 sps:$4 sm:$0xff] (!%p140_p2)   ;;  %v969_v19 = vld [vmem:[%s1304_s1 + $0x80] ss:$8 sps:$4 sm:$0xff] (!%p140_p2)  }
   0xc   : > { %531 = vmatprep.subr.bf16.mxu0 (!%p140_p2), %v949_v4  ;;  %905 = vmatprep.subr.bf16.mxu1 (!%p140_p2), %v949_v4  ;;  %v970_v20 = vld [vmem:[%s1304_s1 + $0x94] ss:$8 sps:$4 sm:$0xff] (!%p140_p2)   ;;  %v972_v21 = vld [vmem:[%s1304_s1 + $0x90] ss:$8 sps:$4 sm:$0xff] (!%p140_p2)   ;;  %v973_v22 = vld [vmem:[%s1304_s1 + $0xa4] ss:$8 sps:$4 sm:$0xff] (!%p140_p2)  }
   0xd   : > { %s1308_s24 = smov (!%p166_p3, %s165_s24), 71  ;;  %v975_v23 = vld [vmem:[%s1304_s1 + $0xa0] ss:$8 sps:$4 sm:$0xff]   ;;  %v976_v24 = vld [vmem:[%s1304_s1 + $0xb4] ss:$8 sps:$4 sm:$0xff]   ;;  %v243_v60 = vsub.s32 1, %v238_v57 }
   0xe   : > { %s901_s10 = sshll.u32 %s1308_s24, 3  ;;  %v978_v25 = vld [vmem:[%s1304_s1 + $0xb0] ss:$8 sps:$4 sm:$0xff]   ;;  %v979_v26 = vld [vmem:[%s1304_s1 + $0xc4] ss:$8 sps:$4 sm:$0xff]   ;;  %s902_s9 = sshll.u32 %s1308_s24, 4 }
   0xf   : > { %532 = vmatpush1.bf16.msra.mxu0 %v951_v5  ;;  %921 = vmatpush1.bf16.msra.mxu1 %v951_v5  ;;  %s1105_s16 = scalar_lea.vmem %s1303_s0, %s901_s10  ;;  %v981_v27 = vld [vmem:[%s1304_s1 + $0xc0] ss:$8 sps:$4 sm:$0xff]   ;;  %v982_v28 = vld [vmem:[%s1304_s1 + $0xd4] ss:$8 sps:$4 sm:$0xff]   ;;  %v984_v29 = vld [vmem:[%s1304_s1 + $0xd0] ss:$8 sps:$4 sm:$0xff]   ;;  %s1204_s11 = scalar_lea.vmem %s1306_s3, %s902_s9 }
  0x10   : > { %533 = vmatprep.subr.bf16.mxu0 %v952_v6  ;;  %906 = vmatprep.subr.bf16.mxu1 %v952_v6  ;;  %v993_v13 = vld [vmem:[%s1105_s16 + $0x4] ss:$8 sps:$4 sm:$0xff]   ;;  %v987_v31 = vld [vmem:[%s1304_s1 + $0xe0] ss:$8 sps:$4 sm:$0xff]   ;;  %v988_v32 = vld [vmem:[%s1304_s1 + $0xf4] ss:$8 sps:$4 sm:$0xff]  }
  0x11   : > { %v996_v15 = vld [vmem:[%s1105_s16 + $0x64] ss:$8 sps:$4 sm:$0xff]   ;;  %559 = vmatprep.mubr.bf16.mxu0 %v993_v13  ;;  %v990_v33 = vld [vmem:[%s1304_s1 + $0xf0] ss:$8 sps:$4 sm:$0xff]   ;;  %v991_v34 = vld [vmem:[%s1105_s16] ss:$8 sps:$4 sm:$0xff]  }
  0x12   : > { %619 = vmatprep.mubr.bf16.mxu1 %v996_v15  ;;  %v985_v30 = vld [vmem:[%s1304_s1 + $0xe4] ss:$8 sps:$4 sm:$0xff]   ;;  %v994_v35 = vld [vmem:[%s1105_s16 + $0x60] ss:$8 sps:$4 sm:$0xff]   ;;  %v997_v36 = vld [vmem:[%s1105_s16 + $0x14] ss:$8 sps:$4 sm:$0xff]  }
  0x13   : > { %534 = vmatpush1.bf16.msra.mxu0 %v954_v7  ;;  %922 = vmatpush1.bf16.msra.mxu1 %v954_v7  ;;  %v999_v37 = vld [vmem:[%s1105_s16 + $0x74] ss:$8 sps:$4 sm:$0xff]   ;;  %v1001_v38 = vld [vmem:[%s1105_s16 + $0x10] ss:$8 sps:$4 sm:$0xff]   ;;  %v1003_v40 = vld [vmem:[%s1105_s16 + $0x24] ss:$8 sps:$4 sm:$0xff]  }
  0x14   : > { %535 = vmatprep.subr.bf16.mxu0 %v955_v8  ;;  %907 = vmatprep.subr.bf16.mxu1 %v955_v8  ;;  %v1002_v39 = vld [vmem:[%s1105_s16 + $0x70] ss:$8 sps:$4 sm:$0xff]   ;;  %v1005_v41 = vld [vmem:[%s1105_s16 + $0x84] ss:$8 sps:$4 sm:$0xff]   ;;  %v1007_v42 = vld [vmem:[%s1105_s16 + $0x20] ss:$8 sps:$4 sm:$0xff]  }
  0x15   : > { %v1008_v43 = vld [vmem:[%s1105_s16 + $0x80] ss:$8 sps:$4 sm:$0xff]   ;;  %v1009_v44 = vld [vmem:[%s1105_s16 + $0x34] ss:$8 sps:$4 sm:$0xff]   ;;  %v1013_v46 = vld [vmem:[%s1105_s16 + $0x30] ss:$8 sps:$4 sm:$0xff]  }
  0x16   : > { %v1011_v45 = vld [vmem:[%s1105_s16 + $0x94] ss:$8 sps:$4 sm:$0xff]   ;;  %v1014_v47 = vld [vmem:[%s1105_s16 + $0x90] ss:$8 sps:$4 sm:$0xff]   ;;  %v1015_v48 = vld [vmem:[%s1105_s16 + $0x44] ss:$8 sps:$4 sm:$0xff]  }
  0x17   : > { %536 = vmatpush1.bf16.msra.mxu0 %v957_v9  ;;  %923 = vmatpush1.bf16.msra.mxu1 %v957_v9  ;;  %v1017_v49 = vld [vmem:[%s1105_s16 + $0xa4] ss:$8 sps:$4 sm:$0xff]   ;;  %v1019_v50 = vld [vmem:[%s1105_s16 + $0x40] ss:$8 sps:$4 sm:$0xff]   ;;  %v1021_v52 = vld [vmem:[%s1105_s16 + $0x54] ss:$8 sps:$4 sm:$0xff]  }
  0x18   : > { %537 = vmatprep.subr.bf16.mxu0 %v958_v10  ;;  %908 = vmatprep.subr.bf16.mxu1 %v958_v10  ;;  %v1020_v51 = vld [vmem:[%s1105_s16 + $0xa0] ss:$8 sps:$4 sm:$0xff]   ;;  %v1023_v53 = vld [vmem:[%s1105_s16 + $0xb4] ss:$8 sps:$4 sm:$0xff]   ;;  %v1025_v54 = vld [vmem:[%s1105_s16 + $0x50] ss:$8 sps:$4 sm:$0xff]  }
  0x19   : > { %v1026_v55 = vld [vmem:[%s1105_s16 + $0xb0] ss:$8 sps:$4 sm:$0xff]   ;;  %v235_v59 = vld [vmem:[%s1305_s2] sm:$0x3] }
  0x1a   : > { %v1194_v61 = vrot.slane %v235_v59, %v239_v58  ;;  %v1196_v62 = vrot.slane %v235_v59, %v243_v60 }
  0x1b   : > { %538 = vmatpush1.bf16.msra.mxu0 %v960_v11  ;;  %924 = vmatpush1.bf16.msra.mxu1 %v960_v11 }
  0x1c   : > { %539 = vmatprep.subr.bf16.mxu0 %v961_v12  ;;  %909 = vmatprep.subr.bf16.mxu1 %v961_v12 }
  0x1f   : > { %540 = vmatpush1.bf16.msra.mxu0 %v963_v14  ;;  %925 = vmatpush1.bf16.msra.mxu1 %v963_v14 }
  0x20   : > { %541 = vmatprep.subr.bf16.mxu0 %v964_v16  ;;  %910 = vmatprep.subr.bf16.mxu1 %v964_v16 }
  0x23   : > { %542 = vmatpush1.bf16.msra.mxu0 %v966_v17  ;;  %926 = vmatpush1.bf16.msra.mxu1 %v966_v17 }
  0x24   : > { %543 = vmatprep.subr.bf16.mxu0 %v967_v18  ;;  %911 = vmatprep.subr.bf16.mxu1 %v967_v18 }
  0x27   : > { %544 = vmatpush1.bf16.msra.mxu0 %v969_v19  ;;  %927 = vmatpush1.bf16.msra.mxu1 %v969_v19 }
  0x28   : > { %545 = vmatprep.subr.bf16.mxu0 %v970_v20  ;;  %912 = vmatprep.subr.bf16.mxu1 %v970_v20 }
  0x2b   : > { %546 = vmatpush1.bf16.msra.mxu0 %v972_v21  ;;  %928 = vmatpush1.bf16.msra.mxu1 %v972_v21 }
  0x2c   : > { %547 = vmatprep.subr.bf16.mxu0 %v973_v22  ;;  %913 = vmatprep.subr.bf16.mxu1 %v973_v22 }
  0x2f   : > { %548 = vmatpush1.bf16.msra.mxu0 %v975_v23  ;;  %929 = vmatpush1.bf16.msra.mxu1 %v975_v23 }
  0x30   : > { %549 = vmatprep.subr.bf16.mxu0 %v976_v24  ;;  %914 = vmatprep.subr.bf16.mxu1 %v976_v24 }
  0x33   : > { %550 = vmatpush1.bf16.msra.mxu0 %v978_v25  ;;  %930 = vmatpush1.bf16.msra.mxu1 %v978_v25 }
  0x34   : > { %551 = vmatprep.subr.bf16.mxu0 %v979_v26  ;;  %915 = vmatprep.subr.bf16.mxu1 %v979_v26 }
  0x37   : > { %552 = vmatpush1.bf16.msra.mxu0 %v981_v27  ;;  %931 = vmatpush1.bf16.msra.mxu1 %v981_v27 }
  0x38   : > { %553 = vmatprep.subr.bf16.mxu0 %v982_v28  ;;  %916 = vmatprep.subr.bf16.mxu1 %v982_v28 }
  0x3b   : > { %554 = vmatpush1.bf16.msra.mxu0 %v984_v29  ;;  %932 = vmatpush1.bf16.msra.mxu1 %v984_v29 }
  0x3c   : > { %555 = vmatprep.subr.bf16.mxu0 %v985_v30  ;;  %917 = vmatprep.subr.bf16.mxu1 %v985_v30 }
  0x3f   : > { %556 = vmatpush1.bf16.msra.mxu0 %v987_v31  ;;  %933 = vmatpush1.bf16.msra.mxu1 %v987_v31 }
  0x40   : > { %557 = vmatprep.subr.bf16.mxu0 %v988_v32  ;;  %918 = vmatprep.subr.bf16.mxu1 %v988_v32 }
  0x43   : > { %558 = vmatpush1.bf16.msra.mxu0 %v990_v33  ;;  %934 = vmatpush1.bf16.msra.mxu1 %v990_v33 }
  0x46   : > { %560 = vmatmul.mubr.bf16.vlgmr.msra.gmra.mrb[0].mxu0 %v991_v34  ;;  %620 = vmatmul.mubr.bf16.vlgmr.msra.gmra.mrb[0].mxu1 %v994_v35 }
  0x47   : > { %569 = vmatprep.mubr.bf16.mxu0 %v997_v36  ;;  %629 = vmatprep.mubr.bf16.mxu1 %v999_v37 }
  0x4e   : > { %570 = vmatmul.mubr.bf16.gmra.mrb[4].mxu0 %v1001_v38  ;;  %630 = vmatmul.mubr.bf16.gmra.mrb[4].mxu1 %v1002_v39 }
  0x4f   : > { %579 = vmatprep.mubr.bf16.mxu0 %v1003_v40  ;;  %639 = vmatprep.mubr.bf16.mxu1 %v1005_v41 }
  0x56   : > { %580 = vmatmul.mubr.bf16.gmra.mrb[8].mxu0 %v1007_v42  ;;  %640 = vmatmul.mubr.bf16.gmra.mrb[8].mxu1 %v1008_v43 }
  0x57   : > { %589 = vmatprep.mubr.bf16.mxu0 %v1009_v44  ;;  %649 = vmatprep.mubr.bf16.mxu1 %v1011_v45 }
  0x5e   : > { %590 = vmatmul.mubr.bf16.gmra.mrb[12].mxu0 %v1013_v46  ;;  %650 = vmatmul.mubr.bf16.gmra.mrb[12].mxu1 %v1014_v47 }
  0x5f   : > { %599 = vmatprep.mubr.bf16.mxu0 %v1015_v48  ;;  %659 = vmatprep.mubr.bf16.mxu1 %v1017_v49 }
  0x66   : > { %600 = vmatmul.mubr.bf16.gmra.mrb[16].mxu0 %v1019_v50  ;;  %660 = vmatmul.mubr.bf16.gmra.mrb[16].mxu1 %v1020_v51 }
  0x67   : > { %609 = vmatprep.mubr.bf16.mxu0 %v1021_v52  ;;  %669 = vmatprep.mubr.bf16.mxu1 %v1023_v53 }
  0x6e   : > { %610 = vmatmul.mubr.bf16.gmra.mrb[20].mxu0 %v1025_v54  ;;  %670 = vmatmul.mubr.bf16.gmra.mrb[20].mxu1 %v1026_v55 }
 0x119   : > { %v561_v63 = vpop.f32.mrb[0].mxu0  ;;  %v621_v0 = vpop.f32.mrb[0].mxu1 }
 0x11a   : > { %v562_v1 = vadd.f32 %v561_v63, %v1194_v61  ;;  %v622_v2 = vadd.f32 %v621_v0, %v1194_v61  ;;  %v563_v3 = vpop.f32.mrb[1].mxu0  ;;  %v623_v4 = vpop.f32.mrb[1].mxu1 }
 0x11b   : > { %v564_v5 = vadd.f32 %v563_v3, %v1196_v62  ;;  %v624_v6 = vadd.f32 %v623_v4, %v1196_v62  ;;  %v565_v7 = vpop.f32.mrb[2].mxu0  ;;  %v625_v8 = vpop.f32.mrb[2].mxu1 }
 0x11c   : > { %v680_v9 = vmax.f32 %v562_v1, 0.0  ;;  %v704_v10 = vmax.f32 %v622_v2, 0.0  ;;  %v566_v11 = vadd.f32 %v565_v7, %v1194_v61  ;;  %v626_v12 = vadd.f32 %v625_v8, %v1194_v61  ;;  %v567_v13 = vpop.f32.mrb[3].mxu0  ;;  %v627_v14 = vpop.f32.mrb[3].mxu1 }
 0x11d   : > { %v681_v15 = vmax.f32 %v564_v5, 0.0  ;;  %v705_v16 = vmax.f32 %v624_v6, 0.0  ;;  %v568_v17 = vadd.f32 %v567_v13, %v1196_v62  ;;  %v628_v18 = vadd.f32 %v627_v14, %v1196_v62 }
 0x11e   : > { %728 = vst [vmem:[%s1204_s11] sm:$0xff] %v680_v9  ;;  %752 = vst [vmem:[%s1204_s11 + $0xc0] sm:$0xff] %v704_v10  ;;  %v682_v19 = vmax.f32 %v566_v11, 0.0  ;;  %v706_v20 = vmax.f32 %v626_v12, 0.0 }
 0x11f   : > { %729 = vst [vmem:[%s1204_s11 + $0x8] sm:$0xff] %v681_v15  ;;  %753 = vst [vmem:[%s1204_s11 + $0xc8] sm:$0xff] %v705_v16  ;;  %v683_v21 = vmax.f32 %v568_v17, 0.0  ;;  %v707_v22 = vmax.f32 %v628_v18, 0.0 }
 0x120   : > { %730 = vst [vmem:[%s1204_s11 + $0x10] sm:$0xff] %v682_v19  ;;  %754 = vst [vmem:[%s1204_s11 + $0xd0] sm:$0xff] %v706_v20 }
 0x121   : > { %731 = vst [vmem:[%s1204_s11 + $0x18] sm:$0xff] %v683_v21  ;;  %755 = vst [vmem:[%s1204_s11 + $0xd8] sm:$0xff] %v707_v22  ;;  %v571_v23 = vpop.f32.mrb[4].mxu0  ;;  %v631_v24 = vpop.f32.mrb[4].mxu1 }
 0x122   : > { %v572_v25 = vadd.f32 %v571_v23, %v1194_v61  ;;  %v632_v26 = vadd.f32 %v631_v24, %v1194_v61  ;;  %v573_v27 = vpop.f32.mrb[5].mxu0  ;;  %v633_v28 = vpop.f32.mrb[5].mxu1 }
 0x123   : > { %v574_v29 = vadd.f32 %v573_v27, %v1196_v62  ;;  %v634_v30 = vadd.f32 %v633_v28, %v1196_v62  ;;  %v575_v31 = vpop.f32.mrb[6].mxu0  ;;  %v635_v32 = vpop.f32.mrb[6].mxu1 }
 0x124   : > { %v684_v33 = vmax.f32 %v572_v25, 0.0  ;;  %v708_v34 = vmax.f32 %v632_v26, 0.0  ;;  %v576_v35 = vadd.f32 %v575_v31, %v1194_v61  ;;  %v636_v36 = vadd.f32 %v635_v32, %v1194_v61  ;;  %v577_v37 = vpop.f32.mrb[7].mxu0  ;;  %v637_v38 = vpop.f32.mrb[7].mxu1 }
 0x125   : > { %v685_v39 = vmax.f32 %v574_v29, 0.0  ;;  %v709_v40 = vmax.f32 %v634_v30, 0.0  ;;  %v578_v41 = vadd.f32 %v577_v37, %v1196_v62  ;;  %v638_v42 = vadd.f32 %v637_v38, %v1196_v62 }
 0x126   : > { %732 = vst [vmem:[%s1204_s11 + $0x20] sm:$0xff] %v684_v33  ;;  %756 = vst [vmem:[%s1204_s11 + $0xe0] sm:$0xff] %v708_v34  ;;  %v686_v43 = vmax.f32 %v576_v35, 0.0  ;;  %v710_v44 = vmax.f32 %v636_v36, 0.0 }
 0x127   : > { %733 = vst [vmem:[%s1204_s11 + $0x28] sm:$0xff] %v685_v39  ;;  %757 = vst [vmem:[%s1204_s11 + $0xe8] sm:$0xff] %v709_v40  ;;  %v687_v45 = vmax.f32 %v578_v41, 0.0  ;;  %v711_v46 = vmax.f32 %v638_v42, 0.0 }
 0x128   : > { %734 = vst [vmem:[%s1204_s11 + $0x30] sm:$0xff] %v686_v43  ;;  %758 = vst [vmem:[%s1204_s11 + $0xf0] sm:$0xff] %v710_v44 }
 0x129   : > { %735 = vst [vmem:[%s1204_s11 + $0x38] sm:$0xff] %v687_v45  ;;  %759 = vst [vmem:[%s1204_s11 + $0xf8] sm:$0xff] %v711_v46  ;;  %v581_v47 = vpop.f32.mrb[8].mxu0  ;;  %v641_v48 = vpop.f32.mrb[8].mxu1 }
 0x12a   : > { %v582_v49 = vadd.f32 %v581_v47, %v1194_v61  ;;  %v642_v50 = vadd.f32 %v641_v48, %v1194_v61  ;;  %v583_v51 = vpop.f32.mrb[9].mxu0  ;;  %v643_v52 = vpop.f32.mrb[9].mxu1 }
 0x12b   : > { %v584_v53 = vadd.f32 %v583_v51, %v1196_v62  ;;  %v644_v54 = vadd.f32 %v643_v52, %v1196_v62  ;;  %v585_v55 = vpop.f32.mrb[10].mxu0  ;;  %v645_v56 = vpop.f32.mrb[10].mxu1 }
 0x12c   : > { %v688_v57 = vmax.f32 %v582_v49, 0.0  ;;  %v712_v58 = vmax.f32 %v642_v50, 0.0  ;;  %v586_v59 = vadd.f32 %v585_v55, %v1194_v61  ;;  %v646_v60 = vadd.f32 %v645_v56, %v1194_v61  ;;  %v587_v63 = vpop.f32.mrb[11].mxu0  ;;  %v647_v0 = vpop.f32.mrb[11].mxu1 }
 0x12d   : > { %v689_v1 = vmax.f32 %v584_v53, 0.0  ;;  %v713_v2 = vmax.f32 %v644_v54, 0.0  ;;  %v588_v3 = vadd.f32 %v587_v63, %v1196_v62  ;;  %v648_v4 = vadd.f32 %v647_v0, %v1196_v62 }
 0x12e   : > { %736 = vst [vmem:[%s1204_s11 + $0x40] sm:$0xff] %v688_v57  ;;  %760 = vst [vmem:[%s1204_s11 + $0x100] sm:$0xff] %v712_v58  ;;  %v690_v5 = vmax.f32 %v586_v59, 0.0  ;;  %v714_v6 = vmax.f32 %v646_v60, 0.0 }
 0x12f   : > { %737 = vst [vmem:[%s1204_s11 + $0x48] sm:$0xff] %v689_v1  ;;  %761 = vst [vmem:[%s1204_s11 + $0x108] sm:$0xff] %v713_v2  ;;  %v691_v7 = vmax.f32 %v588_v3, 0.0  ;;  %v715_v8 = vmax.f32 %v648_v4, 0.0 }
 0x130   : > { %738 = vst [vmem:[%s1204_s11 + $0x50] sm:$0xff] %v690_v5  ;;  %762 = vst [vmem:[%s1204_s11 + $0x110] sm:$0xff] %v714_v6 }
 0x131   : > { %739 = vst [vmem:[%s1204_s11 + $0x58] sm:$0xff] %v691_v7  ;;  %763 = vst [vmem:[%s1204_s11 + $0x118] sm:$0xff] %v715_v8  ;;  %v591_v9 = vpop.f32.mrb[12].mxu0  ;;  %v651_v10 = vpop.f32.mrb[12].mxu1 }
 0x132   : > { %v592_v11 = vadd.f32 %v591_v9, %v1194_v61  ;;  %v652_v12 = vadd.f32 %v651_v10, %v1194_v61  ;;  %v593_v13 = vpop.f32.mrb[13].mxu0  ;;  %v653_v14 = vpop.f32.mrb[13].mxu1 }
 0x133   : > { %v594_v15 = vadd.f32 %v593_v13, %v1196_v62  ;;  %v654_v16 = vadd.f32 %v653_v14, %v1196_v62  ;;  %v595_v17 = vpop.f32.mrb[14].mxu0  ;;  %v655_v18 = vpop.f32.mrb[14].mxu1 }
 0x134   : > { %v692_v19 = vmax.f32 %v592_v11, 0.0  ;;  %v716_v20 = vmax.f32 %v652_v12, 0.0  ;;  %v596_v21 = vadd.f32 %v595_v17, %v1194_v61  ;;  %v656_v22 = vadd.f32 %v655_v18, %v1194_v61  ;;  %v597_v23 = vpop.f32.mrb[15].mxu0  ;;  %v657_v24 = vpop.f32.mrb[15].mxu1 }
 0x135   : > { %v693_v25 = vmax.f32 %v594_v15, 0.0  ;;  %v717_v26 = vmax.f32 %v654_v16, 0.0  ;;  %v598_v27 = vadd.f32 %v597_v23, %v1196_v62  ;;  %v658_v28 = vadd.f32 %v657_v24, %v1196_v62 }
 0x136   : > { %740 = vst [vmem:[%s1204_s11 + $0x60] sm:$0xff] %v692_v19  ;;  %764 = vst [vmem:[%s1204_s11 + $0x120] sm:$0xff] %v716_v20  ;;  %v694_v29 = vmax.f32 %v596_v21, 0.0  ;;  %v718_v30 = vmax.f32 %v656_v22, 0.0 }
 0x137   : > { %741 = vst [vmem:[%s1204_s11 + $0x68] sm:$0xff] %v693_v25  ;;  %765 = vst [vmem:[%s1204_s11 + $0x128] sm:$0xff] %v717_v26  ;;  %v695_v31 = vmax.f32 %v598_v27, 0.0  ;;  %v719_v32 = vmax.f32 %v658_v28, 0.0 }
 0x138   : > { %742 = vst [vmem:[%s1204_s11 + $0x70] sm:$0xff] %v694_v29  ;;  %766 = vst [vmem:[%s1204_s11 + $0x130] sm:$0xff] %v718_v30 }
 0x139   : > { %743 = vst [vmem:[%s1204_s11 + $0x78] sm:$0xff] %v695_v31  ;;  %767 = vst [vmem:[%s1204_s11 + $0x138] sm:$0xff] %v719_v32  ;;  %v601_v33 = vpop.f32.mrb[16].mxu0  ;;  %v661_v34 = vpop.f32.mrb[16].mxu1 }
 0x13a   : > { %v602_v35 = vadd.f32 %v601_v33, %v1194_v61  ;;  %v662_v36 = vadd.f32 %v661_v34, %v1194_v61  ;;  %v603_v37 = vpop.f32.mrb[17].mxu0  ;;  %v663_v38 = vpop.f32.mrb[17].mxu1 }
 0x13b   : > { %v604_v39 = vadd.f32 %v603_v37, %v1196_v62  ;;  %v664_v40 = vadd.f32 %v663_v38, %v1196_v62  ;;  %v605_v41 = vpop.f32.mrb[18].mxu0  ;;  %v665_v42 = vpop.f32.mrb[18].mxu1 }
 0x13c   : > { %v696_v43 = vmax.f32 %v602_v35, 0.0  ;;  %v720_v44 = vmax.f32 %v662_v36, 0.0  ;;  %v606_v45 = vadd.f32 %v605_v41, %v1194_v61  ;;  %v666_v46 = vadd.f32 %v665_v42, %v1194_v61  ;;  %v607_v47 = vpop.f32.mrb[19].mxu0  ;;  %v667_v48 = vpop.f32.mrb[19].mxu1 }
 0x13d   : > { %v697_v49 = vmax.f32 %v604_v39, 0.0  ;;  %v721_v50 = vmax.f32 %v664_v40, 0.0  ;;  %v608_v51 = vadd.f32 %v607_v47, %v1196_v62  ;;  %v668_v52 = vadd.f32 %v667_v48, %v1196_v62 }
 0x13e   : > { %744 = vst [vmem:[%s1204_s11 + $0x80] sm:$0xff] %v696_v43  ;;  %768 = vst [vmem:[%s1204_s11 + $0x140] sm:$0xff] %v720_v44  ;;  %v698_v53 = vmax.f32 %v606_v45, 0.0  ;;  %v722_v54 = vmax.f32 %v666_v46, 0.0 }
 0x13f   : > { %745 = vst [vmem:[%s1204_s11 + $0x88] sm:$0xff] %v697_v49  ;;  %769 = vst [vmem:[%s1204_s11 + $0x148] sm:$0xff] %v721_v50  ;;  %v699_v55 = vmax.f32 %v608_v51, 0.0  ;;  %v723_v56 = vmax.f32 %v668_v52, 0.0 }
 0x140   : > { %746 = vst [vmem:[%s1204_s11 + $0x90] sm:$0xff] %v698_v53  ;;  %770 = vst [vmem:[%s1204_s11 + $0x150] sm:$0xff] %v722_v54 }
 0x141   : > { %747 = vst [vmem:[%s1204_s11 + $0x98] sm:$0xff] %v699_v55  ;;  %771 = vst [vmem:[%s1204_s11 + $0x158] sm:$0xff] %v723_v56  ;;  %v611_v57 = vpop.f32.mrb[20].mxu0  ;;  %v671_v58 = vpop.f32.mrb[20].mxu1 }
 0x142   : > { %v612_v59 = vadd.f32 %v611_v57, %v1194_v61  ;;  %v672_v60 = vadd.f32 %v671_v58, %v1194_v61  ;;  %v613_v63 = vpop.f32.mrb[21].mxu0  ;;  %v673_v0 = vpop.f32.mrb[21].mxu1 }
 0x143   : > { %v614_v1 = vadd.f32 %v613_v63, %v1196_v62  ;;  %v674_v2 = vadd.f32 %v673_v0, %v1196_v62  ;;  %v615_v3 = vpop.f32.mrb[22].mxu0  ;;  %v675_v4 = vpop.f32.mrb[22].mxu1 }
 0x144   : > { %v700_v5 = vmax.f32 %v612_v59, 0.0  ;;  %v724_v6 = vmax.f32 %v672_v60, 0.0  ;;  %v616_v7 = vadd.f32 %v615_v3, %v1194_v61  ;;  %v676_v8 = vadd.f32 %v675_v4, %v1194_v61  ;;  %v617_v9 = vpop.f32.mrb[23].mxu0  ;;  %v677_v10 = vpop.f32.mrb[23].mxu1 }
 0x145   : > { %v701_v11 = vmax.f32 %v614_v1, 0.0  ;;  %v725_v12 = vmax.f32 %v674_v2, 0.0  ;;  %v618_v13 = vadd.f32 %v617_v9, %v1196_v62  ;;  %v678_v14 = vadd.f32 %v677_v10, %v1196_v62 }
 0x146   : > { %748 = vst [vmem:[%s1204_s11 + $0xa0] sm:$0xff] %v700_v5  ;;  %772 = vst [vmem:[%s1204_s11 + $0x160] sm:$0xff] %v724_v6  ;;  %v702_v15 = vmax.f32 %v616_v7, 0.0  ;;  %v726_v16 = vmax.f32 %v676_v8, 0.0 }
 0x147   : > { %749 = vst [vmem:[%s1204_s11 + $0xa8] sm:$0xff] %v701_v11  ;;  %773 = vst [vmem:[%s1204_s11 + $0x168] sm:$0xff] %v725_v12  ;;  %v703_v17 = vmax.f32 %v618_v13, 0.0  ;;  %v727_v18 = vmax.f32 %v678_v14, 0.0 }
 0x148   : > { %750 = vst [vmem:[%s1204_s11 + $0xb0] sm:$0xff] %v702_v15  ;;  %774 = vst [vmem:[%s1204_s11 + $0x170] sm:$0xff] %v726_v16 }
 0x149   : > { %751 = vst [vmem:[%s1204_s11 + $0xb8] sm:$0xff] %v703_v17  ;;  %775 = vst [vmem:[%s1204_s11 + $0x178] sm:$0xff] %v727_v18 }
 0x14a PF: > { %s13_s12 = sadd.s32 1, %s1033_s12  }
 0x14b   : > { %p10_p4 = scmp.ge.s32.totalorder %s13_s12, 5  }
 0x14d   :  { %12 = sbr.rel (!%p10_p4) target bundleno = 1 (0x1), region = 62 }

// kernel: lprnet_forward.36
= control target key start
LH: loop header
LB: loop body
LE: loop exit
PB: predicated region body
PF: predicated region fallthrough
CT: control target
= control target key end

     0   :  { %s8170_s1 = inlined_call_operand.vmem [shape: bf16[3328,128], index: 1, kind: input, shape index: {}]   ;;  %s8171_s0 = inlined_call_operand.vmem [shape: bf16[144,3328], index: 0, kind: input, shape index: {}]   ;;  %s8172_s2 = inlined_call_operand.vmem [shape: f32[1,128], index: 2, kind: input, shape index: {}]   ;;  %s8173_s3 = inlined_call_operand.vmem [shape: f32[144,128], index: 3, kind: output, shape index: {}]  }
   0x1   :  { %v5864_v0 = vld [vmem:[%s8170_s1 + $0x40] sm:$0xff]   ;;  %v5866_v2 = vld [vmem:[%s8170_s1 + $0x48] sm:$0xff]   ;;  %v5868_v4 = vld [vmem:[%s8170_s1 + $0x50] sm:$0xff]  }
   0x2   :  { %v5865_v1 = vld [vmem:[%s8170_s1] sm:$0xff]   ;;  %5848 = vmatprep.subr.bf16.mxu1 %v5864_v0  ;;  %4938 = vmatprep.subr.bf16.mxu0 %v5864_v0  ;;  %v5867_v3 = vld [vmem:[%s8170_s1 + $0x8] sm:$0xff]   ;;  %v5869_v5 = vld [vmem:[%s8170_s1 + $0x10] sm:$0xff]  }
   0x3   :  { %5856 = vmatpush3.bf16.msra.mxu1 %v5865_v1  ;;  %4939 = vmatpush3.bf16.msra.mxu0 %v5865_v1  ;;  %v5870_v6 = vld [vmem:[%s8170_s1 + $0x58] sm:$0xff]   ;;  %v5872_v8 = vld [vmem:[%s8170_s1 + $0x60] sm:$0xff]   ;;  %v5874_v10 = vld [vmem:[%s8170_s1 + $0x68] sm:$0xff]  }
   0x4   :  { %5849 = vmatprep.subr.bf16.mxu1 %v5866_v2  ;;  %4940 = vmatprep.subr.bf16.mxu0 %v5866_v2  ;;  %v5871_v7 = vld [vmem:[%s8170_s1 + $0x18] sm:$0xff]   ;;  %v5873_v9 = vld [vmem:[%s8170_s1 + $0x20] sm:$0xff]   ;;  %v5875_v12 = vld [vmem:[%s8170_s1 + $0x28] sm:$0xff]  }
   0x5   :  { %v5882_v11 = vld [vmem:[%s8171_s0 + $0x344] ss:$104 sps:$4 sm:$0xff]   ;;  %v5876_v13 = vld [vmem:[%s8170_s1 + $0x70] sm:$0xff]   ;;  %v5878_v16 = vld [vmem:[%s8170_s1 + $0x78] sm:$0xff]  }
   0x6   :  { %3154 = vmatprep.mubr.bf16.mxu1 %v5882_v11  ;;  %v5889_v14 = vld [vmem:[%s8171_s0 + $0x4] ss:$104 sps:$4 sm:$0xff]   ;;  %v5877_v15 = vld [vmem:[%s8170_s1 + $0x30] sm:$0xff]   ;;  %v5879_v17 = vld [vmem:[%s8170_s1 + $0x38] sm:$0xff]  }
   0x7   :  { %5857 = vmatpush3.bf16.msra.mxu1 %v5867_v3  ;;  %4941 = vmatpush3.bf16.msra.mxu0 %v5867_v3  ;;  %v5883_v18 = vld [vmem:[%s8170_s1 + $0xc0] sm:$0xff]   ;;  %v5885_v22 = vld [vmem:[%s8170_s1 + $0xc8] sm:$0xff]   ;;  %v5890_v24 = vld [vmem:[%s8171_s0 + $0x414] ss:$104 sps:$4 sm:$0xff]  }
   0x8   :  { %5850 = vmatprep.subr.bf16.mxu1 %v5868_v4  ;;  %4942 = vmatprep.subr.bf16.mxu0 %v5868_v4  ;;  %v5880_v19 = vld [vmem:[%s8171_s0 + $0x340] ss:$104 sps:$4 sm:$0xff]   ;;  %v5899_v27 = vld [vmem:[%s8171_s0 + $0xd4] ss:$104 sps:$4 sm:$0xff]   ;;  %v5892_v30 = vld [vmem:[%s8171_s0 + $0x410] ss:$104 sps:$4 sm:$0xff]  }
   0x9   :  { %3122 = vmatprep.mubr.bf16.mxu0 %v5889_v14  ;;  %v5893_v20 = vld [vmem:[%s8170_s1 + $0x140] sm:$0xff]   ;;  %v5897_v26 = vld [vmem:[%s8170_s1 + $0x148] sm:$0xff]   ;;  %v5895_v29 = vld [vmem:[%s8170_s1 + $0xd0] sm:$0xff]  }
   0xa   :  { %v5884_v21 = vld [vmem:[%s8170_s1 + $0x80] sm:$0xff]   ;;  %v5886_v28 = vld [vmem:[%s8170_s1 + $0x88] sm:$0xff]   ;;  %v5896_v32 = vld [vmem:[%s8170_s1 + $0x90] sm:$0xff]  }
   0xb   :  { %5858 = vmatpush3.bf16.msra.mxu1 %v5869_v5  ;;  %4943 = vmatpush3.bf16.msra.mxu0 %v5869_v5  ;;  %v5887_v23 = vld [vmem:[%s8171_s0] ss:$104 sps:$4 sm:$0xff]   ;;  %v5901_v33 = vld [vmem:[%s8171_s0 + $0x4e4] ss:$104 sps:$4 sm:$0xff]   ;;  %v5907_v34 = vld [vmem:[%s8170_s1 + $0x150] sm:$0xff]  }
   0xc   :  { %5851 = vmatprep.subr.bf16.mxu1 %v5870_v6  ;;  %4944 = vmatprep.subr.bf16.mxu0 %v5870_v6  ;;  %v5894_v25 = vld [vmem:[%s8170_s1 + $0x100] sm:$0xff]   ;;  %v5898_v31 = vld [vmem:[%s8170_s1 + $0x108] sm:$0xff]   ;;  %v5903_v35 = vld [vmem:[%s8170_s1 + $0xd8] sm:$0xff]  }
   0xd   :  { %v5904_v36 = vld [vmem:[%s8171_s0 + $0xd0] ss:$104 sps:$4 sm:$0xff]   ;;  %v5913_v39 = vld [vmem:[%s8171_s0 + $0x1a4] ss:$104 sps:$4 sm:$0xff]   ;;  %v5905_v42 = vld [vmem:[%s8171_s0 + $0x4e0] ss:$104 sps:$4 sm:$0xff]  }
   0xe   :  { %v5908_v37 = vld [vmem:[%s8170_s1 + $0x110] sm:$0xff]   ;;  %v5910_v38 = vld [vmem:[%s8170_s1 + $0x158] sm:$0xff]   ;;  %v5909_v41 = vld [vmem:[%s8170_s1 + $0xe0] sm:$0xff]  }
   0xf   :  { %5859 = vmatpush3.bf16.msra.mxu1 %v5871_v7  ;;  %4945 = vmatpush3.bf16.msra.mxu0 %v5871_v7  ;;  %v5906_v40 = vld [vmem:[%s8170_s1 + $0x98] sm:$0xff]   ;;  %v5911_v44 = vld [vmem:[%s8170_s1 + $0xa0] sm:$0xff]   ;;  %v5920_v48 = vld [vmem:[%s8170_s1 + $0xe8] sm:$0xff]  }
  0x10   :  { %5852 = vmatprep.subr.bf16.mxu1 %v5872_v8  ;;  %4946 = vmatprep.subr.bf16.mxu0 %v5872_v8  ;;  %v5912_v43 = vld [vmem:[%s8170_s1 + $0x118] sm:$0xff]   ;;  %v5919_v46 = vld [vmem:[%s8170_s1 + $0x160] sm:$0xff]   ;;  %v5922_v50 = vld [vmem:[%s8170_s1 + $0xa8] sm:$0xff]  }
  0x11   :  { %v5915_v45 = vld [vmem:[%s8171_s0 + $0x5b4] ss:$104 sps:$4 sm:$0xff]   ;;  %v5917_v47 = vld [vmem:[%s8171_s0 + $0x1a0] ss:$104 sps:$4 sm:$0xff]   ;;  %v5918_v54 = vld [vmem:[%s8171_s0 + $0x5b0] ss:$104 sps:$4 sm:$0xff]  }
  0x12   :  { %v5921_v49 = vld [vmem:[%s8170_s1 + $0x120] sm:$0xff]   ;;  %v5923_v51 = vld [vmem:[%s8170_s1 + $0x168] sm:$0xff]   ;;  %v5926_v53 = vld [vmem:[%s8171_s0 + $0x274] ss:$104 sps:$4 sm:$0xff]  }
  0x13   :  { %5860 = vmatpush3.bf16.msra.mxu1 %v5873_v9  ;;  %4947 = vmatpush3.bf16.msra.mxu0 %v5873_v9  ;;  %v5924_v52 = vld [vmem:[%s8170_s1 + $0x128] sm:$0xff]   ;;  %v5925_v55 = vld [vmem:[%s8170_s1 + $0xf0] sm:$0xff]   ;;  %v5935_v61 = vld [vmem:[%s8170_s1 + $0xf8] sm:$0xff]  }
  0x14   :  { %5853 = vmatprep.subr.bf16.mxu1 %v5874_v10  ;;  %4948 = vmatprep.subr.bf16.mxu0 %v5874_v10  ;;  %v5928_v56 = vld [vmem:[%s8171_s0 + $0x684] ss:$104 sps:$4 sm:$0xff]   ;;  %v5930_v57 = vld [vmem:[%s8170_s1 + $0xb0] sm:$0xff]   ;;  %v5937_v62 = vld [vmem:[%s8170_s1 + $0x178] sm:$0xff]  }
  0x15   :  { %v5931_v58 = vld [vmem:[%s8171_s0 + $0x270] ss:$104 sps:$4 sm:$0xff]   ;;  %v5932_v0 = vld [vmem:[%s8171_s0 + $0x680] ss:$104 sps:$4 sm:$0xff]   ;;  %v5941_v2 = vld [vmem:[%s8171_s0 + $0xc] ss:$104 sps:$4 sm:$0xff]  }
  0x16   :  { %v5933_v59 = vld [vmem:[%s8170_s1 + $0x170] sm:$0xff]   ;;  %v5936_v63 = vld [vmem:[%s8170_s1 + $0xb8] sm:$0xff]   ;;  %v5945_v5 = vld [vmem:[%s8170_s1 + $0x1c0] sm:$0xff]  }
  0x17   :  { %5861 = vmatpush3.bf16.msra.mxu1 %v5875_v12  ;;  %4949 = vmatpush3.bf16.msra.mxu0 %v5875_v12  ;;  %v5934_v60 = vld [vmem:[%s8170_s1 + $0x130] sm:$0xff]   ;;  %v5938_v1 = vld [vmem:[%s8170_s1 + $0x138] sm:$0xff]   ;;  %v5947_v6 = vld [vmem:[%s8170_s1 + $0x240] sm:$0xff]  }
  0x18   :  { %5854 = vmatprep.subr.bf16.mxu1 %v5876_v13  ;;  %4950 = vmatprep.subr.bf16.mxu0 %v5876_v13  ;;  %v5942_v3 = vld [vmem:[%s8171_s0 + $0x10] ss:$104 sps:$4 sm:$0xff]   ;;  %v5944_v4 = vld [vmem:[%s8171_s0 + $0x14] ss:$104 sps:$4 sm:$0xff]   ;;  %v5948_v7 = vld [vmem:[%s8170_s1 + $0x200] sm:$0xff]  }
  0x19   :  { %v5939_v8 = vld [vmem:[%s8171_s0 + $0x8] ss:$104 sps:$4 sm:$0xff]   ;;  %v5951_v9 = vld [vmem:[%s8171_s0 + $0xe4] ss:$104 sps:$4 sm:$0xff]  }
  0x1a   :  { %v5946_v10 = vld [vmem:[%s8170_s1 + $0x180] sm:$0xff]   ;;  %v5955_v13 = vld [vmem:[%s8170_s1 + $0x1c8] sm:$0xff]  }
  0x1b   :  { %5862 = vmatpush3.bf16.msra.mxu1 %v5877_v15  ;;  %4951 = vmatpush3.bf16.msra.mxu0 %v5877_v15  ;;  %v5949_v11 = vld [vmem:[%s8171_s0 + $0xdc] ss:$104 sps:$4 sm:$0xff]   ;;  %v5954_v12 = vld [vmem:[%s8171_s0 + $0xe0] ss:$104 sps:$4 sm:$0xff]  }
  0x1c   :  { %5855 = vmatprep.subr.bf16.mxu1 %v5878_v16  ;;  %4952 = vmatprep.subr.bf16.mxu0 %v5878_v16  ;;  %v5957_v14 = vld [vmem:[%s8170_s1 + $0x248] sm:$0xff]  }
  0x1d   :  { %v5958_v15 = vld [vmem:[%s8170_s1 + $0x208] sm:$0xff]  }
  0x1e   :  { %v5956_v16 = vld [vmem:[%s8170_s1 + $0x188] sm:$0xff]  }
  0x1f   :  { %5863 = vmatpush3.bf16.msra.mxu1 %v5879_v17  ;;  %4953 = vmatpush3.bf16.msra.mxu0 %v5879_v17  ;;  %v5961_v17 = vld [vmem:[%s8171_s0 + $0x1b4] ss:$104 sps:$4 sm:$0xff]  }
  0x20   :  { %5008 = vmatprep.subr.bf16.mxu1 %v5883_v18  ;;  %5078 = vmatprep.subr.bf16.mxu0 %v5893_v20  ;;  %v5953_v18 = vld [vmem:[%s8171_s0 + $0xd8] ss:$104 sps:$4 sm:$0xff]   ;;  %v5959_v20 = vld [vmem:[%s8171_s0 + $0x1ac] ss:$104 sps:$4 sm:$0xff]  }
  0x22   :  { %3155 = vmatmul.mubr.bf16.vlgmr.msra.gmra.mrb[0].mxu1 %v5880_v19  ;;  %3123 = vmatmul.mubr.bf16.vlgmr.msra.gmra.mrb[0].mxu0 %v5887_v23  ;;  %v5965_v19 = vld [vmem:[%s8170_s1 + $0x1d0] sm:$0xff]  }
  0x23   :  { %5009 = vmatpush3.bf16.msra.mxu1 %v5884_v21  ;;  %3162 = vmatprep.mubr.bf16.mxu1 %v5890_v24  ;;  %v5966_v21 = vld [vmem:[%s8170_s1 + $0x190] sm:$0xff]  }
  0x24   :  { %5010 = vmatprep.subr.bf16.mxu1 %v5885_v22  ;;  %5079 = vmatpush3.bf16.msra.mxu0 %v5894_v25  ;;  %v5967_v22 = vld [vmem:[%s8170_s1 + $0x250] sm:$0xff]   ;;  %v5971_v25 = vld [vmem:[%s8171_s0 + $0x284] ss:$104 sps:$4 sm:$0xff]  }
  0x25   :  { %5080 = vmatprep.subr.bf16.mxu0 %v5897_v26  ;;  %3130 = vmatprep.mubr.bf16.mxu0 %v5899_v27  ;;  %v5968_v23 = vld [vmem:[%s8170_s1 + $0x210] sm:$0xff]   ;;  %v5975_v26 = vld [vmem:[%s8170_s1 + $0x1d8] sm:$0xff]  }
  0x26   :  { %v5964_v24 = vld [vmem:[%s8171_s0 + $0x1b0] ss:$104 sps:$4 sm:$0xff]  }
  0x27   :  { %5011 = vmatpush3.bf16.msra.mxu1 %v5886_v28  ;;  %v5963_v27 = vld [vmem:[%s8171_s0 + $0x1a8] ss:$104 sps:$4 sm:$0xff]   ;;  %v5976_v28 = vld [vmem:[%s8170_s1 + $0x198] sm:$0xff]  }
  0x28   :  { %5012 = vmatprep.subr.bf16.mxu1 %v5895_v29  ;;  %5081 = vmatpush3.bf16.msra.mxu0 %v5898_v31  ;;  %v5977_v29 = vld [vmem:[%s8170_s1 + $0x258] sm:$0xff]  }
  0x29   :  { %5082 = vmatprep.subr.bf16.mxu0 %v5907_v34  ;;  %v5969_v31 = vld [vmem:[%s8171_s0 + $0x27c] ss:$104 sps:$4 sm:$0xff]  }
  0x2a   :  { %3163 = vmatmul.mubr.bf16.gmra.mrb[4].mxu1 %v5892_v30  ;;  %3131 = vmatmul.mubr.bf16.gmra.mrb[4].mxu0 %v5904_v36  ;;  %v5978_v30 = vld [vmem:[%s8170_s1 + $0x218] sm:$0xff]   ;;  %v5985_v34 = vld [vmem:[%s8170_s1 + $0x1e0] sm:$0xff]  }
  0x2b   :  { %5013 = vmatpush3.bf16.msra.mxu1 %v5896_v32  ;;  %3170 = vmatprep.mubr.bf16.mxu1 %v5901_v33  ;;  %v5974_v32 = vld [vmem:[%s8171_s0 + $0x280] ss:$104 sps:$4 sm:$0xff]   ;;  %v5981_v33 = vld [vmem:[%s8171_s0 + $0x354] ss:$104 sps:$4 sm:$0xff]  }
  0x2c   :  { %5014 = vmatprep.subr.bf16.mxu1 %v5903_v35  ;;  %5083 = vmatpush3.bf16.msra.mxu0 %v5908_v37  ;;  %v5986_v35 = vld [vmem:[%s8170_s1 + $0x1a0] sm:$0xff]  }
  0x2d   :  { %5084 = vmatprep.subr.bf16.mxu0 %v5910_v38  ;;  %3138 = vmatprep.mubr.bf16.mxu0 %v5913_v39  ;;  %v5987_v36 = vld [vmem:[%s8170_s1 + $0x260] sm:$0xff]   ;;  %v5979_v38 = vld [vmem:[%s8171_s0 + $0x34c] ss:$104 sps:$4 sm:$0xff]   ;;  %v5984_v39 = vld [vmem:[%s8171_s0 + $0x350] ss:$104 sps:$4 sm:$0xff]  }
  0x2e   :  { %v5973_v37 = vld [vmem:[%s8171_s0 + $0x278] ss:$104 sps:$4 sm:$0xff]  }
  0x2f   :  { %5015 = vmatpush3.bf16.msra.mxu1 %v5906_v40  ;;  %v5990_v40 = vld [vmem:[%s8171_s0 + $0x424] ss:$104 sps:$4 sm:$0xff]  }
  0x30   :  { %5016 = vmatprep.subr.bf16.mxu1 %v5909_v41  ;;  %5085 = vmatpush3.bf16.msra.mxu0 %v5912_v43  ;;  %v5992_v41 = vld [vmem:[%s8170_s1 + $0x220] sm:$0xff]   ;;  %v5996_v43 = vld [vmem:[%s8170_s1 + $0x1a8] sm:$0xff]  }
  0x31   :  { %5086 = vmatprep.subr.bf16.mxu0 %v5919_v46  ;;  %v5988_v46 = vld [vmem:[%s8171_s0 + $0x41c] ss:$104 sps:$4 sm:$0xff]  }
  0x32   :  { %3171 = vmatmul.mubr.bf16.gmra.mrb[8].mxu1 %v5905_v42  ;;  %3139 = vmatmul.mubr.bf16.gmra.mrb[8].mxu0 %v5917_v47  ;;  %v5995_v42 = vld [vmem:[%s8170_s1 + $0x1e8] sm:$0xff]  }
  0x33   :  { %5017 = vmatpush3.bf16.msra.mxu1 %v5911_v44  ;;  %3178 = vmatprep.mubr.bf16.mxu1 %v5915_v45  ;;  %v6001_v44 = vld [vmem:[%s8170_s1 + $0x268] sm:$0xff]  }
  0x34   :  { %5018 = vmatprep.subr.bf16.mxu1 %v5920_v48  ;;  %5087 = vmatpush3.bf16.msra.mxu0 %v5921_v49  ;;  %v5983_v45 = vld [vmem:[%s8171_s0 + $0x348] ss:$104 sps:$4 sm:$0xff]  }
  0x35   :  { %5088 = vmatprep.subr.bf16.mxu0 %v5923_v51  ;;  %3146 = vmatprep.mubr.bf16.mxu0 %v5926_v53  ;;  %v6004_v47 = vld [vmem:[%s8170_s1 + $0x228] sm:$0xff]   ;;  %v6005_v48 = vld [vmem:[%s8170_s1 + $0x1f0] sm:$0xff]  }
  0x36   :  { %v5994_v49 = vld [vmem:[%s8171_s0 + $0x420] ss:$104 sps:$4 sm:$0xff]   ;;  %v6010_v51 = vld [vmem:[%s8170_s1 + $0x1b0] sm:$0xff]  }
  0x37   :  { %5019 = vmatpush3.bf16.msra.mxu1 %v5922_v50  ;;  %v5999_v50 = vld [vmem:[%s8171_s0 + $0x4f4] ss:$104 sps:$4 sm:$0xff]  }
  0x38   :  { %5089 = vmatpush3.bf16.msra.mxu0 %v5924_v52  ;;  %5020 = vmatprep.subr.bf16.mxu1 %v5925_v55  ;;  %v6013_v52 = vld [vmem:[%s8170_s1 + $0x270] sm:$0xff]  }
  0x39   :  { %5090 = vmatprep.subr.bf16.mxu0 %v5933_v59  ;;  %v6014_v53 = vld [vmem:[%s8170_s1 + $0x230] sm:$0xff]   ;;  %v6022_v59 = vld [vmem:[%s8170_s1 + $0x1b8] sm:$0xff]  }
  0x3a   :  { %3179 = vmatmul.mubr.bf16.gmra.mrb[12].mxu1 %v5918_v54  ;;  %3147 = vmatmul.mubr.bf16.gmra.mrb[12].mxu0 %v5931_v58  ;;  %v5993_v54 = vld [vmem:[%s8171_s0 + $0x418] ss:$104 sps:$4 sm:$0xff]   ;;  %v5997_v55 = vld [vmem:[%s8171_s0 + $0x4ec] ss:$104 sps:$4 sm:$0xff]  }
  0x3b   :  { %3186 = vmatprep.mubr.bf16.mxu1 %v5928_v56  ;;  %5021 = vmatpush3.bf16.msra.mxu1 %v5930_v57  ;;  %v6003_v56 = vld [vmem:[%s8171_s0 + $0x4f0] ss:$104 sps:$4 sm:$0xff]   ;;  %v6008_v57 = vld [vmem:[%s8171_s0 + $0x5c4] ss:$104 sps:$4 sm:$0xff]  }
  0x3c   :  { %5091 = vmatpush3.bf16.msra.mxu0 %v5934_v60  ;;  %5022 = vmatprep.subr.bf16.mxu1 %v5935_v61  ;;  %v6019_v58 = vld [vmem:[%s8170_s1 + $0x1f8] sm:$0xff]  }
  0x3d   :  { %5092 = vmatprep.subr.bf16.mxu0 %v5937_v62  ;;  %3332 = vmatprep.mubr.bf16.mxu0 %v5944_v4  ;;  %v6023_v60 = vld [vmem:[%s8170_s1 + $0x278] sm:$0xff]   ;;  %v6002_v62 = vld [vmem:[%s8171_s0 + $0x4e8] ss:$104 sps:$4 sm:$0xff]  }
  0x3e   :  { %v6024_v61 = vld [vmem:[%s8170_s1 + $0x238] sm:$0xff]  }
  0x3f   :  { %5023 = vmatpush3.bf16.msra.mxu1 %v5936_v63  ;;  %v6006_v63 = vld [vmem:[%s8171_s0 + $0x5bc] ss:$104 sps:$4 sm:$0xff]   ;;  %v6011_v4 = vld [vmem:[%s8171_s0 + $0x5b8] ss:$104 sps:$4 sm:$0xff]  }
  0x40   :  { %5093 = vmatpush3.bf16.msra.mxu0 %v5938_v1  ;;  %5148 = vmatprep.subr.bf16.mxu1 %v5945_v5  ;;  %v6031_v1 = vld [vmem:[%s8170_s1 + $0x2c0] sm:$0xff]   ;;  %v6015_v5 = vld [vmem:[%s8171_s0 + $0x68c] ss:$104 sps:$4 sm:$0xff]  }
  0x41   :  { %5218 = vmatprep.subr.bf16.mxu0 %v5947_v6  ;;  %v6021_v6 = vld [vmem:[%s8171_s0 + $0x690] ss:$104 sps:$4 sm:$0xff]  }
  0x42   :  { %3187 = vmatmul.mubr.bf16.gmra.mrb[16].mxu1 %v5932_v0  ;;  %v6012_v0 = vld [vmem:[%s8171_s0 + $0x5c0] ss:$104 sps:$4 sm:$0xff]  }
  0x43   :  { %3227 = vmatprep.mubr.bf16.mxu1 %v5941_v2  ;;  %3333 = vmatmul.mubr.bf16.vlgmr.msra.gmra.mrb[16].mxu0 %v5942_v3  ;;  %v6017_v2 = vld [vmem:[%s8171_s0 + $0x694] ss:$104 sps:$4 sm:$0xff]   ;;  %v6033_v3 = vld [vmem:[%s8170_s1 + $0x340] sm:$0xff]  }
  0x44   :  { %5219 = vmatpush3.bf16.msra.mxu0 %v5948_v7  ;;  %3340 = vmatprep.mubr.bf16.mxu0 %v5951_v9  ;;  %v6030_v7 = vld [vmem:[%s8171_s0 + $0x24] ss:$104 sps:$4 sm:$0xff]  }
  0x45   :  { %5220 = vmatprep.subr.bf16.mxu0 %v5957_v14  ;;  %v6027_v9 = vld [vmem:[%s8171_s0 + $0x1c] ss:$104 sps:$4 sm:$0xff]   ;;  %v6025_v14 = vld [vmem:[%s8171_s0 + $0x18] ss:$104 sps:$4 sm:$0xff]  }
  0x48   :  { %5221 = vmatpush3.bf16.msra.mxu0 %v5958_v15  ;;  %v6032_v15 = vld [vmem:[%s8170_s1 + $0x280] sm:$0xff]  }
  0x49   :  { %5222 = vmatprep.subr.bf16.mxu0 %v5967_v22  ;;  %v6054_v22 = vld [vmem:[%s8170_s1 + $0x310] sm:$0xff]  }
  0x4a   :  { %3228 = vmatmul.mubr.bf16.vlgmr.msra.gmra.mrb[20].mxu1 %v5939_v8  ;;  %v6020_v8 = vld [vmem:[%s8171_s0 + $0x688] ss:$104 sps:$4 sm:$0xff]  }
  0x4b   :  { %5149 = vmatpush3.bf16.msra.mxu1 %v5946_v10  ;;  %3235 = vmatprep.mubr.bf16.mxu1 %v5949_v11  ;;  %v6028_v10 = vld [vmem:[%s8171_s0 + $0x20] ss:$104 sps:$4 sm:$0xff]  }
  0x4c   :  { %3341 = vmatmul.mubr.bf16.gmra.mrb[20].mxu0 %v5954_v12  ;;  %5150 = vmatprep.subr.bf16.mxu1 %v5955_v13  ;;  %v6034_v11 = vld [vmem:[%s8170_s1 + $0x300] sm:$0xff]   ;;  %v6037_v12 = vld [vmem:[%s8171_s0 + $0xf4] ss:$104 sps:$4 sm:$0xff]   ;;  %v6043_v13 = vld [vmem:[%s8170_s1 + $0x348] sm:$0xff]  }
  0x4d   :  { %3348 = vmatprep.mubr.bf16.mxu0 %v5961_v17  ;;  %5223 = vmatpush3.bf16.msra.mxu0 %v5968_v23  ;;  %v6044_v17 = vld [vmem:[%s8170_s1 + $0x308] sm:$0xff]   ;;  %v6063_v23 = vld [vmem:[%s8170_s1 + $0x358] sm:$0xff]  }
  0x4e   :  { %5224 = vmatprep.subr.bf16.mxu0 %v5977_v29  ;;  %v6073_v29 = vld [vmem:[%s8170_s1 + $0x360] sm:$0xff]  }
  0x4f   :  { %5151 = vmatpush3.bf16.msra.mxu1 %v5956_v16  ;;  %v6035_v16 = vld [vmem:[%s8171_s0 + $0xec] ss:$104 sps:$4 sm:$0xff]  }
  0x50   :  { %5152 = vmatprep.subr.bf16.mxu1 %v5965_v19  ;;  %v6040_v19 = vld [vmem:[%s8171_s0 + $0xf0] ss:$104 sps:$4 sm:$0xff]  }
  0x51   :  { %5225 = vmatpush3.bf16.msra.mxu0 %v5978_v30  ;;  %v6050_v30 = vld [vmem:[%s8171_s0 + $0x1c0] ss:$104 sps:$4 sm:$0xff]  }
  0x52   :  { %3236 = vmatmul.mubr.bf16.gmra.mrb[24].mxu1 %v5953_v18  ;;  %5226 = vmatprep.subr.bf16.mxu0 %v5987_v36  ;;  %v6053_v18 = vld [vmem:[%s8170_s1 + $0x350] sm:$0xff]   ;;  %v6071_v36 = vld [vmem:[%s8170_s1 + $0x2e0] sm:$0xff]  }
  0x53   :  { %3243 = vmatprep.mubr.bf16.mxu1 %v5959_v20  ;;  %5153 = vmatpush3.bf16.msra.mxu1 %v5966_v21  ;;  %v6041_v20 = vld [vmem:[%s8170_s1 + $0x2c8] sm:$0xff]  }
  0x54   :  { %3349 = vmatmul.mubr.bf16.gmra.mrb[24].mxu0 %v5964_v24  ;;  %5154 = vmatprep.subr.bf16.mxu1 %v5975_v26  ;;  %v6047_v21 = vld [vmem:[%s8171_s0 + $0x1c4] ss:$104 sps:$4 sm:$0xff]   ;;  %v6051_v26 = vld [vmem:[%s8170_s1 + $0x2d0] sm:$0xff]  }
  0x55   :  { %3356 = vmatprep.mubr.bf16.mxu0 %v5971_v25  ;;  %5227 = vmatpush3.bf16.msra.mxu0 %v5992_v41  ;;  %v6042_v24 = vld [vmem:[%s8170_s1 + $0x288] sm:$0xff]  }
  0x56   :  { %5228 = vmatprep.subr.bf16.mxu0 %v6001_v44  ;;  %v6039_v25 = vld [vmem:[%s8171_s0 + $0xe8] ss:$104 sps:$4 sm:$0xff]   ;;  %v6067_v44 = vld [vmem:[%s8171_s0 + $0x364] ss:$104 sps:$4 sm:$0xff]  }
  0x57   :  { %5155 = vmatpush3.bf16.msra.mxu1 %v5976_v28  ;;  %v6064_v28 = vld [vmem:[%s8170_s1 + $0x318] sm:$0xff]   ;;  %v6090_v41 = vld [vmem:[%s8170_s1 + $0x328] sm:$0xff]  }
  0x58   :  { %5156 = vmatprep.subr.bf16.mxu1 %v5985_v34  ;;  %v6078_v34 = vld [vmem:[%s8170_s1 + $0x320] sm:$0xff]  }
  0x59   :  { %5229 = vmatpush3.bf16.msra.mxu0 %v6004_v47  ;;  %v6059_v47 = vld [vmem:[%s8171_s0 + $0x288] ss:$104 sps:$4 sm:$0xff]  }
  0x5a   :  { %3244 = vmatmul.mubr.bf16.gmra.mrb[28].mxu1 %v5963_v27  ;;  %5230 = vmatprep.subr.bf16.mxu0 %v6013_v52  ;;  %v6045_v27 = vld [vmem:[%s8171_s0 + $0x1bc] ss:$104 sps:$4 sm:$0xff]   ;;  %v6070_v52 = vld [vmem:[%s8171_s0 + $0x360] ss:$104 sps:$4 sm:$0xff]  }
  0x5b   :  { %3251 = vmatprep.mubr.bf16.mxu1 %v5969_v31  ;;  %5157 = vmatpush3.bf16.msra.mxu1 %v5986_v35  ;;  %v6052_v31 = vld [vmem:[%s8170_s1 + $0x290] sm:$0xff]   ;;  %v6062_v35 = vld [vmem:[%s8170_s1 + $0x298] sm:$0xff]  }
  0x5c   :  { %3357 = vmatmul.mubr.bf16.gmra.mrb[28].mxu0 %v5974_v32  ;;  %5158 = vmatprep.subr.bf16.mxu1 %v5995_v42  ;;  %v6057_v32 = vld [vmem:[%s8171_s0 + $0x294] ss:$104 sps:$4 sm:$0xff]   ;;  %v6072_v42 = vld [vmem:[%s8170_s1 + $0x2a0] sm:$0xff]  }
  0x5d   :  { %3364 = vmatprep.mubr.bf16.mxu0 %v5981_v33  ;;  %5231 = vmatpush3.bf16.msra.mxu0 %v6014_v53  ;;  %v6061_v33 = vld [vmem:[%s8170_s1 + $0x2d8] sm:$0xff]  }
  0x5e   :  { %5232 = vmatprep.subr.bf16.mxu0 %v6023_v60  ;;  %v6076_v53 = vld [vmem:[%s8171_s0 + $0x434] ss:$104 sps:$4 sm:$0xff]   ;;  %v6080_v60 = vld [vmem:[%s8171_s0 + $0x430] ss:$104 sps:$4 sm:$0xff]  }
  0x5f   :  { %5159 = vmatpush3.bf16.msra.mxu1 %v5996_v43  ;;  %v6081_v43 = vld [vmem:[%s8170_s1 + $0x2e8] sm:$0xff]  }
  0x60   :  { %5160 = vmatprep.subr.bf16.mxu1 %v6005_v48  ;;  %v6099_v48 = vld [vmem:[%s8170_s1 + $0x370] sm:$0xff]  }
  0x61   :  { %5233 = vmatpush3.bf16.msra.mxu0 %v6024_v61  ;;  %v6117_v61 = vld [vmem:[%s8170_s1 + $0x3c0] sm:$0xff]  }
  0x62   :  { %3252 = vmatmul.mubr.bf16.gmra.mrb[32].mxu1 %v5973_v37  ;;  %5358 = vmatprep.subr.bf16.mxu0 %v6033_v3  ;;  %v6087_v37 = vld [vmem:[%s8170_s1 + $0x368] sm:$0xff]   ;;  %v6094_v3 = vld [vmem:[%s8171_s0 + $0x5d4] ss:$104 sps:$4 sm:$0xff]  }
  0x63   :  { %3259 = vmatprep.mubr.bf16.mxu1 %v5979_v38  ;;  %5161 = vmatpush3.bf16.msra.mxu1 %v6010_v51  ;;  %v6049_v38 = vld [vmem:[%s8171_s0 + $0x1b8] ss:$104 sps:$4 sm:$0xff]   ;;  %v6096_v51 = vld [vmem:[%s8170_s1 + $0x2b0] sm:$0xff]  }
  0x64   :  { %3365 = vmatmul.mubr.bf16.gmra.mrb[32].mxu0 %v5984_v39  ;;  %5162 = vmatprep.subr.bf16.mxu1 %v6019_v58  ;;  %v6055_v39 = vld [vmem:[%s8171_s0 + $0x28c] ss:$104 sps:$4 sm:$0xff]   ;;  %v6069_v58 = vld [vmem:[%s8171_s0 + $0x358] ss:$104 sps:$4 sm:$0xff]  }
  0x65   :  { %3372 = vmatprep.mubr.bf16.mxu0 %v5990_v40  ;;  %v6060_v40 = vld [vmem:[%s8171_s0 + $0x290] ss:$104 sps:$4 sm:$0xff]  }
  0x67   :  { %5163 = vmatpush3.bf16.msra.mxu1 %v6022_v59  ;;  %v6074_v59 = vld [vmem:[%s8171_s0 + $0x42c] ss:$104 sps:$4 sm:$0xff]  }
  0x68   :  { %5288 = vmatprep.subr.bf16.mxu1 %v6031_v1  ;;  %v6083_v1 = vld [vmem:[%s8171_s0 + $0x4fc] ss:$104 sps:$4 sm:$0xff]  }
  0x6a   :  { %3260 = vmatmul.mubr.bf16.gmra.mrb[36].mxu1 %v5983_v45  ;;  %v6082_v45 = vld [vmem:[%s8170_s1 + $0x2a8] sm:$0xff]  }
  0x6b   :  { %3267 = vmatprep.mubr.bf16.mxu1 %v5988_v46  ;;  %v6091_v46 = vld [vmem:[%s8170_s1 + $0x2f0] sm:$0xff]  }
  0x6c   :  { %3373 = vmatmul.mubr.bf16.gmra.mrb[36].mxu0 %v5994_v49  ;;  %v6100_v49 = vld [vmem:[%s8170_s1 + $0x330] sm:$0xff]  }
  0x6d   :  { %3380 = vmatprep.mubr.bf16.mxu0 %v5999_v50  ;;  %v6065_v50 = vld [vmem:[%s8171_s0 + $0x35c] ss:$104 sps:$4 sm:$0xff]  }
  0x72   :  { %3268 = vmatmul.mubr.bf16.gmra.mrb[40].mxu1 %v5993_v54  ;;  %v6105_v54 = vld [vmem:[%s8170_s1 + $0x2f8] sm:$0xff]  }
  0x73   :  { %3275 = vmatprep.mubr.bf16.mxu1 %v5997_v55  ;;  %v6108_v55 = vld [vmem:[%s8170_s1 + $0x2b8] sm:$0xff]  }
  0x74   :  { %3381 = vmatmul.mubr.bf16.gmra.mrb[40].mxu0 %v6003_v56  ;;  %v6109_v56 = vld [vmem:[%s8170_s1 + $0x378] sm:$0xff]  }
  0x75   :  { %3388 = vmatprep.mubr.bf16.mxu0 %v6008_v57  ;;  %v6110_v57 = vld [vmem:[%s8170_s1 + $0x338] sm:$0xff]  }
  0x7a   :  { %3276 = vmatmul.mubr.bf16.gmra.mrb[44].mxu1 %v6002_v62  ;;  %v6085_v62 = vld [vmem:[%s8171_s0 + $0x504] ss:$104 sps:$4 sm:$0xff]  }
  0x7b   :  { %3283 = vmatprep.mubr.bf16.mxu1 %v6006_v63  ;;  %v6119_v63 = vld [vmem:[%s8170_s1 + $0x440] sm:$0xff]  }
  0x7c   :  { %3389 = vmatmul.mubr.bf16.gmra.mrb[44].mxu0 %v6012_v0  ;;  %v6079_v0 = vld [vmem:[%s8171_s0 + $0x428] ss:$104 sps:$4 sm:$0xff]  }
  0x7d   :  { %3396 = vmatprep.mubr.bf16.mxu0 %v6017_v2  ;;  %v6089_v2 = vld [vmem:[%s8171_s0 + $0x500] ss:$104 sps:$4 sm:$0xff]  }
  0x82   :  { %3284 = vmatmul.mubr.bf16.gmra.mrb[48].mxu1 %v6011_v4  ;;  %v6088_v4 = vld [vmem:[%s8171_s0 + $0x4f8] ss:$104 sps:$4 sm:$0xff]  }
  0x83   :  { %3291 = vmatprep.mubr.bf16.mxu1 %v6015_v5  ;;  %v6092_v5 = vld [vmem:[%s8171_s0 + $0x5cc] ss:$104 sps:$4 sm:$0xff]  }
  0x84   :  { %3397 = vmatmul.mubr.bf16.gmra.mrb[48].mxu0 %v6021_v6  ;;  %v6098_v6 = vld [vmem:[%s8171_s0 + $0x5d0] ss:$104 sps:$4 sm:$0xff]  }
  0x85   :  { %3542 = vmatprep.mubr.bf16.mxu0 %v6030_v7  ;;  %v6103_v7 = vld [vmem:[%s8171_s0 + $0x6a4] ss:$104 sps:$4 sm:$0xff]  }
  0x8a   :  { %3292 = vmatmul.mubr.bf16.gmra.mrb[52].mxu1 %v6020_v8  ;;  %v6097_v8 = vld [vmem:[%s8171_s0 + $0x5c8] ss:$104 sps:$4 sm:$0xff]  }
  0x8b   :  { %3437 = vmatprep.mubr.bf16.mxu1 %v6027_v9  ;;  %v6101_v9 = vld [vmem:[%s8171_s0 + $0x69c] ss:$104 sps:$4 sm:$0xff]  }
  0x8c   :  { %3543 = vmatmul.mubr.bf16.vlgmr.msra.gmra.mrb[52].mxu0 %v6028_v10  ;;  %v6107_v10 = vld [vmem:[%s8171_s0 + $0x6a0] ss:$104 sps:$4 sm:$0xff]  }
  0x8d   :  { %5359 = vmatpush3.bf16.msra.mxu0 %v6034_v11  ;;  %3550 = vmatprep.mubr.bf16.mxu0 %v6037_v12  ;;  %v6116_v11 = vld [vmem:[%s8171_s0 + $0x34] ss:$104 sps:$4 sm:$0xff]   ;;  %v6106_v12 = vld [vmem:[%s8171_s0 + $0x698] ss:$104 sps:$4 sm:$0xff]  }
  0x8e   :  { %5360 = vmatprep.subr.bf16.mxu0 %v6043_v13  ;;  %v6113_v13 = vld [vmem:[%s8171_s0 + $0x2c] ss:$104 sps:$4 sm:$0xff]  }
  0x91   :  { %5361 = vmatpush3.bf16.msra.mxu0 %v6044_v17  ;;  %v6129_v17 = vld [vmem:[%s8170_s1 + $0x448] sm:$0xff]  }
  0x92   :  { %3438 = vmatmul.mubr.bf16.vlgmr.msra.gmra.mrb[56].mxu1 %v6025_v14  ;;  %5362 = vmatprep.subr.bf16.mxu0 %v6053_v18  ;;  %v6114_v14 = vld [vmem:[%s8171_s0 + $0x30] ss:$104 sps:$4 sm:$0xff]  }
  0x93   :  { %5289 = vmatpush3.bf16.msra.mxu1 %v6032_v15  ;;  %3445 = vmatprep.mubr.bf16.mxu1 %v6035_v16  ;;  %v6120_v15 = vld [vmem:[%s8170_s1 + $0x400] sm:$0xff]   ;;  %v6111_v18 = vld [vmem:[%s8171_s0 + $0x28] ss:$104 sps:$4 sm:$0xff]  }
  0x94   :  { %3551 = vmatmul.mubr.bf16.gmra.mrb[56].mxu0 %v6040_v19  ;;  %5290 = vmatprep.subr.bf16.mxu1 %v6041_v20  ;;  %v6123_v16 = vld [vmem:[%s8171_s0 + $0x104] ss:$104 sps:$4 sm:$0xff]  }
  0x95   :  { %3558 = vmatprep.mubr.bf16.mxu0 %v6047_v21  ;;  %5363 = vmatpush3.bf16.msra.mxu0 %v6054_v22  ;;  %v6118_v19 = vld [vmem:[%s8170_s1 + $0x380] sm:$0xff]   ;;  %v6130_v21 = vld [vmem:[%s8170_s1 + $0x408] sm:$0xff]  }
  0x96   :  { %5364 = vmatprep.subr.bf16.mxu0 %v6063_v23  ;;  %v6121_v20 = vld [vmem:[%s8171_s0 + $0xfc] ss:$104 sps:$4 sm:$0xff]   ;;  %v6126_v22 = vld [vmem:[%s8171_s0 + $0x100] ss:$104 sps:$4 sm:$0xff]   ;;  %v6139_v23 = vld [vmem:[%s8170_s1 + $0x450] sm:$0xff]  }
  0x97   :  { %5291 = vmatpush3.bf16.msra.mxu1 %v6042_v24  ;;  %v6127_v24 = vld [vmem:[%s8170_s1 + $0x3c8] sm:$0xff]  }
  0x98   :  { %5292 = vmatprep.subr.bf16.mxu1 %v6051_v26  ;;  %v6140_v26 = vld [vmem:[%s8170_s1 + $0x410] sm:$0xff]  }
  0x99   :  { %5365 = vmatpush3.bf16.msra.mxu0 %v6064_v28  ;;  %v6128_v28 = vld [vmem:[%s8170_s1 + $0x388] sm:$0xff]  }
  0x9a   :  { %3446 = vmatmul.mubr.bf16.gmra.mrb[60].mxu1 %v6039_v25  ;;  %5366 = vmatprep.subr.bf16.mxu0 %v6073_v29  ;;  %v6133_v25 = vld [vmem:[%s8171_s0 + $0x1d4] ss:$104 sps:$4 sm:$0xff]   ;;  %v6125_v29 = vld [vmem:[%s8171_s0 + $0xf8] ss:$104 sps:$4 sm:$0xff]  }
  0x9b   :  { %3453 = vmatprep.mubr.bf16.mxu1 %v6045_v27  ;;  %5293 = vmatpush3.bf16.msra.mxu1 %v6052_v31  ;;  %v6149_v27 = vld [vmem:[%s8170_s1 + $0x458] sm:$0xff]   ;;  %v6131_v31 = vld [vmem:[%s8171_s0 + $0x1cc] ss:$104 sps:$4 sm:$0xff]  }
  0x9c   :  { %3559 = vmatmul.mubr.bf16.gmra.mrb[60].mxu0 %v6050_v30  ;;  %5294 = vmatprep.subr.bf16.mxu1 %v6061_v33  ;;  %v6137_v30 = vld [vmem:[%s8170_s1 + $0x3d0] sm:$0xff]  }
  0x9d   :  { %3566 = vmatprep.mubr.bf16.mxu0 %v6057_v32  ;;  %5367 = vmatpush3.bf16.msra.mxu0 %v6078_v34  ;;  %v6150_v32 = vld [vmem:[%s8170_s1 + $0x418] sm:$0xff]   ;;  %v6159_v34 = vld [vmem:[%s8170_s1 + $0x460] sm:$0xff]  }
  0x9e   :  { %5368 = vmatprep.subr.bf16.mxu0 %v6087_v37  ;;  %v6136_v33 = vld [vmem:[%s8171_s0 + $0x1d0] ss:$104 sps:$4 sm:$0xff]  }
  0x9f   :  { %5295 = vmatpush3.bf16.msra.mxu1 %v6062_v35  ;;  %v6138_v35 = vld [vmem:[%s8170_s1 + $0x390] sm:$0xff]   ;;  %v6147_v37 = vld [vmem:[%s8170_s1 + $0x3d8] sm:$0xff]  }
  0xa0   :  { %5296 = vmatprep.subr.bf16.mxu1 %v6071_v36  ;;  %v6143_v36 = vld [vmem:[%s8171_s0 + $0x2a4] ss:$104 sps:$4 sm:$0xff]  }
  0xa1   :  { %5369 = vmatpush3.bf16.msra.mxu0 %v6090_v41  ;;  %v6135_v41 = vld [vmem:[%s8171_s0 + $0x1c8] ss:$104 sps:$4 sm:$0xff]  }
  0xa2   :  { %3454 = vmatmul.mubr.bf16.gmra.mrb[64].mxu1 %v6049_v38  ;;  %5370 = vmatprep.subr.bf16.mxu0 %v6099_v48  ;;  %v6164_v38 = vld [vmem:[%s8170_s1 + $0x420] sm:$0xff]  }
  0xa3   :  { %3461 = vmatprep.mubr.bf16.mxu1 %v6055_v39  ;;  %5297 = vmatpush3.bf16.msra.mxu1 %v6072_v42  ;;  %v6173_v39 = vld [vmem:[%s8170_s1 + $0x468] sm:$0xff]   ;;  %v6157_v42 = vld [vmem:[%s8170_s1 + $0x3e0] sm:$0xff]  }
  0xa4   :  { %3567 = vmatmul.mubr.bf16.gmra.mrb[64].mxu0 %v6060_v40  ;;  %5298 = vmatprep.subr.bf16.mxu1 %v6081_v43  ;;  %v6148_v40 = vld [vmem:[%s8170_s1 + $0x398] sm:$0xff]   ;;  %v6158_v48 = vld [vmem:[%s8170_s1 + $0x3a0] sm:$0xff]  }
  0xa5   :  { %3574 = vmatprep.mubr.bf16.mxu0 %v6067_v44  ;;  %5371 = vmatpush3.bf16.msra.mxu0 %v6100_v49  ;;  %v6141_v43 = vld [vmem:[%s8171_s0 + $0x29c] ss:$104 sps:$4 sm:$0xff]   ;;  %v6176_v44 = vld [vmem:[%s8170_s1 + $0x428] sm:$0xff]  }
  0xa6   :  { %5372 = vmatprep.subr.bf16.mxu0 %v6109_v56  ;;  %v6167_v49 = vld [vmem:[%s8170_s1 + $0x3e8] sm:$0xff]   ;;  %v6196_v56 = vld [vmem:[%s8170_s1 + $0x438] sm:$0xff]  }
  0xa7   :  { %5299 = vmatpush3.bf16.msra.mxu1 %v6082_v45  ;;  %v6146_v45 = vld [vmem:[%s8171_s0 + $0x2a0] ss:$104 sps:$4 sm:$0xff]  }
  0xa8   :  { %5300 = vmatprep.subr.bf16.mxu1 %v6091_v46  ;;  %v6185_v46 = vld [vmem:[%s8170_s1 + $0x470] sm:$0xff]  }
  0xa9   :  { %5373 = vmatpush3.bf16.msra.mxu0 %v6110_v57  ;;  %v6156_v57 = vld [vmem:[%s8171_s0 + $0x370] ss:$104 sps:$4 sm:$0xff]  }
  0xaa   :  { %3462 = vmatmul.mubr.bf16.gmra.mrb[68].mxu1 %v6059_v47  ;;  %5498 = vmatprep.subr.bf16.mxu0 %v6119_v63  ;;  %v6153_v47 = vld [vmem:[%s8171_s0 + $0x374] ss:$104 sps:$4 sm:$0xff]   ;;  %v6155_v63 = vld [vmem:[%s8171_s0 + $0x368] ss:$104 sps:$4 sm:$0xff]  }
  0xab   :  { %3469 = vmatprep.mubr.bf16.mxu1 %v6065_v50  ;;  %5301 = vmatpush3.bf16.msra.mxu1 %v6096_v51  ;;  %v6186_v50 = vld [vmem:[%s8170_s1 + $0x430] sm:$0xff]   ;;  %v6195_v51 = vld [vmem:[%s8170_s1 + $0x478] sm:$0xff]  }
  0xac   :  { %3575 = vmatmul.mubr.bf16.gmra.mrb[68].mxu0 %v6070_v52  ;;  %5302 = vmatprep.subr.bf16.mxu1 %v6105_v54  ;;  %v6168_v52 = vld [vmem:[%s8170_s1 + $0x3a8] sm:$0xff]   ;;  %v6177_v54 = vld [vmem:[%s8170_s1 + $0x3f0] sm:$0xff]  }
  0xad   :  { %3582 = vmatprep.mubr.bf16.mxu0 %v6076_v53  ;;  %v6145_v53 = vld [vmem:[%s8171_s0 + $0x298] ss:$104 sps:$4 sm:$0xff]  }
  0xaf   :  { %5303 = vmatpush3.bf16.msra.mxu1 %v6108_v55  ;;  %v6151_v55 = vld [vmem:[%s8171_s0 + $0x36c] ss:$104 sps:$4 sm:$0xff]  }
  0xb0   :  { %5428 = vmatprep.subr.bf16.mxu1 %v6117_v61  ;;  %v6162_v61 = vld [vmem:[%s8171_s0 + $0x444] ss:$104 sps:$4 sm:$0xff]  }
  0xb2   :  { %3470 = vmatmul.mubr.bf16.gmra.mrb[72].mxu1 %v6069_v58  ;;  %v6205_v58 = vld [vmem:[%s8170_s1 + $0x540] sm:$0xff]  }
  0xb3   :  { %3477 = vmatprep.mubr.bf16.mxu1 %v6074_v59  ;;  %v6182_v59 = vld [vmem:[%s8170_s1 + $0x3b0] sm:$0xff]  }
  0xb4   :  { %3583 = vmatmul.mubr.bf16.gmra.mrb[72].mxu0 %v6080_v60  ;;  %v6191_v60 = vld [vmem:[%s8170_s1 + $0x3f8] sm:$0xff]  }
  0xb5   :  { %3590 = vmatprep.mubr.bf16.mxu0 %v6085_v62  ;;  %v6194_v62 = vld [vmem:[%s8170_s1 + $0x3b8] sm:$0xff]  }
  0xba   :  { %3478 = vmatmul.mubr.bf16.gmra.mrb[76].mxu1 %v6079_v0  ;;  %v6203_v0 = vld [vmem:[%s8170_s1 + $0x4c0] sm:$0xff]  }
  0xbb   :  { %3485 = vmatprep.mubr.bf16.mxu1 %v6083_v1 }
  0xbc   :  { %3591 = vmatmul.mubr.bf16.gmra.mrb[76].mxu0 %v6089_v2 }
  0xbd   :  { %3598 = vmatprep.mubr.bf16.mxu0 %v6094_v3  ;;  %v6160_v3 = vld [vmem:[%s8171_s0 + $0x43c] ss:$104 sps:$4 sm:$0xff]  }
  0xc2   :  { %3486 = vmatmul.mubr.bf16.gmra.mrb[80].mxu1 %v6088_v4 }
  0xc3   :  { %3493 = vmatprep.mubr.bf16.mxu1 %v6092_v5 }
  0xc4   :  { %3599 = vmatmul.mubr.bf16.gmra.mrb[80].mxu0 %v6098_v6 }
  0xc5   :  { %3606 = vmatprep.mubr.bf16.mxu0 %v6103_v7 }
  0xca   :  { %3494 = vmatmul.mubr.bf16.gmra.mrb[84].mxu1 %v6097_v8 }
  0xcb   :  { %3501 = vmatprep.mubr.bf16.mxu1 %v6101_v9 }
  0xcc   :  { %3607 = vmatmul.mubr.bf16.gmra.mrb[84].mxu0 %v6107_v10  ;;  %v6166_v10 = vld [vmem:[%s8171_s0 + $0x440] ss:$104 sps:$4 sm:$0xff]  }
  0xcd   :  { %3752 = vmatprep.mubr.bf16.mxu0 %v6116_v11 }
  0xd2   :  { %3502 = vmatmul.mubr.bf16.gmra.mrb[88].mxu1 %v6106_v12 }
  0xd3   :  { %3647 = vmatprep.mubr.bf16.mxu1 %v6113_v13 }
  0xd4   :  { %3753 = vmatmul.mubr.bf16.vlgmr.msra.gmra.mrb[88].mxu0 %v6114_v14 }
  0xd5   :  { %5499 = vmatpush3.bf16.msra.mxu0 %v6120_v15  ;;  %3760 = vmatprep.mubr.bf16.mxu0 %v6123_v16  ;;  %v6171_v15 = vld [vmem:[%s8171_s0 + $0x514] ss:$104 sps:$4 sm:$0xff]   ;;  %v6165_v16 = vld [vmem:[%s8171_s0 + $0x438] ss:$104 sps:$4 sm:$0xff]  }
  0xd6   :  { %5500 = vmatprep.subr.bf16.mxu0 %v6129_v17 }
  0xd9   :  { %5501 = vmatpush3.bf16.msra.mxu0 %v6130_v21 }
  0xda   :  { %3648 = vmatmul.mubr.bf16.vlgmr.msra.gmra.mrb[92].mxu1 %v6111_v18  ;;  %5502 = vmatprep.subr.bf16.mxu0 %v6139_v23 }
  0xdb   :  { %5429 = vmatpush3.bf16.msra.mxu1 %v6118_v19  ;;  %3655 = vmatprep.mubr.bf16.mxu1 %v6121_v20  ;;  %v6169_v19 = vld [vmem:[%s8171_s0 + $0x50c] ss:$104 sps:$4 sm:$0xff]  }
  0xdc   :  { %3761 = vmatmul.mubr.bf16.gmra.mrb[92].mxu0 %v6126_v22  ;;  %5430 = vmatprep.subr.bf16.mxu1 %v6127_v24 }
  0xdd   :  { %3768 = vmatprep.mubr.bf16.mxu0 %v6133_v25  ;;  %5503 = vmatpush3.bf16.msra.mxu0 %v6140_v26 }
  0xde   :  { %5504 = vmatprep.subr.bf16.mxu0 %v6149_v27 }
  0xdf   :  { %5431 = vmatpush3.bf16.msra.mxu1 %v6128_v28  ;;  %v6175_v28 = vld [vmem:[%s8171_s0 + $0x510] ss:$104 sps:$4 sm:$0xff]  }
  0xe0   :  { %5432 = vmatprep.subr.bf16.mxu1 %v6137_v30 }
  0xe1   :  { %5505 = vmatpush3.bf16.msra.mxu0 %v6150_v32 }
  0xe2   :  { %3656 = vmatmul.mubr.bf16.gmra.mrb[96].mxu1 %v6125_v29  ;;  %5506 = vmatprep.subr.bf16.mxu0 %v6159_v34 }
  0xe3   :  { %3663 = vmatprep.mubr.bf16.mxu1 %v6131_v31  ;;  %5433 = vmatpush3.bf16.msra.mxu1 %v6138_v35  ;;  %v6180_v31 = vld [vmem:[%s8171_s0 + $0x5e4] ss:$104 sps:$4 sm:$0xff]   ;;  %v6174_v35 = vld [vmem:[%s8171_s0 + $0x508] ss:$104 sps:$4 sm:$0xff]  }
  0xe4   :  { %3769 = vmatmul.mubr.bf16.gmra.mrb[96].mxu0 %v6136_v33  ;;  %5434 = vmatprep.subr.bf16.mxu1 %v6147_v37 }
  0xe5   :  { %3776 = vmatprep.mubr.bf16.mxu0 %v6143_v36  ;;  %5507 = vmatpush3.bf16.msra.mxu0 %v6164_v38 }
  0xe6   :  { %5508 = vmatprep.subr.bf16.mxu0 %v6173_v39 }
  0xe7   :  { %5435 = vmatpush3.bf16.msra.mxu1 %v6148_v40 }
  0xe8   :  { %5436 = vmatprep.subr.bf16.mxu1 %v6157_v42 }
  0xe9   :  { %5509 = vmatpush3.bf16.msra.mxu0 %v6176_v44  ;;  %v6184_v44 = vld [vmem:[%s8171_s0 + $0x5e0] ss:$104 sps:$4 sm:$0xff]  }
  0xea   :  { %3664 = vmatmul.mubr.bf16.gmra.mrb[100].mxu1 %v6135_v41  ;;  %5510 = vmatprep.subr.bf16.mxu0 %v6185_v46  ;;  %v6178_v41 = vld [vmem:[%s8171_s0 + $0x5dc] ss:$104 sps:$4 sm:$0xff]  }
  0xeb   :  { %3671 = vmatprep.mubr.bf16.mxu1 %v6141_v43  ;;  %5437 = vmatpush3.bf16.msra.mxu1 %v6158_v48 }
  0xec   :  { %3777 = vmatmul.mubr.bf16.gmra.mrb[100].mxu0 %v6146_v45  ;;  %5438 = vmatprep.subr.bf16.mxu1 %v6167_v49 }
  0xed   :  { %3784 = vmatprep.mubr.bf16.mxu0 %v6153_v47  ;;  %5511 = vmatpush3.bf16.msra.mxu0 %v6186_v50  ;;  %v6189_v47 = vld [vmem:[%s8171_s0 + $0x6b4] ss:$104 sps:$4 sm:$0xff]  }
  0xee   :  { %5512 = vmatprep.subr.bf16.mxu0 %v6195_v51  ;;  %v6183_v51 = vld [vmem:[%s8171_s0 + $0x5d8] ss:$104 sps:$4 sm:$0xff]  }
  0xef   :  { %5439 = vmatpush3.bf16.msra.mxu1 %v6168_v52 }
  0xf0   :  { %5440 = vmatprep.subr.bf16.mxu1 %v6177_v54 }
  0xf1   :  { %5513 = vmatpush3.bf16.msra.mxu0 %v6196_v56 }
  0xf2   :  { %3672 = vmatmul.mubr.bf16.gmra.mrb[104].mxu1 %v6145_v53  ;;  %5638 = vmatprep.subr.bf16.mxu0 %v6205_v58 }
  0xf3   :  { %3679 = vmatprep.mubr.bf16.mxu1 %v6151_v55  ;;  %5441 = vmatpush3.bf16.msra.mxu1 %v6182_v59 }
  0xf4   :  { %3785 = vmatmul.mubr.bf16.gmra.mrb[104].mxu0 %v6156_v57  ;;  %5442 = vmatprep.subr.bf16.mxu1 %v6191_v60  ;;  %v6187_v57 = vld [vmem:[%s8171_s0 + $0x6ac] ss:$104 sps:$4 sm:$0xff]   ;;  %v6193_v60 = vld [vmem:[%s8171_s0 + $0x6b0] ss:$104 sps:$4 sm:$0xff]  }
  0xf5   :  { %v4978_v1 = vpop.f32.mrb[0].mxu1  ;;  %v4954_v2 = vpop.f32.mrb[0].mxu0  ;;  %3792 = vmatprep.mubr.bf16.mxu0 %v6162_v61  ;;  %v6202_v61 = vld [vmem:[%s8171_s0 + $0x44] ss:$104 sps:$4 sm:$0xff]  }
  0xf6   :  { %v4979_v4 = vpop.f32.mrb[1].mxu1  ;;  %v4955_v5 = vpop.f32.mrb[1].mxu0 }
  0xf7   :  { %v7217_v6 = vadd.f32 %v4979_v4, %v4978_v1  ;;  %v4981_v7 = vpop.f32.mrb[2].mxu1  ;;  %v7219_v8 = vadd.f32 %v4955_v5, %v4954_v2  ;;  %v4957_v9 = vpop.f32.mrb[2].mxu0  ;;  %5443 = vmatpush3.bf16.msra.mxu1 %v6194_v62  ;;  %v6199_v2 = vld [vmem:[%s8171_s0 + $0x3c] ss:$104 sps:$4 sm:$0xff]  }
  0xf8   :  { %v4982_v11 = vpop.f32.mrb[3].mxu1  ;;  %v4958_v12 = vpop.f32.mrb[3].mxu0  ;;  %5568 = vmatprep.subr.bf16.mxu1 %v6203_v0  ;;  %v6192_v0 = vld [vmem:[%s8171_s0 + $0x6a8] ss:$104 sps:$4 sm:$0xff]  }
  0xf9   :  { %v7224_v13 = vadd.f32 %v4982_v11, %v4981_v7  ;;  %v7226_v14 = vadd.f32 %v4958_v12, %v4957_v9  ;;  %v6200_v7 = vld [vmem:[%s8171_s0 + $0x40] ss:$104 sps:$4 sm:$0xff]  }
  0xfa   :  { %3680 = vmatmul.mubr.bf16.gmra.mrb[108].mxu1 %v6155_v63  ;;  %v6206_v12 = vld [vmem:[%s8170_s1 + $0x500] sm:$0xff]  }
  0xfb   :  { %3687 = vmatprep.mubr.bf16.mxu1 %v6160_v3  ;;  %v7300_v3 = vld [vmem:[%s8172_s2] ss:$0 sm:$0xff] }
  0xfc   :  { %3793 = vmatmul.mubr.bf16.gmra.mrb[108].mxu0 %v6166_v10 }
  0xfd   :  { %v4984_v17 = vpop.f32.mrb[4].mxu1  ;;  %v4960_v18 = vpop.f32.mrb[4].mxu0  ;;  %3800 = vmatprep.mubr.bf16.mxu0 %v6171_v15 }
  0xfe   :  { %v4985_v20 = vpop.f32.mrb[5].mxu1  ;;  %v4961_v21 = vpop.f32.mrb[5].mxu0 }
  0xff   :  { %v7237_v22 = vadd.f32 %v4985_v20, %v4984_v17  ;;  %v4987_v23 = vpop.f32.mrb[6].mxu1  ;;  %v7239_v24 = vadd.f32 %v4961_v21, %v4960_v18  ;;  %v4963_v25 = vpop.f32.mrb[6].mxu0  ;;  %v6209_v21 = vld [vmem:[%s8171_s0 + $0x114] ss:$104 sps:$4 sm:$0xff]  }
 0x100   :  { %v4988_v26 = vpop.f32.mrb[7].mxu1  ;;  %v4964_v27 = vpop.f32.mrb[7].mxu0 }
 0x101   :  { %v7244_v29 = vadd.f32 %v4988_v26, %v4987_v23  ;;  %v7246_v30 = vadd.f32 %v4964_v27, %v4963_v25  ;;  %v6215_v25 = vld [vmem:[%s8170_s1 + $0x548] sm:$0xff]   ;;  %v6197_v27 = vld [vmem:[%s8171_s0 + $0x38] ss:$104 sps:$4 sm:$0xff]  }
 0x102   :  { %3688 = vmatmul.mubr.bf16.gmra.mrb[112].mxu1 %v6165_v16 }
 0x103   :  { %3695 = vmatprep.mubr.bf16.mxu1 %v6169_v19 }
 0x104   :  { %3801 = vmatmul.mubr.bf16.gmra.mrb[112].mxu0 %v6175_v28 }
 0x105   :  { %v4990_v32 = vpop.f32.mrb[8].mxu1  ;;  %v4966_v33 = vpop.f32.mrb[8].mxu0  ;;  %3808 = vmatprep.mubr.bf16.mxu0 %v6180_v31  ;;  %v6207_v31 = vld [vmem:[%s8171_s0 + $0x10c] ss:$104 sps:$4 sm:$0xff]  }
 0x106   :  { %v4991_v34 = vpop.f32.mrb[9].mxu1  ;;  %v4967_v36 = vpop.f32.mrb[9].mxu0 }
 0x107   :  { %v7254_v37 = vadd.f32 %v4991_v34, %v4990_v32  ;;  %v4993_v38 = vpop.f32.mrb[10].mxu1  ;;  %v7256_v39 = vadd.f32 %v4967_v36, %v4966_v33  ;;  %v4969_v40 = vpop.f32.mrb[10].mxu0  ;;  %v6216_v32 = vld [vmem:[%s8170_s1 + $0x508] sm:$0xff]   ;;  %v6212_v34 = vld [vmem:[%s8171_s0 + $0x110] ss:$104 sps:$4 sm:$0xff]   ;;  %v3125_v36 = vadd.f32 %v7219_v8, %v7300_v3 }
 0x108   :  { %v4994_v42 = vpop.f32.mrb[11].mxu1  ;;  %v4970_v43 = vpop.f32.mrb[11].mxu0 }
 0x109   :  { %v7264_v45 = vadd.f32 %v4994_v42, %v4993_v38  ;;  %v7266_v46 = vadd.f32 %v4970_v43, %v4969_v40 }
 0x10a   :  { %3696 = vmatmul.mubr.bf16.gmra.mrb[116].mxu1 %v6174_v35  ;;  %v6225_v35 = vld [vmem:[%s8170_s1 + $0x550] sm:$0xff]  }
 0x10b   :  { %3703 = vmatprep.mubr.bf16.mxu1 %v6178_v41  ;;  %v6204_v41 = vld [vmem:[%s8170_s1 + $0x480] sm:$0xff]  }
 0x10c   :  { %3809 = vmatmul.mubr.bf16.gmra.mrb[116].mxu0 %v6184_v44 }
 0x10d   :  { %v4996_v48 = vpop.f32.mrb[12].mxu1  ;;  %v4972_v49 = vpop.f32.mrb[12].mxu0  ;;  %3816 = vmatprep.mubr.bf16.mxu0 %v6189_v47  ;;  %v6213_v47 = vld [vmem:[%s8170_s1 + $0x4c8] sm:$0xff]  }
 0x10e   :  { %v4997_v50 = vpop.f32.mrb[13].mxu1  ;;  %v4973_v52 = vpop.f32.mrb[13].mxu0 }
 0x10f   :  { %v7274_v53 = vadd.f32 %v4997_v50, %v4996_v48  ;;  %v4999_v54 = vpop.f32.mrb[14].mxu1  ;;  %v7276_v55 = vadd.f32 %v4973_v52, %v4972_v49  ;;  %v4975_v56 = vpop.f32.mrb[14].mxu0  ;;  %v3128_v48 = vadd.f32 %v7226_v14, %v7300_v3  ;;  %v6219_v52 = vld [vmem:[%s8171_s0 + $0x1e4] ss:$104 sps:$4 sm:$0xff]   ;;  %v6235_v14 = vld [vmem:[%s8170_s1 + $0x558] sm:$0xff]  }
 0x110   :  { %v5000_v58 = vpop.f32.mrb[15].mxu1  ;;  %v4976_v59 = vpop.f32.mrb[15].mxu0 }
 0x111   :  { %v7287_v62 = vadd.f32 %v5000_v58, %v4999_v54  ;;  %v7289_v63 = vadd.f32 %v4976_v59, %v4975_v56  ;;  %v6226_v54 = vld [vmem:[%s8170_s1 + $0x510] sm:$0xff]  }
 0x112   :  { %3704 = vmatmul.mubr.bf16.gmra.mrb[120].mxu1 %v6183_v51 }
 0x113   :  { %3711 = vmatprep.mubr.bf16.mxu1 %v6187_v57  ;;  %v6214_v57 = vld [vmem:[%s8170_s1 + $0x488] sm:$0xff]  }
 0x114   :  { %3817 = vmatmul.mubr.bf16.gmra.mrb[120].mxu0 %v6193_v60 }
 0x115   :  { %v5002_v1 = vpop.f32.mrb[16].mxu1  ;;  %3962 = vmatprep.mubr.bf16.mxu0 %v6202_v61  ;;  %v6211_v61 = vld [vmem:[%s8171_s0 + $0x108] ss:$104 sps:$4 sm:$0xff]  }
 0x116   :  { %v5003_v4 = vpop.f32.mrb[17].mxu1  ;;  %v5094_v5 = vpop.f32.mrb[16].mxu0 }
 0x117   :  { %v5004_v9 = vadd.f32 %v5003_v4, %v5002_v1  ;;  %v5005_v10 = vpop.f32.mrb[18].mxu1  ;;  %v5095_v11 = vpop.f32.mrb[17].mxu0  ;;  %v6217_v4 = vld [vmem:[%s8171_s0 + $0x1dc] ss:$104 sps:$4 sm:$0xff]  }
 0x118   :  { %v5006_v15 = vpop.f32.mrb[19].mxu1  ;;  %v5096_v16 = vadd.f32 %v5095_v11, %v5094_v5  ;;  %v5097_v17 = vpop.f32.mrb[18].mxu0  ;;  %v6236_v5 = vld [vmem:[%s8170_s1 + $0x518] sm:$0xff]   ;;  %v3133_v11 = vadd.f32 %v7239_v24, %v7300_v3  ;;  %v3136_v24 = vadd.f32 %v7246_v30, %v7300_v3  ;;  %v6259_v30 = vld [vmem:[%s8170_s1 + $0x568] sm:$0xff]  }
 0x119   :  { %v7309_v18 = vadd.f32 %v5004_v9, %v7300_v3  ;;  %v5007_v19 = vadd.f32 %v5006_v15, %v5005_v10  ;;  %v5098_v20 = vpop.f32.mrb[19].mxu0  ;;  %v6222_v9 = vld [vmem:[%s8171_s0 + $0x1e0] ss:$104 sps:$4 sm:$0xff]  }
 0x11a   :  { %3712 = vmatmul.mubr.bf16.gmra.mrb[124].mxu1 %v6192_v0  ;;  %v5099_v23 = vadd.f32 %v5098_v20, %v5097_v17  ;;  %v6223_v0 = vld [vmem:[%s8170_s1 + $0x4d0] sm:$0xff]   ;;  %v6245_v10 = vld [vmem:[%s8170_s1 + $0x560] sm:$0xff]  }
 0x11b   :  { %v7318_v26 = vadd.f32 %v5007_v19, %v7300_v3  ;;  %3857 = vmatprep.mubr.bf16.mxu1 %v6199_v2  ;;  %v6224_v17 = vld [vmem:[%s8170_s1 + $0x490] sm:$0xff]  }
 0x11c   :  { %3963 = vmatmul.mubr.bf16.vlgmr.msra.gmra.mrb[124].mxu0 %v6200_v7 }
 0x11d   :  { %v5024_v28 = vpop.f32.mrb[20].mxu1  ;;  %5639 = vmatpush3.bf16.msra.mxu0 %v6206_v12  ;;  %3970 = vmatprep.mubr.bf16.mxu0 %v6209_v21  ;;  %v6229_v21 = vld [vmem:[%s8171_s0 + $0x2b4] ss:$104 sps:$4 sm:$0xff]  }
 0x11e   :  { %v5025_v33 = vpop.f32.mrb[21].mxu1  ;;  %5640 = vmatprep.subr.bf16.mxu0 %v6215_v25 }
 0x11f   :  { %v5026_v38 = vadd.f32 %v5025_v33, %v5024_v28  ;;  %v5027_v40 = vpop.f32.mrb[22].mxu1  ;;  %v5100_v42 = vpop.f32.mrb[20].mxu0  ;;  %v6250_v33 = vld [vmem:[%s8170_s1 + $0x520] sm:$0xff]  }
 0x120   :  { %v5028_v43 = vpop.f32.mrb[23].mxu1  ;;  %v5101_v44 = vpop.f32.mrb[21].mxu0 }
 0x121   :  { %v3230_v49 = vadd.f32 %v5026_v38, %v3125_v36  ;;  %v5029_v50 = vadd.f32 %v5028_v43, %v5027_v40  ;;  %v5102_v51 = vadd.f32 %v5101_v44, %v5100_v42  ;;  %v5103_v8 = vpop.f32.mrb[22].mxu0  ;;  %5641 = vmatpush3.bf16.msra.mxu0 %v6216_v32  ;;  %v6234_v32 = vld [vmem:[%s8170_s1 + $0x498] sm:$0xff]   ;;  %v6227_v44 = vld [vmem:[%s8171_s0 + $0x2ac] ss:$104 sps:$4 sm:$0xff]  }
 0x122   :  { %3858 = vmatmul.mubr.bf16.vlgmr.msra.gmra.mrb[128].mxu1 %v6197_v27  ;;  %v5104_v56 = vpop.f32.mrb[23].mxu0  ;;  %5642 = vmatprep.subr.bf16.mxu0 %v6225_v35  ;;  %v6221_v40 = vld [vmem:[%s8171_s0 + $0x1d8] ss:$104 sps:$4 sm:$0xff]  }
 0x123   :  { %v7357_v58 = vadd.f32 %v5096_v16, %v3230_v49  ;;  %v3233_v59 = vadd.f32 %v5029_v50, %v3128_v48  ;;  %5569 = vmatpush3.bf16.msra.mxu1 %v6204_v41  ;;  %v5105_v60 = vadd.f32 %v5104_v56, %v5103_v8  ;;  %3865 = vmatprep.mubr.bf16.mxu1 %v6207_v31  ;;  %v6243_v41 = vld [vmem:[%s8170_s1 + $0x4e0] sm:$0xff]   ;;  %v6232_v49 = vld [vmem:[%s8171_s0 + $0x2b0] ss:$104 sps:$4 sm:$0xff]  }
 0x124   :  { %3971 = vmatmul.mubr.bf16.gmra.mrb[128].mxu0 %v6212_v34  ;;  %5570 = vmatprep.subr.bf16.mxu1 %v6213_v47  ;;  %v6262_v47 = vld [vmem:[%s8170_s1 + $0x528] sm:$0xff]   ;;  %v6271_v50 = vld [vmem:[%s8170_s1 + $0x570] sm:$0xff]  }
 0x125   :  { %v7365_v1 = vadd.f32 %v5099_v23, %v3233_v59  ;;  %v5030_v2 = vpop.f32.mrb[24].mxu1  ;;  %3978 = vmatprep.mubr.bf16.mxu0 %v6219_v52  ;;  %5643 = vmatpush3.bf16.msra.mxu0 %v6226_v54  ;;  %v6233_v23 = vld [vmem:[%s8170_s1 + $0x4d8] sm:$0xff]   ;;  %v6239_v56 = vld [vmem:[%s8171_s0 + $0x384] ss:$104 sps:$4 sm:$0xff]  }
 0x126   :  { %v5031_v7 = vpop.f32.mrb[25].mxu1  ;;  %5644 = vmatprep.subr.bf16.mxu0 %v6235_v14 }
 0x127   :  { %v5032_v12 = vadd.f32 %v5031_v7, %v5030_v2  ;;  %v5033_v15 = vpop.f32.mrb[26].mxu1  ;;  %5571 = vmatpush3.bf16.msra.mxu1 %v6214_v57  ;;  %v5106_v16 = vpop.f32.mrb[24].mxu0  ;;  %v6244_v57 = vld [vmem:[%s8170_s1 + $0x4a0] sm:$0xff]  }
 0x128   :  { %v5034_v19 = vpop.f32.mrb[27].mxu1  ;;  %v5107_v20 = vpop.f32.mrb[25].mxu0  ;;  %5572 = vmatprep.subr.bf16.mxu1 %v6223_v0 }
 0x129   :  { %v3238_v25 = vadd.f32 %v5032_v12, %v3133_v11  ;;  %v5035_v27 = vadd.f32 %v5034_v19, %v5033_v15  ;;  %v5108_v28 = vadd.f32 %v5107_v20, %v5106_v16  ;;  %v5109_v31 = vpop.f32.mrb[26].mxu0  ;;  %5645 = vmatpush3.bf16.msra.mxu0 %v6236_v5  ;;  %v6272_v5 = vld [vmem:[%s8170_s1 + $0x530] sm:$0xff]   ;;  %v6254_v12 = vld [vmem:[%s8170_s1 + $0x4a8] sm:$0xff]   ;;  %v6237_v20 = vld [vmem:[%s8171_s0 + $0x37c] ss:$104 sps:$4 sm:$0xff]  }
 0x12a   :  { %3866 = vmatmul.mubr.bf16.gmra.mrb[132].mxu1 %v6211_v61  ;;  %v5110_v34 = vpop.f32.mrb[27].mxu0  ;;  %5646 = vmatprep.subr.bf16.mxu0 %v6245_v10  ;;  %v6231_v15 = vld [vmem:[%s8171_s0 + $0x2a8] ss:$104 sps:$4 sm:$0xff]  }
 0x12b   :  { %v7401_v35 = vadd.f32 %v5102_v51, %v3238_v25  ;;  %v3241_v36 = vadd.f32 %v5035_v27, %v3136_v24  ;;  %v5111_v38 = vadd.f32 %v5110_v34, %v5109_v31  ;;  %3873 = vmatprep.mubr.bf16.mxu1 %v6217_v4  ;;  %5573 = vmatpush3.bf16.msra.mxu1 %v6224_v17  ;;  %v6263_v16 = vld [vmem:[%s8170_s1 + $0x4f0] sm:$0xff]   ;;  %v6242_v24 = vld [vmem:[%s8171_s0 + $0x380] ss:$104 sps:$4 sm:$0xff]  }
 0x12c   :  { %3979 = vmatmul.mubr.bf16.gmra.mrb[132].mxu0 %v6222_v9  ;;  %5574 = vmatprep.subr.bf16.mxu1 %v6233_v23  ;;  %v3141_v51 = vadd.f32 %v7256_v39, %v7300_v3  ;;  %v3144_v39 = vadd.f32 %v7266_v46, %v7300_v3  ;;  %v6281_v9 = vld [vmem:[%s8170_s1 + $0x578] sm:$0xff]   ;;  %v6291_v25 = vld [vmem:[%s8170_s1 + $0x640] sm:$0xff]   ;;  %v3149_v27 = vadd.f32 %v7276_v55, %v7300_v3  ;;  %v6268_v34 = vld [vmem:[%s8170_s1 + $0x4b0] sm:$0xff]  }
 0x12d   :  { %v7409_v42 = vadd.f32 %v5105_v60, %v3241_v36  ;;  %v5036_v43 = vpop.f32.mrb[28].mxu1  ;;  %3986 = vmatprep.mubr.bf16.mxu0 %v6229_v21  ;;  %5647 = vmatpush3.bf16.msra.mxu0 %v6250_v33  ;;  %v6253_v60 = vld [vmem:[%s8170_s1 + $0x4e8] sm:$0xff]   ;;  %v6282_v21 = vld [vmem:[%s8170_s1 + $0x538] sm:$0xff]   ;;  %v3152_v55 = vadd.f32 %v7289_v63, %v7300_v3  ;;  %v6289_v63 = vld [vmem:[%s8170_s1 + $0x5c0] sm:$0xff]  }
 0x12e   :  { %v5037_v48 = vpop.f32.mrb[29].mxu1  ;;  %5648 = vmatprep.subr.bf16.mxu0 %v6259_v30  ;;  %v6248_v33 = vld [vmem:[%s8171_s0 + $0x454] ss:$104 sps:$4 sm:$0xff]  }
 0x12f   :  { %v5038_v8 = vadd.f32 %v5037_v48, %v5036_v43  ;;  %v5039_v52 = vpop.f32.mrb[30].mxu1  ;;  %v5112_v54 = vpop.f32.mrb[28].mxu0  ;;  %5575 = vmatpush3.bf16.msra.mxu1 %v6234_v32  ;;  %v6280_v48 = vld [vmem:[%s8170_s1 + $0x4b8] sm:$0xff]  }
 0x130   :  { %v5040_v14 = vpop.f32.mrb[31].mxu1  ;;  %v5113_v59 = vpop.f32.mrb[29].mxu0  ;;  %5576 = vmatprep.subr.bf16.mxu1 %v6243_v41 }
 0x131   :  { %v3246_v61 = vadd.f32 %v5038_v8, %v3141_v51  ;;  %v5041_v0 = vadd.f32 %v5040_v14, %v5039_v52  ;;  %v5114_v2 = vadd.f32 %v5113_v59, %v5112_v54  ;;  %v5115_v4 = vpop.f32.mrb[30].mxu0  ;;  %5649 = vmatpush3.bf16.msra.mxu0 %v6262_v47  ;;  %v6241_v54 = vld [vmem:[%s8171_s0 + $0x378] ss:$104 sps:$4 sm:$0xff]   ;;  %v3157_v59 = vadd.f32 %v7217_v6, %v7300_v3 }
 0x132   :  { %3874 = vmatmul.mubr.bf16.gmra.mrb[136].mxu1 %v6221_v40  ;;  %v5116_v7 = vpop.f32.mrb[31].mxu0  ;;  %5650 = vmatprep.subr.bf16.mxu0 %v6271_v50  ;;  %v6252_v14 = vld [vmem:[%s8171_s0 + $0x450] ss:$104 sps:$4 sm:$0xff]  }
 0x133   :  { %v7442_v10 = vadd.f32 %v5108_v28, %v3246_v61  ;;  %v3249_v11 = vadd.f32 %v5041_v0, %v3144_v39  ;;  %v5117_v46 = vadd.f32 %v5116_v7, %v5115_v4  ;;  %3881 = vmatprep.mubr.bf16.mxu1 %v6227_v44  ;;  %5577 = vmatpush3.bf16.msra.mxu1 %v6244_v57  ;;  %v6257_v4 = vld [vmem:[%s8171_s0 + $0x524] ss:$104 sps:$4 sm:$0xff]  }
 0x134   :  { %3987 = vmatmul.mubr.bf16.gmra.mrb[136].mxu0 %v6232_v49  ;;  %5578 = vmatprep.subr.bf16.mxu1 %v6253_v60 }
 0x135   :  { %v7453_v17 = vadd.f32 %v5111_v38, %v3249_v11  ;;  %v5042_v19 = vpop.f32.mrb[32].mxu1  ;;  %3994 = vmatprep.mubr.bf16.mxu0 %v6239_v56  ;;  %5651 = vmatpush3.bf16.msra.mxu0 %v6272_v5  ;;  %v6277_v38 = vld [vmem:[%s8170_s1 + $0x4f8] sm:$0xff]   ;;  %v6246_v56 = vld [vmem:[%s8171_s0 + $0x44c] ss:$104 sps:$4 sm:$0xff]   ;;  %v3160_v5 = vadd.f32 %v7224_v13, %v7300_v3 }
 0x136   :  { %v5043_v23 = vpop.f32.mrb[33].mxu1  ;;  %5652 = vmatprep.subr.bf16.mxu0 %v6281_v9  ;;  %v6255_v13 = vld [vmem:[%s8171_s0 + $0x51c] ss:$104 sps:$4 sm:$0xff]  }
 0x137   :  { %v5044_v28 = vadd.f32 %v5043_v23, %v5042_v19  ;;  %v5045_v31 = vpop.f32.mrb[34].mxu1  ;;  %v5118_v32 = vpop.f32.mrb[32].mxu0  ;;  %5579 = vmatpush3.bf16.msra.mxu1 %v6254_v12  ;;  %v6251_v19 = vld [vmem:[%s8171_s0 + $0x448] ss:$104 sps:$4 sm:$0xff]  }
 0x138   :  { %v5046_v30 = vpop.f32.mrb[35].mxu1  ;;  %v5119_v36 = vpop.f32.mrb[33].mxu0  ;;  %5580 = vmatprep.subr.bf16.mxu1 %v6263_v16 }
 0x139   :  { %v3254_v40 = vadd.f32 %v5044_v28, %v3149_v27  ;;  %v5047_v41 = vadd.f32 %v5046_v30, %v5045_v31  ;;  %v5120_v43 = vadd.f32 %v5119_v36, %v5118_v32  ;;  %v5121_v44 = vpop.f32.mrb[34].mxu0  ;;  %5653 = vmatpush3.bf16.msra.mxu0 %v6282_v21 }
 0x13a   :  { %3882 = vmatmul.mubr.bf16.gmra.mrb[140].mxu1 %v6231_v15  ;;  %v5122_v47 = vpop.f32.mrb[35].mxu0  ;;  %5778 = vmatprep.subr.bf16.mxu0 %v6291_v25 }
 0x13b   :  { %v7483_v49 = vadd.f32 %v5114_v2, %v3254_v40  ;;  %v3257_v50 = vadd.f32 %v5047_v41, %v3152_v55  ;;  %v5123_v51 = vadd.f32 %v5122_v47, %v5121_v44  ;;  %3889 = vmatprep.mubr.bf16.mxu1 %v6237_v20  ;;  %5581 = vmatpush3.bf16.msra.mxu1 %v6268_v34 }
 0x13c   :  { %3995 = vmatmul.mubr.bf16.gmra.mrb[140].mxu0 %v6242_v24  ;;  %5582 = vmatprep.subr.bf16.mxu1 %v6277_v38  ;;  %v3165_v24 = vadd.f32 %v7237_v22, %v7300_v3  ;;  %v3168_v34 = vadd.f32 %v7244_v29, %v7300_v3  ;;  %v6266_v22 = vld [vmem:[%s8171_s0 + $0x5f4] ss:$104 sps:$4 sm:$0xff]   ;;  %v6260_v29 = vld [vmem:[%s8171_s0 + $0x518] ss:$104 sps:$4 sm:$0xff]  }
 0x13d   :  { %v7488_v8 = vadd.f32 %v5117_v46, %v3257_v50  ;;  %v5048_v52 = vpop.f32.mrb[36].mxu1  ;;  %4002 = vmatprep.mubr.bf16.mxu0 %v6248_v33  ;;  %v6261_v33 = vld [vmem:[%s8171_s0 + $0x520] ss:$104 sps:$4 sm:$0xff]  }
 0x13e   :  { %v5049_v57 = vpop.f32.mrb[37].mxu1 }
 0x13f   :  { %v5050_v60 = vadd.f32 %v5049_v57, %v5048_v52  ;;  %v5051_v39 = vpop.f32.mrb[38].mxu1  ;;  %v5124_v61 = vpop.f32.mrb[36].mxu0  ;;  %5583 = vmatpush3.bf16.msra.mxu1 %v6280_v48 }
 0x140   :  { %v5052_v0 = vpop.f32.mrb[39].mxu1  ;;  %v5125_v2 = vpop.f32.mrb[37].mxu0  ;;  %5708 = vmatprep.subr.bf16.mxu1 %v6289_v63  ;;  %v3173_v63 = vadd.f32 %v7254_v37, %v7300_v3  ;;  %v6275_v37 = vld [vmem:[%s8171_s0 + $0x6c4] ss:$104 sps:$4 sm:$0xff]  }
 0x141   :  { %v3262_v7 = vadd.f32 %v5050_v60, %v3157_v59  ;;  %v5053_v9 = vadd.f32 %v5052_v0, %v5051_v39  ;;  %v5126_v11 = vadd.f32 %v5125_v2, %v5124_v61  ;;  %v5127_v46 = vpop.f32.mrb[38].mxu0  ;;  %v6270_v59 = vld [vmem:[%s8171_s0 + $0x5f0] ss:$104 sps:$4 sm:$0xff]   ;;  %v3176_v60 = vadd.f32 %v7264_v45, %v7300_v3 }
 0x142   :  { %3890 = vmatmul.mubr.bf16.gmra.mrb[144].mxu1 %v6241_v54  ;;  %v5128_v6 = vpop.f32.mrb[39].mxu0 }
 0x143   :  { %v7506_v12 = vadd.f32 %v5120_v43, %v3262_v7  ;;  %v3265_v15 = vadd.f32 %v5053_v9, %v3160_v5  ;;  %v5129_v16 = vadd.f32 %v5128_v6, %v5127_v46  ;;  %3897 = vmatprep.mubr.bf16.mxu1 %v6246_v56 }
 0x144   :  { %4003 = vmatmul.mubr.bf16.gmra.mrb[144].mxu0 %v6252_v14 }
 0x145   :  { %v7511_v20 = vadd.f32 %v5123_v51, %v3265_v15  ;;  %v5054_v21 = vpop.f32.mrb[40].mxu1  ;;  %4010 = vmatprep.mubr.bf16.mxu0 %v6257_v4  ;;  %v6264_v51 = vld [vmem:[%s8171_s0 + $0x5ec] ss:$104 sps:$4 sm:$0xff]   ;;  %v6273_v15 = vld [vmem:[%s8171_s0 + $0x6bc] ss:$104 sps:$4 sm:$0xff]  }
 0x146   :  { %v5055_v23 = vpop.f32.mrb[41].mxu1 }
 0x147   :  { %v5056_v25 = vadd.f32 %v5055_v23, %v5054_v21  ;;  %v5057_v27 = vpop.f32.mrb[42].mxu1  ;;  %v5130_v28 = vpop.f32.mrb[40].mxu0 }
 0x148   :  { %v5058_v31 = vpop.f32.mrb[43].mxu1  ;;  %v5131_v32 = vpop.f32.mrb[41].mxu0 }
 0x149   :  { %v3270_v30 = vadd.f32 %v5056_v25, %v3165_v24  ;;  %v5059_v36 = vadd.f32 %v5058_v31, %v5057_v27  ;;  %v5132_v38 = vadd.f32 %v5131_v32, %v5130_v28  ;;  %v5133_v55 = vpop.f32.mrb[42].mxu0  ;;  %v6288_v24 = vld [vmem:[%s8171_s0 + $0x54] ss:$104 sps:$4 sm:$0xff]   ;;  %v3184_v28 = vadd.f32 %v7287_v62, %v7300_v3  ;;  %v6278_v62 = vld [vmem:[%s8171_s0 + $0x6b8] ss:$104 sps:$4 sm:$0xff]  }
 0x14a   :  { %3898 = vmatmul.mubr.bf16.gmra.mrb[148].mxu1 %v6251_v19  ;;  %v5134_v40 = vpop.f32.mrb[43].mxu0  ;;  %v3181_v19 = vadd.f32 %v7274_v53, %v7300_v3 }
 0x14b   :  { %v7526_v41 = vadd.f32 %v5126_v11, %v3270_v30  ;;  %v3273_v43 = vadd.f32 %v5059_v36, %v3168_v34  ;;  %v5135_v44 = vadd.f32 %v5134_v40, %v5133_v55  ;;  %3905 = vmatprep.mubr.bf16.mxu1 %v6255_v13  ;;  %v6269_v11 = vld [vmem:[%s8171_s0 + $0x5e8] ss:$104 sps:$4 sm:$0xff]  }
 0x14c   :  { %4011 = vmatmul.mubr.bf16.gmra.mrb[148].mxu0 %v6261_v33 }
 0x14d   :  { %v7528_v47 = vadd.f32 %v5129_v16, %v3273_v43  ;;  %v5060_v48 = vpop.f32.mrb[44].mxu1  ;;  %4018 = vmatprep.mubr.bf16.mxu0 %v6266_v22  ;;  %v6279_v16 = vld [vmem:[%s8171_s0 + $0x6c0] ss:$104 sps:$4 sm:$0xff]  }
 0x14e   :  { %v5061_v50 = vpop.f32.mrb[45].mxu1 }
 0x14f   :  { %v5062_v52 = vadd.f32 %v5061_v50, %v5060_v48  ;;  %v5063_v54 = vpop.f32.mrb[46].mxu1  ;;  %v5136_v56 = vpop.f32.mrb[44].mxu0  ;;  %v6285_v48 = vld [vmem:[%s8171_s0 + $0x4c] ss:$104 sps:$4 sm:$0xff]  }
 0x150   :  { %v5064_v57 = vpop.f32.mrb[47].mxu1  ;;  %v5137_v14 = vpop.f32.mrb[45].mxu0 }
 0x151   :  { %v3278_v39 = vadd.f32 %v5062_v52, %v3173_v63  ;;  %v5065_v61 = vadd.f32 %v5064_v57, %v5063_v54  ;;  %v5138_v0 = vadd.f32 %v5137_v14, %v5136_v56  ;;  %v5139_v2 = vpop.f32.mrb[46].mxu0  ;;  %v6292_v63 = vld [vmem:[%s8170_s1 + $0x600] sm:$0xff]  }
 0x152   :  { %3906 = vmatmul.mubr.bf16.gmra.mrb[152].mxu1 %v6260_v29  ;;  %v5140_v4 = vpop.f32.mrb[47].mxu0  ;;  %v6286_v29 = vld [vmem:[%s8171_s0 + $0x50] ss:$104 sps:$4 sm:$0xff]   ;;  %v6295_v14 = vld [vmem:[%s8171_s0 + $0x124] ss:$104 sps:$4 sm:$0xff]  }
 0x153   :  { %v7546_v5 = vadd.f32 %v5132_v38, %v3278_v39  ;;  %v3281_v7 = vadd.f32 %v5065_v61, %v3176_v60  ;;  %v5141_v9 = vadd.f32 %v5140_v4, %v5139_v2  ;;  %3913 = vmatprep.mubr.bf16.mxu1 %v6264_v51  ;;  %v6301_v60 = vld [vmem:[%s8170_s1 + $0x648] sm:$0xff]   ;;  %v6293_v4 = vld [vmem:[%s8171_s0 + $0x11c] ss:$104 sps:$4 sm:$0xff]  }
 0x154   :  { %4019 = vmatmul.mubr.bf16.gmra.mrb[152].mxu0 %v6270_v59 }
 0x155   :  { %v7551_v45 = vadd.f32 %v5135_v44, %v3281_v7  ;;  %v5066_v46 = vpop.f32.mrb[48].mxu1  ;;  %4026 = vmatprep.mubr.bf16.mxu0 %v6275_v37 }
 0x156   :  { %v5067_v6 = vpop.f32.mrb[49].mxu1 }
 0x157   :  { %v5068_v21 = vadd.f32 %v5067_v6, %v5066_v46  ;;  %v5069_v13 = vpop.f32.mrb[50].mxu1  ;;  %v5142_v23 = vpop.f32.mrb[48].mxu0  ;;  %v6290_v6 = vld [vmem:[%s8170_s1 + $0x580] sm:$0xff]  }
 0x158   :  { %v5070_v25 = vpop.f32.mrb[51].mxu1  ;;  %v5143_v27 = vpop.f32.mrb[49].mxu0 }
 0x159   :  { %v3286_v31 = vadd.f32 %v5068_v21, %v3181_v19  ;;  %v5071_v32 = vadd.f32 %v5070_v25, %v5069_v13  ;;  %v5144_v33 = vadd.f32 %v5143_v27, %v5142_v23  ;;  %v5145_v34 = vpop.f32.mrb[50].mxu0  ;;  %v6299_v19 = vld [vmem:[%s8170_s1 + $0x5c8] sm:$0xff]   ;;  %v6305_v23 = vld [vmem:[%s8171_s0 + $0x1f4] ss:$104 sps:$4 sm:$0xff]  }
 0x15a   :  { %3914 = vmatmul.mubr.bf16.gmra.mrb[156].mxu1 %v6269_v11  ;;  %v5146_v30 = vpop.f32.mrb[51].mxu0 }
 0x15b   :  { %v7566_v36 = vadd.f32 %v5138_v0, %v3286_v31  ;;  %v3289_v53 = vadd.f32 %v5071_v32, %v3184_v28  ;;  %v5147_v38 = vadd.f32 %v5146_v30, %v5145_v34  ;;  %3921 = vmatprep.mubr.bf16.mxu1 %v6273_v15  ;;  %v6312_v31 = vld [vmem:[%s8170_s1 + $0x610] sm:$0xff]  }
 0x15c   :  { %4027 = vmatmul.mubr.bf16.gmra.mrb[156].mxu0 %v6279_v16  ;;  %v6298_v16 = vld [vmem:[%s8171_s0 + $0x120] ss:$104 sps:$4 sm:$0xff]  }
 0x15d   :  { %v7568_v55 = vadd.f32 %v5141_v9, %v3289_v53  ;;  %v5072_v22 = vpop.f32.mrb[52].mxu1  ;;  %4172 = vmatprep.mubr.bf16.mxu0 %v6288_v24  ;;  %v6311_v9 = vld [vmem:[%s8170_s1 + $0x650] sm:$0xff]   ;;  %v6300_v53 = vld [vmem:[%s8170_s1 + $0x588] sm:$0xff]  }
 0x15e   :  { %v5073_v40 = vpop.f32.mrb[53].mxu1 }
 0x15f   :  { %v5074_v3 = vadd.f32 %v5073_v40, %v5072_v22  ;;  %v5075_v43 = vpop.f32.mrb[54].mxu1  ;;  %v5234_v44 = vpop.f32.mrb[52].mxu0  ;;  %v6309_v22 = vld [vmem:[%s8170_s1 + $0x5d0] sm:$0xff]  }
 0x160   :  { %v5076_v50 = vpop.f32.mrb[55].mxu1  ;;  %v5235_v51 = vpop.f32.mrb[53].mxu0 }
 0x161   :  { %v3294_v52 = vadd.f32 %v5074_v3, %v7309_v18  ;;  %v5077_v54 = vadd.f32 %v5076_v50, %v5075_v43  ;;  %v5236_v56 = vadd.f32 %v5235_v51, %v5234_v44  ;;  %v5237_v57 = vpop.f32.mrb[54].mxu0  ;;  %v6283_v18 = vld [vmem:[%s8171_s0 + $0x48] ss:$104 sps:$4 sm:$0xff]   ;;  %v6322_v3 = vld [vmem:[%s8170_s1 + $0x618] sm:$0xff]  }
 0x162   :  { %3922 = vmatmul.mubr.bf16.gmra.mrb[160].mxu1 %v6278_v62  ;;  %v5238_v59 = vpop.f32.mrb[55].mxu0  ;;  %v6303_v62 = vld [vmem:[%s8171_s0 + $0x1ec] ss:$104 sps:$4 sm:$0xff]   ;;  %v6308_v44 = vld [vmem:[%s8171_s0 + $0x1f0] ss:$104 sps:$4 sm:$0xff]  }
 0x163   :  { %v7589_v39 = vadd.f32 %v5144_v33, %v3294_v52  ;;  %v3297_v61 = vadd.f32 %v5077_v54, %v7318_v26  ;;  %v5239_v0 = vadd.f32 %v5238_v59, %v5237_v57  ;;  %4067 = vmatprep.mubr.bf16.mxu1 %v6285_v48  ;;  %v6302_v26 = vld [vmem:[%s8170_s1 + $0x608] sm:$0xff]   ;;  %v6321_v33 = vld [vmem:[%s8170_s1 + $0x658] sm:$0xff]   ;;  %v6331_v48 = vld [vmem:[%s8170_s1 + $0x660] sm:$0xff]  }
 0x164   :  { %4173 = vmatmul.mubr.bf16.vlgmr.msra.gmra.mrb[160].mxu0 %v6286_v29  ;;  %v6319_v57 = vld [vmem:[%s8170_s1 + $0x5d8] sm:$0xff]  }
 0x165   :  { %v7595_v2 = vadd.f32 %v5147_v38, %v3297_v61  ;;  %v5164_v37 = vpop.f32.mrb[56].mxu1  ;;  %5779 = vmatpush3.bf16.msra.mxu0 %v6292_v63  ;;  %4180 = vmatprep.mubr.bf16.mxu0 %v6295_v14  ;;  %v6297_v38 = vld [vmem:[%s8171_s0 + $0x118] ss:$104 sps:$4 sm:$0xff]   ;;  %v6310_v63 = vld [vmem:[%s8170_s1 + $0x590] sm:$0xff]  }
 0x166   :  { %v5165_v7 = vpop.f32.mrb[57].mxu1  ;;  %5780 = vmatprep.subr.bf16.mxu0 %v6301_v60 }
 0x167   :  { %v5166_v11 = vadd.f32 %v5165_v7, %v5164_v37  ;;  %v5167_v46 = vpop.f32.mrb[58].mxu1  ;;  %v5240_v15 = vpop.f32.mrb[56].mxu0  ;;  %v6345_v37 = vld [vmem:[%s8170_s1 + $0x668] sm:$0xff]   ;;  %v6320_v7 = vld [vmem:[%s8170_s1 + $0x598] sm:$0xff]  }
 0x168   :  { %v5168_v21 = vpop.f32.mrb[59].mxu1  ;;  %v5241_v13 = vpop.f32.mrb[57].mxu0 }
 0x169   :  { %v3440_v24 = vadd.f32 %v5166_v11, %v7357_v58  ;;  %v5169_v25 = vadd.f32 %v5168_v21, %v5167_v46  ;;  %v5242_v27 = vadd.f32 %v5241_v13, %v5240_v15  ;;  %v5243_v28 = vpop.f32.mrb[58].mxu0  ;;  %5781 = vmatpush3.bf16.msra.mxu0 %v6302_v26  ;;  %v6307_v15 = vld [vmem:[%s8171_s0 + $0x1e8] ss:$104 sps:$4 sm:$0xff]  }
 0x16a   :  { %4068 = vmatmul.mubr.bf16.vlgmr.msra.gmra.mrb[164].mxu1 %v6283_v18  ;;  %v5244_v32 = vpop.f32.mrb[59].mxu0  ;;  %5782 = vmatprep.subr.bf16.mxu0 %v6311_v9  ;;  %v6329_v9 = vld [vmem:[%s8170_s1 + $0x5e0] sm:$0xff]  }
 0x16b   :  { %v7625_v34 = vadd.f32 %v5236_v56, %v3440_v24  ;;  %v3443_v30 = vadd.f32 %v5169_v25, %v7365_v1  ;;  %5709 = vmatpush3.bf16.msra.mxu1 %v6290_v6  ;;  %v5245_v58 = vadd.f32 %v5244_v32, %v5243_v28  ;;  %4075 = vmatprep.mubr.bf16.mxu1 %v6293_v4  ;;  %v6315_v56 = vld [vmem:[%s8171_s0 + $0x2c4] ss:$104 sps:$4 sm:$0xff]   ;;  %v6318_v28 = vld [vmem:[%s8171_s0 + $0x2c0] ss:$104 sps:$4 sm:$0xff]  }
 0x16c   :  { %4181 = vmatmul.mubr.bf16.gmra.mrb[164].mxu0 %v6298_v16  ;;  %5710 = vmatprep.subr.bf16.mxu1 %v6299_v19  ;;  %v6357_v16 = vld [vmem:[%s8170_s1 + $0x670] sm:$0xff]   ;;  %v6330_v24 = vld [vmem:[%s8170_s1 + $0x5a0] sm:$0xff]  }
 0x16d   :  { %v7637_v40 = vadd.f32 %v5239_v0, %v3443_v30  ;;  %v5170_v1 = vpop.f32.mrb[60].mxu1  ;;  %4188 = vmatprep.mubr.bf16.mxu0 %v6305_v23  ;;  %5783 = vmatpush3.bf16.msra.mxu0 %v6312_v31  ;;  %v6336_v0 = vld [vmem:[%s8170_s1 + $0x620] sm:$0xff]   ;;  %v6339_v31 = vld [vmem:[%s8170_s1 + $0x5e8] sm:$0xff]  }
 0x16e   :  { %v5171_v43 = vpop.f32.mrb[61].mxu1  ;;  %5784 = vmatprep.subr.bf16.mxu0 %v6321_v33  ;;  %v6313_v23 = vld [vmem:[%s8171_s0 + $0x2bc] ss:$104 sps:$4 sm:$0xff]  }
 0x16f   :  { %v5172_v29 = vadd.f32 %v5171_v43, %v5170_v1  ;;  %v5173_v50 = vpop.f32.mrb[62].mxu1  ;;  %5711 = vmatpush3.bf16.msra.mxu1 %v6300_v53  ;;  %v5246_v51 = vpop.f32.mrb[60].mxu0  ;;  %v6325_v53 = vld [vmem:[%s8171_s0 + $0x394] ss:$104 sps:$4 sm:$0xff]   ;;  %v6340_v43 = vld [vmem:[%s8170_s1 + $0x5a8] sm:$0xff]  }
 0x170   :  { %v5174_v52 = vpop.f32.mrb[63].mxu1  ;;  %v5247_v54 = vpop.f32.mrb[61].mxu0  ;;  %5712 = vmatprep.subr.bf16.mxu1 %v6309_v22  ;;  %v6367_v1 = vld [vmem:[%s8170_s1 + $0x678] sm:$0xff]  }
 0x171   :  { %v3448_v14 = vadd.f32 %v5172_v29, %v7401_v35  ;;  %v5175_v59 = vadd.f32 %v5174_v52, %v5173_v50  ;;  %v5248_v60 = vadd.f32 %v5247_v54, %v5246_v51  ;;  %v5249_v61 = vpop.f32.mrb[62].mxu0  ;;  %5785 = vmatpush3.bf16.msra.mxu0 %v6322_v3  ;;  %v6317_v51 = vld [vmem:[%s8171_s0 + $0x2b8] ss:$104 sps:$4 sm:$0xff]  }
 0x172   :  { %4076 = vmatmul.mubr.bf16.gmra.mrb[168].mxu1 %v6297_v38  ;;  %v5250_v18 = vpop.f32.mrb[63].mxu0  ;;  %5786 = vmatprep.subr.bf16.mxu0 %v6331_v48  ;;  %v6358_v38 = vld [vmem:[%s8170_s1 + $0x630] sm:$0xff]  }
 0x173   :  { %v7667_v4 = vadd.f32 %v5242_v27, %v3448_v14  ;;  %v3451_v26 = vadd.f32 %v5175_v59, %v7409_v42  ;;  %v5251_v35 = vadd.f32 %v5250_v18, %v5249_v61  ;;  %4083 = vmatprep.mubr.bf16.mxu1 %v6303_v62  ;;  %5713 = vmatpush3.bf16.msra.mxu1 %v6310_v63  ;;  %v6348_v42 = vld [vmem:[%s8170_s1 + $0x628] sm:$0xff]   ;;  %v6363_v61 = vld [vmem:[%s8170_s1 + $0x5f8] sm:$0xff]  }
 0x174   :  { %4189 = vmatmul.mubr.bf16.gmra.mrb[168].mxu0 %v6308_v44  ;;  %5714 = vmatprep.subr.bf16.mxu1 %v6319_v57  ;;  %v6349_v44 = vld [vmem:[%s8170_s1 + $0x5f0] sm:$0xff]  }
 0x175   :  { %v7676_v11 = vadd.f32 %v5245_v58, %v3451_v26  ;;  %v5176_v46 = vpop.f32.mrb[64].mxu1  ;;  %4196 = vmatprep.mubr.bf16.mxu0 %v6315_v56  ;;  %5787 = vmatpush3.bf16.msra.mxu0 %v6336_v0  ;;  %v6323_v56 = vld [vmem:[%s8171_s0 + $0x38c] ss:$104 sps:$4 sm:$0xff]  }
 0x176   :  { %v5177_v6 = vpop.f32.mrb[65].mxu1  ;;  %5788 = vmatprep.subr.bf16.mxu0 %v6345_v37  ;;  %v6354_v57 = vld [vmem:[%s8170_s1 + $0x5b0] sm:$0xff]  }
 0x177   :  { %v5178_v19 = vadd.f32 %v5177_v6, %v5176_v46  ;;  %v5179_v21 = vpop.f32.mrb[66].mxu1  ;;  %v5252_v13 = vpop.f32.mrb[64].mxu0  ;;  %5715 = vmatpush3.bf16.msra.mxu1 %v6320_v7 }
 0x178   :  { %v5180_v25 = vpop.f32.mrb[67].mxu1  ;;  %v5253_v27 = vpop.f32.mrb[65].mxu0  ;;  %5716 = vmatprep.subr.bf16.mxu1 %v6329_v9 }
 0x179   :  { %v3456_v32 = vadd.f32 %v5178_v19, %v7442_v10  ;;  %v5181_v33 = vadd.f32 %v5180_v25, %v5179_v21  ;;  %v5254_v30 = vadd.f32 %v5253_v27, %v5252_v13  ;;  %v5255_v58 = vpop.f32.mrb[66].mxu0  ;;  %5789 = vmatpush3.bf16.msra.mxu0 %v6348_v42  ;;  %v6327_v19 = vld [vmem:[%s8171_s0 + $0x388] ss:$104 sps:$4 sm:$0xff]  }
 0x17a   :  { %4084 = vmatmul.mubr.bf16.gmra.mrb[172].mxu1 %v6307_v15  ;;  %v5256_v22 = vpop.f32.mrb[67].mxu0  ;;  %5790 = vmatprep.subr.bf16.mxu0 %v6357_v16  ;;  %v6338_v27 = vld [vmem:[%s8171_s0 + $0x460] ss:$104 sps:$4 sm:$0xff]  }
 0x17b   :  { %v7709_v10 = vadd.f32 %v5248_v60, %v3456_v32  ;;  %v3459_v62 = vadd.f32 %v5181_v33, %v7453_v17  ;;  %v5257_v3 = vadd.f32 %v5256_v22, %v5255_v58  ;;  %4091 = vmatprep.mubr.bf16.mxu1 %v6313_v23  ;;  %5717 = vmatpush3.bf16.msra.mxu1 %v6330_v24  ;;  %v6368_v17 = vld [vmem:[%s8170_s1 + $0x638] sm:$0xff]  }
 0x17c   :  { %4197 = vmatmul.mubr.bf16.gmra.mrb[172].mxu0 %v6318_v28  ;;  %5718 = vmatprep.subr.bf16.mxu1 %v6339_v31  ;;  %v6328_v60 = vld [vmem:[%s8171_s0 + $0x390] ss:$104 sps:$4 sm:$0xff]   ;;  %v6332_v23 = vld [vmem:[%s8171_s0 + $0x45c] ss:$104 sps:$4 sm:$0xff]  }
 0x17d   :  { %v7718_v48 = vadd.f32 %v5251_v35, %v3459_v62  ;;  %v5182_v29 = vpop.f32.mrb[68].mxu1  ;;  %4204 = vmatprep.mubr.bf16.mxu0 %v6325_v53  ;;  %5791 = vmatpush3.bf16.msra.mxu0 %v6358_v38  ;;  %v6334_v35 = vld [vmem:[%s8171_s0 + $0x464] ss:$104 sps:$4 sm:$0xff]  }
 0x17e   :  { %v5183_v50 = vpop.f32.mrb[69].mxu1  ;;  %5792 = vmatprep.subr.bf16.mxu0 %v6367_v1 }
 0x17f   :  { %v5184_v63 = vadd.f32 %v5183_v50, %v5182_v29  ;;  %v5185_v52 = vpop.f32.mrb[70].mxu1  ;;  %v5258_v54 = vpop.f32.mrb[68].mxu0  ;;  %5719 = vmatpush3.bf16.msra.mxu1 %v6340_v43 }
 0x180   :  { %v5186_v14 = vpop.f32.mrb[71].mxu1  ;;  %v5259_v59 = vpop.f32.mrb[69].mxu0  ;;  %5720 = vmatprep.subr.bf16.mxu1 %v6349_v44 }
 0x181   :  { %v3464_v0 = vadd.f32 %v5184_v63, %v7483_v49  ;;  %v5187_v18 = vadd.f32 %v5186_v14, %v5185_v52  ;;  %v5260_v37 = vadd.f32 %v5259_v59, %v5258_v54  ;;  %v5261_v26 = vpop.f32.mrb[70].mxu0  ;;  %5793 = vmatpush3.bf16.msra.mxu0 %v6368_v17  ;;  %v6366_v49 = vld [vmem:[%s8170_s1 + $0x5b8] sm:$0xff]   ;;  %v6341_v17 = vld [vmem:[%s8171_s0 + $0x52c] ss:$104 sps:$4 sm:$0xff]  }
 0x182   :  { %4092 = vmatmul.mubr.bf16.gmra.mrb[176].mxu1 %v6317_v51  ;;  %v5262_v7 = vpop.f32.mrb[71].mxu0  ;;  %v6347_v51 = vld [vmem:[%s8171_s0 + $0x530] ss:$104 sps:$4 sm:$0xff]  }
 0x183   :  { %v7742_v9 = vadd.f32 %v5254_v30, %v3464_v0  ;;  %v3467_v46 = vadd.f32 %v5187_v18, %v7488_v8  ;;  %v5263_v42 = vadd.f32 %v5262_v7, %v5261_v26  ;;  %4099 = vmatprep.mubr.bf16.mxu1 %v6323_v56  ;;  %5721 = vmatpush3.bf16.msra.mxu1 %v6354_v57  ;;  %v6343_v30 = vld [vmem:[%s8171_s0 + $0x534] ss:$104 sps:$4 sm:$0xff]   ;;  %v6352_v57 = vld [vmem:[%s8171_s0 + $0x604] ss:$104 sps:$4 sm:$0xff]  }
 0x184   :  { %4205 = vmatmul.mubr.bf16.gmra.mrb[176].mxu0 %v6328_v60  ;;  %5722 = vmatprep.subr.bf16.mxu1 %v6363_v61 }
 0x185   :  { %v7748_v6 = vadd.f32 %v5257_v3, %v3467_v46  ;;  %v5188_v15 = vpop.f32.mrb[72].mxu1  ;;  %4212 = vmatprep.mubr.bf16.mxu0 %v6334_v35  ;;  %v6337_v3 = vld [vmem:[%s8171_s0 + $0x458] ss:$104 sps:$4 sm:$0xff]   ;;  %v6350_v46 = vld [vmem:[%s8171_s0 + $0x5fc] ss:$104 sps:$4 sm:$0xff]  }
 0x186   :  { %v5189_v16 = vpop.f32.mrb[73].mxu1 }
 0x187   :  { %v5190_v21 = vadd.f32 %v5189_v16, %v5188_v15  ;;  %v5191_v8 = vpop.f32.mrb[74].mxu1  ;;  %v5264_v13 = vpop.f32.mrb[72].mxu0  ;;  %5723 = vmatpush3.bf16.msra.mxu1 %v6366_v49  ;;  %v6356_v49 = vld [vmem:[%s8171_s0 + $0x600] ss:$104 sps:$4 sm:$0xff]  }
 0x188   :  { %v5192_v24 = vpop.f32.mrb[75].mxu1  ;;  %v5265_v25 = vpop.f32.mrb[73].mxu0 }
 0x189   :  { %v3472_v28 = vadd.f32 %v5190_v21, %v7506_v12  ;;  %v5193_v31 = vadd.f32 %v5192_v24, %v5191_v8  ;;  %v5266_v32 = vadd.f32 %v5265_v25, %v5264_v13  ;;  %v5267_v33 = vpop.f32.mrb[74].mxu0  ;;  %v6361_v8 = vld [vmem:[%s8171_s0 + $0x6d4] ss:$104 sps:$4 sm:$0xff]  }
 0x18a   :  { %4100 = vmatmul.mubr.bf16.gmra.mrb[180].mxu1 %v6327_v19  ;;  %v5268_v58 = vpop.f32.mrb[75].mxu0 }
 0x18b   :  { %v7763_v53 = vadd.f32 %v5260_v37, %v3472_v28  ;;  %v3475_v38 = vadd.f32 %v5193_v31, %v7511_v20  ;;  %v5269_v22 = vadd.f32 %v5268_v58, %v5267_v33  ;;  %4107 = vmatprep.mubr.bf16.mxu1 %v6332_v23  ;;  %v6346_v37 = vld [vmem:[%s8171_s0 + $0x528] ss:$104 sps:$4 sm:$0xff]   ;;  %v6355_v31 = vld [vmem:[%s8171_s0 + $0x5f8] ss:$104 sps:$4 sm:$0xff]   ;;  %v6359_v58 = vld [vmem:[%s8171_s0 + $0x6cc] ss:$104 sps:$4 sm:$0xff]  }
 0x18c   :  { %4213 = vmatmul.mubr.bf16.gmra.mrb[180].mxu0 %v6338_v27 }
 0x18d   :  { %v7766_v1 = vadd.f32 %v5263_v42, %v3475_v38  ;;  %v5194_v62 = vpop.f32.mrb[76].mxu1  ;;  %4220 = vmatprep.mubr.bf16.mxu0 %v6343_v30 }
 0x18e   :  { %v5195_v12 = vpop.f32.mrb[77].mxu1 }
 0x18f   :  { %v5196_v43 = vadd.f32 %v5195_v12, %v5194_v62  ;;  %v5197_v44 = vpop.f32.mrb[78].mxu1  ;;  %v5270_v29 = vpop.f32.mrb[76].mxu0 }
 0x190   :  { %v5198_v20 = vpop.f32.mrb[79].mxu1  ;;  %v5271_v50 = vpop.f32.mrb[77].mxu0 }
 0x191   :  { %v3480_v63 = vadd.f32 %v5196_v43, %v7526_v41  ;;  %v5199_v52 = vadd.f32 %v5198_v20, %v5197_v44  ;;  %v5272_v54 = vadd.f32 %v5271_v50, %v5270_v29  ;;  %v5273_v56 = vpop.f32.mrb[78].mxu0  ;;  %v6374_v44 = vld [vmem:[%s8171_s0 + $0x64] ss:$104 sps:$4 sm:$0xff]  }
 0x192   :  { %4108 = vmatmul.mubr.bf16.gmra.mrb[184].mxu1 %v6337_v3  ;;  %v5274_v14 = vpop.f32.mrb[79].mxu0 }
 0x193   :  { %v7781_v59 = vadd.f32 %v5266_v32, %v3480_v63  ;;  %v3483_v60 = vadd.f32 %v5199_v52, %v7528_v47  ;;  %v5275_v61 = vadd.f32 %v5274_v14, %v5273_v56  ;;  %4115 = vmatprep.mubr.bf16.mxu1 %v6341_v17  ;;  %v6364_v52 = vld [vmem:[%s8171_s0 + $0x6c8] ss:$104 sps:$4 sm:$0xff]   ;;  %v6371_v14 = vld [vmem:[%s8171_s0 + $0x5c] ss:$104 sps:$4 sm:$0xff]  }
 0x194   :  { %4221 = vmatmul.mubr.bf16.gmra.mrb[184].mxu0 %v6347_v51 }
 0x195   :  { %v7784_v0 = vadd.f32 %v5269_v22, %v3483_v60  ;;  %v5200_v18 = vpop.f32.mrb[80].mxu1  ;;  %4228 = vmatprep.mubr.bf16.mxu0 %v6352_v57  ;;  %v6365_v22 = vld [vmem:[%s8171_s0 + $0x6d0] ss:$104 sps:$4 sm:$0xff]  }
 0x196   :  { %v5201_v41 = vpop.f32.mrb[81].mxu1 }
 0x197   :  { %v5202_v26 = vadd.f32 %v5201_v41, %v5200_v18  ;;  %v5203_v35 = vpop.f32.mrb[82].mxu1  ;;  %v5276_v7 = vpop.f32.mrb[80].mxu0 }
 0x198   :  { %v5204_v47 = vpop.f32.mrb[83].mxu1  ;;  %v5277_v42 = vpop.f32.mrb[81].mxu0 }
 0x199   :  { %v3488_v15 = vadd.f32 %v5202_v26, %v7546_v5  ;;  %v5205_v16 = vadd.f32 %v5204_v47, %v5203_v35  ;;  %v5278_v19 = vadd.f32 %v5277_v42, %v5276_v7  ;;  %v5279_v21 = vpop.f32.mrb[82].mxu0  ;;  %v6377_v35 = vld [vmem:[%s8171_s0 + $0x134] ss:$104 sps:$4 sm:$0xff]  }
 0x19a   :  { %4116 = vmatmul.mubr.bf16.gmra.mrb[188].mxu1 %v6346_v37  ;;  %v5280_v13 = vpop.f32.mrb[83].mxu0 }
 0x19b   :  { %v7799_v23 = vadd.f32 %v5272_v54, %v3488_v15  ;;  %v3491_v24 = vadd.f32 %v5205_v16, %v7551_v45  ;;  %v5281_v25 = vadd.f32 %v5280_v13, %v5279_v21  ;;  %4123 = vmatprep.mubr.bf16.mxu1 %v6350_v46  ;;  %v6369_v16 = vld [vmem:[%s8171_s0 + $0x58] ss:$104 sps:$4 sm:$0xff]   ;;  %v6375_v13 = vld [vmem:[%s8171_s0 + $0x12c] ss:$104 sps:$4 sm:$0xff]  }
 0x19c   :  { %4229 = vmatmul.mubr.bf16.gmra.mrb[188].mxu0 %v6356_v49 }
 0x19d   :  { %v7802_v27 = vadd.f32 %v5275_v61, %v3491_v24  ;;  %v5206_v28 = vpop.f32.mrb[84].mxu1  ;;  %4236 = vmatprep.mubr.bf16.mxu0 %v6361_v8  ;;  %v6372_v61 = vld [vmem:[%s8171_s0 + $0x60] ss:$104 sps:$4 sm:$0xff]  }
 0x19e   :  { %v5207_v5 = vpop.f32.mrb[85].mxu1 }
 0x19f   :  { %v5208_v32 = vadd.f32 %v5207_v5, %v5206_v28  ;;  %v5209_v33 = vpop.f32.mrb[86].mxu1  ;;  %v5282_v30 = vpop.f32.mrb[84].mxu0 }
 0x1a0   :  { %v5210_v45 = vpop.f32.mrb[87].mxu1  ;;  %v5283_v38 = vpop.f32.mrb[85].mxu0 }
 0x1a1   :  { %v3496_v62 = vadd.f32 %v5208_v32, %v7566_v36  ;;  %v5211_v12 = vadd.f32 %v5210_v45, %v5209_v33  ;;  %v5284_v3 = vadd.f32 %v5283_v38, %v5282_v30  ;;  %v5285_v43 = vpop.f32.mrb[86].mxu0  ;;  %v6383_v33 = vld [vmem:[%s8171_s0 + $0x204] ss:$104 sps:$4 sm:$0xff]  }
 0x1a2   :  { %4124 = vmatmul.mubr.bf16.gmra.mrb[192].mxu1 %v6355_v31  ;;  %v5286_v29 = vpop.f32.mrb[87].mxu0 }
 0x1a3   :  { %v7817_v17 = vadd.f32 %v5278_v19, %v3496_v62  ;;  %v3499_v20 = vadd.f32 %v5211_v12, %v7568_v55  ;;  %v5287_v50 = vadd.f32 %v5286_v29, %v5285_v43  ;;  %4131 = vmatprep.mubr.bf16.mxu1 %v6359_v58  ;;  %v6379_v12 = vld [vmem:[%s8171_s0 + $0x128] ss:$104 sps:$4 sm:$0xff]   ;;  %v6381_v29 = vld [vmem:[%s8171_s0 + $0x1fc] ss:$104 sps:$4 sm:$0xff]  }
 0x1a4   :  { %4237 = vmatmul.mubr.bf16.gmra.mrb[192].mxu0 %v6365_v22 }
 0x1a5   :  { %v7820_v51 = vadd.f32 %v5281_v25, %v3499_v20  ;;  %v5212_v63 = vpop.f32.mrb[88].mxu1  ;;  %4382 = vmatprep.mubr.bf16.mxu0 %v6374_v44  ;;  %v6380_v25 = vld [vmem:[%s8171_s0 + $0x130] ss:$104 sps:$4 sm:$0xff]  }
 0x1a6   :  { %v5213_v36 = vpop.f32.mrb[89].mxu1 }
 0x1a7   :  { %v5214_v54 = vadd.f32 %v5213_v36, %v5212_v63  ;;  %v5215_v56 = vpop.f32.mrb[90].mxu1  ;;  %v5374_v57 = vpop.f32.mrb[88].mxu0 }
 0x1a8   :  { %v5216_v55 = vpop.f32.mrb[91].mxu1  ;;  %v5375_v60 = vpop.f32.mrb[89].mxu0 }
 0x1a9   :  { %v3504_v18 = vadd.f32 %v5214_v54, %v7589_v39  ;;  %v5217_v41 = vadd.f32 %v5216_v55, %v5215_v56  ;;  %v5376_v37 = vadd.f32 %v5375_v60, %v5374_v57  ;;  %v5377_v26 = vpop.f32.mrb[90].mxu0  ;;  %v6389_v56 = vld [vmem:[%s8171_s0 + $0x2d4] ss:$104 sps:$4 sm:$0xff]  }
 0x1aa   :  { %4132 = vmatmul.mubr.bf16.gmra.mrb[196].mxu1 %v6364_v52  ;;  %v5378_v7 = vpop.f32.mrb[91].mxu0 }
 0x1ab   :  { %v7835_v46 = vadd.f32 %v5284_v3, %v3504_v18  ;;  %v3507_v47 = vadd.f32 %v5217_v41, %v7595_v2  ;;  %v5379_v42 = vadd.f32 %v5378_v7, %v5377_v26  ;;  %4277 = vmatprep.mubr.bf16.mxu1 %v6371_v14  ;;  %v6385_v41 = vld [vmem:[%s8171_s0 + $0x1f8] ss:$104 sps:$4 sm:$0xff]   ;;  %v6387_v7 = vld [vmem:[%s8171_s0 + $0x2cc] ss:$104 sps:$4 sm:$0xff]  }
 0x1ac   :  { %4383 = vmatmul.mubr.bf16.vlgmr.msra.gmra.mrb[196].mxu0 %v6372_v61 }
 0x1ad   :  { %v7838_v49 = vadd.f32 %v5287_v50, %v3507_v47  ;;  %v5304_v15 = vpop.f32.mrb[92].mxu1  ;;  %4390 = vmatprep.mubr.bf16.mxu0 %v6377_v35  ;;  %v6386_v50 = vld [vmem:[%s8171_s0 + $0x200] ss:$104 sps:$4 sm:$0xff]  }
 0x1ae   :  { %v5305_v39 = vpop.f32.mrb[93].mxu1 }
 0x1af   :  { %v5306_v19 = vadd.f32 %v5305_v39, %v5304_v15  ;;  %v5307_v21 = vpop.f32.mrb[94].mxu1  ;;  %v5380_v8 = vpop.f32.mrb[92].mxu0 }
 0x1b0   :  { %v5308_v2 = vpop.f32.mrb[95].mxu1  ;;  %v5381_v24 = vpop.f32.mrb[93].mxu0 }
 0x1b1   :  { %v3650_v28 = vadd.f32 %v5306_v19, %v7625_v34  ;;  %v5309_v5 = vadd.f32 %v5308_v2, %v5307_v21  ;;  %v5382_v31 = vadd.f32 %v5381_v24, %v5380_v8  ;;  %v5383_v32 = vpop.f32.mrb[94].mxu0  ;;  %v6395_v21 = vld [vmem:[%s8171_s0 + $0x3a4] ss:$104 sps:$4 sm:$0xff]  }
 0x1b2   :  { %4278 = vmatmul.mubr.bf16.vlgmr.msra.gmra.mrb[200].mxu1 %v6369_v16  ;;  %v5384_v30 = vpop.f32.mrb[95].mxu0 }
 0x1b3   :  { %v7853_v58 = vadd.f32 %v5376_v37, %v3650_v28  ;;  %v3653_v45 = vadd.f32 %v5309_v5, %v7637_v40  ;;  %v5385_v38 = vadd.f32 %v5384_v30, %v5383_v32  ;;  %4285 = vmatprep.mubr.bf16.mxu1 %v6375_v13  ;;  %v6391_v5 = vld [vmem:[%s8171_s0 + $0x2c8] ss:$104 sps:$4 sm:$0xff]   ;;  %v6393_v30 = vld [vmem:[%s8171_s0 + $0x39c] ss:$104 sps:$4 sm:$0xff]  }
 0x1b4   :  { %4391 = vmatmul.mubr.bf16.gmra.mrb[200].mxu0 %v6380_v25 }
 0x1b5   :  { %v7856_v22 = vadd.f32 %v5379_v42, %v3653_v45  ;;  %v5310_v62 = vpop.f32.mrb[96].mxu1  ;;  %4398 = vmatprep.mubr.bf16.mxu0 %v6383_v33  ;;  %v6392_v42 = vld [vmem:[%s8171_s0 + $0x2d0] ss:$104 sps:$4 sm:$0xff]  }
 0x1b6   :  { %v5311_v34 = vpop.f32.mrb[97].mxu1 }
 0x1b7   :  { %v5312_v3 = vadd.f32 %v5311_v34, %v5310_v62  ;;  %v5313_v43 = vpop.f32.mrb[98].mxu1  ;;  %v5386_v44 = vpop.f32.mrb[96].mxu0 }
 0x1b8   :  { %v5314_v40 = vpop.f32.mrb[99].mxu1  ;;  %v5387_v20 = vpop.f32.mrb[97].mxu0 }
 0x1b9   :  { %v3658_v63 = vadd.f32 %v5312_v3, %v7667_v4  ;;  %v5315_v36 = vadd.f32 %v5314_v40, %v5313_v43  ;;  %v5388_v52 = vadd.f32 %v5387_v20, %v5386_v44  ;;  %v5389_v54 = vpop.f32.mrb[98].mxu0  ;;  %v6401_v43 = vld [vmem:[%s8171_s0 + $0x474] ss:$104 sps:$4 sm:$0xff]  }
 0x1ba   :  { %4286 = vmatmul.mubr.bf16.gmra.mrb[204].mxu1 %v6379_v12  ;;  %v5390_v57 = vpop.f32.mrb[99].mxu0 }
 0x1bb   :  { %v7871_v14 = vadd.f32 %v5382_v31, %v3658_v63  ;;  %v3661_v55 = vadd.f32 %v5315_v36, %v7676_v11  ;;  %v5391_v60 = vadd.f32 %v5390_v57, %v5389_v54  ;;  %4293 = vmatprep.mubr.bf16.mxu1 %v6381_v29  ;;  %v6397_v36 = vld [vmem:[%s8171_s0 + $0x398] ss:$104 sps:$4 sm:$0xff]   ;;  %v6399_v57 = vld [vmem:[%s8171_s0 + $0x46c] ss:$104 sps:$4 sm:$0xff]  }
 0x1bc   :  { %4399 = vmatmul.mubr.bf16.gmra.mrb[204].mxu0 %v6386_v50 }
 0x1bd   :  { %v7874_v61 = vadd.f32 %v5385_v38, %v3661_v55  ;;  %v5316_v18 = vpop.f32.mrb[100].mxu1  ;;  %4406 = vmatprep.mubr.bf16.mxu0 %v6389_v56  ;;  %v6398_v38 = vld [vmem:[%s8171_s0 + $0x3a0] ss:$104 sps:$4 sm:$0xff]  }
 0x1be   :  { %v5317_v4 = vpop.f32.mrb[101].mxu1 }
 0x1bf   :  { %v5318_v37 = vadd.f32 %v5317_v4, %v5316_v18  ;;  %v5319_v26 = vpop.f32.mrb[102].mxu1  ;;  %v5392_v35 = vpop.f32.mrb[100].mxu0 }
 0x1c0   :  { %v5320_v11 = vpop.f32.mrb[103].mxu1  ;;  %v5393_v47 = vpop.f32.mrb[101].mxu0 }
 0x1c1   :  { %v3666_v15 = vadd.f32 %v5318_v37, %v7709_v10  ;;  %v5321_v39 = vadd.f32 %v5320_v11, %v5319_v26  ;;  %v5394_v16 = vadd.f32 %v5393_v47, %v5392_v35  ;;  %v5395_v19 = vpop.f32.mrb[102].mxu0  ;;  %v6407_v26 = vld [vmem:[%s8171_s0 + $0x544] ss:$104 sps:$4 sm:$0xff]  }
 0x1c2   :  { %4294 = vmatmul.mubr.bf16.gmra.mrb[208].mxu1 %v6385_v41  ;;  %v5396_v8 = vpop.f32.mrb[103].mxu0 }
 0x1c3   :  { %v7889_v13 = vadd.f32 %v5388_v52, %v3666_v15  ;;  %v3669_v2 = vadd.f32 %v5321_v39, %v7718_v48  ;;  %v5397_v24 = vadd.f32 %v5396_v8, %v5395_v19  ;;  %4301 = vmatprep.mubr.bf16.mxu1 %v6387_v7  ;;  %v6403_v39 = vld [vmem:[%s8171_s0 + $0x468] ss:$104 sps:$4 sm:$0xff]   ;;  %v6405_v8 = vld [vmem:[%s8171_s0 + $0x53c] ss:$104 sps:$4 sm:$0xff]  }
 0x1c4   :  { %4407 = vmatmul.mubr.bf16.gmra.mrb[208].mxu0 %v6392_v42 }
 0x1c5   :  { %v7892_v25 = vadd.f32 %v5391_v60, %v3669_v2  ;;  %v5322_v28 = vpop.f32.mrb[104].mxu1  ;;  %4414 = vmatprep.mubr.bf16.mxu0 %v6395_v21  ;;  %v6404_v60 = vld [vmem:[%s8171_s0 + $0x470] ss:$104 sps:$4 sm:$0xff]  }
 0x1c6   :  { %v5323_v10 = vpop.f32.mrb[105].mxu1 }
 0x1c7   :  { %v5324_v31 = vadd.f32 %v5323_v10, %v5322_v28  ;;  %v5325_v32 = vpop.f32.mrb[106].mxu1  ;;  %v5398_v33 = vpop.f32.mrb[104].mxu0 }
 0x1c8   :  { %v5326_v48 = vpop.f32.mrb[107].mxu1  ;;  %v5399_v45 = vpop.f32.mrb[105].mxu0 }
 0x1c9   :  { %v3674_v62 = vadd.f32 %v5324_v31, %v7742_v9  ;;  %v5327_v34 = vadd.f32 %v5326_v48, %v5325_v32  ;;  %v5400_v12 = vadd.f32 %v5399_v45, %v5398_v33  ;;  %v5401_v3 = vpop.f32.mrb[106].mxu0  ;;  %v6413_v32 = vld [vmem:[%s8171_s0 + $0x614] ss:$104 sps:$4 sm:$0xff]  }
 0x1ca   :  { %4302 = vmatmul.mubr.bf16.gmra.mrb[212].mxu1 %v6391_v5  ;;  %v5402_v44 = vpop.f32.mrb[107].mxu0 }
 0x1cb   :  { %v7907_v29 = vadd.f32 %v5394_v16, %v3674_v62  ;;  %v3677_v40 = vadd.f32 %v5327_v34, %v7748_v6  ;;  %v5403_v20 = vadd.f32 %v5402_v44, %v5401_v3  ;;  %4309 = vmatprep.mubr.bf16.mxu1 %v6393_v30  ;;  %v6409_v34 = vld [vmem:[%s8171_s0 + $0x538] ss:$104 sps:$4 sm:$0xff]   ;;  %v6411_v44 = vld [vmem:[%s8171_s0 + $0x60c] ss:$104 sps:$4 sm:$0xff]  }
 0x1cc   :  { %4415 = vmatmul.mubr.bf16.gmra.mrb[212].mxu0 %v6398_v38 }
 0x1cd   :  { %v7910_v50 = vadd.f32 %v5397_v24, %v3677_v40  ;;  %v5328_v63 = vpop.f32.mrb[108].mxu1  ;;  %4422 = vmatprep.mubr.bf16.mxu0 %v6401_v43  ;;  %v6410_v24 = vld [vmem:[%s8171_s0 + $0x540] ss:$104 sps:$4 sm:$0xff]  }
 0x1ce   :  { %v5329_v9 = vpop.f32.mrb[109].mxu1 }
 0x1cf   :  { %v5330_v52 = vadd.f32 %v5329_v9, %v5328_v63  ;;  %v5331_v54 = vpop.f32.mrb[110].mxu1  ;;  %v5404_v56 = vpop.f32.mrb[108].mxu0 }
 0x1d0   :  { %v5332_v6 = vpop.f32.mrb[111].mxu1  ;;  %v5405_v55 = vpop.f32.mrb[109].mxu0 }
 0x1d1   :  { %v3682_v18 = vadd.f32 %v5330_v52, %v7763_v53  ;;  %v5333_v4 = vadd.f32 %v5332_v6, %v5331_v54  ;;  %v5406_v41 = vadd.f32 %v5405_v55, %v5404_v56  ;;  %v5407_v37 = vpop.f32.mrb[110].mxu0  ;;  %v6419_v54 = vld [vmem:[%s8171_s0 + $0x6e4] ss:$104 sps:$4 sm:$0xff]  }
 0x1d2   :  { %4310 = vmatmul.mubr.bf16.gmra.mrb[216].mxu1 %v6397_v36  ;;  %v5408_v35 = vpop.f32.mrb[111].mxu0 }
 0x1d3   :  { %v7925_v7 = vadd.f32 %v5400_v12, %v3682_v18  ;;  %v3685_v11 = vadd.f32 %v5333_v4, %v7766_v1  ;;  %v5409_v47 = vadd.f32 %v5408_v35, %v5407_v37  ;;  %4317 = vmatprep.mubr.bf16.mxu1 %v6399_v57  ;;  %v6415_v4 = vld [vmem:[%s8171_s0 + $0x608] ss:$104 sps:$4 sm:$0xff]   ;;  %v6417_v35 = vld [vmem:[%s8171_s0 + $0x6dc] ss:$104 sps:$4 sm:$0xff]  }
 0x1d4   :  { %4423 = vmatmul.mubr.bf16.gmra.mrb[216].mxu0 %v6404_v60 }
 0x1d5   :  { %v7928_v42 = vadd.f32 %v5403_v20, %v3685_v11  ;;  %v5334_v15 = vpop.f32.mrb[112].mxu1  ;;  %4430 = vmatprep.mubr.bf16.mxu0 %v6407_v26  ;;  %v6416_v20 = vld [vmem:[%s8171_s0 + $0x610] ss:$104 sps:$4 sm:$0xff]  }
 0x1d6   :  { %v5335_v53 = vpop.f32.mrb[113].mxu1 }
 0x1d7   :  { %v5336_v16 = vadd.f32 %v5335_v53, %v5334_v15  ;;  %v5337_v19 = vpop.f32.mrb[114].mxu1  ;;  %v5410_v21 = vpop.f32.mrb[112].mxu0 }
 0x1d8   :  { %v5338_v1 = vpop.f32.mrb[115].mxu1  ;;  %v5411_v2 = vpop.f32.mrb[113].mxu0 }
 0x1d9   :  { %v3690_v28 = vadd.f32 %v5336_v16, %v7781_v59  ;;  %v5339_v10 = vadd.f32 %v5338_v1, %v5337_v19  ;;  %v5412_v5 = vadd.f32 %v5411_v2, %v5410_v21  ;;  %v5413_v31 = vpop.f32.mrb[114].mxu0 }
 0x1da   :  { %4318 = vmatmul.mubr.bf16.gmra.mrb[220].mxu1 %v6403_v39  ;;  %v5414_v33 = vpop.f32.mrb[115].mxu0 }
 0x1db   :  { %v7943_v30 = vadd.f32 %v5406_v41, %v3690_v28  ;;  %v3693_v48 = vadd.f32 %v5339_v10, %v7784_v0  ;;  %v5415_v45 = vadd.f32 %v5414_v33, %v5413_v31  ;;  %4325 = vmatprep.mubr.bf16.mxu1 %v6405_v8 }
 0x1dc   :  { %4431 = vmatmul.mubr.bf16.gmra.mrb[220].mxu0 %v6410_v24 }
 0x1dd   :  { %v7946_v38 = vadd.f32 %v5409_v47, %v3693_v48  ;;  %v5340_v62 = vpop.f32.mrb[116].mxu1  ;;  %4438 = vmatprep.mubr.bf16.mxu0 %v6413_v32  ;;  %v6422_v47 = vld [vmem:[%s8171_s0 + $0x6e0] ss:$104 sps:$4 sm:$0xff]  }
 0x1de   :  { %v5341_v59 = vpop.f32.mrb[117].mxu1 }
 0x1df   :  { %v5342_v12 = vadd.f32 %v5341_v59, %v5340_v62  ;;  %v5343_v3 = vpop.f32.mrb[118].mxu1  ;;  %v5416_v43 = vpop.f32.mrb[116].mxu0 }
 0x1e0   :  { %v5344_v0 = vpop.f32.mrb[119].mxu1  ;;  %v5417_v40 = vpop.f32.mrb[117].mxu0 }
 0x1e1   :  { %v3698_v63 = vadd.f32 %v5342_v12, %v7799_v23  ;;  %v5345_v9 = vadd.f32 %v5344_v0, %v5343_v3  ;;  %v5418_v36 = vadd.f32 %v5417_v40, %v5416_v43  ;;  %v5419_v52 = vpop.f32.mrb[118].mxu0 }
 0x1e2   :  { %4326 = vmatmul.mubr.bf16.gmra.mrb[224].mxu1 %v6409_v34  ;;  %v5420_v56 = vpop.f32.mrb[119].mxu0 }
 0x1e3   :  { %v7961_v57 = vadd.f32 %v5412_v5, %v3698_v63  ;;  %v3701_v6 = vadd.f32 %v5345_v9, %v7802_v27  ;;  %v5421_v55 = vadd.f32 %v5420_v56, %v5419_v52  ;;  %4333 = vmatprep.mubr.bf16.mxu1 %v6411_v44 }
 0x1e4   :  { %4439 = vmatmul.mubr.bf16.gmra.mrb[224].mxu0 %v6416_v20 }
 0x1e5   :  { %v7964_v60 = vadd.f32 %v5415_v45, %v3701_v6  ;;  %v5346_v18 = vpop.f32.mrb[120].mxu1  ;;  %4446 = vmatprep.mubr.bf16.mxu0 %v6419_v54 }
 0x1e6   :  { %v5347_v23 = vpop.f32.mrb[121].mxu1 }
 0x1e7   :  { %v5348_v41 = vadd.f32 %v5347_v23, %v5346_v18  ;;  %v5349_v37 = vpop.f32.mrb[122].mxu1  ;;  %v5422_v26 = vpop.f32.mrb[120].mxu0 }
 0x1e8   :  { %v5350_v27 = vpop.f32.mrb[123].mxu1  ;;  %v5423_v11 = vpop.f32.mrb[121].mxu0 }
 0x1e9   :  { %v3706_v15 = vadd.f32 %v5348_v41, %v7817_v17  ;;  %v5351_v53 = vadd.f32 %v5350_v27, %v5349_v37  ;;  %v5424_v39 = vadd.f32 %v5423_v11, %v5422_v26  ;;  %v5425_v16 = vpop.f32.mrb[122].mxu0  ;;  %v6421_v17 = vld [vmem:[%s8171_s0 + $0x6d8] ss:$104 sps:$4 sm:$0xff]  }
 0x1ea   :  { %4334 = vmatmul.mubr.bf16.gmra.mrb[228].mxu1 %v6415_v4  ;;  %v5426_v19 = vpop.f32.mrb[123].mxu0 }
 0x1eb   :  { %v7976_v21 = vadd.f32 %v5418_v36, %v3706_v15  ;;  %v3709_v8 = vadd.f32 %v5351_v53, %v7820_v51  ;;  %v5427_v1 = vadd.f32 %v5426_v19, %v5425_v16  ;;  %4341 = vmatprep.mubr.bf16.mxu1 %v6417_v35 }
 0x1ec   :  { %4447 = vmatmul.mubr.bf16.gmra.mrb[228].mxu0 %v6422_v47 }
 0x1ed   :  { %v7979_v2 = vadd.f32 %v5421_v55, %v3709_v8  ;;  %v5352_v24 = vpop.f32.mrb[124].mxu1 }
 0x1ee   :  { %v5353_v28 = vpop.f32.mrb[125].mxu1 }
 0x1ef   :  { %v5354_v10 = vadd.f32 %v5353_v28, %v5352_v24  ;;  %v5355_v5 = vpop.f32.mrb[126].mxu1  ;;  %v5514_v31 = vpop.f32.mrb[124].mxu0 }
 0x1f0   :  { %v5356_v32 = vpop.f32.mrb[127].mxu1  ;;  %v5515_v33 = vpop.f32.mrb[125].mxu0 }
 0x1f1   :  { %v3714_v48 = vadd.f32 %v5354_v10, %v7835_v46  ;;  %v5357_v45 = vadd.f32 %v5356_v32, %v5355_v5  ;;  %v5516_v51 = vadd.f32 %v5515_v33, %v5514_v31  ;;  %v5517_v62 = vpop.f32.mrb[126].mxu0 }
 0x1f2   :  { %4342 = vmatmul.mubr.bf16.gmra.mrb[232].mxu1 %v6421_v17  ;;  %v5518_v59 = vpop.f32.mrb[127].mxu0 }
 0x1f3   :  { %v7985_v34 = vadd.f32 %v5424_v39, %v3714_v48  ;;  %v3717_v12 = vadd.f32 %v5357_v45, %v7838_v49  ;;  %v5519_v3 = vadd.f32 %v5518_v59, %v5517_v62 }
 0x1f5   :  { %v7988_v43 = vadd.f32 %v5427_v1, %v3717_v12  ;;  %v5444_v44 = vpop.f32.mrb[128].mxu1 }
 0x1f6   :  { %v5445_v0 = vpop.f32.mrb[129].mxu1 }
 0x1f7   :  { %v5446_v40 = vadd.f32 %v5445_v0, %v5444_v44  ;;  %v5447_v20 = vpop.f32.mrb[130].mxu1  ;;  %v5520_v63 = vpop.f32.mrb[128].mxu0 }
 0x1f8   :  { %v5448_v9 = vpop.f32.mrb[131].mxu1  ;;  %v5521_v36 = vpop.f32.mrb[129].mxu0 }
 0x1f9   :  { %v3860_v46 = vadd.f32 %v5446_v40, %v7853_v58  ;;  %v5449_v52 = vadd.f32 %v5448_v9, %v5447_v20  ;;  %v5522_v54 = vadd.f32 %v5521_v36, %v5520_v63  ;;  %v5523_v56 = vpop.f32.mrb[130].mxu0 }
 0x1fa   :  { %v5524_v6 = vpop.f32.mrb[131].mxu0 }
 0x1fb   :  { %v7991_v55 = vadd.f32 %v5516_v51, %v3860_v46  ;;  %v3863_v49 = vadd.f32 %v5449_v52, %v7856_v22  ;;  %v5525_v18 = vadd.f32 %v5524_v6, %v5523_v56 }
 0x1fd   :  { %v7994_v23 = vadd.f32 %v5519_v3, %v3863_v49  ;;  %v5450_v4 = vpop.f32.mrb[132].mxu1 }
 0x1fe   :  { %v5451_v41 = vpop.f32.mrb[133].mxu1 }
 0x1ff   :  { %v5452_v37 = vadd.f32 %v5451_v41, %v5450_v4  ;;  %v5453_v26 = vpop.f32.mrb[134].mxu1  ;;  %v5526_v35 = vpop.f32.mrb[132].mxu0 }
 0x200   :  { %v5454_v27 = vpop.f32.mrb[135].mxu1  ;;  %v5527_v11 = vpop.f32.mrb[133].mxu0 }
 0x201   :  { %v3868_v58 = vadd.f32 %v5452_v37, %v7871_v14  ;;  %v5455_v47 = vadd.f32 %v5454_v27, %v5453_v26  ;;  %v5528_v15 = vadd.f32 %v5527_v11, %v5526_v35  ;;  %v5529_v53 = vpop.f32.mrb[134].mxu0 }
 0x202   :  { %v5530_v39 = vpop.f32.mrb[135].mxu0 }
 0x203   :  { %v7997_v16 = vadd.f32 %v5522_v54, %v3868_v58  ;;  %v3871_v22 = vadd.f32 %v5455_v47, %v7874_v61  ;;  %v5531_v19 = vadd.f32 %v5530_v39, %v5529_v53 }
 0x205   :  { %v8000_v8 = vadd.f32 %v5525_v18, %v3871_v22  ;;  %v5456_v1 = vpop.f32.mrb[136].mxu1 }
 0x206   :  { %v5457_v24 = vpop.f32.mrb[137].mxu1 }
 0x207   :  { %v5458_v28 = vadd.f32 %v5457_v24, %v5456_v1  ;;  %v5459_v17 = vpop.f32.mrb[138].mxu1  ;;  %v5532_v10 = vpop.f32.mrb[136].mxu0 }
 0x208   :  { %v5460_v5 = vpop.f32.mrb[139].mxu1  ;;  %v5533_v31 = vpop.f32.mrb[137].mxu0 }
 0x209   :  { %v3876_v14 = vadd.f32 %v5458_v28, %v7889_v13  ;;  %v5461_v32 = vadd.f32 %v5460_v5, %v5459_v17  ;;  %v5534_v33 = vadd.f32 %v5533_v31, %v5532_v10  ;;  %v5535_v48 = vpop.f32.mrb[138].mxu0 }
 0x20a   :  { %v5536_v45 = vpop.f32.mrb[139].mxu0 }
 0x20b   :  { %v8003_v51 = vadd.f32 %v5528_v15, %v3876_v14  ;;  %v3879_v61 = vadd.f32 %v5461_v32, %v7892_v25  ;;  %v5537_v62 = vadd.f32 %v5536_v45, %v5535_v48 }
 0x20d   :  { %v8006_v59 = vadd.f32 %v5531_v19, %v3879_v61  ;;  %v5462_v12 = vpop.f32.mrb[140].mxu1 }
 0x20e   :  { %v5463_v3 = vpop.f32.mrb[141].mxu1 }
 0x20f   :  { %v5464_v44 = vadd.f32 %v5463_v3, %v5462_v12  ;;  %v5465_v0 = vpop.f32.mrb[142].mxu1  ;;  %v5538_v40 = vpop.f32.mrb[140].mxu0 }
 0x210   :  { %v5466_v20 = vpop.f32.mrb[143].mxu1  ;;  %v5539_v63 = vpop.f32.mrb[141].mxu0 }
 0x211   :  { %v3884_v13 = vadd.f32 %v5464_v44, %v7907_v29  ;;  %v5467_v9 = vadd.f32 %v5466_v20, %v5465_v0  ;;  %v5540_v36 = vadd.f32 %v5539_v63, %v5538_v40  ;;  %v5541_v46 = vpop.f32.mrb[142].mxu0 }
 0x212   :  { %v5542_v52 = vpop.f32.mrb[143].mxu0 }
 0x213   :  { %v8009_v54 = vadd.f32 %v5534_v33, %v3884_v13  ;;  %v3887_v25 = vadd.f32 %v5467_v9, %v7910_v50  ;;  %v5543_v56 = vadd.f32 %v5542_v52, %v5541_v46 }
 0x215   :  { %v8012_v6 = vadd.f32 %v5537_v62, %v3887_v25  ;;  %v5468_v49 = vpop.f32.mrb[144].mxu1 }
 0x216   :  { %v5469_v18 = vpop.f32.mrb[145].mxu1 }
 0x217   :  { %v5470_v4 = vadd.f32 %v5469_v18, %v5468_v49  ;;  %v5471_v41 = vpop.f32.mrb[146].mxu1  ;;  %v5544_v37 = vpop.f32.mrb[144].mxu0 }
 0x218   :  { %v5472_v26 = vpop.f32.mrb[147].mxu1  ;;  %v5545_v35 = vpop.f32.mrb[145].mxu0 }
 0x219   :  { %v3892_v29 = vadd.f32 %v5470_v4, %v7925_v7  ;;  %v5473_v27 = vadd.f32 %v5472_v26, %v5471_v41  ;;  %v5546_v11 = vadd.f32 %v5545_v35, %v5544_v37  ;;  %v5547_v58 = vpop.f32.mrb[146].mxu0 }
 0x21a   :  { %v5548_v47 = vpop.f32.mrb[147].mxu0 }
 0x21b   :  { %v8015_v15 = vadd.f32 %v5540_v36, %v3892_v29  ;;  %v3895_v50 = vadd.f32 %v5473_v27, %v7928_v42  ;;  %v5549_v53 = vadd.f32 %v5548_v47, %v5547_v58 }
 0x21d   :  { %v8018_v39 = vadd.f32 %v5543_v56, %v3895_v50  ;;  %v5474_v22 = vpop.f32.mrb[148].mxu1 }
 0x21e   :  { %v5475_v19 = vpop.f32.mrb[149].mxu1 }
 0x21f   :  { %v5476_v1 = vadd.f32 %v5475_v19, %v5474_v22  ;;  %v5477_v24 = vpop.f32.mrb[150].mxu1  ;;  %v5550_v28 = vpop.f32.mrb[148].mxu0 }
 0x220   :  { %v5478_v17 = vpop.f32.mrb[151].mxu1  ;;  %v5551_v10 = vpop.f32.mrb[149].mxu0 }
 0x221   :  { %v3900_v7 = vadd.f32 %v5476_v1, %v7943_v30  ;;  %v5479_v5 = vadd.f32 %v5478_v17, %v5477_v24  ;;  %v5552_v31 = vadd.f32 %v5551_v10, %v5550_v28  ;;  %v5553_v14 = vpop.f32.mrb[150].mxu0 }
 0x222   :  { %v5554_v32 = vpop.f32.mrb[151].mxu0 }
 0x223   :  { %v8021_v33 = vadd.f32 %v5546_v11, %v3900_v7  ;;  %v3903_v42 = vadd.f32 %v5479_v5, %v7946_v38  ;;  %v5555_v48 = vadd.f32 %v5554_v32, %v5553_v14 }
 0x225   :  { %v8024_v45 = vadd.f32 %v5549_v53, %v3903_v42  ;;  %v5480_v61 = vpop.f32.mrb[152].mxu1 }
 0x226   :  { %v5481_v62 = vpop.f32.mrb[153].mxu1 }
 0x227   :  { %v5482_v12 = vadd.f32 %v5481_v62, %v5480_v61  ;;  %v5483_v3 = vpop.f32.mrb[154].mxu1  ;;  %v5556_v44 = vpop.f32.mrb[152].mxu0 }
 0x228   :  { %v5484_v0 = vpop.f32.mrb[155].mxu1  ;;  %v5557_v40 = vpop.f32.mrb[153].mxu0 }
 0x229   :  { %v3908_v30 = vadd.f32 %v5482_v12, %v7961_v57  ;;  %v5485_v20 = vadd.f32 %v5484_v0, %v5483_v3  ;;  %v5558_v63 = vadd.f32 %v5557_v40, %v5556_v44  ;;  %v5559_v13 = vpop.f32.mrb[154].mxu0 }
 0x22a   :  { %v5560_v9 = vpop.f32.mrb[155].mxu0 }
 0x22b   :  { %v8027_v36 = vadd.f32 %v5552_v31, %v3908_v30  ;;  %v3911_v38 = vadd.f32 %v5485_v20, %v7964_v60  ;;  %v5561_v46 = vadd.f32 %v5560_v9, %v5559_v13 }
 0x22d   :  { %v8030_v52 = vadd.f32 %v5555_v48, %v3911_v38  ;;  %v5486_v25 = vpop.f32.mrb[156].mxu1 }
 0x22e   :  { %v5487_v56 = vpop.f32.mrb[157].mxu1 }
 0x22f   :  { %v5488_v49 = vadd.f32 %v5487_v56, %v5486_v25  ;;  %v5489_v18 = vpop.f32.mrb[158].mxu1  ;;  %v5562_v4 = vpop.f32.mrb[156].mxu0 }
 0x230   :  { %v5490_v41 = vpop.f32.mrb[159].mxu1  ;;  %v5563_v37 = vpop.f32.mrb[157].mxu0 }
 0x231   :  { %v3916_v57 = vadd.f32 %v5488_v49, %v7976_v21  ;;  %v5491_v26 = vadd.f32 %v5490_v41, %v5489_v18  ;;  %v5564_v35 = vadd.f32 %v5563_v37, %v5562_v4  ;;  %v5565_v29 = vpop.f32.mrb[158].mxu0 }
 0x232   :  { %v5566_v27 = vpop.f32.mrb[159].mxu0 }
 0x233   :  { %v8033_v11 = vadd.f32 %v5558_v63, %v3916_v57  ;;  %v3919_v60 = vadd.f32 %v5491_v26, %v7979_v2  ;;  %v5567_v58 = vadd.f32 %v5566_v27, %v5565_v29 }
 0x235   :  { %v8036_v47 = vadd.f32 %v5561_v46, %v3919_v60  ;;  %v5492_v50 = vpop.f32.mrb[160].mxu1 }
 0x236   :  { %v5493_v53 = vpop.f32.mrb[161].mxu1 }
 0x237   :  { %v5494_v22 = vadd.f32 %v5493_v53, %v5492_v50  ;;  %v5495_v19 = vpop.f32.mrb[162].mxu1  ;;  %v5654_v1 = vpop.f32.mrb[160].mxu0 }
 0x238   :  { %v5496_v24 = vpop.f32.mrb[163].mxu1  ;;  %v5655_v28 = vpop.f32.mrb[161].mxu0 }
 0x239   :  { %v3924_v21 = vadd.f32 %v5494_v22, %v7985_v34  ;;  %v5497_v17 = vadd.f32 %v5496_v24, %v5495_v19  ;;  %v5656_v10 = vadd.f32 %v5655_v28, %v5654_v1  ;;  %v5657_v7 = vpop.f32.mrb[162].mxu0 }
 0x23a   :  { %v5658_v5 = vpop.f32.mrb[163].mxu0 }
 0x23b   :  { %v8039_v31 = vadd.f32 %v5564_v35, %v3924_v21  ;;  %v3927_v2 = vadd.f32 %v5497_v17, %v7988_v43  ;;  %v5659_v14 = vadd.f32 %v5658_v5, %v5657_v7 }
 0x23d   :  { %v8042_v32 = vadd.f32 %v5567_v58, %v3927_v2  ;;  %v5584_v42 = vpop.f32.mrb[164].mxu1 }
 0x23e   :  { %v5585_v48 = vpop.f32.mrb[165].mxu1 }
 0x23f   :  { %v5586_v61 = vadd.f32 %v5585_v48, %v5584_v42  ;;  %v5587_v62 = vpop.f32.mrb[166].mxu1  ;;  %v5660_v12 = vpop.f32.mrb[164].mxu0 }
 0x240   :  { %v5588_v3 = vpop.f32.mrb[167].mxu1  ;;  %v5661_v44 = vpop.f32.mrb[165].mxu0 }
 0x241   :  { %v4070_v34 = vadd.f32 %v5586_v61, %v7991_v55  ;;  %v5589_v0 = vadd.f32 %v5588_v3, %v5587_v62  ;;  %v5662_v40 = vadd.f32 %v5661_v44, %v5660_v12  ;;  %v5663_v30 = vpop.f32.mrb[166].mxu0 }
 0x242   :  { %v5664_v20 = vpop.f32.mrb[167].mxu0 }
 0x243   :  { %v8045_v63 = vadd.f32 %v5656_v10, %v4070_v34  ;;  %v4073_v43 = vadd.f32 %v5589_v0, %v7994_v23  ;;  %v5665_v13 = vadd.f32 %v5664_v20, %v5663_v30 }
 0x245   :  { %v8048_v9 = vadd.f32 %v5659_v14, %v4073_v43  ;;  %v5590_v38 = vpop.f32.mrb[168].mxu1 }
 0x246   :  { %v5591_v46 = vpop.f32.mrb[169].mxu1 }
 0x247   :  { %v5592_v25 = vadd.f32 %v5591_v46, %v5590_v38  ;;  %v5593_v56 = vpop.f32.mrb[170].mxu1  ;;  %v5666_v49 = vpop.f32.mrb[168].mxu0 }
 0x248   :  { %v5594_v18 = vpop.f32.mrb[171].mxu1  ;;  %v5667_v4 = vpop.f32.mrb[169].mxu0 }
 0x249   :  { %v4078_v55 = vadd.f32 %v5592_v25, %v7997_v16  ;;  %v5595_v41 = vadd.f32 %v5594_v18, %v5593_v56  ;;  %v5668_v37 = vadd.f32 %v5667_v4, %v5666_v49  ;;  %v5669_v57 = vpop.f32.mrb[170].mxu0 }
 0x24a   :  { %v5670_v26 = vpop.f32.mrb[171].mxu0 }
 0x24b   :  { %v8051_v35 = vadd.f32 %v5662_v40, %v4078_v55  ;;  %v4081_v23 = vadd.f32 %v5595_v41, %v8000_v8  ;;  %v5671_v29 = vadd.f32 %v5670_v26, %v5669_v57 }
 0x24d   :  { %v8054_v27 = vadd.f32 %v5665_v13, %v4081_v23  ;;  %v5596_v60 = vpop.f32.mrb[172].mxu1 }
 0x24e   :  { %v5597_v58 = vpop.f32.mrb[173].mxu1 }
 0x24f   :  { %v5598_v50 = vadd.f32 %v5597_v58, %v5596_v60  ;;  %v5599_v53 = vpop.f32.mrb[174].mxu1  ;;  %v5672_v22 = vpop.f32.mrb[172].mxu0 }
 0x250   :  { %v5600_v19 = vpop.f32.mrb[175].mxu1  ;;  %v5673_v1 = vpop.f32.mrb[173].mxu0 }
 0x251   :  { %v4086_v16 = vadd.f32 %v5598_v50, %v8003_v51  ;;  %v5601_v24 = vadd.f32 %v5600_v19, %v5599_v53  ;;  %v5674_v28 = vadd.f32 %v5673_v1, %v5672_v22  ;;  %v5675_v21 = vpop.f32.mrb[174].mxu0 }
 0x252   :  { %v5676_v17 = vpop.f32.mrb[175].mxu0 }
 0x253   :  { %v8057_v10 = vadd.f32 %v5668_v37, %v4086_v16  ;;  %v4089_v8 = vadd.f32 %v5601_v24, %v8006_v59  ;;  %v5677_v7 = vadd.f32 %v5676_v17, %v5675_v21 }
 0x255   :  { %v8060_v5 = vadd.f32 %v5671_v29, %v4089_v8  ;;  %v5602_v2 = vpop.f32.mrb[176].mxu1 }
 0x256   :  { %v5603_v14 = vpop.f32.mrb[177].mxu1 }
 0x257   :  { %v5604_v42 = vadd.f32 %v5603_v14, %v5602_v2  ;;  %v5605_v48 = vpop.f32.mrb[178].mxu1  ;;  %v5678_v61 = vpop.f32.mrb[176].mxu0 }
 0x258   :  { %v5606_v62 = vpop.f32.mrb[179].mxu1  ;;  %v5679_v12 = vpop.f32.mrb[177].mxu0 }
 0x259   :  { %v4094_v51 = vadd.f32 %v5604_v42, %v8009_v54  ;;  %v5607_v3 = vadd.f32 %v5606_v62, %v5605_v48  ;;  %v5680_v44 = vadd.f32 %v5679_v12, %v5678_v61  ;;  %v5681_v34 = vpop.f32.mrb[178].mxu0 }
 0x25a   :  { %v5682_v0 = vpop.f32.mrb[179].mxu0 }
 0x25b   :  { %v8063_v40 = vadd.f32 %v5674_v28, %v4094_v51  ;;  %v4097_v59 = vadd.f32 %v5607_v3, %v8012_v6  ;;  %v5683_v30 = vadd.f32 %v5682_v0, %v5681_v34 }
 0x25d   :  { %v8066_v20 = vadd.f32 %v5677_v7, %v4097_v59  ;;  %v5608_v43 = vpop.f32.mrb[180].mxu1 }
 0x25e   :  { %v5609_v13 = vpop.f32.mrb[181].mxu1 }
 0x25f   :  { %v5610_v38 = vadd.f32 %v5609_v13, %v5608_v43  ;;  %v5611_v46 = vpop.f32.mrb[182].mxu1  ;;  %v5684_v25 = vpop.f32.mrb[180].mxu0 }
 0x260   :  { %v5612_v56 = vpop.f32.mrb[183].mxu1  ;;  %v5685_v49 = vpop.f32.mrb[181].mxu0 }
 0x261   :  { %v4102_v54 = vadd.f32 %v5610_v38, %v8015_v15  ;;  %v5613_v18 = vadd.f32 %v5612_v56, %v5611_v46  ;;  %v5686_v4 = vadd.f32 %v5685_v49, %v5684_v25  ;;  %v5687_v55 = vpop.f32.mrb[182].mxu0 }
 0x262   :  { %v5688_v41 = vpop.f32.mrb[183].mxu0 }
 0x263   :  { %v8069_v37 = vadd.f32 %v5680_v44, %v4102_v54  ;;  %v4105_v6 = vadd.f32 %v5613_v18, %v8018_v39  ;;  %v5689_v57 = vadd.f32 %v5688_v41, %v5687_v55 }
 0x265   :  { %v8072_v26 = vadd.f32 %v5683_v30, %v4105_v6  ;;  %v5614_v23 = vpop.f32.mrb[184].mxu1 }
 0x266   :  { %v5615_v29 = vpop.f32.mrb[185].mxu1 }
 0x267   :  { %v5616_v60 = vadd.f32 %v5615_v29, %v5614_v23  ;;  %v5617_v58 = vpop.f32.mrb[186].mxu1  ;;  %v5690_v50 = vpop.f32.mrb[184].mxu0 }
 0x268   :  { %v5618_v53 = vpop.f32.mrb[187].mxu1  ;;  %v5691_v22 = vpop.f32.mrb[185].mxu0 }
 0x269   :  { %v4110_v15 = vadd.f32 %v5616_v60, %v8021_v33  ;;  %v5619_v19 = vadd.f32 %v5618_v53, %v5617_v58  ;;  %v5692_v1 = vadd.f32 %v5691_v22, %v5690_v50  ;;  %v5693_v16 = vpop.f32.mrb[186].mxu0 }
 0x26a   :  { %v5694_v24 = vpop.f32.mrb[187].mxu0 }
 0x26b   :  { %v8075_v28 = vadd.f32 %v5686_v4, %v4110_v15  ;;  %v4113_v39 = vadd.f32 %v5619_v19, %v8024_v45  ;;  %v5695_v21 = vadd.f32 %v5694_v24, %v5693_v16 }
 0x26d   :  { %v8078_v17 = vadd.f32 %v5689_v57, %v4113_v39  ;;  %v5620_v8 = vpop.f32.mrb[188].mxu1 }
 0x26e   :  { %v5621_v7 = vpop.f32.mrb[189].mxu1 }
 0x26f   :  { %v5622_v2 = vadd.f32 %v5621_v7, %v5620_v8  ;;  %v5623_v14 = vpop.f32.mrb[190].mxu1  ;;  %v5696_v42 = vpop.f32.mrb[188].mxu0 }
 0x270   :  { %v5624_v48 = vpop.f32.mrb[191].mxu1  ;;  %v5697_v61 = vpop.f32.mrb[189].mxu0 }
 0x271   :  { %v4118_v33 = vadd.f32 %v5622_v2, %v8027_v36  ;;  %v5625_v62 = vadd.f32 %v5624_v48, %v5623_v14  ;;  %v5698_v12 = vadd.f32 %v5697_v61, %v5696_v42  ;;  %v5699_v51 = vpop.f32.mrb[190].mxu0 }
 0x272   :  { %v5700_v3 = vpop.f32.mrb[191].mxu0 }
 0x273   :  { %v8081_v44 = vadd.f32 %v5692_v1, %v4118_v33  ;;  %v4121_v45 = vadd.f32 %v5625_v62, %v8030_v52  ;;  %v5701_v34 = vadd.f32 %v5700_v3, %v5699_v51 }
 0x275   :  { %v8084_v0 = vadd.f32 %v5695_v21, %v4121_v45  ;;  %v5626_v59 = vpop.f32.mrb[192].mxu1 }
 0x276   :  { %v5627_v30 = vpop.f32.mrb[193].mxu1 }
 0x277   :  { %v5628_v43 = vadd.f32 %v5627_v30, %v5626_v59  ;;  %v5629_v13 = vpop.f32.mrb[194].mxu1  ;;  %v5702_v38 = vpop.f32.mrb[192].mxu0 }
 0x278   :  { %v5630_v46 = vpop.f32.mrb[195].mxu1  ;;  %v5703_v25 = vpop.f32.mrb[193].mxu0 }
 0x279   :  { %v4126_v36 = vadd.f32 %v5628_v43, %v8033_v11  ;;  %v5631_v56 = vadd.f32 %v5630_v46, %v5629_v13  ;;  %v5704_v49 = vadd.f32 %v5703_v25, %v5702_v38  ;;  %v5705_v54 = vpop.f32.mrb[194].mxu0 }
 0x27a   :  { %v5706_v18 = vpop.f32.mrb[195].mxu0 }
 0x27b   :  { %v8087_v4 = vadd.f32 %v5698_v12, %v4126_v36  ;;  %v4129_v52 = vadd.f32 %v5631_v56, %v8036_v47  ;;  %v5707_v55 = vadd.f32 %v5706_v18, %v5705_v54 }
 0x27d   :  { %v8090_v41 = vadd.f32 %v5701_v34, %v4129_v52  ;;  %v5632_v6 = vpop.f32.mrb[196].mxu1 }
 0x27e   :  { %v5633_v57 = vpop.f32.mrb[197].mxu1 }
 0x27f   :  { %v5634_v23 = vadd.f32 %v5633_v57, %v5632_v6  ;;  %v5635_v29 = vpop.f32.mrb[198].mxu1  ;;  %v5794_v60 = vpop.f32.mrb[196].mxu0 }
 0x280   :  { %v5636_v58 = vpop.f32.mrb[199].mxu1  ;;  %v5795_v50 = vpop.f32.mrb[197].mxu0 }
 0x281   :  { %v4134_v11 = vadd.f32 %v5634_v23, %v8039_v31  ;;  %v5637_v53 = vadd.f32 %v5636_v58, %v5635_v29  ;;  %v5796_v22 = vadd.f32 %v5795_v50, %v5794_v60  ;;  %v5797_v15 = vpop.f32.mrb[198].mxu0 }
 0x282   :  { %v5798_v19 = vpop.f32.mrb[199].mxu0 }
 0x283   :  { %v8093_v1 = vadd.f32 %v5704_v49, %v4134_v11  ;;  %v4137_v47 = vadd.f32 %v5637_v53, %v8042_v32  ;;  %v5799_v16 = vadd.f32 %v5798_v19, %v5797_v15 }
 0x285   :  { %v8096_v24 = vadd.f32 %v5707_v55, %v4137_v47  ;;  %v5724_v39 = vpop.f32.mrb[200].mxu1 }
 0x286   :  { %v5725_v21 = vpop.f32.mrb[201].mxu1 }
 0x287   :  { %v5726_v8 = vadd.f32 %v5725_v21, %v5724_v39  ;;  %v5727_v7 = vpop.f32.mrb[202].mxu1  ;;  %v5800_v2 = vpop.f32.mrb[200].mxu0 }
 0x288   :  { %v5728_v14 = vpop.f32.mrb[203].mxu1  ;;  %v5801_v42 = vpop.f32.mrb[201].mxu0 }
 0x289   :  { %v4280_v31 = vadd.f32 %v5726_v8, %v8045_v63  ;;  %v5729_v48 = vadd.f32 %v5728_v14, %v5727_v7  ;;  %v5802_v61 = vadd.f32 %v5801_v42, %v5800_v2  ;;  %v5803_v33 = vpop.f32.mrb[202].mxu0 }
 0x28a   :  { %v5804_v62 = vpop.f32.mrb[203].mxu0 }
 0x28b   :  { %v4385_v12 = vadd.f32 %v5796_v22, %v4280_v31  ;;  %v4283_v51 = vadd.f32 %v5729_v48, %v8048_v9  ;;  %v5805_v32 = vadd.f32 %v5804_v62, %v5803_v33 }
 0x28d   :  { %v4455_v3 = vmax.f32 %v4385_v12, 0.0  ;;  %v4388_v45 = vadd.f32 %v5799_v16, %v4283_v51  ;;  %v5730_v34 = vpop.f32.mrb[204].mxu1 }
 0x28e   :  { %v5731_v59 = vpop.f32.mrb[205].mxu1 }
 0x28f   :  { %4473 = vst [vmem:[%s8173_s3] sm:$0xff] %v4455_v3  ;;  %v4456_v30 = vmax.f32 %v4388_v45, 0.0  ;;  %v5732_v43 = vadd.f32 %v5731_v59, %v5730_v34  ;;  %v5733_v13 = vpop.f32.mrb[206].mxu1  ;;  %v5806_v63 = vpop.f32.mrb[204].mxu0 }
 0x290   :  { %v5734_v38 = vpop.f32.mrb[207].mxu1  ;;  %v5807_v46 = vpop.f32.mrb[205].mxu0 }
 0x291   :  { %4474 = vst [vmem:[%s8173_s3 + $0x8] sm:$0xff] %v4456_v30  ;;  %v4288_v9 = vadd.f32 %v5732_v43, %v8051_v35  ;;  %v5735_v25 = vadd.f32 %v5734_v38, %v5733_v13  ;;  %v5808_v36 = vadd.f32 %v5807_v46, %v5806_v63  ;;  %v5809_v56 = vpop.f32.mrb[206].mxu0 }
 0x292   :  { %v5810_v49 = vpop.f32.mrb[207].mxu0 }
 0x293   :  { %v4393_v54 = vadd.f32 %v5802_v61, %v4288_v9  ;;  %v4291_v18 = vadd.f32 %v5735_v25, %v8054_v27  ;;  %v5811_v52 = vadd.f32 %v5810_v49, %v5809_v56 }
 0x295   :  { %v4457_v55 = vmax.f32 %v4393_v54, 0.0  ;;  %v4396_v6 = vadd.f32 %v5805_v32, %v4291_v18  ;;  %v5736_v57 = vpop.f32.mrb[208].mxu1 }
 0x296   :  { %v5737_v23 = vpop.f32.mrb[209].mxu1 }
 0x297   :  { %4475 = vst [vmem:[%s8173_s3 + $0x10] sm:$0xff] %v4457_v55  ;;  %v4458_v29 = vmax.f32 %v4396_v6, 0.0  ;;  %v5738_v60 = vadd.f32 %v5737_v23, %v5736_v57  ;;  %v5739_v58 = vpop.f32.mrb[210].mxu1  ;;  %v5812_v35 = vpop.f32.mrb[208].mxu0 }
 0x298   :  { %v5740_v50 = vpop.f32.mrb[211].mxu1  ;;  %v5813_v11 = vpop.f32.mrb[209].mxu0 }
 0x299   :  { %4476 = vst [vmem:[%s8173_s3 + $0x18] sm:$0xff] %v4458_v29  ;;  %v4296_v27 = vadd.f32 %v5738_v60, %v8057_v10  ;;  %v5741_v53 = vadd.f32 %v5740_v50, %v5739_v58  ;;  %v5814_v22 = vadd.f32 %v5813_v11, %v5812_v35  ;;  %v5815_v15 = vpop.f32.mrb[210].mxu0 }
 0x29a   :  { %v5816_v19 = vpop.f32.mrb[211].mxu0 }
 0x29b   :  { %v4401_v47 = vadd.f32 %v5808_v36, %v4296_v27  ;;  %v4299_v16 = vadd.f32 %v5741_v53, %v8060_v5  ;;  %v5817_v39 = vadd.f32 %v5816_v19, %v5815_v15 }
 0x29d   :  { %v4459_v21 = vmax.f32 %v4401_v47, 0.0  ;;  %v4404_v8 = vadd.f32 %v5811_v52, %v4299_v16  ;;  %v5742_v7 = vpop.f32.mrb[212].mxu1 }
 0x29e   :  { %v5743_v2 = vpop.f32.mrb[213].mxu1 }
 0x29f   :  { %4477 = vst [vmem:[%s8173_s3 + $0x20] sm:$0xff] %v4459_v21  ;;  %v4460_v14 = vmax.f32 %v4404_v8, 0.0  ;;  %v5744_v42 = vadd.f32 %v5743_v2, %v5742_v7  ;;  %v5745_v31 = vpop.f32.mrb[214].mxu1  ;;  %v5818_v10 = vpop.f32.mrb[212].mxu0 }
 0x2a0   :  { %v5746_v48 = vpop.f32.mrb[215].mxu1  ;;  %v5819_v61 = vpop.f32.mrb[213].mxu0 }
 0x2a1   :  { %4478 = vst [vmem:[%s8173_s3 + $0x28] sm:$0xff] %v4460_v14  ;;  %v4304_v5 = vadd.f32 %v5744_v42, %v8063_v40  ;;  %v5747_v33 = vadd.f32 %v5746_v48, %v5745_v31  ;;  %v5820_v62 = vadd.f32 %v5819_v61, %v5818_v10  ;;  %v5821_v12 = vpop.f32.mrb[214].mxu0 }
 0x2a2   :  { %v5822_v51 = vpop.f32.mrb[215].mxu0 }
 0x2a3   :  { %v4409_v32 = vadd.f32 %v5814_v22, %v4304_v5  ;;  %v4307_v3 = vadd.f32 %v5747_v33, %v8066_v20  ;;  %v5823_v45 = vadd.f32 %v5822_v51, %v5821_v12 }
 0x2a5   :  { %v4461_v34 = vmax.f32 %v4409_v32, 0.0  ;;  %v4412_v59 = vadd.f32 %v5817_v39, %v4307_v3  ;;  %v5748_v30 = vpop.f32.mrb[216].mxu1 }
 0x2a6   :  { %v5749_v43 = vpop.f32.mrb[217].mxu1 }
 0x2a7   :  { %4479 = vst [vmem:[%s8173_s3 + $0x30] sm:$0xff] %v4461_v34  ;;  %v4462_v13 = vmax.f32 %v4412_v59, 0.0  ;;  %v5750_v63 = vadd.f32 %v5749_v43, %v5748_v30  ;;  %v5751_v38 = vpop.f32.mrb[218].mxu1  ;;  %v5824_v40 = vpop.f32.mrb[216].mxu0 }
 0x2a8   :  { %v5752_v46 = vpop.f32.mrb[219].mxu1  ;;  %v5825_v9 = vpop.f32.mrb[217].mxu0 }
 0x2a9   :  { %4480 = vst [vmem:[%s8173_s3 + $0x38] sm:$0xff] %v4462_v13  ;;  %v4312_v20 = vadd.f32 %v5750_v63, %v8069_v37  ;;  %v5753_v25 = vadd.f32 %v5752_v46, %v5751_v38  ;;  %v5826_v36 = vadd.f32 %v5825_v9, %v5824_v40  ;;  %v5827_v56 = vpop.f32.mrb[218].mxu0 }
 0x2aa   :  { %v5828_v49 = vpop.f32.mrb[219].mxu0 }
 0x2ab   :  { %v4417_v54 = vadd.f32 %v5820_v62, %v4312_v20  ;;  %v4315_v18 = vadd.f32 %v5753_v25, %v8072_v26  ;;  %v5829_v52 = vadd.f32 %v5828_v49, %v5827_v56 }
 0x2ad   :  { %v4463_v55 = vmax.f32 %v4417_v54, 0.0  ;;  %v4420_v6 = vadd.f32 %v5823_v45, %v4315_v18  ;;  %v5754_v57 = vpop.f32.mrb[220].mxu1 }
 0x2ae   :  { %v5755_v23 = vpop.f32.mrb[221].mxu1 }
 0x2af   :  { %4481 = vst [vmem:[%s8173_s3 + $0x40] sm:$0xff] %v4463_v55  ;;  %v4464_v29 = vmax.f32 %v4420_v6, 0.0  ;;  %v5756_v60 = vadd.f32 %v5755_v23, %v5754_v57  ;;  %v5757_v58 = vpop.f32.mrb[222].mxu1  ;;  %v5830_v37 = vpop.f32.mrb[220].mxu0 }
 0x2b0   :  { %v5758_v35 = vpop.f32.mrb[223].mxu1  ;;  %v5831_v50 = vpop.f32.mrb[221].mxu0 }
 0x2b1   :  { %4482 = vst [vmem:[%s8173_s3 + $0x48] sm:$0xff] %v4464_v29  ;;  %v4320_v26 = vadd.f32 %v5756_v60, %v8075_v28  ;;  %v5759_v11 = vadd.f32 %v5758_v35, %v5757_v58  ;;  %v5832_v27 = vadd.f32 %v5831_v50, %v5830_v37  ;;  %v5833_v53 = vpop.f32.mrb[222].mxu0 }
 0x2b2   :  { %v5834_v22 = vpop.f32.mrb[223].mxu0 }
 0x2b3   :  { %v4425_v15 = vadd.f32 %v5826_v36, %v4320_v26  ;;  %v4323_v19 = vadd.f32 %v5759_v11, %v8078_v17  ;;  %v5835_v47 = vadd.f32 %v5834_v22, %v5833_v53 }
 0x2b5   :  { %v4465_v16 = vmax.f32 %v4425_v15, 0.0  ;;  %v4428_v39 = vadd.f32 %v5829_v52, %v4323_v19  ;;  %v5760_v21 = vpop.f32.mrb[224].mxu1 }
 0x2b6   :  { %v5761_v8 = vpop.f32.mrb[225].mxu1 }
 0x2b7   :  { %4483 = vst [vmem:[%s8173_s3 + $0x50] sm:$0xff] %v4465_v16  ;;  %v4466_v7 = vmax.f32 %v4428_v39, 0.0  ;;  %v5762_v2 = vadd.f32 %v5761_v8, %v5760_v21  ;;  %v5763_v14 = vpop.f32.mrb[226].mxu1  ;;  %v5836_v28 = vpop.f32.mrb[224].mxu0 }
 0x2b8   :  { %v5764_v42 = vpop.f32.mrb[227].mxu1  ;;  %v5837_v31 = vpop.f32.mrb[225].mxu0 }
 0x2b9   :  { %4484 = vst [vmem:[%s8173_s3 + $0x58] sm:$0xff] %v4466_v7  ;;  %v4328_v17 = vadd.f32 %v5762_v2, %v8081_v44  ;;  %v5765_v10 = vadd.f32 %v5764_v42, %v5763_v14  ;;  %v5838_v48 = vadd.f32 %v5837_v31, %v5836_v28  ;;  %v5839_v61 = vpop.f32.mrb[226].mxu0 }
 0x2ba   :  { %v5840_v5 = vpop.f32.mrb[227].mxu0 }
 0x2bb   :  { %v4433_v33 = vadd.f32 %v5832_v27, %v4328_v17  ;;  %v4331_v62 = vadd.f32 %v5765_v10, %v8084_v0  ;;  %v5841_v12 = vadd.f32 %v5840_v5, %v5839_v61 }
 0x2bd   :  { %v4467_v51 = vmax.f32 %v4433_v33, 0.0  ;;  %v4436_v32 = vadd.f32 %v5835_v47, %v4331_v62  ;;  %v5766_v3 = vpop.f32.mrb[228].mxu1 }
 0x2be   :  { %v5767_v45 = vpop.f32.mrb[229].mxu1 }
 0x2bf   :  { %4485 = vst [vmem:[%s8173_s3 + $0x60] sm:$0xff] %v4467_v51  ;;  %v4468_v34 = vmax.f32 %v4436_v32, 0.0  ;;  %v5768_v59 = vadd.f32 %v5767_v45, %v5766_v3  ;;  %v5769_v30 = vpop.f32.mrb[230].mxu1  ;;  %v5842_v44 = vpop.f32.mrb[228].mxu0 }
 0x2c0   :  { %v5770_v43 = vpop.f32.mrb[231].mxu1  ;;  %v5843_v13 = vpop.f32.mrb[229].mxu0 }
 0x2c1   :  { %4486 = vst [vmem:[%s8173_s3 + $0x68] sm:$0xff] %v4468_v34  ;;  %v4336_v0 = vadd.f32 %v5768_v59, %v8087_v4  ;;  %v5771_v63 = vadd.f32 %v5770_v43, %v5769_v30  ;;  %v5844_v38 = vadd.f32 %v5843_v13, %v5842_v44  ;;  %v5845_v40 = vpop.f32.mrb[230].mxu0 }
 0x2c2   :  { %v5846_v46 = vpop.f32.mrb[231].mxu0 }
 0x2c3   :  { %v4441_v9 = vadd.f32 %v5838_v48, %v4336_v0  ;;  %v4339_v20 = vadd.f32 %v5771_v63, %v8090_v41  ;;  %v5847_v25 = vadd.f32 %v5846_v46, %v5845_v40 }
 0x2c5   :  { %v4469_v36 = vmax.f32 %v4441_v9, 0.0  ;;  %v4444_v56 = vadd.f32 %v5841_v12, %v4339_v20  ;;  %v5772_v49 = vpop.f32.mrb[232].mxu1 }
 0x2c6   :  { %v5773_v54 = vpop.f32.mrb[233].mxu1 }
 0x2c7   :  { %4487 = vst [vmem:[%s8173_s3 + $0x70] sm:$0xff] %v4469_v36  ;;  %v4470_v18 = vmax.f32 %v4444_v56, 0.0  ;;  %v5774_v52 = vadd.f32 %v5773_v54, %v5772_v49  ;;  %v5775_v55 = vpop.f32.mrb[234].mxu1 }
 0x2c8   :  { %v5776_v4 = vpop.f32.mrb[235].mxu1 }
 0x2c9   :  { %4488 = vst [vmem:[%s8173_s3 + $0x78] sm:$0xff] %v4470_v18  ;;  %v4344_v6 = vadd.f32 %v5774_v52, %v8093_v1  ;;  %v5777_v41 = vadd.f32 %v5776_v4, %v5775_v55 }
 0x2cb   :  { %v4449_v57 = vadd.f32 %v5844_v38, %v4344_v6  ;;  %v4347_v23 = vadd.f32 %v5777_v41, %v8096_v24 }
 0x2cd   :  { %v4471_v29 = vmax.f32 %v4449_v57, 0.0  ;;  %v4452_v60 = vadd.f32 %v5847_v25, %v4347_v23 }
 0x2cf   :  { %4489 = vst [vmem:[%s8173_s3 + $0x80] sm:$0xff] %v4471_v29  ;;  %v4472_v58 = vmax.f32 %v4452_v60, 0.0 }
 0x2d1   :  { %4490 = vst [vmem:[%s8173_s3 + $0x88] sm:$0xff] %v4472_v58 }

// kernel: lprnet_forward.37
= control target key start
LH: loop header
LB: loop body
LE: loop exit
PB: predicated region body
PF: predicated region fallthrough
CT: control target
= control target key end

     0   :  { %v702_v0 = vmov 0.0|0.0   ;;  %vm242_vm0 = vcmask 654336   ;;  %s1188_s1 = inlined_call_operand.vmem [shape: f32[464,128], index: 1, kind: input, shape index: {}]   ;;  %s1189_s0 = inlined_call_operand.vmem [shape: f32[4,40,464], index: 0, kind: input, shape index: {}]   ;;  %s1190_s2 = inlined_call_operand.vmem [shape: f32[1,128], index: 2, kind: input, shape index: {}]   ;;  %s1191_s3 = inlined_call_operand.vmem [shape: f32[40,128], index: 3, kind: output, shape index: {}]  }
   0x1   :  { %642 = vmatprep.subr.bf16.mxu1 %v702_v0  ;;  %v209_v1 = vld [vmem:[%s1188_s1 + $0x100] sm:$0xff]  ;;  %v210_v2 = vld [vmem:[%s1188_s1 + $0x108] sm:$0xff]  ;;  %v211_v3 = vld [vmem:[%s1188_s1 + $0x110] sm:$0xff] }
   0x2   :  { %v643_v4 = vpack.c.bf16 %v210_v2, %v209_v1  ;;  %v212_v5 = vld [vmem:[%s1188_s1 + $0x118] sm:$0xff]  ;;  %v193_v6 = vld [vmem:[%s1188_s1 + $0x80] sm:$0xff]  ;;  %v194_v8 = vld [vmem:[%s1188_s1 + $0x88] sm:$0xff] }
   0x3   :  { %v646_v7 = vpack.c.bf16 %v212_v5, %v211_v3  ;;  %v177_v9 = vld [vmem:[%s1188_s1] sm:$0xff]  ;;  %v178_v10 = vld [vmem:[%s1188_s1 + $0x8] sm:$0xff]  ;;  %v610_v13 = vpack.c.bf16 %v194_v8, %v193_v6  ;;  %v195_v15 = vld [vmem:[%s1188_s1 + $0x90] sm:$0xff] }
   0x4   :  { %644 = vmatpush1.bf16.msra.mxu1 %v643_v4  ;;  %v213_v11 = vld [vmem:[%s1188_s1 + $0x120] sm:$0xff]  ;;  %v214_v12 = vld [vmem:[%s1188_s1 + $0x128] sm:$0xff]  ;;  %v612_v14 = vpack.c.bf16 %v178_v10, %v177_v9  ;;  %v196_v16 = vld [vmem:[%s1188_s1 + $0x98] sm:$0xff] }
   0x5   :  { %645 = vmatprep.subr.bf16.mxu1 %v702_v0  ;;  %v179_v17 = vld [vmem:[%s1188_s1 + $0x10] sm:$0xff]  ;;  %v180_v18 = vld [vmem:[%s1188_s1 + $0x18] sm:$0xff]  ;;  %611 = vmatprep.subr.bf16.mxu0 %v610_v13  ;;  %v614_v19 = vpack.c.bf16 %v196_v16, %v195_v15  ;;  %v197_v20 = vld [vmem:[%s1188_s1 + $0xa0] sm:$0xff]  ;;  %v649_v21 = vpack.c.bf16 %v214_v12, %v213_v11 }
   0x6   :  { %v215_v22 = vld [vmem:[%s1188_s1 + $0x130] sm:$0xff]  ;;  %613 = vmatpush3.bf16.msra.mxu0 %v612_v14  ;;  %v616_v23 = vpack.c.bf16 %v180_v18, %v179_v17  ;;  %v198_v24 = vld [vmem:[%s1188_s1 + $0xa8] sm:$0xff]  ;;  %v216_v25 = vld [vmem:[%s1188_s1 + $0x138] sm:$0xff] }
   0x7   :  { %615 = vmatprep.subr.bf16.mxu0 %v614_v19  ;;  %v618_v26 = vpack.c.bf16 %v198_v24, %v197_v20  ;;  %v181_v27 = vld [vmem:[%s1188_s1 + $0x20] sm:$0xff]  ;;  %v182_v28 = vld [vmem:[%s1188_s1 + $0x28] sm:$0xff]  ;;  %v199_v29 = vld [vmem:[%s1188_s1 + $0xb0] sm:$0xff]  ;;  %v652_v31 = vpack.c.bf16 %v216_v25, %v215_v22 }
   0x8   :  { %647 = vmatpush1.bf16.msra.mxu1 %v646_v7  ;;  %v200_v30 = vld [vmem:[%s1188_s1 + $0xb8] sm:$0xff]  ;;  %v217_v32 = vld [vmem:[%s1188_s1 + $0x140] sm:$0xff]  ;;  %v620_v33 = vpack.c.bf16 %v182_v28, %v181_v27  ;;  %v218_v34 = vld [vmem:[%s1188_s1 + $0x148] sm:$0xff] }
   0x9   :  { %648 = vmatprep.subr.bf16.mxu1 %v702_v0  ;;  %v622_v35 = vpack.c.bf16 %v200_v30, %v199_v29  ;;  %v183_v36 = vld [vmem:[%s1188_s1 + $0x30] sm:$0xff]  ;;  %v184_v37 = vld [vmem:[%s1188_s1 + $0x38] sm:$0xff]  ;;  %v201_v38 = vld [vmem:[%s1188_s1 + $0xc0] sm:$0xff]  ;;  %v655_v40 = vpack.c.bf16 %v218_v34, %v217_v32 }
   0xa   :  { %617 = vmatpush3.bf16.msra.mxu0 %v616_v23  ;;  %v202_v39 = vld [vmem:[%s1188_s1 + $0xc8] sm:$0xff]  ;;  %v219_v41 = vld [vmem:[%s1188_s1 + $0x150] sm:$0xff]  ;;  %v624_v42 = vpack.c.bf16 %v184_v37, %v183_v36  ;;  %v220_v43 = vld [vmem:[%s1188_s1 + $0x158] sm:$0xff] }
   0xb   :  { %619 = vmatprep.subr.bf16.mxu0 %v618_v26  ;;  %v626_v44 = vpack.c.bf16 %v202_v39, %v201_v38  ;;  %v185_v45 = vld [vmem:[%s1188_s1 + $0x40] sm:$0xff]  ;;  %v186_v46 = vld [vmem:[%s1188_s1 + $0x48] sm:$0xff]  ;;  %v203_v49 = vld [vmem:[%s1188_s1 + $0xd0] sm:$0xff]  ;;  %v658_v54 = vpack.c.bf16 %v220_v43, %v219_v41 }
   0xc   :  { %650 = vmatpush1.bf16.msra.mxu1 %v649_v21  ;;  %v221_v47 = vld [vmem:[%s1188_s1 + $0x160] sm:$0xff]  ;;  %v222_v48 = vld [vmem:[%s1188_s1 + $0x168] sm:$0xff]  ;;  %v204_v50 = vld [vmem:[%s1188_s1 + $0xd8] sm:$0xff]  ;;  %v628_v55 = vpack.c.bf16 %v186_v46, %v185_v45 }
   0xd   :  { %651 = vmatprep.subr.bf16.mxu1 %v702_v0  ;;  %v15_v51 = vld [vmem:[%s1189_s0 + $0x8] sm:$0xff]  ;;  %v187_v56 = vld [vmem:[%s1188_s1 + $0x50] sm:$0xff]  ;;  %v188_v57 = vld [vmem:[%s1188_s1 + $0x58] sm:$0xff]  ;;  %v630_v60 = vpack.c.bf16 %v204_v50, %v203_v49  ;;  %v661_v5 = vpack.c.bf16 %v222_v48, %v221_v47 }
   0xe   :  { %621 = vmatpush3.bf16.msra.mxu0 %v620_v33  ;;  %v498_v52 = vld [vmem:[%s1189_s0 + $0xa8] sm:$0xff]  ;;  %v205_v58 = vld [vmem:[%s1188_s1 + $0xe0] sm:$0xff]  ;;  %v223_v6 = vld [vmem:[%s1188_s1 + $0x170] sm:$0xff]  ;;  %v632_v11 = vpack.c.bf16 %v188_v57, %v187_v56 }
   0xf   :  { %623 = vmatprep.subr.bf16.mxu0 %v622_v35  ;;  %v518_v53 = vld [vmem:[%s1189_s0 + $0x148] sm:$0xff]  ;;  %v56_v59 = vadd.f32 %v498_v52, %v15_v51  ;;  %v14_v62 = vld [vmem:[%s1189_s0] sm:$0xff]  ;;  %v224_v7 = vld [vmem:[%s1188_s1 + $0x178] sm:$0xff] }
  0x10   :  { %653 = vmatpush1.bf16.msra.mxu1 %v652_v31  ;;  %v538_v61 = vld [vmem:[%s1189_s0 + $0x1e8] sm:$0xff]  ;;  %v497_v63 = vld [vmem:[%s1189_s0 + $0xa0] sm:$0xff]  ;;  %v207_v20 = vld [vmem:[%s1188_s1 + $0xf0] sm:$0xff]  ;;  %v664_v34 = vpack.c.bf16 %v224_v7, %v223_v6 }
  0x11   :  { %654 = vmatprep.subr.bf16.mxu1 %v702_v0  ;;  %v206_v1 = vld [vmem:[%s1188_s1 + $0xe8] sm:$0xff]  ;;  %v97_v2 = vadd.f32 %v518_v53, %v56_v59  ;;  %v189_v8 = vld [vmem:[%s1188_s1 + $0x60] sm:$0xff]  ;;  %v55_v10 = vadd.f32 %v497_v63, %v14_v62  ;;  %v17_v22 = vld [vmem:[%s1189_s0 + $0x18] sm:$0xff] }
  0x12   :  { %625 = vmatpush3.bf16.msra.mxu0 %v624_v42  ;;  %v19_v3 = vld [vmem:[%s1189_s0 + $0x28] sm:$0xff]  ;;  %v517_v13 = vld [vmem:[%s1189_s0 + $0x140] sm:$0xff]  ;;  %v634_v19 = vpack.c.bf16 %v206_v1, %v205_v58  ;;  %v208_v23 = vld [vmem:[%s1188_s1 + $0xf8] sm:$0xff] }
  0x13   :  { %627 = vmatprep.subr.bf16.mxu0 %v626_v44  ;;  %v502_v4 = vld [vmem:[%s1189_s0 + $0xc8] sm:$0xff]  ;;  %v138_v12 = vadd.f32 %v538_v61, %v97_v2  ;;  %v18_v15 = vld [vmem:[%s1189_s0 + $0x20] sm:$0xff]  ;;  %v500_v25 = vld [vmem:[%s1189_s0 + $0xb8] sm:$0xff]  ;;  %v96_v29 = vadd.f32 %v517_v13, %v55_v10 }
  0x14   :  { %656 = vmatpush1.bf16.msra.mxu1 %v655_v40  ;;  %v190_v9 = vld [vmem:[%s1188_s1 + $0x68] sm:$0xff]  ;;  %v60_v14 = vadd.f32 %v502_v4, %v19_v3  ;;  %v501_v16 = vld [vmem:[%s1189_s0 + $0xc0] sm:$0xff]  ;;  %v520_v26 = vld [vmem:[%s1189_s0 + $0x158] sm:$0xff]  ;;  %v58_v33 = vadd.f32 %v500_v25, %v17_v22  ;;  %v638_v40 = vpack.c.bf16 %v208_v23, %v207_v20 }
  0x15   :  { %657 = vmatprep.subr.bf16.mxu1 %v702_v0  ;;  %v898_v17 = vld [vmem:[%s1188_s1 + $0x180] sm:$0xff]  ;;  %v903_v18 = vld [vmem:[%s1188_s1 + $0x188] sm:$0xff]  ;;  %v158_v24 = vmul.f32 0.25, %v138_v12  ;;  %v191_v27 = vld [vmem:[%s1188_s1 + $0x70] sm:$0xff]  ;;  %v59_v31 = vadd.f32 %v501_v16, %v18_v15  ;;  %v636_v35 = vpack.c.bf16 %v190_v9, %v189_v8 }
  0x16   :  { %629 = vmatpush3.bf16.msra.mxu0 %v628_v55  ;;  %v522_v21 = vld [vmem:[%s1189_s0 + $0x168] sm:$0xff]  ;;  %v192_v28 = vld [vmem:[%s1188_s1 + $0x78] sm:$0xff]  ;;  %v537_v30 = vld [vmem:[%s1189_s0 + $0x1e0] sm:$0xff]  ;;  %v99_v42 = vadd.f32 %v520_v26, %v58_v33  ;;  %v667_v46 = vpack.c.bf16 %v903_v18, %v898_v17 }
  0x17   :  { %631 = vmatprep.subr.bf16.mxu0 %v630_v60  ;;  %v521_v32 = vld [vmem:[%s1189_s0 + $0x160] sm:$0xff]  ;;  %v101_v36 = vadd.f32 %v522_v21, %v60_v14  ;;  %v540_v37 = vld [vmem:[%s1189_s0 + $0x1f8] sm:$0xff]  ;;  %v23_v38 = vld [vmem:[%s1189_s0 + $0x48] sm:$0xff]  ;;  %322 = vmatprep.mubr.f32.mxu0 %v158_v24  ;;  %v137_v48 = vadd.f32 %v537_v30, %v96_v29  ;;  %v640_v53 = vpack.c.bf16 %v192_v28, %v191_v27 }
  0x18   :  { %659 = vmatpush1.bf16.msra.mxu1 %v658_v54  ;;  %v506_v39 = vld [vmem:[%s1189_s0 + $0xe8] sm:$0xff]  ;;  %v22_v45 = vld [vmem:[%s1189_s0 + $0x40] sm:$0xff]  ;;  %v100_v49 = vadd.f32 %v521_v32, %v59_v31  ;;  %v140_v50 = vadd.f32 %v540_v37, %v99_v42  ;;  %v227_v52 = vld [vmem:[%s1188_s1 + $0x190] sm:$0xff] }
  0x19   :  { %660 = vmatprep.subr.bf16.mxu1 %v702_v0  ;;  %v542_v41 = vld [vmem:[%s1189_s0 + $0x208] sm:$0xff]  ;;  %v64_v43 = vadd.f32 %v506_v39, %v23_v38  ;;  %v505_v47 = vld [vmem:[%s1189_s0 + $0xe0] sm:$0xff]  ;;  %v228_v58 = vld [vmem:[%s1188_s1 + $0x198] sm:$0xff]  ;;  %v157_v3 = vmul.f32 0.25, %v137_v48 }
  0x1a   :  { %633 = vmatpush3.bf16.msra.mxu0 %v632_v11  ;;  %v526_v44 = vld [vmem:[%s1189_s0 + $0x188] sm:$0xff]  ;;  %v63_v51 = vadd.f32 %v505_v47, %v22_v45  ;;  %v142_v54 = vadd.f32 %v542_v41, %v101_v36  ;;  %v541_v55 = vld [vmem:[%s1189_s0 + $0x200] sm:$0xff]  ;;  %v160_v59 = vmul.f32 0.25, %v140_v50  ;;  %v16_v63 = vld [vmem:[%s1189_s0 + $0x10] sm:$0xff]  ;;  %v670_v10 = vpack.c.bf16 %v228_v58, %v227_v52 }
  0x1b   :  { %635 = vmatprep.subr.bf16.mxu0 %v634_v19  ;;  %v105_v56 = vadd.f32 %v526_v44, %v64_v43  ;;  %v525_v57 = vld [vmem:[%s1189_s0 + $0x180] sm:$0xff]  ;;  %v546_v60 = vld [vmem:[%s1189_s0 + $0x228] sm:$0xff]  ;;  %v141_v4 = vadd.f32 %v541_v55, %v100_v49  ;;  %v1015_v17 = vld [vmem:[%s1188_s1 + $0x1b0] sm:$0xff] }
  0x1c   :  { %662 = vmatpush1.bf16.msra.mxu1 %v661_v5  ;;  %v27_v61 = vld [vmem:[%s1189_s0 + $0x68] sm:$0xff]  ;;  %v981_v62 = vld [vmem:[%s1188_s1 + $0x1a0] sm:$0xff]  ;;  %558 = vmatprep.mubr.msk.f32.mxu1 %vm242_vm0, %v160_v59  ;;  %v499_v5 = vld [vmem:[%s1189_s0 + $0xb0] sm:$0xff]  ;;  %v104_v6 = vadd.f32 %v525_v57, %v63_v51  ;;  %v162_v12 = vmul.f32 0.25, %v142_v54 }
  0x1d   :  { %663 = vmatprep.subr.bf16.mxu1 %v702_v0  ;;  %v510_v1 = vld [vmem:[%s1189_s0 + $0x108] sm:$0xff]  ;;  %v26_v8 = vld [vmem:[%s1189_s0 + $0x60] sm:$0xff]  ;;  %v146_v13 = vadd.f32 %v546_v60, %v105_v56  ;;  %v1020_v18 = vld [vmem:[%s1188_s1 + $0x1b8] sm:$0xff]  ;;  %v57_v24 = vadd.f32 %v499_v5, %v16_v63  ;;  %v161_v29 = vmul.f32 0.25, %v141_v4 }
  0x1e   :  { %637 = vmatpush3.bf16.msra.mxu0 %v636_v35  ;;  %v530_v2 = vld [vmem:[%s1189_s0 + $0x1a8] sm:$0xff]  ;;  %v68_v7 = vadd.f32 %v510_v1, %v27_v61  ;;  %v509_v9 = vld [vmem:[%s1189_s0 + $0x100] sm:$0xff]  ;;  %v519_v19 = vld [vmem:[%s1189_s0 + $0x150] sm:$0xff]  ;;  %v676_v47 = vpack.c.bf16 %v1020_v18, %v1015_v17 }
  0x1f   :  { %639 = vmatprep.subr.bf16.mxu0 %v638_v40  ;;  %v230_v11 = vld [vmem:[%s1188_s1 + $0x1a8] sm:$0xff]  ;;  %v545_v14 = vld [vmem:[%s1189_s0 + $0x220] sm:$0xff]  ;;  %v67_v15 = vadd.f32 %v509_v9, %v26_v8  ;;  %v21_v20 = vld [vmem:[%s1189_s0 + $0x38] sm:$0xff]  ;;  %v166_v36 = vmul.f32 0.25, %v146_v13  ;;  %v98_v50 = vadd.f32 %v519_v19, %v57_v24 }
  0x20   :  { %665 = vmatpush1.bf16.msra.mxu1 %v664_v34  ;;  %v529_v16 = vld [vmem:[%s1189_s0 + $0x1a0] sm:$0xff]  ;;  %v504_v21 = vld [vmem:[%s1189_s0 + $0xd8] sm:$0xff]  ;;  %v109_v22 = vadd.f32 %v530_v2, %v68_v7  ;;  %v550_v23 = vld [vmem:[%s1189_s0 + $0x248] sm:$0xff]  ;;  %v673_v28 = vpack.c.bf16 %v230_v11, %v981_v62  ;;  %v145_v30 = vadd.f32 %v545_v14, %v104_v6 }
  0x21   :  { %666 = vmatprep.subr.bf16.mxu1 %v702_v0  ;;  %v20_v25 = vld [vmem:[%s1189_s0 + $0x30] sm:$0xff]  ;;  %v549_v27 = vld [vmem:[%s1189_s0 + $0x240] sm:$0xff]  ;;  %v524_v31 = vld [vmem:[%s1189_s0 + $0x178] sm:$0xff]  ;;  %v108_v32 = vadd.f32 %v529_v16, %v67_v15  ;;  %v62_v37 = vadd.f32 %v504_v21, %v21_v20 }
  0x22   :  { %641 = vmatpush3.bf16.msra.mxu0 %v640_v53  ;;  %v503_v26 = vld [vmem:[%s1189_s0 + $0xd0] sm:$0xff]  ;;  %v31_v33 = vld [vmem:[%s1189_s0 + $0x88] sm:$0xff]  ;;  %v150_v38 = vadd.f32 %v550_v23, %v109_v22  ;;  %v25_v39 = vld [vmem:[%s1189_s0 + $0x58] sm:$0xff]  ;;  %v165_v53 = vmul.f32 0.25, %v145_v30 }
  0x23   :  { %v514_v34 = vld [vmem:[%s1189_s0 + $0x128] sm:$0xff]  ;;  %v30_v41 = vld [vmem:[%s1189_s0 + $0x80] sm:$0xff]  ;;  %v508_v43 = vld [vmem:[%s1189_s0 + $0xf8] sm:$0xff]  ;;  %v61_v55 = vadd.f32 %v503_v26, %v20_v25  ;;  %v149_v57 = vadd.f32 %v549_v27, %v108_v32  ;;  %v103_v59 = vadd.f32 %v524_v31, %v62_v37 }
  0x24   :  { %668 = vmatpush1.bf16.msra.mxu1 %v667_v46  ;;  %v534_v35 = vld [vmem:[%s1189_s0 + $0x1c8] sm:$0xff]  ;;  %v72_v40 = vadd.f32 %v514_v34, %v31_v33  ;;  %v513_v42 = vld [vmem:[%s1189_s0 + $0x120] sm:$0xff]  ;;  %v539_v52 = vld [vmem:[%s1189_s0 + $0x1f0] sm:$0xff]  ;;  %v170_v60 = vmul.f32 0.25, %v150_v38  ;;  %v66_v61 = vadd.f32 %v508_v43, %v25_v39 }
  0x25   :  { %669 = vmatprep.subr.bf16.mxu1 %v702_v0  ;;  %323 = vmatmul.mubr.f32.vlgmr.msra.gmra.mrb[0].mxu0 %v157_v3  ;;  %v554_v44 = vld [vmem:[%s1189_s0 + $0x268] sm:$0xff]  ;;  %v71_v45 = vadd.f32 %v513_v42, %v30_v41  ;;  %v533_v46 = vld [vmem:[%s1189_s0 + $0x1c0] sm:$0xff]  ;;  %v544_v54 = vld [vmem:[%s1189_s0 + $0x218] sm:$0xff]  ;;  %v139_v7 = vadd.f32 %v539_v52, %v98_v50 }
  0x26   :  { %327 = vmatprep.mubr.f32.mxu0 %v162_v12  ;;  %v233_v48 = vld [vmem:[%s1188_s1 + $0x1c0] sm:$0xff]  ;;  %v234_v49 = vld [vmem:[%s1188_s1 + $0x1c8] sm:$0xff]  ;;  %v113_v51 = vadd.f32 %v534_v35, %v72_v40  ;;  %v523_v56 = vld [vmem:[%s1189_s0 + $0x170] sm:$0xff]  ;;  %v144_v14 = vadd.f32 %v544_v54, %v103_v59 }
  0x27   :  { %v112_v58 = vadd.f32 %v533_v46, %v71_v45  ;;  %v24_v62 = vld [vmem:[%s1189_s0 + $0x50] sm:$0xff]  ;;  %v553_v2 = vld [vmem:[%s1189_s0 + $0x260] sm:$0xff]  ;;  %v528_v3 = vld [vmem:[%s1189_s0 + $0x198] sm:$0xff]  ;;  %v679_v6 = vpack.c.bf16 %v234_v49, %v233_v48  ;;  %v102_v8 = vadd.f32 %v523_v56, %v61_v55  ;;  %v159_v24 = vmul.f32 0.25, %v139_v7 }
  0x28   :  { %671 = vmatpush1.bf16.msra.mxu1 %v670_v10  ;;  %v507_v63 = vld [vmem:[%s1189_s0 + $0xf0] sm:$0xff]  ;;  %v154_v1 = vadd.f32 %v554_v44, %v113_v51  ;;  %v29_v4 = vld [vmem:[%s1189_s0 + $0x78] sm:$0xff]  ;;  %v169_v10 = vmul.f32 0.25, %v149_v57  ;;  %v107_v15 = vadd.f32 %v528_v3, %v66_v61  ;;  %v557_v3 = vld [vmem:[%s1190_s2] ss:$0 sm:$0xff] }
  0x29   :  { %672 = vmatprep.subr.bf16.mxu1 %v702_v0  ;;  %328 = vmatmul.mubr.f32.gmra.mrb[2].mxu0 %v161_v29  ;;  %v512_v5 = vld [vmem:[%s1189_s0 + $0x118] sm:$0xff]  ;;  %v543_v9 = vld [vmem:[%s1189_s0 + $0x210] sm:$0xff]  ;;  %v65_v12 = vadd.f32 %v507_v63, %v24_v62  ;;  %v153_v13 = vadd.f32 %v553_v2, %v112_v58  ;;  %v164_v29 = vmul.f32 0.25, %v144_v14 }
  0x2a   :  { %332 = vmatprep.mubr.f32.mxu0 %v166_v36  ;;  %v548_v11 = vld [vmem:[%s1189_s0 + $0x238] sm:$0xff]  ;;  %v527_v16 = vld [vmem:[%s1189_s0 + $0x190] sm:$0xff]  ;;  %v174_v17 = vmul.f32 0.25, %v154_v1  ;;  %v70_v18 = vadd.f32 %v512_v5, %v29_v4  ;;  %v143_v25 = vadd.f32 %v543_v9, %v102_v8 }
  0x2b   :  { %v28_v19 = vld [vmem:[%s1189_s0 + $0x70] sm:$0xff]  ;;  %v532_v21 = vld [vmem:[%s1189_s0 + $0x1b8] sm:$0xff]  ;;  %v106_v26 = vadd.f32 %v527_v16, %v65_v12  ;;  %v173_v27 = vmul.f32 0.25, %v153_v13  ;;  %v148_v30 = vadd.f32 %v548_v11, %v107_v15 }
  0x2c   :  { %674 = vmatpush1.bf16.msra.mxu1 %v673_v28  ;;  %v511_v20 = vld [vmem:[%s1189_s0 + $0x110] sm:$0xff]  ;;  %v33_v22 = vld [vmem:[%s1189_s0 + $0x98] sm:$0xff]  ;;  %v111_v31 = vadd.f32 %v532_v21, %v70_v18  ;;  %v163_v38 = vmul.f32 0.25, %v143_v25 }
  0x2d   :  { %675 = vmatprep.subr.bf16.mxu1 %v702_v0  ;;  %333 = vmatmul.mubr.f32.gmra.mrb[4].mxu0 %v165_v53  ;;  %v516_v23 = vld [vmem:[%s1189_s0 + $0x138] sm:$0xff]  ;;  %v69_v28 = vadd.f32 %v511_v20, %v28_v19  ;;  %v531_v32 = vld [vmem:[%s1189_s0 + $0x1b0] sm:$0xff]  ;;  %v168_v42 = vmul.f32 0.25, %v148_v30 }
  0x2e   :  { %337 = vmatprep.mubr.f32.mxu0 %v170_v60  ;;  %v74_v33 = vadd.f32 %v516_v23, %v33_v22  ;;  %v32_v34 = vld [vmem:[%s1189_s0 + $0x90] sm:$0xff]  ;;  %v552_v36 = vld [vmem:[%s1189_s0 + $0x258] sm:$0xff] }
  0x2f   :  { %v515_v35 = vld [vmem:[%s1189_s0 + $0x130] sm:$0xff]  ;;  %v536_v37 = vld [vmem:[%s1189_s0 + $0x1d8] sm:$0xff]  ;;  %v110_v40 = vadd.f32 %v531_v32, %v69_v28  ;;  %v152_v43 = vadd.f32 %v552_v36, %v111_v31 }
  0x30   :  { %677 = vmatpush1.bf16.msra.mxu1 %v676_v47  ;;  %v73_v41 = vadd.f32 %v515_v35, %v32_v34  ;;  %v551_v44 = vld [vmem:[%s1189_s0 + $0x250] sm:$0xff]  ;;  %v115_v45 = vadd.f32 %v536_v37, %v74_v33  ;;  %v556_v47 = vld [vmem:[%s1189_s0 + $0x278] sm:$0xff] }
  0x31   :  { %678 = vmatprep.subr.bf16.mxu1 %v702_v0  ;;  %338 = vmatmul.mubr.f32.gmra.mrb[6].mxu0 %v169_v10  ;;  %v547_v0 = vld [vmem:[%s1189_s0 + $0x230] sm:$0xff]  ;;  %v151_v49 = vadd.f32 %v551_v44, %v110_v40  ;;  %v172_v51 = vmul.f32 0.25, %v152_v43 }
  0x32   :  { %342 = vmatprep.mubr.f32.mxu0 %v174_v17  ;;  %v147_v39 = vadd.f32 %v547_v0, %v106_v26  ;;  %v535_v46 = vld [vmem:[%s1189_s0 + $0x1d0] sm:$0xff]  ;;  %v156_v52 = vadd.f32 %v556_v47, %v115_v45 }
  0x33   :  { %v114_v50 = vadd.f32 %v535_v46, %v73_v41  ;;  %v555_v53 = vld [vmem:[%s1189_s0 + $0x270] sm:$0xff]  ;;  %v171_v54 = vmul.f32 0.25, %v151_v49 }
  0x34   :  { %680 = vmatpush1.bf16.msra.mxu1 %v679_v6  ;;  %v167_v48 = vmul.f32 0.25, %v147_v39  ;;  %v176_v56 = vmul.f32 0.25, %v156_v52 }
  0x35   :  { %343 = vmatmul.mubr.f32.gmra.mrb[8].mxu0 %v173_v27  ;;  %v155_v55 = vadd.f32 %v555_v53, %v114_v50 }
  0x37   :  { %413 = vmatmul.mubr.f32.vlgmr.msra.gmra.mrb[0].mxu1 %v159_v24  ;;  %v175_v57 = vmul.f32 0.25, %v155_v55 }
  0x38   :  { %559 = vmatprep.mubr.msk.f32.mxu1 %vm242_vm0, %v164_v29 }
  0x3b   :  { %418 = vmatmul.mubr.f32.gmra.mrb[2].mxu1 %v163_v38 }
  0x3c   :  { %560 = vmatprep.mubr.msk.f32.mxu1 %vm242_vm0, %v168_v42 }
  0x3f   :  { %423 = vmatmul.mubr.f32.gmra.mrb[4].mxu1 %v167_v48 }
  0x40   :  { %561 = vmatprep.mubr.msk.f32.mxu1 %vm242_vm0, %v172_v51 }
  0x43   :  { %428 = vmatmul.mubr.f32.gmra.mrb[6].mxu1 %v171_v54 }
  0x44   :  { %562 = vmatprep.mubr.msk.f32.mxu1 %vm242_vm0, %v176_v56 }
  0x47   :  { %433 = vmatmul.mubr.f32.gmra.mrb[8].mxu1 %v175_v57 }
  0xf8   :  { %v595_v58 = vpop.f32.mrb[0].mxu0 }
  0xf9   :  { %v596_v59 = vpop.f32.mrb[1].mxu0 }
  0xfa   :  { %v597_v60 = vadd.f32 %v596_v59, %v595_v58 }
  0xfc   :  { %v598_v61 = vpop.f32.mrb[2].mxu0  ;;  %v325_v6 = vadd.f32 %v597_v60, %v557_v3 }
  0xfd   :  { %v599_v62 = vpop.f32.mrb[3].mxu0 }
  0xfe   :  { %v600_v63 = vadd.f32 %v599_v62, %v598_v61 }
 0x100   :  { %v601_v1 = vpop.f32.mrb[4].mxu0  ;;  %v330_v13 = vadd.f32 %v600_v63, %v557_v3 }
 0x101   :  { %v602_v2 = vpop.f32.mrb[5].mxu0 }
 0x102   :  { %v603_v4 = vadd.f32 %v602_v2, %v601_v1 }
 0x104   :  { %v604_v5 = vpop.f32.mrb[6].mxu0  ;;  %v335_v19 = vadd.f32 %v603_v4, %v557_v3 }
 0x105   :  { %v605_v7 = vpop.f32.mrb[7].mxu0 }
 0x106   :  { %v606_v8 = vadd.f32 %v605_v7, %v604_v5 }
 0x108   :  { %v607_v10 = vpop.f32.mrb[8].mxu0  ;;  %v340_v23 = vadd.f32 %v606_v8, %v557_v3 }
 0x109   :  { %v608_v14 = vpop.f32.mrb[9].mxu0 }
 0x10a   :  { %v414_v9 = vpop.f32.mrb[0].mxu1  ;;  %v609_v15 = vadd.f32 %v608_v14, %v607_v10 }
 0x10b   :  { %v415_v11 = vadd.f32 %v414_v9, %v325_v6  ;;  %v416_v12 = vpop.f32.mrb[1].mxu1 }
 0x10c   :  { %v345_v0 = vadd.f32 %v609_v15, %v557_v3 }
 0x10d   :  { %438 = vmax.xlane.f32.xlu0 %v415_v11 }
 0x10e   :  { %v419_v16 = vpop.f32.mrb[2].mxu1 }
 0x10f   :  { %v420_v17 = vadd.f32 %v419_v16, %v330_v13  ;;  %v421_v18 = vpop.f32.mrb[3].mxu1 }
 0x111   :  { %440 = vmax.xlane.f32.xlu0 %v420_v17 }
 0x112   :  { %v424_v20 = vpop.f32.mrb[4].mxu1 }
 0x113   :  { %v425_v21 = vadd.f32 %v424_v20, %v335_v19  ;;  %v426_v22 = vpop.f32.mrb[5].mxu1 }
 0x115   :  { %442 = vmax.xlane.f32.xlu1 %v425_v21 }
 0x116   :  { %v429_v24 = vpop.f32.mrb[6].mxu1 }
 0x117   :  { %v430_v25 = vadd.f32 %v429_v24, %v340_v23  ;;  %v431_v26 = vpop.f32.mrb[7].mxu1 }
 0x119   :  { %444 = vmax.xlane.f32.xlu1 %v430_v25 }
 0x11a   :  { %v434_v27 = vpop.f32.mrb[8].mxu1 }
 0x11b   :  { %v435_v28 = vadd.f32 %v434_v27, %v345_v0  ;;  %v436_v29 = vpop.f32.mrb[9].mxu1 }
 0x11d   :  { %446 = vmax.xlane.f32.xlu0 %v435_v28 }
 0x19a   :  { %v439_v30 = vpop.xlane.xlu0 %438 }
 0x19b   :  { %v448_v31 = vsub.f32 %v415_v11, %v439_v30 }
 0x19d   :  { %v453_v32 = vmul.f32 1.442695, %v448_v31 }
 0x19e   :  { %v441_v33 = vpop.xlane.xlu0 %440 }
 0x19f   :  { %682 = vpow2.f32 %v453_v32  ;;  %v449_v34 = vsub.f32 %v420_v17, %v441_v33 }
 0x1a1   :  { %v455_v35 = vmul.f32 1.442695, %v449_v34 }
 0x1a2   :  { %v443_v36 = vpop.xlane.xlu1 %442 }
 0x1a3   :  { %684 = vpow2.f32 %v455_v35  ;;  %v450_v37 = vsub.f32 %v425_v21, %v443_v36 }
 0x1a5   :  { %v457_v38 = vmul.f32 1.442695, %v450_v37 }
 0x1a6   :  { %v445_v39 = vpop.xlane.xlu1 %444 }
 0x1a7   :  { %686 = vpow2.f32 %v457_v38  ;;  %v451_v40 = vsub.f32 %v430_v25, %v445_v39 }
 0x1a9   :  { %v683_v41 = vpop.eup %682  ;;  %v459_v42 = vmul.f32 1.442695, %v451_v40 }
 0x1aa   :  { %463 = vadd.xlane.f32.xlu1 %v683_v41  ;;  %v447_v43 = vpop.xlane.xlu0 %446 }
 0x1ab   :  { %688 = vpow2.f32 %v459_v42  ;;  %v452_v44 = vsub.f32 %v435_v28, %v447_v43 }
 0x1ad   :  { %v685_v45 = vpop.eup %684  ;;  %v461_v46 = vmul.f32 1.442695, %v452_v44 }
 0x1ae   :  { %465 = vadd.xlane.f32.xlu0 %v685_v45 }
 0x1af   :  { %690 = vpow2.f32 %v461_v46 }
 0x1b1   :  { %v687_v47 = vpop.eup %686 }
 0x1b2   :  { %467 = vadd.xlane.f32.xlu1 %v687_v47 }
 0x1b5   :  { %v689_v48 = vpop.eup %688 }
 0x1b6   :  { %469 = vadd.xlane.f32.xlu0 %v689_v48 }
 0x1b9   :  { %v691_v49 = vpop.eup %690 }
 0x1ba   :  { %471 = vadd.xlane.f32.xlu1 %v691_v49 }
 0x237   :  { %v464_v50 = vpop.xlane.xlu1 %463 }
 0x238   :  { %692 = vlog2.f32 %v464_v50 }
 0x23b   :  { %v466_v51 = vpop.xlane.xlu0 %465 }
 0x23c   :  { %694 = vlog2.f32 %v466_v51 }
 0x23f   :  { %v468_v52 = vpop.xlane.xlu1 %467 }
 0x240   :  { %696 = vlog2.f32 %v468_v52 }
 0x242   :  { %v693_v53 = vpop.eup %692 }
 0x243   :  { %v474_v54 = vmul.f32 0.6931472, %v693_v53  ;;  %v470_v55 = vpop.xlane.xlu0 %469 }
 0x244   :  { %698 = vlog2.f32 %v470_v55 }
 0x245   :  { %v483_v56 = vsub.f32 %v448_v31, %v474_v54 }
 0x246   :  { %v695_v57 = vpop.eup %694 }
 0x247   :  { %488 = vst [vmem:[%s1191_s3] sm:$0xff] %v483_v56  ;;  %v476_v58 = vmul.f32 0.6931472, %v695_v57  ;;  %v472_v59 = vpop.xlane.xlu1 %471 }
 0x248   :  { %700 = vlog2.f32 %v472_v59 }
 0x249   :  { %v484_v60 = vsub.f32 %v449_v34, %v476_v58 }
 0x24a   :  { %v697_v61 = vpop.eup %696 }
 0x24b   :  { %489 = vst [vmem:[%s1191_s3 + $0x8] sm:$0xff] %v484_v60  ;;  %v478_v62 = vmul.f32 0.6931472, %v697_v61 }
 0x24d   :  { %v485_v63 = vsub.f32 %v450_v37, %v478_v62 }
 0x24e   :  { %v699_v1 = vpop.eup %698 }
 0x24f   :  { %490 = vst [vmem:[%s1191_s3 + $0x10] sm:$0xff] %v485_v63  ;;  %v480_v2 = vmul.f32 0.6931472, %v699_v1 }
 0x251   :  { %v486_v3 = vsub.f32 %v451_v40, %v480_v2 }
 0x252   :  { %v701_v4 = vpop.eup %700 }
 0x253   :  { %491 = vst [vmem:[%s1191_s3 + $0x18] sm:$0xff] %v486_v3  ;;  %v482_v5 = vmul.f32 0.6931472, %v701_v4 }
 0x255   :  { %v487_v6 = vsub.f32 %v452_v44, %v482_v5 }
 0x257   :  { %492 = vst [vmem:[%s1191_s3 + $0x20] sm:$0xff] %v487_v6 }

</bundles_post_ra>
